<compile_context>
chip_gen: v6e
topology: v6e:2x2x1
jax: 0.10.0
libtpu: 0.0.40
codegen_flags: <defaults>
</compile_context>

<pallas_src>
import functools
import math

import jax
import jax.numpy as jnp
from jax.experimental import pallas as pl
from jax.experimental.pallas import tpu as pltpu


# ----------------------------- Pallas kernel --------------------------------

def _layer_kernel(x_ref, wq_ref, wk_ref, wv_ref, wo_ref, w1_ref, w2_ref,
                  b2_ref, o_ref, *, heads, dim_head, tq):
    f32, bf16 = jnp.float32, jnp.bfloat16
    n, d = x_ref.shape
    inner = heads * dim_head

    # ------------------------------ inputs ----------------------------------
    # Full (N, D) sequence block is resident (grid-invariant across the
    # query-tile axis); the query/residual tile is sliced from it in VMEM.
    q_start = pl.multiple_of(pl.program_id(1) * tq, tq)
    xq = x_ref[pl.ds(q_start, tq), :]                 # (TQ, D) f32, residual
    x_kv = x_ref[...].astype(bf16)                    # (N,  D) bf16, K/V src
    xq_b = xq.astype(bf16)

    # --------------------------- projections --------------------------------
    # Lane-dense fused-head projections: (seq, D) @ (D, H*dh), full MXU width.
    q = jnp.dot(xq_b, wq_ref[...], preferred_element_type=f32)   # (TQ, H*dh)
    k = jnp.dot(x_kv, wk_ref[...], preferred_element_type=f32)   # (N,  H*dh)
    v = jnp.dot(x_kv, wv_ref[...], preferred_element_type=f32)   # (N,  H*dh)

    # Split heads only for the (inherently per-head) score / PV matmuls.
    q3 = jnp.swapaxes(q.astype(bf16).reshape(tq, heads, dim_head), 0, 1)  # (H,TQ,dh)
    k3 = jnp.swapaxes(k.astype(bf16).reshape(n, heads, dim_head), 0, 1)   # (H,N, dh)
    v3 = jnp.swapaxes(v.astype(bf16).reshape(n, heads, dim_head), 0, 1)   # (H,N, dh)

    # ----------------------------- attention --------------------------------
    # softmax scale dim_head**-0.5 is folded into wq at init time.
    dots = jnp.einsum("hqd,hmd->hqm", q3, k3,
                      preferred_element_type=f32)                 # (H, TQ, N)
    m = jnp.max(dots, axis=-1, keepdims=True)
    e = jnp.exp(dots - m)                                         # unnormalized
    # Deferred normalization: divide the small (H, TQ, dh) context, not the
    # (H, TQ, N) probabilities; reciprocal uses the otherwise-idle EUP slot.
    inv = pl.reciprocal(jnp.sum(e, axis=-1, keepdims=True), approx=True)  # (H,TQ,1)

    ctx = jnp.einsum("hqm,hmd->hqd", e.astype(bf16), v3,
                     preferred_element_type=f32)                  # (H, TQ, dh)
    ctx = ctx * inv
    # One relayout: heads back into the lane dim -> single fused out-proj.
    ctx2 = jnp.swapaxes(ctx.astype(bf16), 0, 1).reshape(tq, inner)  # (TQ, H*dh)
    attn_out = jnp.dot(ctx2, wo_ref[...], preferred_element_type=f32)  # (TQ, D)
    x1 = attn_out + xq                                            # residual (f32)

    # --------------------------- feed-forward -------------------------------
    h1 = jnp.dot(x1.astype(bf16), w1_ref[...],
                 preferred_element_type=f32)                      # (TQ, mlp)
    # exact GELU (PyTorch nn.GELU default): 0.5*x*(1+erf(x/sqrt(2)))
    g = 0.5 * h1 * (1.0 + jax.lax.erf(h1 * (1.0 / math.sqrt(2.0))))
    y = jnp.dot(g.astype(bf16), w2_ref[...],
                preferred_element_type=f32) + b2_ref[...]         # (TQ, D)

    o_ref[...] = y + x1                                           # FF residual


# ----------------------------- wrapper ---------------------------------------

def _vmem_limit_bytes():
    """Generation-aware VMEM budget: ~75% of physical (96 MiB on v5e/v6e's
    128 MiB, 48 MiB on v7x's 64 MiB/TC). Conservative fallback otherwise."""
    try:
        cap = int(pltpu.get_tpu_info().vmem_capacity_bytes)
        return int(cap * 3 // 4)
    except Exception:
        return 32 * 1024 * 1024


def _choose_tq(batch, seq, tq):
    tq = min(tq, seq)
    # Query tile must divide N and be a multiple of 8 (sublane-legal), else
    # fall back to the whole sequence (block == full dim is always legal).
    if seq % tq != 0 or tq % 8 != 0:
        tq = seq
    # v7x has 2 TensorCores: keep >= 2 independent grid points when batch == 1.
    if batch == 1 and tq == seq and seq % 16 == 0:
        tq = seq // 2
    return tq


def transformer_layer(x, layer, *, heads, dim_head, tq=256):
    # tq=256 default matches the 256x256 MXU of v6e/v7x; falls back for small
    # / odd N. v5e (128-wide MXU) loses nothing from the larger tile.
    B, N, D = x.shape
    assert D % 128 == 0, "D must be a multiple of 128 for lane-dense stores"
    inner = heads * dim_head
    mlp = layer["w1"].shape[1]
    tq = _choose_tq(B, N, tq)
    n_q = N // tq

    kernel = functools.partial(_layer_kernel, heads=heads, dim_head=dim_head,
                               tq=tq)
    inv_map = lambda b, qi: (0, 0)          # grid-invariant weights

    return pl.pallas_call(
        kernel,
        out_shape=jax.ShapeDtypeStruct((B, N, D), jnp.float32),
        grid=(B, n_q),
        in_specs=[
            # single activation input: full (N, D) sequence per batch element,
            # grid-invariant across the query-tile axis (stays resident);
            # query + residual rows are sliced out of it inside the kernel.
            pl.BlockSpec((pl.Squeezed(), N, D), lambda b, qi: (b, 0, 0)),
            pl.BlockSpec((D, inner), inv_map),   # wq (softmax scale folded in)
            pl.BlockSpec((D, inner), inv_map),   # wk
            pl.BlockSpec((D, inner), inv_map),   # wv
            pl.BlockSpec((inner, D), inv_map),   # wout
            pl.BlockSpec((D, mlp), inv_map),     # ff w1
            pl.BlockSpec((mlp, D), inv_map),     # ff w2
            pl.BlockSpec((1, D), inv_map),       # ff b2
        ],
        out_specs=pl.BlockSpec((pl.Squeezed(), tq, D), lambda b, qi: (b, qi, 0)),
        compiler_params=pltpu.CompilerParams(
            dimension_semantics=("parallel", "parallel"),
            vmem_limit_bytes=_vmem_limit_bytes(),
        ),
    )(x, layer["wq"], layer["wk"], layer["wv"], layer["wout"],
      layer["w1"], layer["w2"], layer["b2"])


def transformer_forward(x, params, *, heads, dim_head):
    for layer in params:
        x = transformer_layer(x, layer, heads=heads, dim_head=dim_head)
    return x


# ----------------------------- reference (pure JAX) --------------------------
# Same math as the PyTorch module (fixup=False, augmented=False); matmul
# inputs are cast to bf16 (f32 accumulation) to mirror the kernel's MXU
# precision; softmax is exact. The dim_head**-0.5 scale is already folded
# into wq (done in f32 at init), which is mathematically identical to
# PyTorch's `dots * scale`.

def transformer_reference(x, params, *, heads, dim_head):
    f32, bf16 = jnp.float32, jnp.bfloat16
    for layer in params:
        B, N, D = x.shape
        xb = x.astype(bf16)
        q = jnp.einsum("bnd,de->bne", xb, layer["wq"],
                       preferred_element_type=f32).reshape(B, N, heads, dim_head)
        k = jnp.einsum("bnd,de->bne", xb, layer["wk"],
                       preferred_element_type=f32).reshape(B, N, heads, dim_head)
        v = jnp.einsum("bnd,de->bne", xb, layer["wv"],
                       preferred_element_type=f32).reshape(B, N, heads, dim_head)
        dots = jnp.einsum("bqhd,bmhd->bhqm", q.astype(bf16), k.astype(bf16),
                          preferred_element_type=f32)
        attn = jax.nn.softmax(dots, axis=-1)
        ctx = jnp.einsum("bhqm,bmhd->bqhd", attn.astype(bf16), v.astype(bf16),
                         preferred_element_type=f32)
        ctx = ctx.reshape(B, N, heads * dim_head)
        y = jnp.einsum("bne,ed->bnd", ctx.astype(bf16), layer["wout"],
                       preferred_element_type=f32)
        x = y + x
        h = jnp.einsum("bnd,dh->bnh", x.astype(bf16), layer["w1"],
                       preferred_element_type=f32)
        g = 0.5 * h * (1.0 + jax.lax.erf(h / math.sqrt(2.0)))
        x = jnp.einsum("bnh,hd->bnd", g.astype(bf16), layer["w2"],
                       preferred_element_type=f32) + layer["b2"] + x
    return x


# ----------------------------- param init ------------------------------------

def init_params(key, *, dim, depth, heads, dim_head, mlp_dim):
    inner = heads * dim_head
    scale = dim_head ** -0.5
    params = []
    for _ in range(depth):
        key, kq, kk, kv, ko, k1, k2, kb = jax.random.split(key, 8)
        wq_f32 = 0.05 * jax.random.normal(kq, (dim, inner), jnp.float32)
        params.append({
            # Attention.to_qkv (dim -> 3*inner, no bias), head-fused lane-dense
            # layout; softmax scale folded into wq IN F32 before the bf16 cast.
            "wq":   (wq_f32 * scale).astype(jnp.bfloat16),
            "wk":   (0.05 * jax.random.normal(kk, (dim, inner))).astype(jnp.bfloat16),
            "wv":   (0.05 * jax.random.normal(kv, (dim, inner))).astype(jnp.bfloat16),
            # Attention.to_out (inner -> dim, no bias)
            "wout": (0.05 * jax.random.normal(ko, (inner, dim))).astype(jnp.bfloat16),
            # FeedForward: Linear(dim, mlp, bias=False), GELU, Linear(mlp, dim)
            "w1":   (0.05 * jax.random.normal(k1, (dim, mlp_dim))).astype(jnp.bfloat16),
            "w2":   (0.05 * jax.random.normal(k2, (mlp_dim, dim))).astype(jnp.bfloat16),
            "b2":   0.05 * jax.random.normal(kb, (1, dim), jnp.float32),
        })
    return params


# ----------------------------- main -------------------------------------------

if __name__ == "__main__":
    # Small but MXU/layout-friendly config (D and N multiples of 128,
    # heads*dim_head = 128 so all projections are lane-dense).
    B, N = 2, 128
    dim, depth, heads, dim_head, mlp_dim = 128, 2, 4, 32, 256

    key = jax.random.PRNGKey(0)
    kx, kp = jax.random.split(key)
    x = jax.random.normal(kx, (B, N, dim), jnp.float32)
    params = init_params(kp, dim=dim, depth=depth, heads=heads,
                         dim_head=dim_head, mlp_dim=mlp_dim)

    out = transformer_forward(x, params, heads=heads, dim_head=dim_head)
    out = jax.block_until_ready(out)

    ref = transformer_reference(x, params, heads=heads, dim_head=dim_head)
    assert out.shape == (B, N, dim)
    max_err = float(jnp.max(jnp.abs(out - ref)))
    assert jnp.allclose(out, ref, atol=1e-2, rtol=1e-2), \
        f"mismatch vs reference (max abs err {max_err})"

    print("KERNEL_OK")
</pallas_src>

<mosaic_0001>
module attributes {stable_mosaic.version = 11 : i64} {
  func.func @_layer_kernel(%arg0: i32, %arg1: i32, %arg2: memref<1x128x128xf32, #tpu.memory_space<vmem>>, %arg3: memref<128x128xbf16, #tpu.memory_space<vmem>>, %arg4: memref<128x128xbf16, #tpu.memory_space<vmem>>, %arg5: memref<128x128xbf16, #tpu.memory_space<vmem>>, %arg6: memref<128x128xbf16, #tpu.memory_space<vmem>>, %arg7: memref<128x256xbf16, #tpu.memory_space<vmem>>, %arg8: memref<256x128xbf16, #tpu.memory_space<vmem>>, %arg9: memref<1x128xf32, #tpu.memory_space<vmem>>, %arg10: memref<1x128x128xf32, #tpu.memory_space<vmem>>) attributes {dimension_semantics = [#tpu.dimension_semantics<parallel>, #tpu.dimension_semantics<parallel>], iteration_bounds = array<i64: 2, 1>, scalar_prefetch = 0 : i64, scratch_operands = 0 : i64, tpu.core_type = #tpu.core_type<tc>, window_params = [{transform_indices = @transform_0, window_bounds = array<i64: 1, 128, 128>}, {pipeline_mode = #tpu.pipeline_mode<synchronous>, transform_indices = @transform_1, window_bounds = array<i64: 128, 128>}, {pipeline_mode = #tpu.pipeline_mode<synchronous>, transform_indices = @transform_2, window_bounds = array<i64: 128, 128>}, {pipeline_mode = #tpu.pipeline_mode<synchronous>, transform_indices = @transform_3, window_bounds = array<i64: 128, 128>}, {pipeline_mode = #tpu.pipeline_mode<synchronous>, transform_indices = @transform_4, window_bounds = array<i64: 128, 128>}, {pipeline_mode = #tpu.pipeline_mode<synchronous>, transform_indices = @transform_5, window_bounds = array<i64: 128, 256>}, {pipeline_mode = #tpu.pipeline_mode<synchronous>, transform_indices = @transform_6, window_bounds = array<i64: 256, 128>}, {pipeline_mode = #tpu.pipeline_mode<synchronous>, transform_indices = @transform_7, window_bounds = array<i64: 1, 128>}, {transform_indices = @transform_8, window_bounds = array<i64: 1, 128, 128>}]} {
    %c128_i32 = arith.constant 128 : i32
    %0 = arith.muli %arg1, %c128_i32 : i32
    %1 = tpu.assume_multiple %0, 128 : i32
    %c0 = arith.constant 0 : index
    %2 = arith.index_cast %1 : i32 to index
    %c0_0 = arith.constant 0 : index
    %3 = vector.load %arg2[%c0, %2, %c0_0] : memref<1x128x128xf32, #tpu.memory_space<vmem>>, vector<1x128x128xf32>
    %4 = vector.shape_cast %3 : vector<1x128x128xf32> to vector<128x128xf32>
    %c0_1 = arith.constant 0 : index
    %c0_2 = arith.constant 0 : index
    %c0_3 = arith.constant 0 : index
    %5 = vector.load %arg2[%c0_1, %c0_2, %c0_3] : memref<1x128x128xf32, #tpu.memory_space<vmem>>, vector<1x128x128xf32>
    %6 = vector.shape_cast %5 : vector<1x128x128xf32> to vector<128x128xf32>
    %7 = arith.truncf %6 : vector<128x128xf32> to vector<128x128xbf16>
    %8 = arith.truncf %4 : vector<128x128xf32> to vector<128x128xbf16>
    %c0_4 = arith.constant 0 : index
    %c0_5 = arith.constant 0 : index
    %9 = vector.load %arg3[%c0_4, %c0_5] : memref<128x128xbf16, #tpu.memory_space<vmem>>, vector<128x128xbf16>
    %cst = arith.constant dense<0.000000e+00> : vector<128x128xf32>
    %10 = tpu.matmul %8, %9, %cst {dimension_numbers = #tpu.dot_dimension_numbers<[1], [0], [0], [1], [0, 0, 1, 1], [], []>} : vector<128x128xbf16>, vector<128x128xbf16>, vector<128x128xf32> -> vector<128x128xf32>
    %c0_6 = arith.constant 0 : index
    %c0_7 = arith.constant 0 : index
    %11 = vector.load %arg4[%c0_6, %c0_7] : memref<128x128xbf16, #tpu.memory_space<vmem>>, vector<128x128xbf16>
    %cst_8 = arith.constant dense<0.000000e+00> : vector<128x128xf32>
    %12 = tpu.matmul %7, %11, %cst_8 {dimension_numbers = #tpu.dot_dimension_numbers<[1], [0], [0], [1], [0, 0, 1, 1], [], []>} : vector<128x128xbf16>, vector<128x128xbf16>, vector<128x128xf32> -> vector<128x128xf32>
    %c0_9 = arith.constant 0 : index
    %c0_10 = arith.constant 0 : index
    %13 = vector.load %arg5[%c0_9, %c0_10] : memref<128x128xbf16, #tpu.memory_space<vmem>>, vector<128x128xbf16>
    %cst_11 = arith.constant dense<0.000000e+00> : vector<128x128xf32>
    %14 = tpu.matmul %7, %13, %cst_11 {dimension_numbers = #tpu.dot_dimension_numbers<[1], [0], [0], [1], [0, 0, 1, 1], [], []>} : vector<128x128xbf16>, vector<128x128xbf16>, vector<128x128xf32> -> vector<128x128xf32>
    %15 = arith.truncf %10 : vector<128x128xf32> to vector<128x128xbf16>
    %16 = vector.shape_cast %15 : vector<128x128xbf16> to vector<128x4x32xbf16>
    %17 = tpu.transpose %16, [1, 0, 2] : vector<128x4x32xbf16> -> vector<4x128x32xbf16>
    %18 = arith.truncf %12 : vector<128x128xf32> to vector<128x128xbf16>
    %19 = vector.shape_cast %18 : vector<128x128xbf16> to vector<128x4x32xbf16>
    %20 = tpu.transpose %19, [1, 0, 2] : vector<128x4x32xbf16> -> vector<4x128x32xbf16>
    %21 = arith.truncf %14 : vector<128x128xf32> to vector<128x128xbf16>
    %22 = vector.shape_cast %21 : vector<128x128xbf16> to vector<128x4x32xbf16>
    %23 = tpu.transpose %22, [1, 0, 2] : vector<128x4x32xbf16> -> vector<4x128x32xbf16>
    "tpu.trace_start"() <{level = 10 : i32, message = "hqd,hmd->hqm"}> : () -> ()
    %cst_12 = arith.constant dense<0.000000e+00> : vector<4x128x128xf32>
    %24 = tpu.matmul %17, %20, %cst_12 {dimension_numbers = #tpu.dot_dimension_numbers<[2], [2], [1], [1], [0, 0, 0, 1, 1, 1], [0], [0]>} : vector<4x128x32xbf16>, vector<4x128x32xbf16>, vector<4x128x128xf32> -> vector<4x128x128xf32>
    "tpu.trace_stop"() : () -> ()
    %cst_13 = arith.constant dense<0xFF800000> : vector<4x128xf32>
    %25 = vector.multi_reduction <maximumf>, %24, %cst_13 [2] : vector<4x128x128xf32> to vector<4x128xf32>
    %26 = vector.shape_cast %25 : vector<4x128xf32> to vector<4x128x1xf32>
    %27 = vector.broadcast %26 : vector<4x128x1xf32> to vector<4x128x128xf32>
    %28 = arith.subf %24, %27 : vector<4x128x128xf32>
    %29 = math.exp %28 : vector<4x128x128xf32>
    %cst_14 = arith.constant dense<0.000000e+00> : vector<4x128xf32>
    %30 = vector.multi_reduction <add>, %29, %cst_14 [2] : vector<4x128x128xf32> to vector<4x128xf32>
    %31 = vector.shape_cast %30 : vector<4x128xf32> to vector<4x128x1xf32>
    %32 = tpu.reciprocal %31 {approx = true} : vector<4x128x1xf32> -> vector<4x128x1xf32>
    %33 = arith.truncf %29 : vector<4x128x128xf32> to vector<4x128x128xbf16>
    "tpu.trace_start"() <{level = 10 : i32, message = "hqm,hmd->hqd"}> : () -> ()
    %cst_15 = arith.constant dense<0.000000e+00> : vector<4x128x32xf32>
    %34 = tpu.matmul %33, %23, %cst_15 {dimension_numbers = #tpu.dot_dimension_numbers<[2], [1], [1], [2], [0, 0, 0, 1, 1, 2], [0], [0]>} : vector<4x128x128xbf16>, vector<4x128x32xbf16>, vector<4x128x32xf32> -> vector<4x128x32xf32>
    "tpu.trace_stop"() : () -> ()
    %35 = vector.broadcast %32 : vector<4x128x1xf32> to vector<4x128x32xf32>
    %36 = arith.mulf %34, %35 : vector<4x128x32xf32>
    %37 = arith.truncf %36 : vector<4x128x32xf32> to vector<4x128x32xbf16>
    %38 = tpu.transpose %37, [1, 0, 2] : vector<4x128x32xbf16> -> vector<128x4x32xbf16>
    %39 = vector.shape_cast %38 : vector<128x4x32xbf16> to vector<128x128xbf16>
    %c0_16 = arith.constant 0 : index
    %c0_17 = arith.constant 0 : index
    %40 = vector.load %arg6[%c0_16, %c0_17] : memref<128x128xbf16, #tpu.memory_space<vmem>>, vector<128x128xbf16>
    %cst_18 = arith.constant dense<0.000000e+00> : vector<128x128xf32>
    %41 = tpu.matmul %39, %40, %cst_18 {dimension_numbers = #tpu.dot_dimension_numbers<[1], [0], [0], [1], [0, 0, 1, 1], [], []>} : vector<128x128xbf16>, vector<128x128xbf16>, vector<128x128xf32> -> vector<128x128xf32>
    %42 = arith.addf %41, %4 : vector<128x128xf32>
    %43 = arith.truncf %42 : vector<128x128xf32> to vector<128x128xbf16>
    %c0_19 = arith.constant 0 : index
    %c0_20 = arith.constant 0 : index
    %44 = vector.load %arg7[%c0_19, %c0_20] : memref<128x256xbf16, #tpu.memory_space<vmem>>, vector<128x256xbf16>
    %cst_21 = arith.constant dense<0.000000e+00> : vector<128x256xf32>
    %45 = tpu.matmul %43, %44, %cst_21 {dimension_numbers = #tpu.dot_dimension_numbers<[1], [0], [0], [1], [0, 0, 1, 1], [], []>} : vector<128x128xbf16>, vector<128x256xbf16>, vector<128x256xf32> -> vector<128x256xf32>
    %cst_22 = arith.constant 5.000000e-01 : f32
    %46 = vector.broadcast %cst_22 : f32 to vector<128x256xf32>
    %47 = arith.mulf %46, %45 : vector<128x256xf32>
    %cst_23 = arith.constant 0.707106769 : f32
    %48 = vector.broadcast %cst_23 : f32 to vector<128x256xf32>
    %49 = arith.mulf %45, %48 : vector<128x256xf32>
    %50 = math.erf %49 : vector<128x256xf32>
    %cst_24 = arith.constant 1.000000e+00 : f32
    %51 = vector.broadcast %cst_24 : f32 to vector<128x256xf32>
    %52 = arith.addf %51, %50 : vector<128x256xf32>
    %53 = arith.mulf %47, %52 : vector<128x256xf32>
    %54 = arith.truncf %53 : vector<128x256xf32> to vector<128x256xbf16>
    %c0_25 = arith.constant 0 : index
    %c0_26 = arith.constant 0 : index
    %55 = vector.load %arg8[%c0_25, %c0_26] : memref<256x128xbf16, #tpu.memory_space<vmem>>, vector<256x128xbf16>
    %cst_27 = arith.constant dense<0.000000e+00> : vector<128x128xf32>
    %56 = tpu.matmul %54, %55, %cst_27 {dimension_numbers = #tpu.dot_dimension_numbers<[1], [0], [0], [1], [0, 0, 1, 1], [], []>} : vector<128x256xbf16>, vector<256x128xbf16>, vector<128x128xf32> -> vector<128x128xf32>
    %c0_28 = arith.constant 0 : index
    %c0_29 = arith.constant 0 : index
    %57 = vector.load %arg9[%c0_28, %c0_29] : memref<1x128xf32, #tpu.memory_space<vmem>>, vector<1x128xf32>
    %58 = vector.broadcast %57 : vector<1x128xf32> to vector<128x128xf32>
    %59 = arith.addf %56, %58 : vector<128x128xf32>
    %60 = arith.addf %59, %42 : vector<128x128xf32>
    %c0_30 = arith.constant 0 : index
    %c0_31 = arith.constant 0 : index
    %c0_32 = arith.constant 0 : index
    %61 = vector.load %arg10[%c0_30, %c0_31, %c0_32] : memref<1x128x128xf32, #tpu.memory_space<vmem>>, vector<1x128x128xf32>
    %62 = vector.shape_cast %61 : vector<1x128x128xf32> to vector<128x128xf32>
    %63 = vector.shape_cast %60 : vector<128x128xf32> to vector<1x128x128xf32>
    tpu.vector_store %arg10[%c0_30, %c0_31, %c0_32], %63 {strides = array<i32>} : memref<1x128x128xf32, #tpu.memory_space<vmem>>, vector<1x128x128xf32>,
    return
  }
  func.func @transform_0(%arg0: i32, %arg1: i32) -> (i32, i32, i32) {
    %c0_i32 = arith.constant 0 : i32
    %c0_i32_0 = arith.constant 0 : i32
    %c0_i32_1 = arith.constant 0 : i32
    return %arg0, %c0_i32, %c0_i32_0 : i32, i32, i32
  }
  func.func @transform_1(%arg0: i32, %arg1: i32) -> (i32, i32) {
    %c0_i32 = arith.constant 0 : i32
    %c0_i32_0 = arith.constant 0 : i32
    %c0_i32_1 = arith.constant 0 : i32
    return %c0_i32, %c0_i32_0 : i32, i32
  }
  func.func @transform_2(%arg0: i32, %arg1: i32) -> (i32, i32) {
    %c0_i32 = arith.constant 0 : i32
    %c0_i32_0 = arith.constant 0 : i32
    %c0_i32_1 = arith.constant 0 : i32
    return %c0_i32, %c0_i32_0 : i32, i32
  }
  func.func @transform_3(%arg0: i32, %arg1: i32) -> (i32, i32) {
    %c0_i32 = arith.constant 0 : i32
    %c0_i32_0 = arith.constant 0 : i32
    %c0_i32_1 = arith.constant 0 : i32
    return %c0_i32, %c0_i32_0 : i32, i32
  }
  func.func @transform_4(%arg0: i32, %arg1: i32) -> (i32, i32) {
    %c0_i32 = arith.constant 0 : i32
    %c0_i32_0 = arith.constant 0 : i32
    %c0_i32_1 = arith.constant 0 : i32
    return %c0_i32, %c0_i32_0 : i32, i32
  }
  func.func @transform_5(%arg0: i32, %arg1: i32) -> (i32, i32) {
    %c0_i32 = arith.constant 0 : i32
    %c0_i32_0 = arith.constant 0 : i32
    %c0_i32_1 = arith.constant 0 : i32
    return %c0_i32, %c0_i32_0 : i32, i32
  }
  func.func @transform_6(%arg0: i32, %arg1: i32) -> (i32, i32) {
    %c0_i32 = arith.constant 0 : i32
    %c0_i32_0 = arith.constant 0 : i32
    %c0_i32_1 = arith.constant 0 : i32
    return %c0_i32, %c0_i32_0 : i32, i32
  }
  func.func @transform_7(%arg0: i32, %arg1: i32) -> (i32, i32) {
    %c0_i32 = arith.constant 0 : i32
    %c0_i32_0 = arith.constant 0 : i32
    %c0_i32_1 = arith.constant 0 : i32
    return %c0_i32, %c0_i32_0 : i32, i32
  }
  func.func @transform_8(%arg0: i32, %arg1: i32) -> (i32, i32, i32) {
    %c0_i32 = arith.constant 0 : i32
    %c0_i32_0 = arith.constant 0 : i32
    return %arg0, %arg1, %c0_i32 : i32, i32, i32
  }
}

</mosaic_0001>

<bundles_post_ra>
// kernel: tpu_custom_call.1
= control target key start
LH: loop header
LB: loop body
LE: loop exit
PB: predicated region body
PF: predicated region fallthrough
CT: control target
= control target key end

     0   :  { %s18818_s0 = inlined_call_operand.hbm [shape: f32[2,128,128], index: 0, kind: input, shape index: {}]   ;;  %s18819_s1 = inlined_call_operand.hbm [shape: bf16[128,128], index: 1, kind: input, shape index: {}]   ;;  %s18820_s2 = inlined_call_operand.hbm [shape: bf16[128,128], index: 2, kind: input, shape index: {}]   ;;  %s18821_s3 = inlined_call_operand.hbm [shape: bf16[128,128], index: 3, kind: input, shape index: {}]   ;;  %s18822_s4 = inlined_call_operand.hbm [shape: bf16[128,128], index: 4, kind: input, shape index: {}]   ;;  %s18823_s5 = inlined_call_operand.hbm [shape: bf16[128,256], index: 5, kind: input, shape index: {}]   ;;  %s18824_s6 = inlined_call_operand.hbm [shape: bf16[256,128], index: 6, kind: input, shape index: {}]   ;;  %s18825_s7 = inlined_call_operand.vmem [shape: f32[1,128], index: 7, kind: input, shape index: {}]   ;;  %s18826_s8 = inlined_call_operand.hbm [shape: f32[2,128,128], index: 8, kind: output, shape index: {}]  }
   0x1   :  { %18989 = sst [smem:[#allocation76_spill]] %s18819_s1 }
   0x2   :  { %18990 = sst [smem:[#allocation77_spill]] %s18820_s2 }
   0x3   :  { %18991 = sst [smem:[#allocation78_spill]] %s18821_s3 }
   0x4   :  { %18992 = sst [smem:[#allocation79_spill]] %s18822_s4 }
   0x5   :  { %18993 = sst [smem:[#allocation80_spill]] %s18823_s5 }
   0x6   :  { %13 = vsyncpa [#allocation3], 0 }
   0x7   :  { %15 = vsyncpa [#allocation3 + $0x1], 0 }
   0x8   :  { %16 = vsyncpa [#allocation6], 0 }
   0x9   :  { %17 = vsyncpa [#allocation9], 0 }
   0xa   :  { %18 = vsyncpa [#allocation12], 0 }
   0xb   :  { %19 = vsyncpa [#allocation4], 0 }
   0xc   :  { %21 = vsyncpa [#allocation4 + $0x1], 0  ;;  %s14014_s27 = smov 0   ;;  %s14016_s28 = smov 0  }
   0xd   :  { %s14018_s29 = smov 0   ;;  %s14020_s30 = smov 0  }
   0xe   :  { %s14022_s9 = smov 0   ;;  %s14024_s10 = smov 0  }
   0xf LB: > { %s18827_s11 = sadd.s32 4294967295, %s13947_s10   ;;  %p12212_p0 = scmp.ge.s32.totalorder %s13947_s10, 1  ;;  %s13947_s10 = sphi %s14024_s10, %s27_s10   ;;  %s13943_s9 = sphi %s14022_s9, %s19453_s9   ;;  %s13939_s30 = sphi %s14020_s30, %s19452_s30   ;;  %s13935_s29 = sphi %s14018_s29, %s19451_s29   ;;  %s13931_s28 = sphi %s14016_s28, %s19450_s28   ;;  %s13927_s27 = sphi %s14014_s27, %s19449_s27  }
  0x10   : > { %p14048_p1 = scmp.eq.s32.totalorder %s18827_s11, 0  ;;  %p245_p2 = scmp.lt.s32.totalorder %s13947_s10, 3 }
  0x11   : > { %s13949_s14 = smov [#allocation5]   ;;  %s13950_s17 = smov [#allocation8]  }
  0x12   : > { %p14053_p3 = pnand %p12212_p0, %p245_p2  ;;  %s257_s15 = sshll.u32 %s13949_s14, 4  ;;  %s258_s15 = int_to_ptr.vmem [resolvable:$true] %s257_s15 }
  0x13   : > { %s283_s18 = sshll.u32 %s13950_s17, 4  ;;  %s13951_s19 = smov [#allocation11]   ;;  %s284_s18 = int_to_ptr.vmem [resolvable:$true] %s283_s18 }
  0x14   : > { %p13164_p4 = pneg %p14053_p3  ;;  %s309_s20 = sshll.u32 %s13951_s19, 4  ;;  %s310_s20 = int_to_ptr.vmem [resolvable:$true] %s309_s20 }
  0x15   : > { %s13682_s22 = scalar_lea.vmem %s258_s15, 1024  ;;  %p13690_p11 = scmp.lt.s32.totalorder %s258_s15, %s258_s15 }
  0x16   : > { %p14062_p6 = pnand %p13164_p4, %p14048_p1  ;;  %p13683_p8 = scmp.ne.s32.totalorder %s258_s15, %s13682_s22 }
  0x17   : > { %p13691_p12 = scmp.lt.s32.totalorder %s13682_s22, %s13682_s22 }
  0x18   : > { %p14068_p7 = pneg %p14062_p6 }
  0x19   : > { %p13692_p13 = por %p13691_p12, %p13690_p11 }
  0x1a   : > { %p13685_p9 = pnand %p13683_p8, %p14068_p7 }
  0x1c   : > { %p13686_p10 = pneg %p13685_p9 }
  0x1e   : > { %p13693_p0 = pnand %p13692_p13, %p13686_p10 }
  0x20   : > { %13696 = shalt.err (!%p13693_p0)
}
  0x21   : > { %s13952_s23 = smov 64   ;;  %s13953_s24 = smov 4  }
  0x22   : > { %s18998_s1 = sld [smem:[#allocation76_spill]]  ;;  %s13708_s14 = scalar_lea.vmem %s284_s18, 1024 }
  0x23   : > { %p13709_p2 = scmp.ne.s32.totalorder %s284_s18, %s13708_s14  ;;  %p13716_p9 = scmp.lt.s32.totalorder %s284_s18, %s284_s18 }
  0x24   : > { %p13717_p10 = scmp.lt.s32.totalorder %s13708_s14, %s13708_s14 }
  0x25   : > { %p13711_p4 = pnand %p13709_p2, %p14068_p7 }
  0x26   : > { %p13718_p11 = por %p13717_p10, %p13716_p9 }
  0x27   : > { %p13712_p8 = pneg %p13711_p4 }
  0x28   : > { %13167 = dma.hbm_to_vmem [thread:$0]  (!%p14062_p6), %s18998_s1, 1024, %s258_s15, [#allocation6], %s13952_s23, %s13952_s23, %s13953_s24  }
  0x29   : > { %p13719_p12 = pnand %p13718_p11, %p13712_p8 }
  0x2b   : > { %13722 = shalt.err (!%p13719_p12)
}
  0x2c   : > { %s18999_s3 = sld [smem:[#allocation78_spill]]  ;;  %s13734_s15 = scalar_lea.vmem %s310_s20, 2048 }
  0x2d   : > { %p13735_p13 = scmp.ne.s32.totalorder %s310_s20, %s13734_s15  ;;  %p13742_p4 = scmp.lt.s32.totalorder %s310_s20, %s310_s20 }
  0x2e   : > { %p13743_p9 = scmp.lt.s32.totalorder %s13734_s15, %s13734_s15 }
  0x2f   : > { %p13737_p0 = pnand %p13735_p13, %p14068_p7 }
  0x30   : > { %p13744_p8 = por %p13743_p9, %p13742_p4 }
  0x31   : > { %p13738_p2 = pneg %p13737_p0 }
  0x32   : > { %13173 = dma.hbm_to_vmem [thread:$0]  (!%p14062_p6), %s18999_s3, 1024, %s284_s18, [#allocation9], %s13952_s23, %s13952_s23, %s13953_s24  }
  0x33   : > { %p13745_p10 = pnand %p13744_p8, %p13738_p2 }
  0x35   : > { %13748 = shalt.err (!%p13745_p10)
}
  0x36   : > { %s18828_s22 = smov 128   ;;  %s18829_s25 = smov 8  }
  0x37   : > { %s19000_s5 = sld [smem:[#allocation80_spill]]  ;;  %s13956_s14 = smov [#allocation7]  }
  0x38   : > { %s270_s17 = sshll.u32 %s13956_s14, 4  ;;  %s13957_s19 = smov [#allocation10]   ;;  %s271_s17 = int_to_ptr.vmem [resolvable:$true] %s270_s17 }
  0x39   : > { %s296_s15 = sshll.u32 %s13957_s19, 4  ;;  %s13760_s11 = scalar_lea.vmem %s271_s17, 1024  ;;  %s297_s15 = int_to_ptr.vmem [resolvable:$true] %s296_s15 }
  0x3a   : > { %p13761_p11 = scmp.ne.s32.totalorder %s271_s17, %s13760_s11  ;;  %p13768_p0 = scmp.lt.s32.totalorder %s271_s17, %s271_s17 }
  0x3b   : > { %p13769_p2 = scmp.lt.s32.totalorder %s13760_s11, %s13760_s11 }
  0x3c   : > { %p13763_p12 = pnand %p13761_p11, %p14068_p7 }
  0x3d   : > { %13179 = dma.hbm_to_vmem [thread:$0]  (!%p14062_p6), %s19000_s5, 2048, %s310_s20, [#allocation12], %s18828_s22, %s18828_s22, %s18829_s25  }
  0x3e   : > { %p13764_p13 = pneg %p13763_p12  ;;  %p13770_p4 = por %p13769_p2, %p13768_p0 }
  0x40   : > { %p13771_p9 = pnand %p13770_p4, %p13764_p13 }
  0x42   : > { %13774 = shalt.err (!%p13771_p9)
}
  0x43   : > { %s19001_s2 = sld [smem:[#allocation77_spill]]  ;;  %s13786_s26 = scalar_lea.vmem %s297_s15, 1024 }
  0x44   : > { %p13787_p8 = scmp.ne.s32.totalorder %s297_s15, %s13786_s26  ;;  %p13794_p12 = scmp.lt.s32.totalorder %s297_s15, %s297_s15 }
  0x45   : > { %p13795_p0 = scmp.lt.s32.totalorder %s13786_s26, %s13786_s26 }
  0x46   : > { %p13789_p10 = pnand %p13787_p8, %p14068_p7 }
  0x47   : > { %p13796_p13 = por %p13795_p0, %p13794_p12 }
  0x48   : > { %p13790_p11 = pneg %p13789_p10 }
  0x49   : > { %13170 = dma.hbm_to_vmem [thread:$0]  (!%p14062_p6), %s19001_s2, 1024, %s271_s17, [#allocation6], %s13952_s23, %s13952_s23, %s13953_s24  }
  0x4a   : > { %p13797_p2 = pnand %p13796_p13, %p13790_p11 }
  0x4c   : > { %13800 = shalt.err (!%p13797_p2)
}
  0x4d   : > { %s19002_s4 = sld [smem:[#allocation79_spill]]  ;;  %s13958_s17 = smov [#allocation13]  }
  0x4e   : > { %s322_s19 = sshll.u32 %s13958_s17, 4  ;;  %s323_s19 = int_to_ptr.vmem [resolvable:$true] %s322_s19 }
  0x4f   : > { %s13812_s20 = scalar_lea.vmem %s323_s19, 2048  ;;  %p13820_p10 = scmp.lt.s32.totalorder %s323_s19, %s323_s19 }
  0x50   : > { %p13813_p4 = scmp.ne.s32.totalorder %s323_s19, %s13812_s20  ;;  %p13821_p11 = scmp.lt.s32.totalorder %s13812_s20, %s13812_s20 }
  0x52   : > { %p13815_p9 = pnand %p13813_p4, %p14068_p7  ;;  %p13822_p12 = por %p13821_p11, %p13820_p10 }
  0x53   : > { %13176 = dma.hbm_to_vmem [thread:$0]  (!%p14062_p6), %s19002_s4, 1024, %s297_s15, [#allocation9], %s13952_s23, %s13952_s23, %s13953_s24  }
  0x54   : > { %p13816_p8 = pneg %p13815_p9 }
  0x56   : > { %p13823_p0 = pnand %p13822_p12, %p13816_p8 }
  0x58   : > { %13826 = shalt.err (!%p13823_p0)
}
  0x59   : > { %13182 = dma.hbm_to_vmem [thread:$0]  (!%p14062_p6), %s18824_s6, 2048, %s323_s19, [#allocation12], %s13952_s23, %s13952_s23, %s13953_s24  }
  0x5a   : > { %s12211_s16 = sadd.s32 4294967294, %s13947_s10   ;;  %s39_s21 = sadd.s32 1, %s13943_s9 }
  0x5b   : > { %p41_p7 = scmp.ge.s32.totalorder %s39_s21, 2  ;;  %s46_s26 = sadd.s32 1, %s13935_s29 }
  0x5c   : > { %p53_p13 = scmp.ne.s32.totalorder %s13935_s29, %s13931_s28  ;;  %p54_p2 = scmp.eq.s32.totalorder %s13947_s10, 0 }
  0x5d   : > { %s19455_s21 = smov (%p41_p7, %s39_s21), 0  ;;  %p59_p9 = scmp.ne.s32.totalorder %s13931_s28, %s13927_s27 }
  0x5e   : > { %p14140_p4 = por %p54_p2, %p53_p13  ;;  %s43_s23 = ssub.s32 %s13943_s9, %s19455_s21 }
  0x5f   : > { %s19004_s24 = sadd.s32 4294967295, %s13947_s10   ;;  %p44_p8 = scmp.eq.s32.totalorder %s43_s23, 0 }
  0x60   : > { %p232_p6 = scmp.eq.s32.totalorder %s19004_s24, 1  ;;  %p14152_p10 = por %p14048_p1, %p59_p9 }
  0x61   : > { %p238_p12 = scmp.eq.s32.totalorder %s12211_s16, 1  ;;  %p13197_p7 = scmp.lt.s32.totalorder %s13947_s10, 2 }
  0x62   : > { %p14156_p11 = por %p232_p6, %p53_p13  ;;  %s339_s18 = sand.u32 1, %s13935_s29  }
  0x63   : > { %s14161_s19 = scalar_select %p44_p8, %s13935_s29, %s46_s26  }
  0x64   : > { %p14163_p0 = por %p238_p12, %p59_p9  ;;  %s12462_s15 = sshll.u32 %s13943_s9, 11 }
  0x65   : > { %s12220_s23 = sshll.u32 %s339_s18, 7  ;;  %s349_s25 = scalar_lea.hbm %s18818_s0, %s12462_s15 }
  0x66   : > { %s19007_s20 = scalar_select %p14163_p0, 1, 0 }
  0x67   : > { %s343_s1 = scalar_lea.vmem [#allocation2], %s12220_s23  ;;  %p14175_p13 = pnand %p13197_p7, %p14140_p4 }
  0x68   : > { %s350_s2 = sshll.u32 %s343_s1, 4  ;;  %s340_s16 = scalar_lea.sflag [#allocation3], %s339_s18  ;;  %s351_s2 = int_to_ptr.vmem [resolvable:$true] %s350_s2 }
  0x69   : > { %p13829_p2 = pneg %p14175_p13  ;;  %s13840_s26 = scalar_lea.vmem %s351_s2, 2048 }
  0x6a   : > { %p13841_p9 = scmp.ne.s32.totalorder %s351_s2, %s13840_s26  ;;  %s13959_s4 = smov [#allocation2]  }
  0x6b   : > { %s13845_s5 = sshll.u32 %s13959_s4, 4  ;;  %s13846_s5 = int_to_ptr.vmem [resolvable:$false] %s13845_s5 }
  0x6c   : > { %p13843_p6 = pnand %p13841_p9, %p13829_p2  ;;  %s13847_s22 = scalar_lea.vmem %s13846_s5, 4096 }
  0x6d   : > { %p13848_p12 = scmp.lt.s32.totalorder %s351_s2, %s13846_s5  ;;  %p13849_p5 = scmp.lt.s32.totalorder %s13847_s22, %s13840_s26 }
  0x6e   : > { %p13844_p8 = pneg %p13843_p6 }
  0x6f   : > { %p13850_p0 = por %p13849_p5, %p13848_p12 }
  0x71   : > { %p13851_p4 = pnand %p13850_p0, %p13844_p8 }
  0x73   : > { %13854 = shalt.err (!%p13851_p4)
}
  0x74   : > { %s19009_s1 = smov 8   ;;  %s19010_s11 = smov 128  }
  0x75   : > { %13186 = dma.hbm_to_vmem [thread:$0]  (!%p14175_p13), %s349_s25, 2048, %s351_s2, %s340_s16, %s19010_s11, %s19010_s11, %s19009_s1  }
  0x76   : > { %362 = sbr.rel (%p14053_p3) target bundleno = 2318 (0x90e), region = 52 }
  0x7b   : > { %s14189_s18 = sand.u32 1, %s13931_s28  }
  0x7c   : > { %s12224_s4 = sshll.u32 %s14189_s18, 7  ;;  %s365_s5 = scalar_lea.sflag [#allocation3], %s14189_s18 }
  0x7d   : > { %s14195_s15 = scalar_lea.vmem [#allocation2], %s12224_s4 }
  0x7e   : > { %13906 = dma.done.wait (%p14152_p10), %s365_s5, 2048  }
  0x7f   : > { %13908 = vsyncadd (%p14152_p10), %s365_s5, 4294965248 }
  0x80   : > { %13910 = dma.done.wait (%p14048_p1), [#allocation6], 2048  }
  0x81   : > { %13912 = vsyncadd (%p14048_p1), [#allocation6], 4294965248 }
  0x82   : > { %13914 = dma.done.wait (%p14048_p1), [#allocation9], 2048  }
  0x83   : > { %13916 = vsyncadd (%p14048_p1), [#allocation9], 4294965248 }
  0x84   : > { %13918 = dma.done.wait (%p14048_p1), [#allocation12], 4096  }
  0x85   : > { %13920 = vsyncadd (%p14048_p1), [#allocation12], 4294963200  ;;  %v13271_v0 = vld [vmem:[#allocation7 + $0x38] sm:$0xff]   ;;  %v13272_v1 = vld [vmem:[#allocation7 + $0x30] sm:$0xff]   ;;  %s13960_s2 = smov 32   ;;  %s13961_s3 = smov 96  }
  0x86   : > { %12752 = vmatprep.subr.bf16.mxu1 %v13271_v0  ;;  %v13273_v2 = vld [vmem:[#allocation7 + $0x28] sm:$0xff]   ;;  %v13274_v3 = vld [vmem:[#allocation7 + $0x20] sm:$0xff]   ;;  %v13275_v7 = vld [vmem:[#allocation7 + $0x18] sm:$0xff]   ;;  %s13962_s12 = smov 64   ;;  %vm7430_vm0 = vcmask 261120   ;;  %vm11208_vm1 = vcmask 785408  }
  0x87   : > { %12753 = vmatpush3.bf16.msra.mxu1 %v13271_v0  ;;  %v445_v4 = vld [vmem:[%s14195_s15] sm:$0xff]  ;;  %v446_v5 = vld [vmem:[%s14195_s15 + $0x8] sm:$0xff]  ;;  %v13279_v8 = vld [vmem:[#allocation5 + $0x38] sm:$0xff]   ;;  %vm11191_vm2 = vcmask 523264   ;;  %s18715_s14 = scalar_lea.vmem [#allocation14], %s12224_s4  ;;  %s12463_s23 = sshll.u32 %s13939_s30, 11 }
  0x88   : > { %12754 = vmatprep.subr.bf16.mxu1 %v13272_v1  ;;  %v14215_v6 = vpack.c.bf16 %v446_v5, %v445_v4  ;;  %v13280_v9 = vld [vmem:[#allocation5 + $0x30] sm:$0xff]   ;;  %12720 = vmatprep.subr.bf16.mxu0 %v13279_v8  ;;  %v13281_v11 = vld [vmem:[#allocation5 + $0x28] sm:$0xff]   ;;  %v13282_v13 = vld [vmem:[#allocation5 + $0x20] sm:$0xff]   ;;  %s12067_s24 = sshll.u32 %s18715_s14, 4  ;;  %s18766_s22 = scalar_lea.hbm %s18826_s8, %s12463_s23  ;;  %s18768_s24 = int_to_ptr.vmem [resolvable:$true] %s12067_s24 }
  0x89   : > { %v13276_v10 = vld [vmem:[#allocation7 + $0x10] sm:$0xff]   ;;  %12721 = vmatpush3.bf16.msra.mxu0 %v13279_v8  ;;  %v13277_v12 = vld [vmem:[#allocation7 + $0x8] sm:$0xff]   ;;  %v13278_v14 = vld [vmem:[#allocation7] sm:$0xff]   ;;  %s12052_s1 = scalar_lea.sflag [#allocation4], %s14189_s18  ;;  %s13855_s11 = scalar_lea.vmem %s18768_s24, 2048 }
  0x8a   : > { %12768 = vmatprep.mubr.bf16.mxu1 %v14215_v6  ;;  %12722 = vmatprep.subr.bf16.mxu0 %v13280_v9  ;;  %v447_v15 = vld [vmem:[%s14195_s15 + $0x10] sm:$0xff]  ;;  %v448_v16 = vld [vmem:[%s14195_s15 + $0x18] sm:$0xff]  ;;  %v449_v18 = vld [vmem:[%s14195_s15 + $0x20] sm:$0xff]  ;;  %p13856_p1 = scmp.ne.s32.totalorder %s18768_s24, %s13855_s11  ;;  %s13966_s30 = smov [#allocation14]  }
  0x8b   : > { %12755 = vmatpush3.bf16.msra.mxu1 %v13272_v1  ;;  %v13283_v17 = vld [vmem:[#allocation5 + $0x18] sm:$0xff]   ;;  %v450_v19 = vld [vmem:[%s14195_s15 + $0x28] sm:$0xff]  ;;  %v13284_v20 = vld [vmem:[#allocation5 + $0x10] sm:$0xff]   ;;  %v14222_v21 = vpack.c.bf16 %v448_v16, %v447_v15  ;;  %s13859_s4 = sshll.u32 %s13966_s30, 4  ;;  %s13860_s4 = int_to_ptr.vmem [resolvable:$false] %s13859_s4 }
  0x8c   : > { %12756 = vmatprep.subr.bf16.mxu1 %v13273_v2  ;;  %v463_v22 = vpack.c.bf16 %v450_v19, %v449_v18  ;;  %v13285_v23 = vld [vmem:[#allocation5 + $0x8] sm:$0xff]   ;;  %v451_v24 = vld [vmem:[%s14195_s15 + $0x30] sm:$0xff]  ;;  %v452_v25 = vld [vmem:[%s14195_s15 + $0x38] sm:$0xff]  ;;  %p13857_p3 = pnand %p13856_p1, %p14156_p11  ;;  %s13861_s5 = scalar_lea.vmem %s13860_s4, 4096 }
  0x8d   : > { %12723 = vmatpush3.bf16.msra.mxu0 %v13280_v9  ;;  %v453_v26 = vld [vmem:[%s14195_s15 + $0x40] sm:$0xff]  ;;  %v454_v27 = vld [vmem:[%s14195_s15 + $0x48] sm:$0xff]  ;;  %v464_v29 = vpack.c.bf16 %v452_v25, %v451_v24  ;;  %v13287_v31 = vld [vmem:[#allocation8 + $0x38] sm:$0xff]   ;;  %p13862_p10 = scmp.lt.s32.totalorder %s18768_s24, %s13860_s4  ;;  %p13863_p0 = scmp.lt.s32.totalorder %s13861_s5, %s13855_s11 }
  0x8e   : > { %12724 = vmatprep.subr.bf16.mxu0 %v13281_v11  ;;  %v13286_v28 = vld [vmem:[#allocation5] sm:$0xff]   ;;  %v465_v30 = vpack.c.bf16 %v454_v27, %v453_v26  ;;  %v455_v32 = vld [vmem:[%s14195_s15 + $0x50] sm:$0xff]  ;;  %v456_v33 = vld [vmem:[%s14195_s15 + $0x58] sm:$0xff]  ;;  %p13858_p5 = pneg %p13857_p3 }
  0x8f   : > { %12757 = vmatpush3.bf16.msra.mxu1 %v13273_v2  ;;  %v457_v34 = vld [vmem:[%s14195_s15 + $0x60] sm:$0xff]  ;;  %v458_v35 = vld [vmem:[%s14195_s15 + $0x68] sm:$0xff]  ;;  %v13288_v36 = vld [vmem:[#allocation8 + $0x30] sm:$0xff]   ;;  %v466_v37 = vpack.c.bf16 %v456_v33, %v455_v32  ;;  %p13864_p7 = por %p13863_p0, %p13862_p10 }
  0x90   : > { %12758 = vmatprep.subr.bf16.mxu1 %v13274_v3  ;;  %v467_v38 = vpack.c.bf16 %v458_v35, %v457_v34  ;;  %v13289_v39 = vld [vmem:[#allocation8 + $0x28] sm:$0xff]   ;;  %v459_v40 = vld [vmem:[%s14195_s15 + $0x70] sm:$0xff]  ;;  %v460_v41 = vld [vmem:[%s14195_s15 + $0x78] sm:$0xff] }
  0x91   : > { %12725 = vmatpush3.bf16.msra.mxu0 %v13281_v11  ;;  %v468_v42 = vpack.c.bf16 %v460_v41, %v459_v40  ;;  %v13290_v43 = vld [vmem:[#allocation8 + $0x20] sm:$0xff]   ;;  %v13291_v44 = vld [vmem:[#allocation8 + $0x18] sm:$0xff]   ;;  %v13292_v45 = vld [vmem:[#allocation8 + $0x10] sm:$0xff]   ;;  %p13865_p13 = pnand %p13864_p7, %p13858_p5 }
  0x92   : > { %12726 = vmatprep.subr.bf16.mxu0 %v13282_v13  ;;  %v13293_v46 = vld [vmem:[#allocation8 + $0x8] sm:$0xff]   ;;  %v13294_v47 = vld [vmem:[#allocation8] sm:$0xff]  }
  0x93   : > { %12759 = vmatpush3.bf16.msra.mxu1 %v13274_v3 }
  0x94   : > { %12760 = vmatprep.subr.bf16.mxu1 %v13275_v7 }
  0x95   : > { %12727 = vmatpush3.bf16.msra.mxu0 %v13282_v13 }
  0x96   : > { %12728 = vmatprep.subr.bf16.mxu0 %v13283_v17 }
  0x97   : > { %12761 = vmatpush3.bf16.msra.mxu1 %v13275_v7 }
  0x98   : > { %12762 = vmatprep.subr.bf16.mxu1 %v13276_v10 }
  0x99   : > { %12729 = vmatpush3.bf16.msra.mxu0 %v13283_v17 }
  0x9a   : > { %12730 = vmatprep.subr.bf16.mxu0 %v13284_v20 }
  0x9b   : > { %12763 = vmatpush3.bf16.msra.mxu1 %v13276_v10 }
  0x9c   : > { %12764 = vmatprep.subr.bf16.mxu1 %v13277_v12 }
  0x9d   : > { %12731 = vmatpush3.bf16.msra.mxu0 %v13284_v20 }
  0x9e   : > { %12732 = vmatprep.subr.bf16.mxu0 %v13285_v23 }
  0x9f   : > { %12765 = vmatpush3.bf16.msra.mxu1 %v13277_v12 }
  0xa0   : > { %12766 = vmatprep.subr.bf16.mxu1 %v13278_v14 }
  0xa1   : > { %12733 = vmatpush3.bf16.msra.mxu0 %v13285_v23 }
  0xa2   : > { %12734 = vmatprep.subr.bf16.mxu0 %v13286_v28 }
  0xa3   : > { %12767 = vmatpush3.bf16.msra.mxu1 %v13278_v14 }
  0xa5   : > { %12735 = vmatpush3.bf16.msra.mxu0 %v13286_v28 }
  0xa6   : > { %12769 = vmatmul.mubr.bf16.vlgmr.msra.gmra.mxu1 %v14222_v21  ;;  %12784 = vmatprep.subr.bf16.mxu0 %v13287_v31 }
  0xa7   : > { %12772 = vmatprep.mubr.bf16.mxu1 %v463_v22 }
  0xa8   : > { %12737 = vmatmul.mubr.bf16.vlgmr.msra.gmra.mxu0 %v14222_v21 }
  0xa9   : > { %12785 = vmatpush3.bf16.msra.mxu0 %v13287_v31 }
  0xaa   : > { %12786 = vmatprep.subr.bf16.mxu0 %v13288_v36 }
  0xad   : > { %12787 = vmatpush3.bf16.msra.mxu0 %v13288_v36 }
  0xae   : > { %12773 = vmatmul.mubr.bf16.gmra.mxu1 %v464_v29  ;;  %12788 = vmatprep.subr.bf16.mxu0 %v13289_v39 }
  0xaf   : > { %12776 = vmatprep.mubr.bf16.mxu1 %v465_v30 }
  0xb0   : > { %12741 = vmatmul.mubr.bf16.gmra.mxu0 %v464_v29 }
  0xb1   : > { %12789 = vmatpush3.bf16.msra.mxu0 %v13289_v39 }
  0xb2   : > { %12790 = vmatprep.subr.bf16.mxu0 %v13290_v43 }
  0xb5   : > { %12791 = vmatpush3.bf16.msra.mxu0 %v13290_v43 }
  0xb6   : > { %12777 = vmatmul.mubr.bf16.gmra.mxu1 %v466_v37  ;;  %12792 = vmatprep.subr.bf16.mxu0 %v13291_v44 }
  0xb7   : > { %12780 = vmatprep.mubr.bf16.mxu1 %v467_v38 }
  0xb8   : > { %12745 = vmatmul.mubr.bf16.gmra.mxu0 %v466_v37 }
  0xb9   : > { %12793 = vmatpush3.bf16.msra.mxu0 %v13291_v44 }
  0xba   : > { %12794 = vmatprep.subr.bf16.mxu0 %v13292_v45 }
  0xbd   : > { %12795 = vmatpush3.bf16.msra.mxu0 %v13292_v45  ;;  %v13963_v45 = vmov 1983009808  }
  0xbe   : > { %12781 = vmatmul.mubr.bf16.gmra.mxu1 %v468_v42  ;;  %12796 = vmatprep.subr.bf16.mxu0 %v13293_v46 }
  0xc0   : > { %12749 = vmatmul.mubr.bf16.gmra.mxu0 %v468_v42 }
  0xc1   : > { %12797 = vmatpush3.bf16.msra.mxu0 %v13293_v46  ;;  %12800 = vmatprep.mubr.bf16.mxu0 %v14215_v6  ;;  %v1160_v46 = vunpack.c.l.s4 %v13963_v45 }
  0xc2   : > { %12798 = vmatprep.subr.bf16.mxu0 %v13294_v47 }
  0xc5   : > { %12799 = vmatpush3.bf16.msra.mxu0 %v13294_v47  ;;  %v1162_v47 = vlaneseq }
  0xc8   : > { %12801 = vmatmul.mubr.bf16.vlgmr.msra.gmra.mxu0 %v14222_v21 }
  0xc9   : > { %12804 = vmatprep.mubr.bf16.mxu0 %v463_v22 }
  0xd0   : > { %12805 = vmatmul.mubr.bf16.gmra.mxu0 %v464_v29 }
  0xd1   : > { %12808 = vmatprep.mubr.bf16.mxu0 %v465_v30 }
  0xd8   : > { %12809 = vmatmul.mubr.bf16.gmra.mxu0 %v466_v37 }
  0xd9   : > { %12812 = vmatprep.mubr.bf16.mxu0 %v467_v38 }
  0xe0   : > { %12813 = vmatmul.mubr.bf16.gmra.mxu0 %v468_v42 }
 0x166   : > { %v12770_v48 = vpop.f32.mrf.mxu1 }
 0x168   : > { %v736_v49 = vpop.f32.mrf.mxu1  ;;  %v12738_v4 = vpop.f32.mrf.mxu0 }
 0x16a   : > { %v12771_v50 = vpop.f32.mrf.mxu1  ;;  %v575_v5 = vpop.f32.mrf.mxu0 }
 0x16b   : > { %v14286_v11 = vpack.c.bf16 %v12771_v50, %v12770_v48 }
 0x16c   : > { %v739_v51 = vpop.f32.mrf.mxu1  ;;  %v12739_v7 = vpop.f32.mrf.mxu0 }
 0x16d   : > { %v14292_v13 = vpack.c.bf16 %v739_v51, %v736_v49  ;;  %v14304_v18 = vpack.c.bf16 %v12739_v7, %v12738_v4  ;;  %v13964_v49 = vmov 1934713408  }
 0x16e   : > { %v12774_v52 = vpop.f32.mrf.mxu1  ;;  %v578_v9 = vpop.f32.mrf.mxu0  ;;  %v1191_v50 = vunpack.c.l.s4 %v13964_v49 }
 0x16f   : > { %v14302_v16 = vpack.c.bf16 %v578_v9, %v575_v5 }
 0x170   : > { %v752_v53 = vpop.f32.mrf.mxu1  ;;  %v12742_v10 = vpop.f32.mrf.mxu0 }
 0x172   : > { %v12775_v54 = vpop.f32.mrf.mxu1  ;;  %v591_v12 = vpop.f32.mrf.mxu0 }
 0x173   : > { %v14270_v6 = vpack.c.bf16 %v12775_v54, %v12774_v52  ;;  %v1163_v54 = vshrl.u32 %v1162_v47, 7 }
 0x174   : > { %v755_v55 = vpop.f32.mrf.mxu1  ;;  %v12743_v14 = vpop.f32.mrf.mxu0 }
 0x175   : > { %v14276_v8 = vpack.c.bf16 %v755_v55, %v752_v53  ;;  %v14320_v24 = vpack.c.bf16 %v12743_v14, %v12742_v10  ;;  %v1161_v53 = vunpack.c.0.s8 %v1160_v46 }
 0x176   : > { %v12778_v56 = vpop.f32.mrf.mxu1  ;;  %v594_v15 = vpop.f32.mrf.mxu0 }
 0x177   : > { %v14318_v21 = vpack.c.bf16 %v594_v15, %v591_v12  ;;  %19012 = vst [vmem:[#allocation21_spill] sm:$0xff] %v14320_v24 }
 0x178   : > { %v768_v57 = vpop.f32.mrf.mxu1  ;;  %v12746_v17 = vpop.f32.mrf.mxu0 }
 0x179   : > { %19011 = vst [vmem:[#allocation20_spill] sm:$0xff] %v14318_v21 }
 0x17a   : > { %v12779_v58 = vpop.f32.mrf.mxu1  ;;  %v607_v19 = vpop.f32.mrf.mxu0 }
 0x17b   : > { %v14254_v2 = vpack.c.bf16 %v12779_v58, %v12778_v56  ;;  %v1192_v56 = vunpack.c.0.s8 %v1191_v50 }
 0x17c   : > { %v771_v59 = vpop.f32.mrf.mxu1  ;;  %v12747_v20 = vpop.f32.mrf.mxu0 }
 0x17d   : > { %v14260_v3 = vpack.c.bf16 %v771_v59, %v768_v57  ;;  %v14336_v29 = vpack.c.bf16 %v12747_v20, %v12746_v17  ;;  %v18830_v59 = vmov 0   ;;  %v14407_v10 = vsub.s32 %v1192_v56, %v1163_v54 }
 0x17e   : > { %v12782_v60 = vpop.f32.mrf.mxu1  ;;  %v610_v22 = vpop.f32.mrf.mxu0  ;;  %v3258_v12 = vshrl.u32 %v14254_v2, 16 }
 0x17f   : > { %v14334_v27 = vpack.c.bf16 %v610_v22, %v607_v19  ;;  %19014 = vst [vmem:[#allocation23_spill] sm:$0xff] %v14336_v29  ;;  %19024 = vst [vmem:[#allocation33_spill] sm:$0xff] %v14407_v10  ;;  %v3242_v14 = vshrl.u32 %v14260_v3, 16 }
 0x180   : > { %v784_v61 = vpop.f32.mrf.mxu1  ;;  %v12750_v23 = vpop.f32.mrf.mxu0 }
 0x181   : > { %19013 = vst [vmem:[#allocation22_spill] sm:$0xff] %v14334_v27 }
 0x182   : > { %v12783_v62 = vpop.f32.mrf.mxu1  ;;  %v623_v25 = vpop.f32.mrf.mxu0 }
 0x183   : > { %v14238_v63 = vpack.c.bf16 %v12783_v62, %v12782_v60  ;;  %v14398_v60 = vpack.i.b16 %v18830_v59, %v18830_v59 }
 0x184   : > { %v787_v0 = vpop.f32.mrf.mxu1  ;;  %v12751_v26 = vpop.f32.mrf.mxu0 }
 0x185   : > { %3172 = vrot.lane.b32.xlu1 %v14238_v63, %s13960_s2  ;;  %3140 = vrot.lane.b32.xlu0 %v14238_v63, %s13961_s3  ;;  %v14244_v1 = vpack.c.bf16 %v787_v0, %v784_v61  ;;  %v14346_v32 = vpack.c.bf16 %v12751_v26, %v12750_v23  ;;  %19021 = vst [vmem:[#allocation30_spill] sm:$0xff] %v14398_v60  ;;  %v3290_v9 = vshrl.u32 %v14238_v63, 16 }
 0x186   : > { %v626_v28 = vpop.f32.mrf.mxu0  ;;  %v14400_v61 = vsub.s32 %v1161_v53, %v1163_v54 }
 0x187   : > { %19015 = vst [vmem:[#allocation24_spill] sm:$0xff] %v14346_v32  ;;  %v14352_v33 = vpack.c.bf16 %v626_v28, %v623_v25  ;;  %v3274_v19 = vshrl.u32 %v14244_v1, 16 }
 0x188   : > { %v12802_v30 = vpop.f32.mrf.mxu0  ;;  %19022 = vst [vmem:[#allocation31_spill] sm:$0xff] %v14400_v61 }
 0x189   : > { %3156 = vrot.lane.b32.xlu0 %v14238_v63, %s13962_s12  ;;  %3138 = vrot.lane.b32.xlu1 %v14244_v1, %s13961_s3  ;;  %19016 = vst [vmem:[#allocation25_spill] sm:$0xff] %v14352_v33 }
 0x18a   : > { %v897_v31 = vpop.f32.mrf.mxu0 }
 0x18c   : > { %v12803_v34 = vpop.f32.mrf.mxu0 }
 0x18d   : > { %3154 = vrot.lane.b32.xlu0 %v14244_v1, %s13962_s12  ;;  %3170 = vrot.lane.b32.xlu1 %v14244_v1, %s13960_s2  ;;  %v14366_v38 = vpack.c.bf16 %v12803_v34, %v12802_v30 }
 0x18e   : > { %v900_v35 = vpop.f32.mrf.mxu0 }
 0x18f   : > { %19017 = vst [vmem:[#allocation26_spill] sm:$0xff] %v14366_v38  ;;  %v14372_v41 = vpack.c.bf16 %v900_v35, %v897_v31 }
 0x190   : > { %v12806_v36 = vpop.f32.mrf.mxu0 }
 0x191   : > { %3136 = vrot.lane.b32.xlu0 %v14254_v2, %s13961_s3  ;;  %3152 = vrot.lane.b32.xlu1 %v14254_v2, %s13962_s12  ;;  %19018 = vst [vmem:[#allocation27_spill] sm:$0xff] %v14372_v41 }
 0x192   : > { %v913_v37 = vpop.f32.mrf.mxu0 }
 0x194   : > { %v12807_v39 = vpop.f32.mrf.mxu0 }
 0x195   : > { %3168 = vrot.lane.b32.xlu0 %v14254_v2, %s13960_s2  ;;  %3134 = vrot.lane.b32.xlu1 %v14260_v3, %s13961_s3  ;;  %v14382_v44 = vpack.c.bf16 %v12807_v39, %v12806_v36 }
 0x196   : > { %v916_v40 = vpop.f32.mrf.mxu0 }
 0x197   : > { %19019 = vst [vmem:[#allocation28_spill] sm:$0xff] %v14382_v44  ;;  %v14388_v52 = vpack.c.bf16 %v916_v40, %v913_v37 }
 0x198   : > { %v12810_v42 = vpop.f32.mrf.mxu0 }
 0x199   : > { %3150 = vrot.lane.b32.xlu0 %v14260_v3, %s13962_s12  ;;  %3166 = vrot.lane.b32.xlu1 %v14260_v3, %s13960_s2  ;;  %19020 = vst [vmem:[#allocation29_spill] sm:$0xff] %v14388_v52 }
 0x19a   : > { %v929_v43 = vpop.f32.mrf.mxu0 }
 0x19c   : > { %v12811_v48 = vpop.f32.mrf.mxu0 }
 0x19d   : > { %3132 = vrot.lane.b32.xlu0 %v14270_v6, %s13961_s3  ;;  %3148 = vrot.lane.b32.xlu1 %v14270_v6, %s13962_s12  ;;  %v14418_v22 = vpack.c.bf16 %v12811_v48, %v12810_v42 }
 0x19e   : > { %v932_v51 = vpop.f32.mrf.mxu0 }
 0x19f   : > { %19025 = vst [vmem:[#allocation34_spill] sm:$0xff] %v14418_v22  ;;  %v14427_v40 = vpack.c.bf16 %v932_v51, %v929_v43 }
 0x1a0   : > { %v12814_v55 = vpop.f32.mrf.mxu0 }
 0x1a1   : > { %3164 = vrot.lane.b32.xlu0 %v14270_v6, %s13960_s2  ;;  %3130 = vrot.lane.b32.xlu1 %v14276_v8, %s13961_s3  ;;  %19026 = vst [vmem:[#allocation35_spill] sm:$0xff] %v14427_v40 }
 0x1a2   : > { %v14404_v4 = vpop.f32.mrf.mxu0 }
 0x1a3   : > { %19023 = vst [vmem:[#allocation32_spill] sm:$0xff] %v14404_v4 }
 0x1a4   : > { %v12815_v30 = vpop.f32.mrf.mxu0 }
 0x1a5   : > { %3146 = vrot.lane.b32.xlu0 %v14276_v8, %s13962_s12  ;;  %3162 = vrot.lane.b32.xlu1 %v14276_v8, %s13960_s2  ;;  %v14429_v42 = vpack.c.bf16 %v12815_v30, %v12814_v55 }
 0x1a7   : > { %19027 = vst [vmem:[#allocation36_spill] sm:$0xff] %v14429_v42 }
 0x1a9   : > { %3128 = vrot.lane.b32.xlu0 %v14286_v11, %s13961_s3  ;;  %3144 = vrot.lane.b32.xlu1 %v14286_v11, %s13962_s12 }
 0x1ad   : > { %3160 = vrot.lane.b32.xlu0 %v14286_v11, %s13960_s2  ;;  %3126 = vrot.lane.b32.xlu1 %v14292_v13, %s13961_s3 }
 0x1b1   : > { %3142 = vrot.lane.b32.xlu0 %v14292_v13, %s13962_s12  ;;  %3158 = vrot.lane.b32.xlu1 %v14292_v13, %s13960_s2 }
 0x1b5   : > { %992 = vrot.lane.b32.xlu1 %v14302_v16, %s13962_s12  ;;  %976 = vrot.lane.b32.xlu0 %v14302_v16, %s13961_s3 }
 0x1b9   : > { %978 = vrot.lane.b32.xlu1 %v14304_v18, %s13961_s3  ;;  %1008 = vrot.lane.b32.xlu0 %v14302_v16, %s13960_s2 }
 0x1bd   : > { %1010 = vrot.lane.b32.xlu1 %v14304_v18, %s13960_s2  ;;  %994 = vrot.lane.b32.xlu0 %v14304_v18, %s13962_s12 }
 0x1c1   : > { %996 = vrot.lane.b32.xlu1 %v14318_v21, %s13962_s12  ;;  %980 = vrot.lane.b32.xlu0 %v14318_v21, %s13961_s3 }
 0x1c5   : > { %982 = vrot.lane.b32.xlu1 %v14320_v24, %s13961_s3  ;;  %1012 = vrot.lane.b32.xlu0 %v14318_v21, %s13960_s2 }
 0x1c9   : > { %1014 = vrot.lane.b32.xlu1 %v14320_v24, %s13960_s2  ;;  %998 = vrot.lane.b32.xlu0 %v14320_v24, %s13962_s12 }
 0x1cd   : > { %1000 = vrot.lane.b32.xlu1 %v14334_v27, %s13962_s12  ;;  %984 = vrot.lane.b32.xlu0 %v14334_v27, %s13961_s3 }
 0x1d1   : > { %986 = vrot.lane.b32.xlu1 %v14336_v29, %s13961_s3  ;;  %1016 = vrot.lane.b32.xlu0 %v14334_v27, %s13960_s2 }
 0x1d5   : > { %1018 = vrot.lane.b32.xlu1 %v14336_v29, %s13960_s2  ;;  %1002 = vrot.lane.b32.xlu0 %v14336_v29, %s13962_s12 }
 0x1d9   : > { %990 = vrot.lane.b32.xlu1 %v14346_v32, %s13961_s3  ;;  %988 = vrot.lane.b32.xlu0 %v14352_v33, %s13961_s3 }
 0x1dd   : > { %1004 = vrot.lane.b32.xlu1 %v14352_v33, %s13962_s12  ;;  %1020 = vrot.lane.b32.xlu0 %v14352_v33, %s13960_s2 }
 0x1e1   : > { %1022 = vrot.lane.b32.xlu1 %v14346_v32, %s13960_s2  ;;  %1006 = vrot.lane.b32.xlu0 %v14346_v32, %s13962_s12 }
 0x1e5   : > { %5288 = vrot.lane.b32.xlu1 %v14366_v38, %s13962_s12  ;;  %5272 = vrot.lane.b32.xlu0 %v14366_v38, %s13961_s3 }
 0x1e9   : > { %5304 = vrot.lane.b32.xlu0 %v14366_v38, %s13960_s2  ;;  %5286 = vrot.lane.b32.xlu1 %v14372_v41, %s13962_s12 }
 0x1ed   : > { %5302 = vrot.lane.b32.xlu1 %v14372_v41, %s13960_s2  ;;  %5270 = vrot.lane.b32.xlu0 %v14372_v41, %s13961_s3 }
 0x1f1   : > { %5292 = vrot.lane.b32.xlu1 %v14382_v44, %s13962_s12  ;;  %5276 = vrot.lane.b32.xlu0 %v14382_v44, %s13961_s3 }
 0x1f5   : > { %5308 = vrot.lane.b32.xlu0 %v14382_v44, %s13960_s2  ;;  %5274 = vrot.lane.b32.xlu1 %v14388_v52, %s13961_s3 }
 0x1f7   : > { %v3173_v5 = vpop.permute.xlu1 %3172  ;;  %v3141_v7 = vpop.permute.xlu0 %3140 }
 0x1f8   : > { %v3288_v15 = vpack.i.b16 %v3141_v7, %v14238_v63  ;;  %v3291_v17 = vshrl.u32 %v3141_v7, 16  ;;  %v3299_v35 = vshrl.u32 %v3173_v5, 16 }
 0x1f9   : > { %5290 = vrot.lane.b32.xlu0 %v14388_v52, %s13962_s12  ;;  %5306 = vrot.lane.b32.xlu1 %v14388_v52, %s13960_s2 }
 0x1fa   : > { %v3292_v63 = vpack.i.b16 %v3291_v17, %v3290_v9  ;;  %v4226_v28 = vcombine.high %v3288_v15, %v14398_v60  ;;  %v4233_v36 = vrot.slane %v3288_v15, %v14400_v61 }
 0x1fb   : > { %v3157_v37 = vpop.permute.xlu0 %3156  ;;  %v3139_v39 = vpop.permute.xlu1 %3138 }
 0x1fc   : > { %v4240_v45 = vrot.slane %v4226_v28, %v14400_v61  ;;  %v4292_v46 = vcombine.high %v3292_v63, %v14398_v60  ;;  %v4299_v47 = vrot.slane %v3292_v63, %v14400_v61  ;;  %v3296_v48 = vpack.i.b16 %v3173_v5, %v3157_v37 }
 0x1fd   : > { %v3298_v49 = vshrl.u32 %v3157_v37, 16  ;;  %v3272_v50 = vpack.i.b16 %v3139_v39, %v14244_v1  ;;  %v3275_v53 = vshrl.u32 %v3139_v39, 16  ;;  %5296 = vrot.lane.b32.xlu1 %v14418_v22, %s13962_s12  ;;  %5280 = vrot.lane.b32.xlu0 %v14418_v22, %s13961_s3 }
 0x1fe   : > { %v4306_v51 = vrot.slane %v4292_v46, %v14400_v61  ;;  %v4241_v54 = vcombine.high %v3296_v48, %v14398_v60  ;;  %v4248_v55 = vrot.slane %v3296_v48, %v14400_v61 }
 0x1ff   : > { %v3300_v5 = vpack.i.b16 %v3299_v35, %v3298_v49  ;;  %v3276_v7 = vpack.i.b16 %v3275_v53, %v3274_v19  ;;  %v4094_v1 = vcombine.high %v3272_v50, %v14398_v60  ;;  %v14446_v9 = vrot.slane %v3272_v50, %v14400_v61  ;;  %v3155_v15 = vpop.permute.xlu0 %3154  ;;  %v3171_v37 = vpop.permute.xlu1 %3170 }
 0x200   : > { %v4255_v17 = vrot.slane %v4241_v54, %v14400_v61  ;;  %v4256_v63 = vcombine.low %v4233_v36, %v4248_v55  ;;  %v4257_v28 = vcombine.high %v4233_v36, %v4248_v55  ;;  %v3282_v30 = vshrl.u32 %v3155_v15, 16 }
 0x201   : > { %v4307_v39 = vcombine.high %v3300_v5, %v14398_v60  ;;  %v4314_v46 = vrot.slane %v3300_v5, %v14400_v61  ;;  %v14452_v48 = vrot.slane %v4094_v1, %v14400_v61  ;;  %v4160_v19 = vcombine.high %v3276_v7, %v14398_v60  ;;  %5312 = vrot.lane.b32.xlu0 %v14418_v22, %s13960_s2 }
 0x202   : > { %v4264_v35 = vrot.slane %v4256_v63, %v14407_v10  ;;  %v4271_v49 = vrot.slane %v4257_v28, %v14407_v10  ;;  %v4272_v50 = vcombine.low %v4240_v45, %v4255_v17  ;;  %v4273_v36 = vcombine.high %v4240_v45, %v4255_v17  ;;  %5278 = vrot.lane.b32.xlu1 %v14427_v40, %s13961_s3 }
 0x203   : > { %v4321_v53 = vrot.slane %v4307_v39, %v14400_v61  ;;  %v4322_v54 = vcombine.low %v4299_v47, %v4314_v46  ;;  %v4323_v55 = vcombine.high %v4299_v47, %v4314_v46  ;;  %v14463_v5 = vrot.slane %v3276_v7, %v14400_v61  ;;  %v3137_v1 = vpop.permute.xlu0 %3136 }
 0x204   : > { %v14466_v59 = vrot.slane %v4272_v50, %v14407_v10  ;;  %v14469_v63 = vrot.slane %v4273_v36, %v14407_v10  ;;  %v5058_v28 = vcombine.low %v4264_v35, %v4271_v49  ;;  %v12316_v56 = vcombine.high %v4264_v35, %v4271_v49  ;;  %v3153_v50 = vpop.permute.xlu1 %3152 }
 0x205   : > { %v14472_v45 = vrot.slane %v4322_v54, %v14407_v10  ;;  %v14475_v17 = vrot.slane %v4323_v55, %v14407_v10  ;;  %v4338_v39 = vcombine.low %v4306_v51, %v4321_v53  ;;  %v4339_v47 = vcombine.high %v4306_v51, %v4321_v53  ;;  %5294 = vrot.lane.b32.xlu0 %v14427_v40, %s13962_s12 }
 0x206   : > { %v14480_v7 = vrot.slane %v5058_v28, %v14400_v61  ;;  %v14483_v46 = vrot.slane %v12316_v56, %v14400_v61  ;;  %5310 = vrot.lane.b32.xlu1 %v14427_v40, %s13960_s2  ;;  %v4174_v54 = vrot.slane %v4160_v19, %v14400_v61  ;;  %v3280_v55 = vpack.i.b16 %v3171_v37, %v3155_v15 }
 0x207   : > { %v14492_v51 = vrot.slane %v4338_v39, %v14407_v10  ;;  %v14495_v36 = vrot.slane %v4339_v47, %v14407_v10  ;;  %v3283_v28 = vshrl.u32 %v3171_v37, 16  ;;  %v3256_v43 = vpack.i.b16 %v3137_v1, %v14254_v2  ;;  %v3169_v34 = vpop.permute.xlu0 %3168 }
 0x208   : > { %v3259_v31 = vshrl.u32 %v3137_v1, 16  ;;  %v3266_v26 = vshrl.u32 %v3153_v50, 16  ;;  %v4109_v23 = vcombine.high %v3280_v55, %v14398_v60  ;;  %v4116_v15 = vrot.slane %v3280_v55, %v14400_v61  ;;  %v3135_v56 = vpop.permute.xlu1 %3134 }
 0x209   : > { %5284 = vrot.lane.b32.xlu0 %v14429_v42, %s13961_s3  ;;  %v3284_v25 = vpack.i.b16 %v3283_v28, %v3282_v30  ;;  %v3962_v37 = vcombine.high %v3256_v43, %v14398_v60  ;;  %v3969_v20 = vrot.slane %v3256_v43, %v14400_v61  ;;  %v3264_v1 = vpack.i.b16 %v3169_v34, %v3153_v50 }
 0x20a   : > { %5300 = vrot.lane.b32.xlu1 %v14429_v42, %s13962_s12  ;;  %v3260_v19 = vpack.i.b16 %v3259_v31, %v3258_v12  ;;  %v3267_v58 = vshrl.u32 %v3169_v34, 16  ;;  %v4123_v57 = vrot.slane %v4109_v23, %v14400_v61  ;;  %v4124_v30 = vcombine.low %v14446_v9, %v4116_v15 }
 0x20b   : > { %v4125_v28 = vcombine.high %v14446_v9, %v4116_v15  ;;  %v4175_v55 = vcombine.high %v3284_v25, %v14398_v60  ;;  %v4182_v47 = vrot.slane %v3284_v25, %v14400_v61  ;;  %v3976_v39 = vrot.slane %v3962_v37, %v14400_v61 }
 0x20c   : > { %v4028_v53 = vcombine.high %v3260_v19, %v14398_v60  ;;  %v4035_v2 = vrot.slane %v3260_v19, %v14400_v61  ;;  %v4132_v12 = vrot.slane %v4124_v30, %v14407_v10  ;;  %v4140_v31 = vcombine.low %v14452_v48, %v4123_v57 }
 0x20d   : > { %5316 = vrot.lane.b32.xlu0 %v14429_v42, %s13960_s2  ;;  %v4139_v23 = vrot.slane %v4125_v28, %v14407_v10  ;;  %v4141_v34 = vcombine.high %v14452_v48, %v4123_v57  ;;  %v4189_v43 = vrot.slane %v4175_v55, %v14400_v61  ;;  %v4190_v25 = vcombine.low %v14463_v5, %v4182_v47 }
 0x20e   : > { %v4191_v9 = vcombine.high %v14463_v5, %v4182_v47  ;;  %v4042_v50 = vrot.slane %v4028_v53, %v14400_v61  ;;  %v14536_v15 = vrot.slane %v4140_v31, %v14407_v10 }
 0x20f   : > { %v14539_v37 = vrot.slane %v4141_v34, %v14407_v10  ;;  %v4958_v19 = vcombine.low %v4132_v12, %v4139_v23  ;;  %v12312_v30 = vcombine.high %v4132_v12, %v4139_v23  ;;  %v14542_v28 = vrot.slane %v4190_v25, %v14407_v10  ;;  %v3151_v23 = vpop.permute.xlu0 %3150 }
 0x210   : > { %v14545_v57 = vrot.slane %v4191_v9, %v14407_v10  ;;  %v4206_v48 = vcombine.low %v4174_v54, %v4189_v43  ;;  %v4207_v55 = vcombine.high %v4174_v54, %v4189_v43  ;;  %v3268_v25 = vpack.i.b16 %v3267_v58, %v3266_v26 }
 0x211   : > { %v14548_v5 = vrot.slane %v4958_v19, %v14400_v61  ;;  %v14551_v53 = vrot.slane %v12312_v30, %v14400_v61  ;;  %v3977_v9 = vcombine.high %v3264_v1, %v14398_v60  ;;  %v3984_v19 = vrot.slane %v3264_v1, %v14400_v61 }
 0x212   : > { %v14558_v31 = vrot.slane %v4206_v48, %v14407_v10  ;;  %v14561_v34 = vrot.slane %v4207_v55, %v14407_v10  ;;  %v3240_v30 = vpack.i.b16 %v3135_v56, %v14260_v3  ;;  %v3243_v12 = vshrl.u32 %v3135_v56, 16 }
 0x213   : > { %v3250_v47 = vshrl.u32 %v3151_v23, 16  ;;  %v3991_v54 = vrot.slane %v3977_v9, %v14400_v61  ;;  %v3992_v0 = vcombine.low %v3969_v20, %v3984_v19  ;;  %v3993_v49 = vcombine.high %v3969_v20, %v3984_v19  ;;  %v3167_v9 = vpop.permute.xlu1 %3166 }
 0x214   : > { %v4043_v58 = vcombine.high %v3268_v25, %v14398_v60  ;;  %v4050_v26 = vrot.slane %v3268_v25, %v14400_v61  ;;  %v3244_v1 = vpack.i.b16 %v3243_v12, %v3242_v14  ;;  %v3830_v43 = vcombine.high %v3240_v30, %v14398_v60 }
 0x215   : > { %v3837_v48 = vrot.slane %v3240_v30, %v14400_v61  ;;  %v4000_v35 = vrot.slane %v3992_v0, %v14407_v10  ;;  %v4007_v56 = vrot.slane %v3993_v49, %v14407_v10  ;;  %v4008_v55 = vcombine.low %v3976_v39, %v3991_v54 }
 0x216   : > { %v4009_v62 = vcombine.high %v3976_v39, %v3991_v54  ;;  %v4057_v20 = vrot.slane %v4043_v58, %v14400_v61  ;;  %v4058_v19 = vcombine.low %v4035_v2, %v4050_v26  ;;  %v4059_v42 = vcombine.high %v4035_v2, %v4050_v26 }
 0x217   : > { %v3844_v25 = vrot.slane %v3830_v43, %v14400_v61  ;;  %v14586_v3 = vrot.slane %v4008_v55, %v14407_v10  ;;  %v4858_v12 = vcombine.low %v4000_v35, %v4007_v56  ;;  %v12308_v30 = vcombine.high %v4000_v35, %v4007_v56  ;;  %v3133_v55 = vpop.permute.xlu0 %3132 }
 0x218   : > { %v14589_v14 = vrot.slane %v4009_v62, %v14407_v10  ;;  %v14592_v0 = vrot.slane %v4058_v19, %v14407_v10  ;;  %v14595_v49 = vrot.slane %v4059_v42, %v14407_v10  ;;  %v4074_v39 = vcombine.low %v4042_v50, %v4057_v20 }
 0x219   : > { %v4075_v54 = vcombine.high %v4042_v50, %v4057_v20  ;;  %v14598_v2 = vrot.slane %v4858_v12, %v14400_v61  ;;  %v14601_v43 = vrot.slane %v12308_v30, %v14400_v61  ;;  %v3896_v56 = vcombine.high %v3244_v1, %v14398_v60  ;;  %v3149_v30 = vpop.permute.xlu1 %3148 }
 0x21a   : > { %v14608_v58 = vrot.slane %v4074_v39, %v14407_v10  ;;  %v3903_v20 = vrot.slane %v3244_v1, %v14400_v61  ;;  %v3248_v19 = vpack.i.b16 %v3167_v9, %v3151_v23  ;;  %v3251_v12 = vshrl.u32 %v3167_v9, 16 }
 0x21b   : > { %v14611_v42 = vrot.slane %v4075_v54, %v14407_v10  ;;  %v3224_v35 = vpack.i.b16 %v3133_v55, %v14270_v6  ;;  %v3227_v62 = vshrl.u32 %v3133_v55, 16  ;;  %v3910_v50 = vrot.slane %v3896_v56, %v14400_v61 }
 0x21c   : > { %v3252_v40 = vpack.i.b16 %v3251_v12, %v3250_v47  ;;  %v3845_v26 = vcombine.high %v3248_v19, %v14398_v60  ;;  %v3852_v22 = vrot.slane %v3248_v19, %v14400_v61  ;;  %v19028_v23 = vshrl.u32 %v14270_v6, 16 }
 0x21d   : > { %v3698_v9 = vcombine.high %v3224_v35, %v14398_v60  ;;  %v3705_v39 = vrot.slane %v3224_v35, %v14400_v61  ;;  %v3234_v52 = vshrl.u32 %v3149_v30, 16 }
 0x21e   : > { %v3228_v1 = vpack.i.b16 %v3227_v62, %v19028_v23  ;;  %v3859_v54 = vrot.slane %v3845_v26, %v14400_v61  ;;  %v3860_v44 = vcombine.low %v3837_v48, %v3852_v22  ;;  %v3861_v41 = vcombine.high %v3837_v48, %v3852_v22 }
 0x21f   : > { %v3911_v55 = vcombine.high %v3252_v40, %v14398_v60  ;;  %v3918_v47 = vrot.slane %v3252_v40, %v14400_v61  ;;  %v14635_v56 = vrot.slane %v3698_v9, %v14400_v61 }
 0x220   : > { %v3764_v19 = vcombine.high %v3228_v1, %v14398_v60  ;;  %v14639_v6 = vrot.slane %v3228_v1, %v14400_v61  ;;  %v3868_v62 = vrot.slane %v3860_v44, %v14407_v10  ;;  %v3875_v35 = vrot.slane %v3861_v41, %v14407_v10 }
 0x221   : > { %v3876_v12 = vcombine.low %v3844_v25, %v3859_v54  ;;  %v3877_v26 = vcombine.high %v3844_v25, %v3859_v54  ;;  %v3925_v22 = vrot.slane %v3911_v55, %v14400_v61  ;;  %v3926_v48 = vcombine.low %v3903_v20, %v3918_v47  ;;  %v3131_v55 = vpop.permute.xlu1 %3130 }
 0x222   : > { %v3927_v23 = vcombine.high %v3903_v20, %v3918_v47  ;;  %v14645_v40 = vrot.slane %v3764_v19, %v14400_v61  ;;  %v4758_v1 = vcombine.low %v3868_v62, %v3875_v35  ;;  %v12304_v33 = vcombine.high %v3868_v62, %v3875_v35  ;;  %v3165_v20 = vpop.permute.xlu0 %3164 }
 0x223   : > { %v14648_v9 = vrot.slane %v3876_v12, %v14407_v10  ;;  %v14651_v38 = vrot.slane %v3877_v26, %v14407_v10  ;;  %v14654_v44 = vrot.slane %v3926_v48, %v14407_v10  ;;  %v3942_v25 = vcombine.low %v3910_v50, %v3925_v22 }
 0x224   : > { %v14657_v41 = vrot.slane %v3927_v23, %v14407_v10  ;;  %v3943_v54 = vcombine.high %v3910_v50, %v3925_v22  ;;  %v14660_v47 = vrot.slane %v4758_v1, %v14400_v61  ;;  %v14663_v19 = vrot.slane %v12304_v33, %v14400_v61 }
 0x225   : > { %v14670_v35 = vrot.slane %v3942_v25, %v14407_v10  ;;  %v3232_v33 = vpack.i.b16 %v3165_v20, %v3149_v30  ;;  %v3235_v48 = vshrl.u32 %v3165_v20, 16  ;;  %v3208_v23 = vpack.i.b16 %v3131_v55, %v14276_v8 }
 0x226   : > { %v14673_v26 = vrot.slane %v3943_v54, %v14407_v10  ;;  %v3211_v1 = vshrl.u32 %v3131_v55, 16  ;;  %v19029_v54 = vcombine.low %v14466_v59, %v14469_v63  ;;  %v19030_v22 = vcombine.high %v14466_v59, %v14469_v63 }
 0x227   : > { %v3236_v20 = vpack.i.b16 %v3235_v48, %v3234_v52  ;;  %v3713_v50 = vcombine.high %v3232_v33, %v14398_v60  ;;  %v3720_v55 = vrot.slane %v3232_v33, %v14400_v61  ;;  %v19031_v62 = vshrl.u32 %v14276_v8, 16 }
 0x228   : > { %v5081_v12 = vrot.slane %v19029_v54, %v14400_v61  ;;  %v5089_v30 = vrot.slane %v19030_v22, %v14400_v61  ;;  %v3566_v25 = vcombine.high %v3208_v23, %v14398_v60  ;;  %v14698_v29 = vrot.slane %v3208_v23, %v14400_v61 }
 0x229   : > { %v3212_v32 = vpack.i.b16 %v3211_v1, %v19031_v62  ;;  %v5090_v54 = vcombine.low %v14480_v7, %v14483_v46  ;;  %v3727_v59 = vrot.slane %v3713_v50, %v14400_v61  ;;  %v3728_v63 = vcombine.low %v3705_v39, %v3720_v55 }
 0x22a   : > { %v5098_v27 = vcombine.low %v5081_v12, %v5089_v30  ;;  %v3729_v52 = vcombine.high %v3705_v39, %v3720_v55  ;;  %v3779_v22 = vcombine.high %v3236_v20, %v14398_v60  ;;  %v3786_v33 = vrot.slane %v3236_v20, %v14400_v61 }
 0x22b   : > { %v14706_v8 = vrot.slane %v3566_v25, %v14400_v61  ;;  %v3632_v62 = vcombine.high %v3212_v32, %v14398_v60  ;;  %v14710_v48 = vrot.slane %v3212_v32, %v14400_v61  ;;  %v3736_v23 = vrot.slane %v3728_v63, %v14407_v10 }
 0x22c   : > { %v3743_v7 = vrot.slane %v3729_v52, %v14407_v10  ;;  %v3744_v46 = vcombine.low %v14635_v56, %v3727_v59  ;;  %v3745_v39 = vcombine.high %v14635_v56, %v3727_v59  ;;  %v3793_v12 = vrot.slane %v3779_v22, %v14400_v61 }
 0x22d   : > { %v3794_v50 = vcombine.low %v14639_v6, %v3786_v33  ;;  %v3795_v1 = vcombine.high %v14639_v6, %v3786_v33  ;;  %v14720_v25 = vrot.slane %v3632_v62, %v14400_v61 }
 0x22e   : > { %v14723_v32 = vrot.slane %v3744_v46, %v14407_v10  ;;  %v14726_v30 = vrot.slane %v3745_v39, %v14407_v10  ;;  %v4658_v20 = vcombine.low %v3736_v23, %v3743_v7  ;;  %v12300_v55 = vcombine.high %v3736_v23, %v3743_v7  ;;  %v3147_v39 = vpop.permute.xlu0 %3146 }
 0x22f   : > { %v14729_v63 = vrot.slane %v3794_v50, %v14407_v10  ;;  %v14732_v56 = vrot.slane %v3795_v1, %v14407_v10  ;;  %v3810_v59 = vcombine.low %v14645_v40, %v3793_v12  ;;  %v3811_v6 = vcombine.high %v14645_v40, %v3793_v12  ;;  %v3163_v12 = vpop.permute.xlu1 %3162 }
 0x230   : > { %v14737_v52 = vrot.slane %v4658_v20, %v14400_v61  ;;  %v14740_v22 = vrot.slane %v12300_v55, %v14400_v61  ;;  %v14757_v50 = vrot.slane %v5090_v54, %v14407_v10  ;;  %v14760_v1 = vrot.slane %v5098_v27, %v14407_v10 }
 0x231   : > { %v14747_v23 = vrot.slane %v3810_v59, %v14407_v10  ;;  %v14750_v7 = vrot.slane %v3811_v6, %v14407_v10  ;;  %v19034_v20 = vcombine.low %v14472_v45, %v14475_v17  ;;  %v19035_v59 = vcombine.high %v14472_v45, %v14475_v17 }
 0x232   : > { %19032 = vst [vmem:[#allocation37_spill] sm:$0xff] %v14757_v50  ;;  %19033 = vst [vmem:[#allocation38_spill] sm:$0xff] %v14760_v1  ;;  %v19036_v27 = vcombine.low %v14492_v51, %v14495_v36  ;;  %v5106_v45 = vcombine.low %v14757_v50, %v14760_v1  ;;  %v3216_v33 = vpack.i.b16 %v3163_v12, %v3147_v39  ;;  %v3219_v24 = vshrl.u32 %v3163_v12, 16 }
 0x233   : > { %v5115_v55 = vrot.slane %v19034_v20, %v14400_v61  ;;  %v5123_v6 = vrot.slane %v19035_v59, %v14400_v61  ;;  %v19037_v20 = vcombine.high %v14492_v51, %v14495_v36  ;;  %v3218_v59 = vshrl.u32 %v3147_v39, 16 }
 0x234   : > { %v5131_v40 = vrot.slane %v19036_v27, %v14400_v61  ;;  %v19038_v54 = vcombine.low %v14536_v15, %v14539_v37  ;;  %v19039_v27 = vcombine.high %v14536_v15, %v14539_v37  ;;  %v5245_v36 = vshrl.u32 %v5106_v45, 16 }
 0x235   : > { %v5139_v62 = vrot.slane %v19037_v20, %v14400_v61  ;;  %v5140_v17 = vcombine.low %v5115_v55, %v5123_v6  ;;  %v3581_v55 = vcombine.high %v3216_v33, %v14398_v60  ;;  %v3588_v39 = vrot.slane %v3216_v33, %v14400_v61 }
 0x236   : > { %v4981_v21 = vrot.slane %v19038_v54, %v14400_v61  ;;  %v4989_v4 = vrot.slane %v19039_v27, %v14400_v61  ;;  %v4990_v12 = vcombine.low %v14548_v5, %v14551_v53  ;;  %v19042_v20 = vcombine.low %v14542_v28, %v14545_v57 }
 0x237   : > { %v5148_v46 = vcombine.low %v5131_v40, %v5139_v62  ;;  %v14793_v51 = vrot.slane %v5140_v17, %v14407_v10  ;;  %v3220_v40 = vpack.i.b16 %v3219_v24, %v3218_v59  ;;  %v3595_v54 = vrot.slane %v3581_v55, %v14400_v61 }
 0x238   : > { %v4998_v6 = vcombine.low %v4981_v21, %v4989_v4  ;;  %v3596_v15 = vcombine.low %v14698_v29, %v3588_v39  ;;  %v3597_v37 = vcombine.high %v14698_v29, %v3588_v39  ;;  %v5015_v17 = vrot.slane %v19042_v20, %v14400_v61  ;;  %v3129_v20 = vpop.permute.xlu0 %3128 }
 0x239   : > { %19040 = vst [vmem:[#allocation39_spill] sm:$0xff] %v14793_v51  ;;  %v14798_v62 = vrot.slane %v5148_v46, %v14407_v10  ;;  %v3647_v24 = vcombine.high %v3220_v40, %v14398_v60  ;;  %v3654_v46 = vrot.slane %v3220_v40, %v14400_v61  ;;  %v14814_v21 = vrot.slane %v4990_v12, %v14407_v10 }
 0x23a   : > { %v3604_v4 = vrot.slane %v3596_v15, %v14407_v10  ;;  %v3611_v5 = vrot.slane %v3597_v37, %v14407_v10  ;;  %v3612_v29 = vcombine.low %v14706_v8, %v3595_v54  ;;  %v3613_v53 = vcombine.high %v14706_v8, %v3595_v54 }
 0x23b   : > { %19041 = vst [vmem:[#allocation40_spill] sm:$0xff] %v14798_v62  ;;  %v5156_v33 = vcombine.low %v14793_v51, %v14798_v62  ;;  %19043 = vst [vmem:[#allocation41_spill] sm:$0xff] %v14814_v21  ;;  %v3661_v55 = vrot.slane %v3647_v24, %v14400_v61  ;;  %v3662_v39 = vcombine.low %v14710_v48, %v3654_v46 }
 0x23c   : > { %v14823_v40 = vrot.slane %v3612_v29, %v14407_v10  ;;  %v14826_v12 = vrot.slane %v3613_v53, %v14407_v10  ;;  %v3663_v15 = vcombine.high %v14710_v48, %v3654_v46  ;;  %v4558_v37 = vcombine.low %v3604_v4, %v3611_v5  ;;  %v3145_v46 = vpop.permute.xlu1 %3144 }
 0x23d   : > { %v5244_v59 = vpack.i.b16 %v5156_v33, %v5106_v45  ;;  %v5246_v27 = vshrl.u32 %v5156_v33, 16  ;;  %v14832_v54 = vrot.slane %v3662_v39, %v14407_v10  ;;  %v3678_v33 = vcombine.low %v14720_v25, %v3661_v55 }
 0x23e   : > { %v14836_v24 = vrot.slane %v3663_v15, %v14407_v10  ;;  %v3679_v29 = vcombine.high %v14720_v25, %v3661_v55  ;;  %v14840_v53 = vrot.slane %v4558_v37, %v14400_v61  ;;  %v12296_v48 = vcombine.high %v3604_v4, %v3611_v5  ;;  %v3161_v5 = vpop.permute.xlu0 %3160 }
 0x23f   : > { %13104 = vmatprep.subr.msk.bf16.mxu1 %vm7430_vm0, %v5244_v59  ;;  %v7477_v8 = vsel %vm7430_vm0, %v5244_v59, 0  ;;  %v5247_v45 = vpack.i.b16 %v5246_v27, %v5245_v36  ;;  %v14844_v36 = vrot.slane %v3678_v33, %v14407_v10  ;;  %v14862_v15 = vrot.slane %v4998_v6, %v14407_v10 }
 0x240   : > { %12817 = vmatpush3.bf16.xpose.msra.mxu1 %v7477_v8  ;;  %v14852_v25 = vrot.slane %v3679_v29, %v14407_v10  ;;  %v14855_v55 = vrot.slane %v12296_v48, %v14400_v61  ;;  %v19045_v37 = vcombine.high %v14542_v28, %v14545_v57  ;;  %v19047_v29 = vcombine.high %v14558_v31, %v14561_v34  ;;  %v3127_v51 = vpop.permute.xlu1 %3126 }
 0x241   : > { %13112 = vmatprep.subr.msk.bf16.mxu0 %vm7430_vm0, %v5247_v45  ;;  %v7622_v39 = vsel %vm7430_vm0, %v5247_v45, 0  ;;  %19044 = vst [vmem:[#allocation42_spill] sm:$0xff] %v14862_v15  ;;  %v19046_v45 = vcombine.low %v14558_v31, %v14561_v34  ;;  %v3192_v28 = vpack.i.b16 %v3129_v20, %v14286_v11  ;;  %v3195_v57 = vshrl.u32 %v3129_v20, 16 }
 0x242   : > { %12849 = vmatpush3.bf16.xpose.msra.mxu0 %v7622_v39  ;;  %v5023_v8 = vrot.slane %v19045_v37, %v14400_v61  ;;  %v5039_v48 = vrot.slane %v19047_v29, %v14400_v61  ;;  %v5006_v37 = vcombine.low %v14814_v21, %v14862_v15  ;;  %v3202_v27 = vshrl.u32 %v3145_v46, 16 }
 0x243   : > { %v5031_v33 = vrot.slane %v19046_v45, %v14400_v61  ;;  %v19048_v59 = vshrl.u32 %v14286_v11, 16  ;;  %v3434_v34 = vcombine.high %v3192_v28, %v14398_v60  ;;  %v3441_v29 = vrot.slane %v3192_v28, %v14400_v61 }
 0x244   : > { %v5040_v4 = vcombine.low %v5015_v17, %v5023_v8  ;;  %v3200_v6 = vpack.i.b16 %v3161_v5, %v3145_v46  ;;  %v5233_v62 = vshrl.u32 %v5006_v37, 16  ;;  %v3203_v21 = vshrl.u32 %v3161_v5, 16 }
 0x245   : > { %v5048_v45 = vcombine.low %v5031_v33, %v5039_v48  ;;  %v3196_v31 = vpack.i.b16 %v3195_v57, %v19048_v59  ;;  %v3448_v17 = vrot.slane %v3434_v34, %v14400_v61  ;;  %v3176_v48 = vpack.i.b16 %v3127_v51, %v14292_v13 }
 0x246   : > { %v14888_v39 = vrot.slane %v5040_v4, %v14407_v10  ;;  %v3449_v59 = vcombine.high %v3200_v6, %v14398_v60  ;;  %v3204_v33 = vpack.i.b16 %v3203_v21, %v3202_v27  ;;  %v3456_v4 = vrot.slane %v3200_v6, %v14400_v61 }
 0x247   : > { %v14891_v20 = vrot.slane %v5048_v45, %v14407_v10  ;;  %v3500_v8 = vcombine.high %v3196_v31, %v14398_v60  ;;  %v3507_v11 = vrot.slane %v3196_v31, %v14400_v61  ;;  %v3179_v57 = vshrl.u32 %v3127_v51, 16 }
 0x248   : > { %19049 = vst [vmem:[#allocation43_spill] sm:$0xff] %v14888_v39  ;;  %v3463_v5 = vrot.slane %v3449_v59, %v14400_v61  ;;  %v19051_v45 = vcombine.low %v14586_v3, %v14589_v14  ;;  %v3464_v50 = vcombine.low %v3441_v29, %v3456_v4  ;;  %v3515_v6 = vcombine.high %v3204_v33, %v14398_v60 }
 0x249   : > { %19050 = vst [vmem:[#allocation44_spill] sm:$0xff] %v14891_v20  ;;  %v5056_v46 = vcombine.low %v14888_v39, %v14891_v20  ;;  %v3514_v28 = vrot.slane %v3500_v8, %v14400_v61  ;;  %v3465_v39 = vcombine.high %v3441_v29, %v3456_v4  ;;  %v3522_v20 = vrot.slane %v3204_v33, %v14400_v61 }
 0x24a   : > { %v14907_v31 = vrot.slane %v19051_v45, %v14400_v61  ;;  %v3480_v21 = vcombine.low %v3448_v17, %v3463_v5  ;;  %v3481_v27 = vcombine.high %v3448_v17, %v3463_v5  ;;  %v3472_v59 = vrot.slane %v3464_v50, %v14407_v10 }
 0x24b   : > { %v5232_v34 = vpack.i.b16 %v5056_v46, %v5006_v37  ;;  %v5234_v15 = vshrl.u32 %v5056_v46, 16  ;;  %v3479_v45 = vrot.slane %v3465_v39, %v14407_v10  ;;  %v3529_v17 = vrot.slane %v3515_v6, %v14400_v61 }
 0x24c   : > { %v14916_v37 = vrot.slane %v3480_v21, %v14407_v10  ;;  %v14919_v29 = vrot.slane %v3481_v27, %v14407_v10  ;;  %v3530_v46 = vcombine.low %v3507_v11, %v3522_v20  ;;  %v3531_v33 = vcombine.high %v3507_v11, %v3522_v20 }
 0x24d   : > { %13105 = vmatprep.subr.msk.bf16.mxu1 %vm7430_vm0, %v5232_v34  ;;  %v5235_v8 = vpack.i.b16 %v5234_v15, %v5233_v62  ;;  %v7474_v51 = vsel %vm7430_vm0, %v5232_v34, 0  ;;  %v4458_v62 = vcombine.low %v3472_v59, %v3479_v45  ;;  %v12292_v15 = vcombine.high %v3472_v59, %v3479_v45 }
 0x24e   : > { %12819 = vmatpush3.bf16.xpose.msra.mxu1 %v7474_v51  ;;  %v19052_v4 = vshrl.u32 %v14292_v13, 16  ;;  %v14926_v39 = vrot.slane %v3530_v46, %v14407_v10  ;;  %v3546_v5 = vcombine.low %v3514_v28, %v3529_v17  ;;  %v3547_v34 = vcombine.high %v3514_v28, %v3529_v17 }
 0x24f   : > { %13113 = vmatprep.subr.msk.bf16.mxu0 %vm7430_vm0, %v5235_v8  ;;  %v14931_v27 = vrot.slane %v3531_v33, %v14407_v10  ;;  %v14934_v6 = vrot.slane %v4458_v62, %v14400_v61  ;;  %v14937_v20 = vrot.slane %v12292_v15, %v14400_v61  ;;  %v3309_v51 = vrot.slane %v3176_v48, %v14400_v61  ;;  %v3143_v33 = vpop.permute.xlu0 %3142 }
 0x250   : > { %v3180_v50 = vpack.i.b16 %v3179_v57, %v19052_v4  ;;  %v14942_v11 = vrot.slane %v3546_v5, %v14407_v10  ;;  %v14945_v28 = vrot.slane %v3547_v34, %v14407_v10  ;;  %v3302_v57 = vcombine.high %v3176_v48, %v14398_v60  ;;  %v3159_v5 = vpop.permute.xlu1 %3158 }
 0x251   : > { %v7619_v48 = vsel %vm7430_vm0, %v5235_v8, 0  ;;  %v19053_v45 = vcombine.high %v14586_v3, %v14589_v14  ;;  %v4890_v59 = vcombine.low %v14598_v2, %v14601_v43  ;;  %v19054_v15 = vcombine.low %v14592_v0, %v14595_v49 }
 0x252   : > { %v3368_v17 = vcombine.high %v3180_v50, %v14398_v60  ;;  %v3375_v46 = vrot.slane %v3180_v50, %v14400_v61  ;;  %v3316_v4 = vrot.slane %v3302_v57, %v14400_v61  ;;  %12851 = vmatpush3.bf16.xpose.msra.mxu0 %v7619_v48  ;;  %v19055_v8 = vcombine.high %v14592_v0, %v14595_v49 }
 0x253   : > { %v4889_v50 = vrot.slane %v19053_v45, %v14400_v61  ;;  %v4915_v62 = vrot.slane %v19054_v15, %v14400_v61  ;;  %v19057_v3 = vcombine.high %v14608_v58, %v14611_v42  ;;  %v3186_v2 = vshrl.u32 %v3143_v33, 16 }
 0x254   : > { %v3382_v34 = vrot.slane %v3368_v17, %v14400_v61  ;;  %v4923_v57 = vrot.slane %v19055_v8, %v14400_v61  ;;  %v19056_v17 = vcombine.low %v14608_v58, %v14611_v42  ;;  %v14985_v43 = vrot.slane %v4890_v59, %v14407_v10 }
 0x255   : > { %v4939_v14 = vrot.slane %v19057_v3, %v14400_v61  ;;  %v4898_v45 = vcombine.low %v14907_v31, %v4889_v50  ;;  %v3184_v15 = vpack.i.b16 %v3159_v5, %v3143_v33  ;;  %v3187_v13 = vshrl.u32 %v3159_v5, 16 }
 0x256   : > { %v4931_v48 = vrot.slane %v19056_v17, %v14400_v61  ;;  %19058 = vst [vmem:[#allocation45_spill] sm:$0xff] %v14985_v43  ;;  %v4940_v0 = vcombine.low %v4915_v62, %v4923_v57  ;;  %v19059_v8 = vcombine.low %v14648_v9, %v14651_v38  ;;  %v19060_v58 = vcombine.high %v14648_v9, %v14651_v38 }
 0x257   : > { %v14997_v3 = vrot.slane %v4898_v45, %v14407_v10  ;;  %v3188_v59 = vpack.i.b16 %v3187_v13, %v3186_v2  ;;  %v3317_v31 = vcombine.high %v3184_v15, %v14398_v60  ;;  %v3324_v33 = vrot.slane %v3184_v15, %v14400_v61 }
 0x258   : > { %v4948_v49 = vcombine.low %v4931_v48, %v4939_v14  ;;  %v4781_v17 = vrot.slane %v19059_v8, %v14400_v61  ;;  %v4789_v42 = vrot.slane %v19060_v58, %v14400_v61  ;;  %v15002_v62 = vrot.slane %v4940_v0, %v14407_v10 }
 0x259   : > { %19061 = vst [vmem:[#allocation46_spill] sm:$0xff] %v14997_v3  ;;  %v4790_v50 = vcombine.low %v14660_v47, %v14663_v19  ;;  %v4906_v38 = vcombine.low %v14985_v43, %v14997_v3  ;;  %v3331_v9 = vrot.slane %v3317_v31, %v14400_v61  ;;  %v3332_v13 = vcombine.low %v3309_v51, %v3324_v33 }
 0x25a   : > { %19062 = vst [vmem:[#allocation47_spill] sm:$0xff] %v15002_v62  ;;  %v15005_v5 = vrot.slane %v4948_v49, %v14407_v10  ;;  %v4798_v57 = vcombine.low %v4781_v17, %v4789_v42  ;;  %v3333_v48 = vcombine.high %v3309_v51, %v3324_v33  ;;  %v3383_v2 = vcombine.high %v3188_v59, %v14398_v60  ;;  %v15022_v42 = vpop.permute.xlu1 %992 }
 0x25b   : > { %v3390_v45 = vrot.slane %v3188_v59, %v14400_v61  ;;  %v15017_v15 = vrot.slane %v4790_v50, %v14407_v10  ;;  %v5221_v0 = vshrl.u32 %v4906_v38, 16  ;;  %v3340_v47 = vrot.slane %v3332_v13, %v14407_v10 }
 0x25c   : > { %19063 = vst [vmem:[#allocation48_spill] sm:$0xff] %v15005_v5  ;;  %v4956_v14 = vcombine.low %v15002_v62, %v15005_v5  ;;  %v3347_v19 = vrot.slane %v3333_v48, %v14407_v10  ;;  %v3348_v49 = vcombine.low %v3316_v4, %v3331_v9  ;;  %v3349_v58 = vcombine.high %v3316_v4, %v3331_v9 }
 0x25d   : > { %19064 = vst [vmem:[#allocation49_spill] sm:$0xff] %v15017_v15  ;;  %v3397_v51 = vrot.slane %v3383_v2, %v14400_v61  ;;  %v3398_v59 = vcombine.low %v3375_v46, %v3390_v45  ;;  %v3399_v33 = vcombine.high %v3375_v46, %v3390_v45  ;;  %v19070_v62 = vshrl.u32 %v14302_v16, 16 }
 0x25e   : > { %v5220_v8 = vpack.i.b16 %v4956_v14, %v4906_v38  ;;  %v5222_v17 = vshrl.u32 %v4956_v14, 16  ;;  %v15025_v31 = vrot.slane %v3348_v49, %v14407_v10  ;;  %v4358_v50 = vcombine.low %v3340_v47, %v3347_v19 }
 0x25f   : > { %v15029_v13 = vrot.slane %v3349_v58, %v14407_v10  ;;  %v3414_v48 = vcombine.low %v3382_v34, %v3397_v51  ;;  %v3415_v38 = vcombine.high %v3382_v34, %v3397_v51  ;;  %v15032_v4 = vrot.slane %v3398_v59, %v14407_v10  ;;  %v977_v58 = vpop.permute.xlu0 %976 }
 0x260   : > { %13106 = vmatprep.subr.msk.bf16.mxu1 %vm7430_vm0, %v5220_v8  ;;  %v5223_v21 = vpack.i.b16 %v5222_v17, %v5221_v0  ;;  %v15035_v9 = vrot.slane %v3399_v33, %v14407_v10  ;;  %v15038_v14 = vrot.slane %v4358_v50, %v14400_v61  ;;  %v12288_v2 = vcombine.high %v3340_v47, %v3347_v19 }
 0x261   : > { %v15042_v46 = vrot.slane %v3414_v48, %v14407_v10  ;;  %v15045_v45 = vrot.slane %v3415_v38, %v14407_v10  ;;  %v7471_v17 = vsel %vm7430_vm0, %v5220_v8, 0  ;;  %v15064_v33 = vrot.slane %v4798_v57, %v14407_v10  ;;  %v979_v38 = vpop.permute.xlu1 %978 }
 0x262   : > { %13114 = vmatprep.subr.msk.bf16.mxu0 %vm7430_vm0, %v5223_v21  ;;  %v15052_v49 = vrot.slane %v12288_v2, %v14400_v61  ;;  %12821 = vmatpush3.bf16.xpose.msra.mxu1 %v7471_v17  ;;  %v19066_v50 = vcombine.low %v14654_v44, %v14657_v41  ;;  %v19067_v8 = vcombine.high %v14654_v44, %v14657_v41  ;;  %v7616_v19 = vsel %vm7430_vm0, %v5223_v21, 0 }
 0x263   : > { %19065 = vst [vmem:[#allocation50_spill] sm:$0xff] %v15064_v33  ;;  %v19068_v51 = vcombine.low %v14670_v35, %v14673_v26  ;;  %v19069_v57 = vcombine.high %v14670_v35, %v14673_v26  ;;  %12853 = vmatpush3.bf16.xpose.msra.mxu0 %v7616_v19  ;;  %v1036_v47 = vshrl.u32 %v15022_v42, 16  ;;  %v1026_v44 = vpack.i.b16 %v977_v58, %v14302_v16 }
 0x264   : > { %v4815_v48 = vrot.slane %v19066_v50, %v14400_v61  ;;  %v4823_v2 = vrot.slane %v19067_v8, %v14400_v61  ;;  %v4806_v50 = vcombine.low %v15017_v15, %v15064_v33  ;;  %v1029_v41 = vshrl.u32 %v977_v58, 16 }
 0x265   : > { %v4831_v59 = vrot.slane %v19068_v51, %v14400_v61  ;;  %v4839_v17 = vrot.slane %v19069_v57, %v14400_v61  ;;  %v1048_v51 = vpack.i.b16 %v979_v38, %v14304_v18  ;;  %v1051_v34 = vshrl.u32 %v979_v38, 16  ;;  %v1009_v38 = vpop.permute.xlu0 %1008 }
 0x266   : > { %v4840_v8 = vcombine.low %v4815_v48, %v4823_v2  ;;  %v1030_v35 = vpack.i.b16 %v1029_v41, %v19070_v62  ;;  %v1158_v26 = vcombine.high %v1026_v44, %v14398_v60  ;;  %v1165_v21 = vrot.slane %v1026_v44, %v14400_v61 }
 0x267   : > { %v4848_v0 = vcombine.low %v4831_v59, %v4839_v17  ;;  %v5209_v57 = vshrl.u32 %v4806_v50, 16  ;;  %v19073_v58 = vshrl.u32 %v14304_v18, 16  ;;  %v1290_v48 = vcombine.high %v1048_v51, %v14398_v60 }
 0x268   : > { %v15093_v19 = vrot.slane %v4840_v8, %v14407_v10  ;;  %v1172_v16 = vrot.slane %v1158_v26, %v14400_v61  ;;  %v1224_v62 = vcombine.high %v1030_v35, %v14398_v60  ;;  %v1231_v2 = vrot.slane %v1030_v35, %v14400_v61 }
 0x269   : > { %v15096_v15 = vrot.slane %v4848_v0, %v14407_v10  ;;  %v1052_v59 = vpack.i.b16 %v1051_v34, %v19073_v58  ;;  %v15105_v17 = vrot.slane %v1048_v51, %v14400_v61  ;;  %v15110_v0 = vrot.slane %v1290_v48, %v14400_v61 }
 0x26a   : > { %19071 = vst [vmem:[#allocation51_spill] sm:$0xff] %v15093_v19  ;;  %v1238_v41 = vrot.slane %v1224_v62, %v14400_v61  ;;  %v1034_v8 = vpack.i.b16 %v1009_v38, %v15022_v42  ;;  %v1037_v26 = vshrl.u32 %v1009_v38, 16  ;;  %v19074_v51 = vcombine.low %v14723_v32, %v14726_v30 }
 0x26b   : > { %19072 = vst [vmem:[#allocation52_spill] sm:$0xff] %v15096_v15  ;;  %v4856_v44 = vcombine.low %v15093_v19, %v15096_v15  ;;  %v1356_v18 = vcombine.high %v1052_v59, %v14398_v60  ;;  %v15114_v34 = vrot.slane %v1052_v59, %v14400_v61  ;;  %v19075_v59 = vcombine.high %v14723_v32, %v14726_v30 }
 0x26c   : > { %v4681_v35 = vrot.slane %v19074_v51, %v14400_v61  ;;  %v1038_v33 = vpack.i.b16 %v1037_v26, %v1036_v47  ;;  %v1173_v62 = vcombine.high %v1034_v8, %v14398_v60  ;;  %v1180_v42 = vrot.slane %v1034_v8, %v14400_v61 }
 0x26d   : > { %v5208_v58 = vpack.i.b16 %v4856_v44, %v4806_v50  ;;  %v5210_v19 = vshrl.u32 %v4856_v44, 16  ;;  %v15123_v48 = vrot.slane %v1356_v18, %v14400_v61  ;;  %v4689_v15 = vrot.slane %v19075_v59, %v14400_v61 }
 0x26e   : > { %v4690_v38 = vcombine.low %v14737_v52, %v14740_v22  ;;  %v19076_v51 = vcombine.low %v14729_v63, %v14732_v56  ;;  %v1187_v30 = vrot.slane %v1173_v62, %v14400_v61  ;;  %v1188_v47 = vcombine.low %v1165_v21, %v1180_v42 }
 0x26f   : > { %13107 = vmatprep.subr.msk.bf16.mxu1 %vm7430_vm0, %v5208_v58  ;;  %v5211_v50 = vpack.i.b16 %v5210_v19, %v5209_v57  ;;  %v7468_v44 = vsel %vm7430_vm0, %v5208_v58, 0  ;;  %v4698_v18 = vcombine.low %v4681_v35, %v4689_v15  ;;  %v1189_v26 = vcombine.high %v1165_v21, %v1180_v42 }
 0x270   : > { %v4715_v32 = vrot.slane %v19076_v51, %v14400_v61  ;;  %v1239_v8 = vcombine.high %v1038_v33, %v14398_v60  ;;  %12823 = vmatpush3.bf16.xpose.msra.mxu1 %v7468_v44  ;;  %v1246_v52 = vrot.slane %v1038_v33, %v14400_v61  ;;  %v15144_v22 = vrot.slane %v4690_v38, %v14407_v10  ;;  %v995_v44 = vpop.permute.xlu0 %994 }
 0x271   : > { %13115 = vmatprep.subr.msk.bf16.mxu0 %vm7430_vm0, %v5211_v50  ;;  %v15147_v15 = vrot.slane %v4698_v18, %v14407_v10  ;;  %v19079_v57 = vcombine.high %v14729_v63, %v14732_v56  ;;  %v1196_v21 = vrot.slane %v1188_v47, %v14407_v10  ;;  %v1203_v35 = vrot.slane %v1189_v26, %v14407_v10  ;;  %v1011_v47 = vpop.permute.xlu1 %1010 }
 0x272   : > { %19077 = vst [vmem:[#allocation53_spill] sm:$0xff] %v15144_v22  ;;  %v1204_v58 = vcombine.low %v1172_v16, %v1187_v30  ;;  %v1205_v59 = vcombine.high %v1172_v16, %v1187_v30  ;;  %v1253_v62 = vrot.slane %v1239_v8, %v14400_v61  ;;  %v1254_v33 = vcombine.low %v1231_v2, %v1246_v52 }
 0x273   : > { %19078 = vst [vmem:[#allocation54_spill] sm:$0xff] %v15147_v15  ;;  %v4723_v19 = vrot.slane %v19079_v57, %v14400_v61  ;;  %v1255_v42 = vcombine.high %v1231_v2, %v1246_v52  ;;  %v15158_v38 = vcombine.low %v15144_v22, %v15147_v15  ;;  %v2214_v56 = vcombine.low %v1196_v21, %v1203_v35 }
 0x274   : > { %v15161_v18 = vrot.slane %v1204_v58, %v14407_v10  ;;  %v15164_v63 = vrot.slane %v1205_v59, %v14407_v10  ;;  %v12256_v51 = vcombine.high %v1196_v21, %v1203_v35  ;;  %v15167_v16 = vrot.slane %v1254_v33, %v14407_v10  ;;  %v981_v22 = vpop.permute.xlu0 %980 }
 0x275   : > { %v15170_v30 = vrot.slane %v1255_v42, %v14407_v10  ;;  %v1270_v2 = vcombine.low %v1238_v41, %v1253_v62  ;;  %v1271_v26 = vcombine.high %v1238_v41, %v1253_v62  ;;  %v15173_v8 = vrot.slane %v2214_v56, %v14400_v61  ;;  %v948_v62 = vpop.f32.mrf.mxu0 }
 0x276   : > { %v15176_v52 = vrot.slane %v12256_v51, %v14400_v61  ;;  %v19080_v33 = vcombine.low %v14747_v23, %v14750_v7  ;;  %v19081_v56 = vcombine.high %v14747_v23, %v14750_v7  ;;  %v1059_v21 = vshrl.u32 %v1011_v47, 16  ;;  %v19083_v23 = vld [vmem:[#allocation32_spill] sm:$0xff] }
 0x277   : > { %v15183_v35 = vrot.slane %v1270_v2, %v14407_v10  ;;  %v15186_v58 = vrot.slane %v1271_v26, %v14407_v10  ;;  %v4740_v2 = vcombine.low %v4715_v32, %v4723_v19  ;;  %v7613_v26 = vsel %vm7430_vm0, %v5211_v50, 0  ;;  %v15211_v32 = vpop.permute.xlu1 %996 }
 0x278   : > { %v4731_v42 = vrot.slane %v19080_v33, %v14400_v61  ;;  %v4739_v51 = vrot.slane %v19081_v56, %v14400_v61  ;;  %12855 = vmatpush3.bf16.xpose.msra.mxu0 %v7613_v26  ;;  %v1056_v57 = vpack.i.b16 %v1011_v47, %v995_v44  ;;  %v1058_v5 = vshrl.u32 %v995_v44, 16  ;;  %v19086_v44 = vld [vmem:[#allocation20_spill] sm:$0xff] }
 0x279   : > { %v15206_v33 = vrot.slane %v4740_v2, %v14407_v10  ;;  %v15209_v7 = vpack.c.bf16 %v948_v62, %v19083_v23  ;;  %v5197_v56 = vshrl.u32 %v15158_v38, 16  ;;  %v1064_v62 = vpack.i.b16 %v981_v22, %v19086_v44 }
 0x27a   : > { %v4748_v15 = vcombine.low %v4731_v42, %v4739_v51  ;;  %v1305_v50 = vcombine.high %v1056_v57, %v14398_v60  ;;  %v1312_v19 = vrot.slane %v1056_v57, %v14400_v61  ;;  %v1060_v2 = vpack.i.b16 %v1059_v21, %v1058_v5 }
 0x27b   : > { %19082 = vst [vmem:[#allocation55_spill] sm:$0xff] %v15206_v33  ;;  %19084 = vst [vmem:[#allocation32_spill] sm:$0xff] %v15209_v7  ;;  %5282 = vrot.lane.b32.xlu1 %v15209_v7, %s13961_s3  ;;  %v1067_v42 = vshrl.u32 %v981_v22, 16  ;;  %5298 = vrot.lane.b32.xlu0 %v15209_v7, %s13962_s12  ;;  %v19088_v41 = vshrl.u32 %v19086_v44, 16 }
 0x27c   : > { %v15218_v47 = vrot.slane %v4748_v15, %v14407_v10  ;;  %v1319_v51 = vrot.slane %v1305_v50, %v14400_v61  ;;  %v1320_v57 = vcombine.low %v15105_v17, %v1312_v19  ;;  %v1321_v23 = vcombine.high %v15105_v17, %v1312_v19 }
 0x27d   : > { %v19087_v15 = vcombine.low %v14823_v40, %v14826_v12  ;;  %v1371_v22 = vcombine.high %v1060_v2, %v14398_v60  ;;  %v1378_v59 = vrot.slane %v1060_v2, %v14400_v61  ;;  %v1068_v50 = vpack.i.b16 %v1067_v42, %v19088_v41 }
 0x27e   : > { %19085 = vst [vmem:[#allocation56_spill] sm:$0xff] %v15218_v47  ;;  %v4756_v21 = vcombine.low %v15206_v33, %v15218_v47  ;;  %v1328_v26 = vrot.slane %v1320_v57, %v14407_v10  ;;  %v1335_v17 = vrot.slane %v1321_v23, %v14407_v10  ;;  %v1336_v19 = vcombine.low %v15110_v0, %v1319_v51 }
 0x27f   : > { %v15232_v5 = vrot.slane %v19087_v15, %v14400_v61  ;;  %v1337_v43 = vcombine.high %v15110_v0, %v1319_v51  ;;  %v1385_v3 = vrot.slane %v1371_v22, %v14400_v61  ;;  %v1386_v33 = vcombine.low %v15114_v34, %v1378_v59  ;;  %5314 = vrot.lane.b32.xlu1 %v15209_v7, %s13960_s2 }
 0x280   : > { %v5196_v15 = vpack.i.b16 %v4756_v21, %v15158_v38  ;;  %v1387_v47 = vcombine.high %v15114_v34, %v1378_v59  ;;  %v1344_v41 = vrot.slane %v1336_v19, %v14407_v10  ;;  %v2314_v44 = vcombine.low %v1328_v26, %v1335_v17 }
 0x281   : > { %v1351_v2 = vrot.slane %v1337_v43, %v14407_v10  ;;  %v12260_v42 = vcombine.high %v1328_v26, %v1335_v17  ;;  %v1394_v0 = vrot.slane %v1386_v33, %v14407_v10  ;;  %v1402_v51 = vcombine.low %v15123_v48, %v1385_v3 }
 0x282   : > { %13108 = vmatprep.subr.msk.bf16.mxu1 %vm7430_vm0, %v5196_v15  ;;  %v1401_v38 = vrot.slane %v1387_v47, %v14407_v10  ;;  %v1403_v57 = vcombine.high %v15123_v48, %v1385_v3  ;;  %v2321_v34 = vrot.slane %v2314_v44, %v14400_v61  ;;  %v5198_v1 = vshrl.u32 %v4756_v21, 16 }
 0x283   : > { %v2329_v59 = vrot.slane %v12260_v42, %v14400_v61  ;;  %v2330_v23 = vcombine.low %v1344_v41, %v1351_v2  ;;  %v12261_v22 = vcombine.high %v1344_v41, %v1351_v2  ;;  %v1410_v43 = vrot.slane %v1402_v51, %v14407_v10 }
 0x284   : > { %v1417_v26 = vrot.slane %v1403_v57, %v14407_v10  ;;  %v2364_v17 = vcombine.low %v1394_v0, %v1401_v38  ;;  %v12262_v19 = vcombine.high %v1394_v0, %v1401_v38  ;;  %v5199_v51 = vpack.i.b16 %v5198_v1, %v5197_v56 }
 0x285   : > { %v2337_v33 = vrot.slane %v2330_v23, %v14400_v61  ;;  %v2345_v47 = vrot.slane %v12261_v22, %v14400_v61  ;;  %v2346_v7 = vcombine.low %v2321_v34, %v2329_v59  ;;  %v1422_v57 = vcombine.high %v1064_v62, %v14398_v60 }
 0x286   : > { %v2371_v3 = vrot.slane %v2364_v17, %v14400_v61  ;;  %v2379_v48 = vrot.slane %v12262_v19, %v14400_v61  ;;  %v2380_v44 = vcombine.low %v1410_v43, %v1417_v26  ;;  %v12263_v42 = vcombine.high %v1410_v43, %v1417_v26  ;;  %13116 = vmatprep.subr.msk.bf16.mxu0 %vm7430_vm0, %v5199_v51  ;;  %v983_v17 = vpop.permute.xlu1 %982 }
 0x287   : > { %v15266_v41 = vrot.slane %v2346_v7, %v14407_v10  ;;  %v2354_v2 = vcombine.low %v2337_v33, %v2345_v47  ;;  %v1429_v34 = vrot.slane %v1064_v62, %v14400_v61  ;;  %v1436_v7 = vrot.slane %v1422_v57, %v14400_v61 }
 0x288   : > { %v15270_v0 = vrot.slane %v2380_v44, %v14400_v61  ;;  %v15273_v38 = vrot.slane %v12263_v42, %v14400_v61  ;;  %v2396_v21 = vcombine.low %v2371_v3, %v2379_v48  ;;  %v1488_v1 = vcombine.high %v1068_v50, %v14398_v60  ;;  %v1013_v48 = vpop.permute.xlu0 %1012 }
 0x289   : > { %v15277_v59 = vrot.slane %v2354_v2, %v14407_v10  ;;  %v1495_v56 = vrot.slane %v1068_v50, %v14400_v61  ;;  %v7465_v43 = vsel %vm7430_vm0, %v5196_v15, 0  ;;  %v19090_v62 = vcombine.high %v14823_v40, %v14826_v12 }
 0x28a   : > { %v15284_v23 = vrot.slane %v2396_v21, %v14407_v10  ;;  %v1502_v19 = vrot.slane %v1488_v1, %v14400_v61  ;;  %12825 = vmatpush3.bf16.xpose.msra.mxu1 %v7465_v43  ;;  %v4590_v50 = vcombine.low %v14840_v53, %v14855_v55  ;;  %v19091_v33 = vcombine.low %v14832_v54, %v14836_v24 }
 0x28b   : > { %v4589_v26 = vrot.slane %v19090_v62, %v14400_v61  ;;  %v19092_v15 = vcombine.high %v14832_v54, %v14836_v24  ;;  %v19093_v12 = vcombine.low %v14844_v36, %v14852_v25  ;;  %v19094_v53 = vcombine.high %v14844_v36, %v14852_v25  ;;  %v19096_v24 = vld [vmem:[#allocation21_spill] sm:$0xff] }
 0x28c   : > { %19089 = vst [vmem:[#allocation20_spill] sm:$0xff] %v15284_v23  ;;  %v4615_v47 = vrot.slane %v19091_v33, %v14400_v61  ;;  %v7610_v42 = vsel %vm7430_vm0, %v5199_v51, 0  ;;  %v15315_v2 = vrot.slane %v4590_v50, %v14407_v10  ;;  %v1080_v57 = vpack.i.b16 %v983_v17, %v19096_v24 }
 0x28d   : > { %v4623_v3 = vrot.slane %v19092_v15, %v14400_v61  ;;  %v4598_v40 = vcombine.low %v15232_v5, %v4589_v26  ;;  %v4631_v44 = vrot.slane %v19093_v12, %v14400_v61  ;;  %v4639_v55 = vrot.slane %v19094_v53, %v14400_v61  ;;  %12857 = vmatpush3.bf16.xpose.msra.mxu0 %v7610_v42 }
 0x28e   : > { %19095 = vst [vmem:[#allocation57_spill] sm:$0xff] %v15315_v2  ;;  %v1083_v5 = vshrl.u32 %v983_v17, 16  ;;  %v1072_v43 = vpack.i.b16 %v1013_v48, %v15211_v32  ;;  %v1075_v62 = vshrl.u32 %v1013_v48, 16  ;;  %v19099_v25 = vshrl.u32 %v19096_v24, 16 }
 0x28f   : > { %v4640_v54 = vcombine.low %v4615_v47, %v4623_v3  ;;  %v15319_v21 = vrot.slane %v4598_v40, %v14407_v10  ;;  %v4648_v1 = vcombine.low %v4631_v44, %v4639_v55  ;;  %v1554_v26 = vcombine.high %v1080_v57, %v14398_v60 }
 0x290   : > { %v1084_v51 = vpack.i.b16 %v1083_v5, %v19099_v25  ;;  %v15329_v50 = vrot.slane %v1080_v57, %v14400_v61  ;;  %v19101_v47 = vshrl.u32 %v15211_v32, 16  ;;  %v1437_v3 = vcombine.high %v1072_v43, %v14398_v60 }
 0x291   : > { %19097 = vst [vmem:[#allocation21_spill] sm:$0xff] %v15319_v21  ;;  %v15323_v36 = vrot.slane %v4640_v54, %v14407_v10  ;;  %v4606_v17 = vcombine.low %v15315_v2, %v15319_v21  ;;  %v15334_v33 = vrot.slane %v4648_v1, %v14407_v10  ;;  %v15340_v48 = vrot.slane %v1554_v26, %v14400_v61 }
 0x292   : > { %v1076_v15 = vpack.i.b16 %v1075_v62, %v19101_v47  ;;  %v1620_v40 = vcombine.high %v1084_v51, %v14398_v60  ;;  %v15344_v12 = vrot.slane %v1084_v51, %v14400_v61  ;;  %v1444_v44 = vrot.slane %v1072_v43, %v14400_v61 }
 0x293   : > { %19098 = vst [vmem:[#allocation58_spill] sm:$0xff] %v15323_v36  ;;  %19100 = vst [vmem:[#allocation59_spill] sm:$0xff] %v15334_v33  ;;  %v4656_v53 = vcombine.low %v15323_v36, %v15334_v33  ;;  %v1451_v55 = vrot.slane %v1437_v3, %v14400_v61  ;;  %v5185_v5 = vshrl.u32 %v4606_v17, 16 }
 0x294   : > { %v1503_v32 = vcombine.high %v1076_v15, %v14398_v60  ;;  %v1510_v42 = vrot.slane %v1076_v15, %v14400_v61  ;;  %v15353_v54 = vrot.slane %v1620_v40, %v14400_v61  ;;  %v1452_v24 = vcombine.low %v1429_v34, %v1444_v44 }
 0x295   : > { %v1453_v57 = vcombine.high %v1429_v34, %v1444_v44  ;;  %v5184_v1 = vpack.i.b16 %v4656_v53, %v4606_v17  ;;  %v1468_v62 = vcombine.low %v1436_v7, %v1451_v55  ;;  %v1469_v25 = vcombine.high %v1436_v7, %v1451_v55 }
 0x296   : > { %v1517_v43 = vrot.slane %v1503_v32, %v14400_v61  ;;  %v1460_v51 = vrot.slane %v1452_v24, %v14407_v10  ;;  %v1518_v47 = vcombine.low %v1495_v56, %v1510_v42  ;;  %v1519_v3 = vcombine.high %v1495_v56, %v1510_v42  ;;  %v1015_v24 = vpop.permute.xlu1 %1014 }
 0x297   : > { %v1467_v26 = vrot.slane %v1453_v57, %v14407_v10  ;;  %13109 = vmatprep.subr.msk.bf16.mxu1 %vm7430_vm0, %v5184_v1  ;;  %v15360_v15 = vrot.slane %v1468_v62, %v14407_v10  ;;  %v15363_v40 = vrot.slane %v1469_v25, %v14407_v10  ;;  %v999_v62 = vpop.permute.xlu0 %998  ;;  %v7462_v57 = vsel %vm7430_vm0, %v5184_v1, 0 }
 0x298   : > { %v1534_v34 = vcombine.low %v1502_v19, %v1517_v43  ;;  %v1535_v17 = vcombine.high %v1502_v19, %v1517_v43  ;;  %v15366_v7 = vrot.slane %v1518_v47, %v14407_v10  ;;  %v15369_v44 = vrot.slane %v1519_v3, %v14407_v10  ;;  %12827 = vmatpush3.bf16.xpose.msra.mxu1 %v7462_v57 }
 0x299   : > { %v2414_v55 = vcombine.low %v1460_v51, %v1467_v26  ;;  %v12264_v32 = vcombine.high %v1460_v51, %v1467_v26  ;;  %v1088_v19 = vpack.i.b16 %v1015_v24, %v999_v62  ;;  %v19103_v47 = vcombine.high %v14916_v37, %v14919_v29 }
 0x29a   : > { %v15372_v56 = vrot.slane %v1534_v34, %v14407_v10  ;;  %v15375_v42 = vrot.slane %v1535_v17, %v14407_v10  ;;  %v5186_v34 = vshrl.u32 %v4656_v53, 16  ;;  %v1091_v17 = vshrl.u32 %v1015_v24, 16 }
 0x29b   : > { %v15382_v25 = vrot.slane %v2414_v55, %v14400_v61  ;;  %v15385_v43 = vrot.slane %v12264_v32, %v14400_v61  ;;  %v1090_v55 = vshrl.u32 %v999_v62, 16  ;;  %v19102_v32 = vcombine.low %v14916_v37, %v14919_v29 }
 0x29c   : > { %v5187_v22 = vpack.i.b16 %v5186_v34, %v5185_v5  ;;  %v4489_v26 = vrot.slane %v19103_v47, %v14400_v61  ;;  %v4490_v53 = vcombine.low %v14934_v6, %v14937_v20  ;;  %v19104_v24 = vcombine.low %v14926_v39, %v14931_v27 }
 0x29d   : > { %v4481_v51 = vrot.slane %v19102_v32, %v14400_v61  ;;  %v1092_v62 = vpack.i.b16 %v1091_v17, %v1090_v55  ;;  %v1569_v3 = vcombine.high %v1088_v19, %v14398_v60  ;;  %v1576_v32 = vrot.slane %v1088_v19, %v14400_v61 }
 0x29e   : > { %v4515_v1 = vrot.slane %v19104_v24, %v14400_v61  ;;  %v19105_v5 = vcombine.high %v14926_v39, %v14931_v27  ;;  %13117 = vmatprep.subr.msk.bf16.mxu0 %vm7430_vm0, %v5187_v22  ;;  %v15418_v37 = vrot.slane %v4490_v53, %v14407_v10  ;;  %v19107_v6 = vcombine.low %v14942_v11, %v14945_v28  ;;  %v15436_v24 = vpop.permute.xlu1 %1000 }
 0x29f   : > { %v4498_v29 = vcombine.low %v4481_v51, %v4489_v26  ;;  %v19108_v19 = vcombine.high %v14942_v11, %v14945_v28  ;;  %v1583_v34 = vrot.slane %v1569_v3, %v14400_v61  ;;  %v1584_v39 = vcombine.low %v15329_v50, %v1576_v32 }
 0x2a0   : > { %v4523_v57 = vrot.slane %v19105_v5, %v14400_v61  ;;  %19106 = vst [vmem:[#allocation60_spill] sm:$0xff] %v15418_v37  ;;  %v4531_v20 = vrot.slane %v19107_v6, %v14400_v61  ;;  %v1585_v27 = vcombine.high %v15329_v50, %v1576_v32  ;;  %v1635_v17 = vcombine.high %v1092_v62, %v14398_v60  ;;  %v985_v50 = vpop.permute.xlu0 %984 }
 0x2a1   : > { %v4539_v47 = vrot.slane %v19108_v19, %v14400_v61  ;;  %v1642_v51 = vrot.slane %v1092_v62, %v14400_v61  ;;  %v15434_v26 = vrot.slane %v4498_v29, %v14407_v10  ;;  %v1592_v11 = vrot.slane %v1584_v39, %v14407_v10 }
 0x2a2   : > { %v4540_v55 = vcombine.low %v4515_v1, %v4523_v57  ;;  %v1599_v28 = vrot.slane %v1585_v27, %v14407_v10  ;;  %v1600_v3 = vcombine.low %v15340_v48, %v1583_v34  ;;  %v1601_v5 = vcombine.high %v15340_v48, %v1583_v34 }
 0x2a3   : > { %19109 = vst [vmem:[#allocation61_spill] sm:$0xff] %v15434_v26  ;;  %v4548_v53 = vcombine.low %v4531_v20, %v4539_v47  ;;  %v1649_v32 = vrot.slane %v1635_v17, %v14400_v61  ;;  %v1650_v62 = vcombine.low %v15344_v12, %v1642_v51  ;;  %v1651_v29 = vcombine.high %v15344_v12, %v1642_v51  ;;  %v19115_v17 = vld [vmem:[#allocation23_spill] sm:$0xff] }
 0x2a4   : > { %v4506_v1 = vcombine.low %v15418_v37, %v15434_v26  ;;  %v15448_v57 = vrot.slane %v1600_v3, %v14407_v10  ;;  %v15451_v6 = vrot.slane %v1601_v5, %v14407_v10  ;;  %v2514_v20 = vcombine.low %v1592_v11, %v1599_v28  ;;  %v987_v5 = vpop.permute.xlu1 %986  ;;  %v19114_v3 = vld [vmem:[#allocation22_spill] sm:$0xff] }
 0x2a5   : > { %v12268_v19 = vcombine.high %v1592_v11, %v1599_v28  ;;  %v15454_v48 = vrot.slane %v1650_v62, %v14407_v10  ;;  %v15457_v47 = vrot.slane %v1651_v29, %v14407_v10  ;;  %v1666_v34 = vcombine.low %v15353_v54, %v1649_v32 }
 0x2a6   : > { %v1667_v12 = vcombine.high %v15353_v54, %v1649_v32  ;;  %v15462_v39 = vrot.slane %v2514_v20, %v14400_v61  ;;  %v15482_v32 = vrot.slane %v4540_v55, %v14407_v10  ;;  %v15485_v62 = vrot.slane %v4548_v53, %v14407_v10 }
 0x2a7   : > { %v15465_v27 = vrot.slane %v12268_v19, %v14400_v61  ;;  %v15472_v11 = vrot.slane %v1666_v34, %v14407_v10  ;;  %v7607_v29 = vsel %vm7430_vm0, %v5187_v22, 0  ;;  %v1106_v20 = vshrl.u32 %v15436_v24, 16  ;;  %v1017_v19 = vpop.permute.xlu0 %1016 }
 0x2a8   : > { %v15475_v28 = vrot.slane %v1667_v12, %v14407_v10  ;;  %19112 = vst [vmem:[#allocation64_spill] sm:$0xff] %v15482_v32  ;;  %19113 = vst [vmem:[#allocation65_spill] sm:$0xff] %v15485_v62  ;;  %12859 = vmatpush3.bf16.xpose.msra.mxu0 %v7607_v29  ;;  %v1096_v54 = vpack.i.b16 %v985_v50, %v19114_v3  ;;  %v1099_v51 = vshrl.u32 %v985_v50, 16  ;;  %v5173_v53 = vshrl.u32 %v4506_v1, 16 }
 0x2a9   : > { %19110 = vst [vmem:[#allocation62_spill] sm:$0xff] %v15472_v11  ;;  %v4556_v55 = vcombine.low %v15482_v32, %v15485_v62  ;;  %v1112_v37 = vpack.i.b16 %v987_v5, %v19115_v17  ;;  %v1115_v22 = vshrl.u32 %v987_v5, 16  ;;  %v19116_v26 = vshrl.u32 %v19114_v3, 16 }
 0x2aa   : > { %19111 = vst [vmem:[#allocation63_spill] sm:$0xff] %v15475_v28  ;;  %v1686_v33 = vcombine.high %v1096_v54, %v14398_v60  ;;  %v1693_v34 = vrot.slane %v1096_v54, %v14400_v61  ;;  %v1104_v12 = vpack.i.b16 %v1017_v19, %v15436_v24  ;;  %v19117_v50 = vshrl.u32 %v19115_v17, 16 }
 0x2ab   : > { %v1100_v36 = vpack.i.b16 %v1099_v51, %v19116_v26  ;;  %v5172_v29 = vpack.i.b16 %v4556_v55, %v4506_v1  ;;  %v5174_v2 = vshrl.u32 %v4556_v55, 16  ;;  %v1818_v32 = vcombine.high %v1112_v37, %v14398_v60 }
 0x2ac   : > { %v1116_v21 = vpack.i.b16 %v1115_v22, %v19117_v50  ;;  %v1700_v62 = vrot.slane %v1686_v33, %v14400_v61  ;;  %v15509_v26 = vrot.slane %v1112_v37, %v14400_v61  ;;  %v1107_v54 = vshrl.u32 %v1017_v19, 16 }
 0x2ad   : > { %v1752_v5 = vcombine.high %v1100_v36, %v14398_v60  ;;  %v1759_v3 = vrot.slane %v1100_v36, %v14400_v61  ;;  %13110 = vmatprep.subr.msk.bf16.mxu1 %vm7430_vm0, %v5172_v29  ;;  %v15512_v51 = vpack.i.b16 %v5174_v2, %v5173_v53  ;;  %v15515_v24 = vrot.slane %v1818_v32, %v14400_v61 }
 0x2ae   : > { %v1884_v1 = vcombine.high %v1116_v21, %v14398_v60  ;;  %v15519_v17 = vrot.slane %v1116_v21, %v14400_v61  ;;  %v1701_v36 = vcombine.high %v1104_v12, %v14398_v60  ;;  %v1708_v37 = vrot.slane %v1104_v12, %v14400_v61 }
 0x2af   : > { %v1766_v33 = vrot.slane %v1752_v5, %v14400_v61  ;;  %13118 = vmatprep.subr.msk.bf16.mxu0 %vm7430_vm0, %v15512_v51  ;;  %v19118_v32 = vcombine.low %v15161_v18, %v15164_v63  ;;  %v19119_v21 = vcombine.high %v15161_v18, %v15164_v63  ;;  %v2246_v53 = vcombine.low %v15173_v8, %v15176_v52 }
 0x2b0   : > { %v15527_v2 = vrot.slane %v1884_v1, %v14400_v61  ;;  %v1108_v12 = vpack.i.b16 %v1107_v54, %v1106_v20  ;;  %v1715_v22 = vrot.slane %v1701_v36, %v14400_v61  ;;  %v1716_v50 = vcombine.low %v1693_v34, %v1708_v37 }
 0x2b1   : > { %v2237_v55 = vrot.slane %v19118_v32, %v14400_v61  ;;  %v2245_v19 = vrot.slane %v19119_v21, %v14400_v61  ;;  %v1717_v5 = vcombine.high %v1693_v34, %v1708_v37  ;;  %v15541_v1 = vrot.slane %v2246_v53, %v14407_v10 }
 0x2b2   : > { %v19121_v32 = vcombine.low %v15167_v16, %v15170_v30  ;;  %v19122_v18 = vcombine.high %v15167_v16, %v15170_v30  ;;  %v1724_v8 = vrot.slane %v1716_v50, %v14407_v10  ;;  %v1732_v20 = vcombine.low %v1700_v62, %v1715_v22 }
 0x2b3   : > { %19120 = vst [vmem:[#allocation22_spill] sm:$0xff] %v15541_v1  ;;  %v2254_v28 = vcombine.low %v2237_v55, %v2245_v19  ;;  %v1731_v52 = vrot.slane %v1717_v5, %v14407_v10  ;;  %v1733_v34 = vcombine.high %v1700_v62, %v1715_v22  ;;  %v1767_v54 = vcombine.high %v1108_v12, %v14398_v60 }
 0x2b4   : > { %v2271_v11 = vrot.slane %v19121_v32, %v14400_v61  ;;  %v2279_v63 = vrot.slane %v19122_v18, %v14400_v61  ;;  %v1774_v36 = vrot.slane %v1108_v12, %v14400_v61  ;;  %v19124_v55 = vcombine.low %v15183_v35, %v15186_v58 }
 0x2b5   : > { %v15556_v37 = vrot.slane %v2254_v28, %v14407_v10  ;;  %v15563_v16 = vrot.slane %v1732_v20, %v14407_v10  ;;  %v15566_v30 = vrot.slane %v1733_v34, %v14407_v10  ;;  %v2614_v19 = vcombine.low %v1724_v8, %v1731_v52 }
 0x2b6   : > { %v2287_v21 = vrot.slane %v19124_v55, %v14400_v61  ;;  %v12272_v62 = vcombine.high %v1724_v8, %v1731_v52  ;;  %v1781_v53 = vrot.slane %v1767_v54, %v14400_v61  ;;  %v1782_v22 = vcombine.low %v1759_v3, %v1774_v36  ;;  %v1019_v8 = vpop.permute.xlu1 %1018 }
 0x2b7   : > { %19123 = vst [vmem:[#allocation23_spill] sm:$0xff] %v15556_v37  ;;  %v1783_v12 = vcombine.high %v1759_v3, %v1774_v36  ;;  %v2262_v28 = vcombine.low %v15541_v1, %v15556_v37  ;;  %v15572_v50 = vrot.slane %v2614_v19, %v14400_v61  ;;  %v19125_v54 = vcombine.high %v15183_v35, %v15186_v58 }
 0x2b8   : > { %v15575_v5 = vrot.slane %v12272_v62, %v14400_v61  ;;  %v15582_v52 = vrot.slane %v1782_v22, %v14407_v10  ;;  %v1798_v20 = vcombine.low %v1766_v33, %v1781_v53  ;;  %v1799_v34 = vcombine.high %v1766_v33, %v1781_v53 }
 0x2b9   : > { %v15585_v3 = vrot.slane %v1783_v12, %v14407_v10  ;;  %v2295_v36 = vrot.slane %v19125_v54, %v14400_v61  ;;  %v2296_v55 = vcombine.low %v2271_v11, %v2279_v63  ;;  %v7459_v19 = vsel %vm7430_vm0, %v5172_v29, 0 }
 0x2ba   : > { %v19126_v62 = vcombine.low %v15025_v31, %v15029_v13  ;;  %v15597_v22 = vrot.slane %v1798_v20, %v14407_v10  ;;  %v15600_v12 = vrot.slane %v1799_v34, %v14407_v10  ;;  %12829 = vmatpush3.bf16.xpose.msra.mxu1 %v7459_v19  ;;  %v19128_v29 = vcombine.high %v15025_v31, %v15029_v13  ;;  %v1003_v13 = vpop.permute.xlu0 %1002 }
 0x2bb   : > { %v15607_v58 = vrot.slane %v2296_v55, %v14407_v10  ;;  %v2304_v11 = vcombine.low %v2287_v21, %v2295_v36  ;;  %v4390_v53 = vcombine.low %v15038_v14, %v15052_v49  ;;  %v19129_v54 = vcombine.low %v15032_v4, %v15035_v9 }
 0x2bc   : > { %v4381_v18 = vrot.slane %v19126_v62, %v14400_v61  ;;  %v4389_v63 = vrot.slane %v19128_v29, %v14400_v61  ;;  %v19130_v21 = vcombine.high %v15032_v4, %v15035_v9  ;;  %v19133_v19 = vcombine.low %v15042_v46, %v15045_v45  ;;  %v991_v29 = vpop.permute.xlu1 %990 }
 0x2bd   : > { %19127 = vst [vmem:[#allocation66_spill] sm:$0xff] %v15607_v58  ;;  %v4415_v55 = vrot.slane %v19129_v54, %v14400_v61  ;;  %v15628_v36 = vrot.slane %v2304_v11, %v14407_v10  ;;  %v15631_v14 = vrot.slane %v4390_v53, %v14407_v10  ;;  %v19134_v54 = vcombine.high %v15042_v46, %v15045_v45  ;;  %v19137_v45 = vld [vmem:[#allocation24_spill] sm:$0xff] }
 0x2be   : > { %v4423_v31 = vrot.slane %v19130_v21, %v14400_v61  ;;  %v4398_v49 = vcombine.low %v4381_v18, %v4389_v63  ;;  %v4431_v62 = vrot.slane %v19133_v19, %v14400_v61  ;;  %v3017_v21 = vshrl.u32 %v2262_v28, 16 }
 0x2bf   : > { %19131 = vst [vmem:[#allocation67_spill] sm:$0xff] %v15628_v36  ;;  %19132 = vst [vmem:[#allocation68_spill] sm:$0xff] %v15631_v14  ;;  %v4439_v4 = vrot.slane %v19134_v54, %v14400_v61  ;;  %v7604_v11 = vsel %vm7430_vm0, %v15512_v51, 0  ;;  %v2312_v53 = vcombine.low %v15607_v58, %v15628_v36  ;;  %v1123_v63 = vshrl.u32 %v1019_v8, 16 }
 0x2c0   : > { %v4440_v9 = vcombine.low %v4415_v55, %v4423_v31  ;;  %v15646_v18 = vrot.slane %v4398_v49, %v14407_v10  ;;  %12861 = vmatpush3.bf16.xpose.msra.mxu0 %v7604_v11  ;;  %v1120_v19 = vpack.i.b16 %v1019_v8, %v1003_v13  ;;  %v1122_v46 = vshrl.u32 %v1003_v13, 16 }
 0x2c1   : > { %v4448_v20 = vcombine.low %v4431_v62, %v4439_v4  ;;  %v1144_v55 = vpack.i.b16 %v991_v29, %v19137_v45  ;;  %v3016_v31 = vpack.i.b16 %v2312_v53, %v2262_v28  ;;  %v3018_v54 = vshrl.u32 %v2312_v53, 16 }
 0x2c2   : > { %19135 = vst [vmem:[#allocation69_spill] sm:$0xff] %v15646_v18  ;;  %v15649_v34 = vrot.slane %v4440_v9, %v14407_v10  ;;  %v4406_v51 = vcombine.low %v15631_v14, %v15646_v18  ;;  %v1833_v35 = vcombine.high %v1120_v19, %v14398_v60  ;;  %v1124_v11 = vpack.i.b16 %v1123_v63, %v1122_v46  ;;  %v989_v46 = vpop.permute.xlu0 %988  ;;  %v19147_v14 = vld [vmem:[#allocation37_spill] sm:$0xff]  ;;  %v19148_v18 = vld [vmem:[#allocation40_spill] sm:$0xff] }
 0x2c3   : > { %v15656_v49 = vrot.slane %v4448_v20, %v14407_v10  ;;  %v1840_v8 = vrot.slane %v1120_v19, %v14400_v61  ;;  %v1147_v33 = vshrl.u32 %v991_v29, 16  ;;  %12832 = vmatprep.mubr.msk.bf16.mxu1 %vm7430_vm0, %v3016_v31  ;;  %v3019_v62 = vpack.i.b16 %v3018_v54, %v3017_v21 }
 0x2c4   : > { %19136 = vst [vmem:[#allocation70_spill] sm:$0xff] %v15649_v34  ;;  %v1847_v13 = vrot.slane %v1833_v35, %v14400_v61  ;;  %v5161_v4 = vshrl.u32 %v4406_v51, 16  ;;  %v2082_v28 = vcombine.high %v1144_v55, %v14398_v60  ;;  %v1899_v63 = vcombine.high %v1124_v11, %v14398_v60 }
 0x2c5   : > { %19138 = vst [vmem:[#allocation24_spill] sm:$0xff] %v15656_v49  ;;  %v4456_v9 = vcombine.low %v15649_v34, %v15656_v49  ;;  %v1848_v53 = vcombine.low %v15509_v26, %v1840_v8  ;;  %v1849_v20 = vcombine.high %v15509_v26, %v1840_v8  ;;  %12864 = vmatprep.mubr.msk.bf16.mxu0 %vm7430_vm0, %v3019_v62  ;;  %v19139_v19 = vshrl.u32 %v19137_v45, 16  ;;  %v19146_v49 = vld [vmem:[#allocation38_spill] sm:$0xff] }
 0x2c6   : > { %v1864_v29 = vcombine.low %v15515_v24, %v1847_v13  ;;  %v1865_v21 = vcombine.high %v15515_v24, %v1847_v13  ;;  %v1906_v35 = vrot.slane %v1124_v11, %v14400_v61  ;;  %v1913_v26 = vrot.slane %v1899_v63, %v14400_v61 }
 0x2c7   : > { %v1148_v31 = vpack.i.b16 %v1147_v33, %v19139_v19  ;;  %v5160_v54 = vpack.i.b16 %v4456_v9, %v4406_v51  ;;  %v1856_v32 = vrot.slane %v1848_v53, %v14407_v10  ;;  %v1863_v34 = vrot.slane %v1849_v20, %v14407_v10 }
 0x2c8   : > { %v15677_v8 = vrot.slane %v1864_v29, %v14407_v10  ;;  %v15680_v62 = vrot.slane %v1865_v21, %v14407_v10  ;;  %v1914_v24 = vcombine.low %v15519_v17, %v1906_v35  ;;  %v1915_v11 = vcombine.high %v15519_v17, %v1906_v35  ;;  %v1021_v35 = vpop.permute.xlu0 %1020 }
 0x2c9   : > { %13111 = vmatprep.subr.msk.bf16.mxu1 %vm7430_vm0, %v5160_v54  ;;  %v1930_v33 = vcombine.low %v15527_v2, %v1913_v26  ;;  %v1931_v45 = vcombine.high %v15527_v2, %v1913_v26  ;;  %v2714_v51 = vcombine.low %v1856_v32, %v1863_v34  ;;  %v12276_v13 = vcombine.high %v1856_v32, %v1863_v34  ;;  %v1005_v34 = vpop.permute.xlu1 %1004  ;;  %v19145_v26 = vld [vmem:[#allocation25_spill] sm:$0xff] }
 0x2ca   : > { %v15688_v53 = vrot.slane %v1914_v24, %v14407_v10  ;;  %v15691_v20 = vrot.slane %v1915_v11, %v14407_v10  ;;  %v5162_v24 = vshrl.u32 %v4456_v9, 16  ;;  %v15714_v11 = vrot.slane %v1144_v55, %v14400_v61 }
 0x2cb   : > { %v15698_v29 = vrot.slane %v1930_v33, %v14407_v10  ;;  %v15701_v21 = vrot.slane %v1931_v45, %v14407_v10  ;;  %v15704_v2 = vrot.slane %v2714_v51, %v14400_v61  ;;  %v15707_v32 = vrot.slane %v12276_v13, %v14400_v61 }
 0x2cc   : > { %19140 = vst [vmem:[#allocation71_spill] sm:$0xff] %v15688_v53  ;;  %19141 = vst [vmem:[#allocation72_spill] sm:$0xff] %v15691_v20  ;;  %v15721_v51 = vrot.slane %v2082_v28, %v14400_v61  ;;  %v2148_v13 = vcombine.high %v1148_v31, %v14398_v60  ;;  %v5163_v17 = vpack.i.b16 %v5162_v24, %v5161_v4  ;;  %v1131_v63 = vshrl.u32 %v989_v46, 16  ;;  %v19149_v28 = vld [vmem:[#allocation39_spill] sm:$0xff] }
 0x2cd   : > { %19142 = vst [vmem:[#allocation73_spill] sm:$0xff] %v15698_v29  ;;  %19143 = vst [vmem:[#allocation74_spill] sm:$0xff] %v15701_v21  ;;  %v15725_v19 = vrot.slane %v1148_v31, %v14400_v61  ;;  %v1128_v9 = vpack.i.b16 %v989_v46, %v19145_v26  ;;  %v7456_v33 = vsel %vm7430_vm0, %v5160_v54, 0  ;;  %v5107_v45 = vcombine.high %v19147_v14, %v19146_v49  ;;  %v1023_v1 = vpop.permute.xlu1 %1022 }
 0x2ce   : > { %19144 = vst [vmem:[#allocation75_spill] sm:$0xff] %v15704_v2  ;;  %v15729_v55 = vrot.slane %v2148_v13, %v14400_v61  ;;  %v5157_v58 = vcombine.high %v19149_v28, %v19148_v18  ;;  %13119 = vmatprep.subr.msk.bf16.mxu0 %vm7430_vm0, %v5163_v17  ;;  %v19150_v4 = vshrl.u32 %v19145_v26, 16  ;;  %12831 = vmatpush3.bf16.xpose.msra.mxu1 %v7456_v33  ;;  %v7601_v13 = vsel %vm7430_vm0, %v5163_v17, 0  ;;  %v1007_v18 = vpop.permute.xlu0 %1006 }
 0x2cf   : > { %v1950_v24 = vcombine.high %v1128_v9, %v14398_v60  ;;  %v1957_v46 = vrot.slane %v1128_v9, %v14400_v61  ;;  %12863 = vmatpush3.bf16.xpose.msra.mxu0 %v7601_v13  ;;  %v1138_v54 = vshrl.u32 %v1005_v34, 16  ;;  %v1136_v14 = vpack.i.b16 %v1021_v35, %v1005_v34 }
 0x2d0   : > { %v1132_v31 = vpack.i.b16 %v1131_v63, %v19150_v4  ;;  %v15742_v36 = vpack.i.b16 %v5157_v58, %v5107_v45  ;;  %v1139_v49 = vshrl.u32 %v1021_v35, 16  ;;  %v5251_v4 = vshrl.u32 %v5107_v45, 16 }
 0x2d1   : > { %v1964_v28 = vrot.slane %v1950_v24, %v14400_v61  ;;  %v1965_v17 = vcombine.high %v1136_v14, %v14398_v60  ;;  %v1972_v9 = vrot.slane %v1136_v14, %v14400_v61  ;;  %v5252_v13 = vshrl.u32 %v5157_v58, 16 }
 0x2d2   : > { %v2016_v26 = vcombine.high %v1132_v31, %v14398_v60  ;;  %v2023_v63 = vrot.slane %v1132_v31, %v14400_v61  ;;  %13120 = vmatprep.subr.msk.bf16.mxu1 %vm7430_vm0, %v15742_v36  ;;  %v1140_v33 = vpack.i.b16 %v1139_v49, %v1138_v54  ;;  %v1155_v35 = vshrl.u32 %v1023_v1, 16 }
 0x2d3   : > { %v1152_v37 = vpack.i.b16 %v1023_v1, %v1007_v18  ;;  %v1154_v21 = vshrl.u32 %v1007_v18, 16  ;;  %v1979_v24 = vrot.slane %v1965_v17, %v14400_v61  ;;  %v1980_v29 = vcombine.low %v1957_v46, %v1972_v9 }
 0x2d4   : > { %v2030_v34 = vrot.slane %v2016_v26, %v14400_v61  ;;  %v1981_v20 = vcombine.high %v1957_v46, %v1972_v9  ;;  %v2031_v45 = vcombine.high %v1140_v33, %v14398_v60  ;;  %v2038_v31 = vrot.slane %v1140_v33, %v14400_v61 }
 0x2d5   : > { %v15755_v53 = vpack.i.b16 %v5252_v13, %v5251_v4  ;;  %v1156_v54 = vpack.i.b16 %v1155_v35, %v1154_v21  ;;  %v2097_v49 = vcombine.high %v1152_v37, %v14398_v60  ;;  %v1988_v58 = vrot.slane %v1980_v29, %v14407_v10  ;;  %v19161_v35 = vld [vmem:[#allocation43_spill] sm:$0xff] }
 0x2d6   : > { %v1995_v14 = vrot.slane %v1981_v20, %v14407_v10  ;;  %v1996_v26 = vcombine.low %v1964_v28, %v1979_v24  ;;  %v1997_v1 = vcombine.high %v1964_v28, %v1979_v24  ;;  %v2045_v18 = vrot.slane %v2031_v45, %v14400_v61 }
 0x2d7   : > { %v2046_v17 = vcombine.low %v2023_v63, %v2038_v31  ;;  %v2047_v2 = vcombine.high %v2023_v63, %v2038_v31  ;;  %13128 = vmatprep.subr.msk.bf16.mxu0 %vm7430_vm0, %v15755_v53  ;;  %v2104_v46 = vrot.slane %v1152_v37, %v14400_v61 }
 0x2d8   : > { %v15765_v4 = vrot.slane %v1996_v26, %v14407_v10  ;;  %v15768_v21 = vrot.slane %v1997_v1, %v14407_v10  ;;  %v2814_v29 = vcombine.low %v1988_v58, %v1995_v14  ;;  %v12280_v33 = vcombine.high %v1988_v58, %v1995_v14 }
 0x2d9   : > { %v15771_v20 = vrot.slane %v2046_v17, %v14407_v10  ;;  %v15774_v28 = vrot.slane %v2047_v2, %v14407_v10  ;;  %v2062_v63 = vcombine.low %v2030_v34, %v2045_v18  ;;  %v2063_v9 = vcombine.high %v2030_v34, %v2045_v18 }
 0x2da   : > { %v15777_v13 = vrot.slane %v2814_v29, %v14400_v61  ;;  %v15780_v37 = vrot.slane %v12280_v33, %v14400_v61  ;;  %v2111_v58 = vrot.slane %v2097_v49, %v14400_v61  ;;  %v2112_v14 = vcombine.low %v15714_v11, %v2104_v46 }
 0x2db   : > { %v15787_v45 = vrot.slane %v2062_v63, %v14407_v10  ;;  %v15790_v2 = vrot.slane %v2063_v9, %v14407_v10  ;;  %v2113_v26 = vcombine.high %v15714_v11, %v2104_v46  ;;  %v2163_v1 = vcombine.high %v1156_v54, %v14398_v60 }
 0x2dc   : > { %v2170_v29 = vrot.slane %v1156_v54, %v14400_v61  ;;  %v2362_v33 = vcombine.low %v15266_v41, %v15277_v59  ;;  %v2120_v63 = vrot.slane %v2112_v14, %v14407_v10  ;;  %v2128_v9 = vcombine.low %v15721_v51, %v2111_v58 }
 0x2dd   : > { %v2127_v49 = vrot.slane %v2113_v26, %v14407_v10  ;;  %v2129_v11 = vcombine.high %v15721_v51, %v2111_v58  ;;  %v2177_v46 = vrot.slane %v2163_v1, %v14400_v61  ;;  %v19151_v54 = vcombine.low %v15270_v0, %v15273_v38 }
 0x2de   : > { %v2178_v18 = vcombine.low %v15725_v19, %v2170_v29  ;;  %v2179_v31 = vcombine.high %v15725_v19, %v2170_v29  ;;  %v15821_v14 = vrot.slane %v2128_v9, %v14407_v10 }
 0x2df   : > { %v15818_v17 = vrot.slane %v19151_v54, %v14407_v10  ;;  %v15824_v26 = vrot.slane %v2129_v11, %v14407_v10  ;;  %v2914_v34 = vcombine.low %v2120_v63, %v2127_v49  ;;  %v12284_v51 = vcombine.high %v2120_v63, %v2127_v49 }
 0x2e0   : > { %v15827_v58 = vrot.slane %v2178_v18, %v14407_v10  ;;  %v15830_v1 = vrot.slane %v2179_v31, %v14407_v10  ;;  %v2194_v19 = vcombine.low %v15729_v55, %v2177_v46  ;;  %v2195_v0 = vcombine.high %v15729_v55, %v2177_v46 }
 0x2e1   : > { %v15835_v38 = vrot.slane %v2914_v34, %v14400_v61  ;;  %v15838_v29 = vrot.slane %v12284_v51, %v14400_v61  ;;  %v2412_v49 = vcombine.low %v15284_v23, %v15818_v17  ;;  %v19152_v11 = vcombine.low %v15360_v15, %v15363_v40 }
 0x2e2   : > { %v15845_v63 = vrot.slane %v2194_v19, %v14407_v10  ;;  %v15848_v31 = vrot.slane %v2195_v0, %v14407_v10  ;;  %v19153_v54 = vcombine.high %v15360_v15, %v15363_v40  ;;  %v2446_v19 = vcombine.low %v15382_v25, %v15385_v43 }
 0x2e3   : > { %v2437_v46 = vrot.slane %v19152_v11, %v14400_v61  ;;  %v19154_v55 = vcombine.low %v15366_v7, %v15369_v44  ;;  %v19155_v11 = vcombine.high %v15366_v7, %v15369_v44  ;;  %v3028_v40 = vpack.i.b16 %v2412_v49, %v2362_v33 }
 0x2e4   : > { %v2445_v51 = vrot.slane %v19153_v54, %v14400_v61  ;;  %v15879_v54 = vrot.slane %v2446_v19, %v14407_v10  ;;  %v19156_v43 = vcombine.low %v15372_v56, %v15375_v42  ;;  %v19157_v0 = vcombine.high %v15372_v56, %v15375_v42 }
 0x2e5   : > { %v2471_v18 = vrot.slane %v19154_v55, %v14400_v61  ;;  %v2479_v15 = vrot.slane %v19155_v11, %v14400_v61  ;;  %v7767_v7 = vsel %vm7430_vm0, %v15742_v36, 0  ;;  %v3029_v44 = vshrl.u32 %v2362_v33, 16  ;;  %12833 = vmatmul.mubr.msk.bf16.vlgmr.msra.gmra.mxu1 %vm7430_vm0, %v3028_v40  ;;  %v19159_v11 = vld [vmem:[#allocation41_spill] sm:$0xff] }
 0x2e6   : > { %v2454_v25 = vcombine.low %v2437_v46, %v2445_v51  ;;  %v2487_v34 = vrot.slane %v19156_v43, %v14400_v61  ;;  %v2495_v55 = vrot.slane %v19157_v0, %v14400_v61  ;;  %v3030_v46 = vshrl.u32 %v2412_v49, 16  ;;  %v19158_v51 = vld [vmem:[#allocation42_spill] sm:$0xff]  ;;  %v19160_v43 = vld [vmem:[#allocation44_spill] sm:$0xff]  ;;  %12881 = vmatpush3.bf16.xpose.msra.mxu1 %v7767_v7 }
 0x2e7   : > { %v2496_v9 = vcombine.low %v2471_v18, %v2479_v15  ;;  %v5007_v24 = vcombine.high %v19159_v11, %v19158_v51  ;;  %v5057_v23 = vcombine.high %v19161_v35, %v19160_v43  ;;  %v7912_v36 = vsel %vm7430_vm0, %v15755_v53, 0 }
 0x2e8   : > { %v15893_v19 = vrot.slane %v2454_v25, %v14407_v10  ;;  %v2504_v42 = vcombine.low %v2487_v34, %v2495_v55  ;;  %v19162_v33 = vcombine.low %v15448_v57, %v15451_v6  ;;  %v3031_v0 = vpack.i.b16 %v3030_v46, %v3029_v44 }
 0x2e9   : > { %v15900_v56 = vrot.slane %v2496_v9, %v14407_v10  ;;  %v5238_v15 = vpack.i.b16 %v5057_v23, %v5007_v24  ;;  %v5239_v40 = vshrl.u32 %v5007_v24, 16  ;;  %v5240_v9 = vshrl.u32 %v5057_v23, 16 }
 0x2ea   : > { %v2537_v18 = vrot.slane %v19162_v33, %v14400_v61  ;;  %v2462_v49 = vcombine.low %v15879_v54, %v15893_v19  ;;  %v15911_v35 = vrot.slane %v2504_v42, %v14407_v10  ;;  %v19163_v34 = vcombine.high %v15448_v57, %v15451_v6  ;;  %12865 = vmatmul.mubr.msk.bf16.vlgmr.msra.gmra.mxu0 %vm7430_vm0, %v3031_v0  ;;  %v19166_v57 = vld [vmem:[#allocation62_spill] sm:$0xff]  ;;  %v19167_v6 = vld [vmem:[#allocation63_spill] sm:$0xff] }
 0x2eb   : > { %v2546_v25 = vcombine.low %v15462_v39, %v15465_v27  ;;  %13121 = vmatprep.subr.msk.bf16.mxu1 %vm7430_vm0, %v5238_v15  ;;  %v19164_v24 = vcombine.low %v15454_v48, %v15457_v47  ;;  %v19165_v23 = vcombine.high %v15454_v48, %v15457_v47  ;;  %v19168_v46 = vcombine.low %v19166_v57, %v19167_v6 }
 0x2ec   : > { %v2545_v53 = vrot.slane %v19163_v34, %v14400_v61  ;;  %v3041_v55 = vshrl.u32 %v2462_v49, 16  ;;  %v2512_v27 = vcombine.low %v15900_v56, %v15911_v35  ;;  %12913 = vmatpush3.bf16.xpose.msra.mxu0 %v7912_v36  ;;  %v5241_v51 = vpack.i.b16 %v5240_v9, %v5239_v40 }
 0x2ed   : > { %v2571_v7 = vrot.slane %v19164_v24, %v14400_v61  ;;  %v2579_v44 = vrot.slane %v19165_v23, %v14400_v61  ;;  %v2587_v39 = vrot.slane %v19168_v46, %v14400_v61  ;;  %v15936_v11 = vrot.slane %v2546_v25, %v14407_v10 }
 0x2ee   : > { %v2554_v43 = vcombine.low %v2537_v18, %v2545_v53  ;;  %v19169_v42 = vcombine.high %v19166_v57, %v19167_v6  ;;  %v19170_v33 = vcombine.low %v15563_v16, %v15566_v30  ;;  %v19171_v36 = vcombine.high %v15563_v16, %v15566_v30  ;;  %13129 = vmatprep.subr.msk.bf16.mxu0 %vm7430_vm0, %v5241_v51 }
 0x2ef   : > { %v2596_v47 = vcombine.low %v2571_v7, %v2579_v44  ;;  %v3040_v9 = vpack.i.b16 %v2512_v27, %v2462_v49  ;;  %v3042_v34 = vshrl.u32 %v2512_v27, 16  ;;  %v2646_v53 = vcombine.low %v15572_v50, %v15575_v5 }
 0x2f0   : > { %v2595_v48 = vrot.slane %v19169_v42, %v14400_v61  ;;  %v2637_v0 = vrot.slane %v19170_v33, %v14400_v61  ;;  %v2645_v40 = vrot.slane %v19171_v36, %v14400_v61  ;;  %v15952_v18 = vrot.slane %v2554_v43, %v14407_v10  ;;  %v19176_v42 = vld [vmem:[#allocation46_spill] sm:$0xff] }
 0x2f1   : > { %v15957_v25 = vrot.slane %v2596_v47, %v14407_v10  ;;  %v19172_v16 = vcombine.low %v15582_v52, %v15585_v3  ;;  %12836 = vmatprep.mubr.msk.bf16.mxu1 %vm7430_vm0, %v3040_v9  ;;  %v3043_v49 = vpack.i.b16 %v3042_v34, %v3041_v55  ;;  %v15967_v44 = vrot.slane %v2646_v53, %v14407_v10 }
 0x2f2   : > { %v2604_v24 = vcombine.low %v2587_v39, %v2595_v48  ;;  %v2654_v7 = vcombine.low %v2637_v0, %v2645_v40  ;;  %v2562_v23 = vcombine.low %v15936_v11, %v15952_v18  ;;  %v19173_v50 = vcombine.high %v15582_v52, %v15585_v3  ;;  %v19177_v48 = vld [vmem:[#allocation45_spill] sm:$0xff]  ;;  %v19178_v40 = vld [vmem:[#allocation48_spill] sm:$0xff] }
 0x2f3   : > { %v2671_v30 = vrot.slane %v19172_v16, %v14400_v61  ;;  %v19174_v55 = vcombine.low %v15597_v22, %v15600_v12  ;;  %v19175_v39 = vcombine.high %v15597_v22, %v15600_v12  ;;  %12868 = vmatprep.mubr.msk.bf16.mxu0 %vm7430_vm0, %v3043_v49  ;;  %v7764_v3 = vsel %vm7430_vm0, %v5238_v15, 0  ;;  %v19179_v22 = vld [vmem:[#allocation47_spill] sm:$0xff] }
 0x2f4   : > { %v2679_v5 = vrot.slane %v19173_v50, %v14400_v61  ;;  %v15974_v57 = vrot.slane %v2604_v24, %v14407_v10  ;;  %v15977_v6 = vrot.slane %v2654_v7, %v14407_v10  ;;  %v3053_v43 = vshrl.u32 %v2562_v23, 16  ;;  %12883 = vmatpush3.bf16.xpose.msra.mxu1 %v7764_v3  ;;  %v19184_v3 = vld [vmem:[#allocation72_spill] sm:$0xff] }
 0x2f5   : > { %v2687_v46 = vrot.slane %v19174_v55, %v14400_v61  ;;  %v2695_v27 = vrot.slane %v19175_v39, %v14400_v61  ;;  %v4907_v47 = vcombine.high %v19177_v48, %v19176_v42  ;;  %v4957_v12 = vcombine.high %v19179_v22, %v19178_v40  ;;  %v19187_v22 = vld [vmem:[#allocation73_spill] sm:$0xff] }
 0x2f6   : > { %v2696_v52 = vcombine.low %v2671_v30, %v2679_v5  ;;  %v2612_v33 = vcombine.low %v15957_v25, %v15974_v57  ;;  %v2662_v0 = vcombine.low %v15967_v44, %v15977_v6  ;;  %v7909_v15 = vsel %vm7430_vm0, %v5241_v51, 0 }
 0x2f7   : > { %v2704_v36 = vcombine.low %v2687_v46, %v2695_v27  ;;  %v5227_v34 = vshrl.u32 %v4907_v47, 16  ;;  %v19180_v53 = vcombine.low %v15677_v8, %v15680_v62  ;;  %v5226_v49 = vpack.i.b16 %v4957_v12, %v4907_v47  ;;  %12915 = vmatpush3.bf16.xpose.msra.mxu0 %v7909_v15  ;;  %v19182_v46 = vld [vmem:[#allocation75_spill] sm:$0xff] }
 0x2f8   : > { %v15998_v9 = vrot.slane %v2696_v52, %v14407_v10  ;;  %v3052_v7 = vpack.i.b16 %v2612_v33, %v2562_v23  ;;  %v3054_v30 = vshrl.u32 %v2612_v33, 16  ;;  %v3065_v50 = vshrl.u32 %v2662_v0, 16  ;;  %v19183_v52 = vld [vmem:[#allocation71_spill] sm:$0xff] }
 0x2f9   : > { %v2737_v24 = vrot.slane %v19180_v53, %v14400_v61  ;;  %v16006_v16 = vrot.slane %v2704_v36, %v14407_v10  ;;  %v5228_v5 = vshrl.u32 %v4957_v12, 16  ;;  %v19181_v55 = vcombine.high %v15677_v8, %v15680_v62  ;;  %13122 = vmatprep.subr.msk.bf16.mxu1 %vm7430_vm0, %v5226_v49  ;;  %v19188_v12 = vld [vmem:[#allocation74_spill] sm:$0xff] }
 0x2fa   : > { %v2746_v39 = vcombine.low %v19182_v46, %v15707_v32  ;;  %12837 = vmatmul.mubr.msk.bf16.gmra.mxu1 %vm7430_vm0, %v3052_v7  ;;  %v3055_v27 = vpack.i.b16 %v3054_v30, %v3053_v43  ;;  %v19185_v42 = vcombine.low %v19183_v52, %v19184_v3  ;;  %v7761_v47 = vsel %vm7430_vm0, %v5226_v49, 0  ;;  %v19192_v49 = vld [vmem:[#allocation49_spill] sm:$0xff] }
 0x2fb   : > { %v2745_v51 = vrot.slane %v19181_v55, %v14400_v61  ;;  %v2712_v23 = vcombine.low %v15998_v9, %v16006_v16  ;;  %v5229_v8 = vpack.i.b16 %v5228_v5, %v5227_v34  ;;  %v19186_v33 = vcombine.high %v19183_v52, %v19184_v3  ;;  %v19193_v55 = vld [vmem:[#allocation52_spill] sm:$0xff] }
 0x2fc   : > { %v2771_v48 = vrot.slane %v19185_v42, %v14400_v61  ;;  %v16024_v62 = vrot.slane %v2746_v39, %v14407_v10  ;;  %12869 = vmatmul.mubr.msk.bf16.gmra.mxu0 %vm7430_vm0, %v3055_v27  ;;  %v19189_v15 = vcombine.low %v19187_v22, %v19188_v12  ;;  %v19190_v34 = vcombine.high %v19187_v22, %v19188_v12 }
 0x2fd   : > { %v2754_v32 = vcombine.low %v2737_v24, %v2745_v51  ;;  %v2779_v36 = vrot.slane %v19186_v33, %v14400_v61  ;;  %v3064_v43 = vpack.i.b16 %v2712_v23, %v2662_v0  ;;  %v3066_v40 = vshrl.u32 %v2712_v23, 16  ;;  %13130 = vmatprep.subr.msk.bf16.mxu0 %vm7430_vm0, %v5229_v8  ;;  %v19191_v0 = vld [vmem:[#allocation50_spill] sm:$0xff]  ;;  %v19194_v51 = vld [vmem:[#allocation51_spill] sm:$0xff]  ;;  %12885 = vmatpush3.bf16.xpose.msra.mxu1 %v7761_v47 }
 0x2fe   : > { %v2787_v53 = vrot.slane %v19189_v15, %v14400_v61  ;;  %v2795_v7 = vrot.slane %v19190_v34, %v14400_v61  ;;  %v4807_v5 = vcombine.high %v19192_v49, %v19191_v0  ;;  %v4857_v46 = vcombine.high %v19194_v51, %v19193_v55 }
 0x2ff   : > { %v16041_v24 = vrot.slane %v2754_v32, %v14407_v10  ;;  %v2796_v30 = vcombine.low %v2771_v48, %v2779_v36  ;;  %12840 = vmatprep.mubr.msk.bf16.mxu1 %vm7430_vm0, %v3064_v43  ;;  %v3067_v39 = vpack.i.b16 %v3066_v40, %v3065_v50  ;;  %v7906_v27 = vsel %vm7430_vm0, %v5229_v8, 0 }
 0x300   : > { %v2804_v23 = vcombine.low %v2787_v53, %v2795_v7  ;;  %v19195_v52 = vcombine.low %v15765_v4, %v15768_v21  ;;  %v5214_v32 = vpack.i.b16 %v4857_v46, %v4807_v5  ;;  %v19196_v50 = vcombine.high %v15765_v4, %v15768_v21  ;;  %12917 = vmatpush3.bf16.xpose.msra.mxu0 %v7906_v27 }
 0x301   : > { %v2762_v42 = vcombine.low %v16024_v62, %v16041_v24  ;;  %v16056_v48 = vrot.slane %v2796_v30, %v14407_v10  ;;  %12872 = vmatprep.mubr.msk.bf16.mxu0 %vm7430_vm0, %v3067_v39  ;;  %v2846_v8 = vcombine.low %v15777_v13, %v15780_v37  ;;  %v19197_v36 = vcombine.low %v15771_v20, %v15774_v28 }
 0x302   : > { %v2837_v3 = vrot.slane %v19195_v52, %v14400_v61  ;;  %v2845_v33 = vrot.slane %v19196_v50, %v14400_v61  ;;  %v16064_v47 = vrot.slane %v2804_v23, %v14407_v10  ;;  %v5215_v40 = vshrl.u32 %v4807_v5, 16  ;;  %13123 = vmatprep.subr.msk.bf16.mxu1 %vm7430_vm0, %v5214_v32 }
 0x303   : > { %v2871_v43 = vrot.slane %v19197_v36, %v14400_v61  ;;  %v3077_v22 = vshrl.u32 %v2762_v42, 16  ;;  %v19198_v21 = vcombine.high %v15771_v20, %v15774_v28  ;;  %v19199_v15 = vcombine.low %v15787_v45, %v15790_v2 }
 0x304   : > { %v2854_v4 = vcombine.low %v2837_v3, %v2845_v33  ;;  %v2812_v37 = vcombine.low %v16056_v48, %v16064_v47  ;;  %v16084_v53 = vrot.slane %v2846_v8, %v14407_v10  ;;  %v19200_v34 = vcombine.high %v15787_v45, %v15790_v2 }
 0x305   : > { %v2879_v12 = vrot.slane %v19198_v21, %v14400_v61  ;;  %v2887_v13 = vrot.slane %v19199_v15, %v14400_v61  ;;  %v5216_v30 = vshrl.u32 %v4857_v46, 16  ;;  %v19201_v0 = vcombine.low %v15821_v14, %v15824_v26  ;;  %v19207_v21 = vld [vmem:[#allocation23_spill] sm:$0xff] }
 0x306   : > { %v2895_v7 = vrot.slane %v19200_v34, %v14400_v61  ;;  %v16091_v20 = vrot.slane %v2854_v4, %v14407_v10  ;;  %v19202_v5 = vcombine.high %v15821_v14, %v15824_v26  ;;  %v3076_v51 = vpack.i.b16 %v2812_v37, %v2762_v42 }
 0x307   : > { %v2896_v28 = vcombine.low %v2871_v43, %v2879_v12  ;;  %v2937_v49 = vrot.slane %v19201_v0, %v14400_v61  ;;  %v3078_v39 = vshrl.u32 %v2812_v37, 16  ;;  %v5217_v45 = vpack.i.b16 %v5216_v30, %v5215_v40  ;;  %v19208_v12 = vld [vmem:[#allocation22_spill] sm:$0xff]  ;;  %v19212_v30 = vld [vmem:[#allocation53_spill] sm:$0xff] }
 0x308   : > { %v2945_v55 = vrot.slane %v19202_v5, %v14400_v61  ;;  %v2904_v23 = vcombine.low %v2887_v13, %v2895_v7  ;;  %v2862_v2 = vcombine.low %v16084_v53, %v16091_v20  ;;  %v2946_v27 = vcombine.low %v15835_v38, %v15838_v29  ;;  %12841 = vmatmul.mubr.msk.bf16.gmra.mxu1 %vm7430_vm0, %v3076_v51  ;;  %v19209_v13 = vld [vmem:[#allocation67_spill] sm:$0xff]  ;;  %v19210_v37 = vld [vmem:[#allocation66_spill] sm:$0xff] }
 0x309   : > { %v16104_v46 = vrot.slane %v2896_v28, %v14407_v10  ;;  %v3079_v3 = vpack.i.b16 %v3078_v39, %v3077_v22  ;;  %13131 = vmatprep.subr.msk.bf16.mxu0 %vm7430_vm0, %v5217_v45  ;;  %v19203_v26 = vcombine.low %v15827_v58, %v15830_v1  ;;  %v7758_v50 = vsel %vm7430_vm0, %v5214_v32, 0  ;;  %v19211_v7 = vld [vmem:[#allocation54_spill] sm:$0xff]  ;;  %v19214_v51 = vld [vmem:[#allocation55_spill] sm:$0xff]  ;;  %v5273_v39 = vpop.permute.xlu0 %5272 }
 0x30a   : > { %v2954_v52 = vcombine.low %v2937_v49, %v2945_v55  ;;  %v16110_v14 = vrot.slane %v2904_v23, %v14407_v10  ;;  %v3089_v33 = vshrl.u32 %v2862_v2, 16  ;;  %v16119_v8 = vrot.slane %v2946_v27, %v14407_v10  ;;  %12887 = vmatpush3.bf16.xpose.msra.mxu1 %v7758_v50  ;;  %v19213_v55 = vld [vmem:[#allocation56_spill] sm:$0xff] }
 0x30b   : > { %v2971_v42 = vrot.slane %v19203_v26, %v14400_v61  ;;  %v19204_v29 = vcombine.high %v15827_v58, %v15830_v1  ;;  %12873 = vmatmul.mubr.msk.bf16.gmra.mxu0 %vm7430_vm0, %v3079_v3  ;;  %v19205_v32 = vcombine.low %v15845_v63, %v15848_v31  ;;  %v19206_v22 = vcombine.high %v15845_v63, %v15848_v31  ;;  %v16149_v31 = vpop.permute.xlu1 %5288 }
 0x30c   : > { %v16122_v38 = vrot.slane %v2954_v52, %v14407_v10  ;;  %v2912_v43 = vcombine.low %v16104_v46, %v16110_v14  ;;  %v2263_v58 = vcombine.high %v19208_v12, %v19207_v21  ;;  %v2313_v34 = vcombine.high %v19210_v37, %v19209_v13  ;;  %v19218_v21 = vld [vmem:[#allocation58_spill] sm:$0xff] }
 0x30d   : > { %v2979_v36 = vrot.slane %v19204_v29, %v14400_v61  ;;  %v2987_v40 = vrot.slane %v19205_v32, %v14400_v61  ;;  %v2995_v4 = vrot.slane %v19206_v22, %v14400_v61  ;;  %v4707_v28 = vcombine.high %v19212_v30, %v19211_v7  ;;  %v19215_v32 = vld [vmem:[#allocation21_spill] sm:$0xff] }
 0x30e   : > { %v2962_v1 = vcombine.low %v16119_v8, %v16122_v38  ;;  %v3088_v0 = vpack.i.b16 %v2912_v43, %v2862_v2  ;;  %v3090_v49 = vshrl.u32 %v2912_v43, 16  ;;  %v4757_v63 = vcombine.high %v19214_v51, %v19213_v55 }
 0x30f   : > { %v2996_v15 = vcombine.low %v2971_v42, %v2979_v36  ;;  %v3004_v5 = vcombine.low %v2987_v40, %v2995_v4  ;;  %v3022_v27 = vpack.i.b16 %v2313_v34, %v2263_v58  ;;  %v7903_v3 = vsel %vm7430_vm0, %v5217_v45, 0  ;;  %v19216_v40 = vld [vmem:[#allocation57_spill] sm:$0xff]  ;;  %v19217_v4 = vld [vmem:[#allocation59_spill] sm:$0xff]  ;;  %v5287_v55 = vpop.permute.xlu1 %5286 }
 0x310   : > { %v3101_v52 = vshrl.u32 %v2962_v1, 16  ;;  %12844 = vmatprep.mubr.msk.bf16.mxu1 %vm7430_vm0, %v3088_v0  ;;  %v3091_v26 = vpack.i.b16 %v3090_v49, %v3089_v33  ;;  %v5202_v42 = vpack.i.b16 %v4757_v63, %v4707_v28  ;;  %12919 = vmatpush3.bf16.xpose.msra.mxu0 %v7903_v3  ;;  %v3023_v50 = vshrl.u32 %v2263_v58, 16 }
 0x311   : > { %v16152_v23 = vrot.slane %v2996_v15, %v14407_v10  ;;  %v16157_v2 = vrot.slane %v3004_v5, %v14407_v10  ;;  %v3024_v29 = vshrl.u32 %v2313_v34, 16  ;;  %v5203_v36 = vshrl.u32 %v4707_v28, 16  ;;  %v19219_v34 = vld [vmem:[#allocation26_spill] sm:$0xff]  ;;  %v5305_v5 = vpop.permute.xlu0 %5304 }
 0x312   : > { %v5204_v43 = vshrl.u32 %v4757_v63, 16  ;;  %v4607_v22 = vcombine.high %v19216_v40, %v19215_v32  ;;  %12876 = vmatprep.mubr.msk.bf16.mxu0 %vm7430_vm0, %v3091_v26  ;;  %13124 = vmatprep.subr.msk.bf16.mxu1 %vm7430_vm0, %v5202_v42  ;;  %v7755_v33 = vsel %vm7430_vm0, %v5202_v42, 0  ;;  %v4657_v12 = vcombine.high %v19218_v21, %v19217_v4  ;;  %v19220_v32 = vld [vmem:[#allocation61_spill] sm:$0xff]  ;;  %v19221_v40 = vld [vmem:[#allocation60_spill] sm:$0xff] }
 0x313   : > { %v3012_v45 = vcombine.low %v16152_v23, %v16157_v2  ;;  %v5346_v58 = vshrl.u32 %v16149_v31, 16  ;;  %v3025_v15 = vpack.i.b16 %v3024_v29, %v3023_v50  ;;  %12889 = vmatpush3.bf16.xpose.msra.mxu1 %v7755_v33  ;;  %v5336_v7 = vpack.i.b16 %v5273_v39, %v19219_v34 }
 0x314   : > { %v5205_v13 = vpack.i.b16 %v5204_v43, %v5203_v36  ;;  %v5191_v37 = vshrl.u32 %v4607_v22, 16  ;;  %v5190_v0 = vpack.i.b16 %v4657_v12, %v4607_v22  ;;  %v5192_v49 = vshrl.u32 %v4657_v12, 16  ;;  %v19222_v22 = vld [vmem:[#allocation65_spill] sm:$0xff] }
 0x315   : > { %v3100_v30 = vpack.i.b16 %v3012_v45, %v2962_v1  ;;  %v3102_v28 = vshrl.u32 %v3012_v45, 16  ;;  %v5338_v63 = vshrl.u32 %v19219_v34, 16  ;;  %v5339_v3 = vshrl.u32 %v5273_v39, 16  ;;  %v19223_v45 = vld [vmem:[#allocation64_spill] sm:$0xff] }
 0x316   : > { %13132 = vmatprep.subr.msk.bf16.mxu0 %vm7430_vm0, %v5205_v13  ;;  %v7900_v51 = vsel %vm7430_vm0, %v5205_v13, 0  ;;  %v5578_v26 = vcombine.high %v5336_v7, %v14398_v60  ;;  %13125 = vmatprep.subr.msk.bf16.mxu1 %vm7430_vm0, %v5190_v0  ;;  %v5193_v1 = vpack.i.b16 %v5192_v49, %v5191_v37  ;;  %v5585_v50 = vrot.slane %v5336_v7, %v14400_v61  ;;  %v5271_v49 = vpop.permute.xlu0 %5270 }
 0x317   : > { %12845 = vmatmul.mubr.msk.bf16.gmra.mxu1 %vm7430_vm0, %v3100_v30  ;;  %v3103_v42 = vpack.i.b16 %v3102_v28, %v3101_v52  ;;  %v7752_v29 = vsel %vm7430_vm0, %v5190_v0, 0  ;;  %v5340_v36 = vpack.i.b16 %v5339_v3, %v5338_v63  ;;  %v4507_v39 = vcombine.high %v19221_v40, %v19220_v32  ;;  %v19224_v63 = vld [vmem:[#allocation27_spill] sm:$0xff] }
 0x318   : > { %12896 = vmatprep.mubr.msk.bf16.mxu1 %vm7430_vm0, %v3022_v27  ;;  %v5592_v43 = vrot.slane %v5578_v26, %v14400_v61  ;;  %v4557_v33 = vcombine.high %v19223_v45, %v19222_v22  ;;  %v7897_v52 = vsel %vm7430_vm0, %v5193_v1, 0  ;;  %v5344_v4 = vpack.i.b16 %v5305_v5, %v16149_v31  ;;  %12921 = vmatpush3.bf16.xpose.msra.mxu0 %v7900_v51  ;;  %v5303_v31 = vpop.permute.xlu1 %5302 }
 0x319   : > { %12877 = vmatmul.mubr.msk.bf16.gmra.mxu0 %vm7430_vm0, %v3103_v42  ;;  %v5347_v21 = vshrl.u32 %v5305_v5, 16  ;;  %v5330_v12 = vshrl.u32 %v5287_v55, 16  ;;  %v5644_v27 = vcombine.high %v5340_v36, %v14398_v60  ;;  %v5651_v13 = vrot.slane %v5340_v36, %v14400_v61  ;;  %13133 = vmatprep.subr.msk.bf16.mxu0 %vm7430_vm0, %v5193_v1 }
 0x31a   : > { %12928 = vmatprep.mubr.msk.bf16.mxu0 %vm7430_vm0, %v3025_v15  ;;  %v5178_v37 = vpack.i.b16 %v4557_v33, %v4507_v39  ;;  %v5179_v34 = vshrl.u32 %v4507_v39, 16  ;;  %v5180_v7 = vshrl.u32 %v4557_v33, 16  ;;  %v5593_v28 = vcombine.high %v5344_v4, %v14398_v60 }
 0x31b   : > { %v5348_v30 = vpack.i.b16 %v5347_v21, %v5346_v58  ;;  %v5600_v0 = vrot.slane %v5344_v4, %v14400_v61  ;;  %v5658_v5 = vrot.slane %v5644_v27, %v14400_v61  ;;  %12891 = vmatpush3.bf16.xpose.msra.mxu1 %v7752_v29  ;;  %v5328_v15 = vpack.i.b16 %v5303_v31, %v5287_v55 }
 0x31c   : > { %v5331_v51 = vshrl.u32 %v5303_v31, 16  ;;  %v5320_v3 = vpack.i.b16 %v5271_v49, %v19224_v63  ;;  %13126 = vmatprep.subr.msk.bf16.mxu1 %vm7430_vm0, %v5178_v37  ;;  %v5181_v26 = vpack.i.b16 %v5180_v7, %v5179_v34  ;;  %v5607_v42 = vrot.slane %v5593_v28, %v14400_v61  ;;  %v19236_v31 = vld [vmem:[#allocation70_spill] sm:$0xff] }
 0x31d   : > { %v5608_v1 = vcombine.low %v5585_v50, %v5600_v0  ;;  %v5609_v58 = vcombine.high %v5585_v50, %v5600_v0  ;;  %v5659_v36 = vcombine.high %v5348_v30, %v14398_v60  ;;  %v5666_v32 = vrot.slane %v5348_v30, %v14400_v61 }
 0x31e   : > { %v5332_v40 = vpack.i.b16 %v5331_v51, %v5330_v12  ;;  %v5461_v39 = vcombine.high %v5328_v15, %v14398_v60  ;;  %v5624_v22 = vcombine.low %v5592_v43, %v5607_v42  ;;  %v5625_v45 = vcombine.high %v5592_v43, %v5607_v42 }
 0x31f   : > { %v16201_v29 = vrot.slane %v5608_v1, %v14407_v10  ;;  %v16204_v55 = vrot.slane %v5609_v58, %v14407_v10  ;;  %v5673_v33 = vrot.slane %v5659_v36, %v14400_v61  ;;  %v5674_v4 = vcombine.low %v5651_v13, %v5666_v32  ;;  %v19235_v1 = vld [vmem:[#allocation24_spill] sm:$0xff] }
 0x320   : > { %v5675_v21 = vcombine.high %v5651_v13, %v5666_v32  ;;  %v5468_v50 = vrot.slane %v5328_v15, %v14400_v61  ;;  %v16209_v27 = vrot.slane %v5624_v22, %v14407_v10  ;;  %v16212_v12 = vrot.slane %v5625_v45, %v14407_v10  ;;  %12923 = vmatpush3.bf16.xpose.msra.mxu0 %v7897_v52 }
 0x321   : > { %19225 = vst [vmem:[#allocation25_spill] sm:$0xff] %v16201_v29  ;;  %19226 = vst [vmem:[#allocation38_spill] sm:$0xff] %v16204_v55  ;;  %v16219_v43 = vrot.slane %v5674_v4, %v14407_v10  ;;  %v5690_v30 = vcombine.low %v5658_v5, %v5673_v33  ;;  %v5691_v28 = vcombine.high %v5658_v5, %v5673_v33  ;;  %13134 = vmatprep.subr.msk.bf16.mxu0 %vm7430_vm0, %v5181_v26  ;;  %v19233_v4 = vld [vmem:[#allocation69_spill] sm:$0xff] }
 0x322   : > { %19227 = vst [vmem:[#allocation37_spill] sm:$0xff] %v16209_v27  ;;  %19228 = vst [vmem:[#allocation40_spill] sm:$0xff] %v16212_v12  ;;  %v16222_v13 = vrot.slane %v5675_v21, %v14407_v10  ;;  %v5475_v15 = vrot.slane %v5461_v39, %v14400_v61  ;;  %v5527_v52 = vcombine.high %v5332_v40, %v14398_v60  ;;  %v5322_v32 = vshrl.u32 %v19224_v63, 16  ;;  %v19234_v21 = vld [vmem:[#allocation68_spill] sm:$0xff] }
 0x323   : > { %19229 = vst [vmem:[#allocation39_spill] sm:$0xff] %v16219_v43  ;;  %v16232_v51 = vrot.slane %v5690_v30, %v14407_v10  ;;  %v16235_v42 = vrot.slane %v5691_v28, %v14407_v10  ;;  %v5534_v58 = vrot.slane %v5332_v40, %v14400_v61  ;;  %v5323_v39 = vshrl.u32 %v5271_v49, 16  ;;  %v5293_v28 = vpop.permute.xlu1 %5292 }
 0x324   : > { %19230 = vst [vmem:[#allocation42_spill] sm:$0xff] %v16222_v13  ;;  %v5541_v36 = vrot.slane %v5527_v52, %v14400_v61  ;;  %v5446_v22 = vcombine.high %v5320_v3, %v14398_v60  ;;  %v5453_v45 = vrot.slane %v5320_v3, %v14400_v61  ;;  %v7749_v33 = vsel %vm7430_vm0, %v5178_v37, 0 }
 0x325   : > { %19231 = vst [vmem:[#allocation41_spill] sm:$0xff] %v16232_v51  ;;  %19232 = vst [vmem:[#allocation44_spill] sm:$0xff] %v16235_v42  ;;  %v4407_v30 = vcombine.high %v19234_v21, %v19233_v4  ;;  %v5324_v5 = vpack.i.b16 %v5323_v39, %v5322_v32  ;;  %12893 = vmatpush3.bf16.xpose.msra.mxu1 %v7749_v33  ;;  %v4457_v40 = vcombine.high %v19236_v31, %v19235_v1  ;;  %v5277_v32 = vpop.permute.xlu0 %5276 }
 0x326   : > { %v7894_v52 = vsel %vm7430_vm0, %v5181_v26, 0  ;;  %v5378_v0 = vshrl.u32 %v5293_v28, 16  ;;  %v5460_v49 = vrot.slane %v5446_v22, %v14400_v61  ;;  %v5476_v63 = vcombine.low %v5453_v45, %v5468_v50 }
 0x327   : > { %v5477_v7 = vcombine.high %v5453_v45, %v5468_v50  ;;  %v5167_v34 = vshrl.u32 %v4407_v30, 16  ;;  %v5512_v3 = vcombine.high %v5324_v5, %v14398_v60  ;;  %v5519_v37 = vrot.slane %v5324_v5, %v14400_v61 }
 0x328   : > { %v16255_v51 = vpack.i.b16 %v4457_v40, %v4407_v30  ;;  %v5168_v4 = vshrl.u32 %v4457_v40, 16  ;;  %v16258_v39 = vrot.slane %v5476_v63, %v14407_v10  ;;  %v5492_v26 = vcombine.low %v5460_v49, %v5475_v15  ;;  %12925 = vmatpush3.bf16.xpose.msra.mxu0 %v7894_v52  ;;  %v19243_v63 = vld [vmem:[#allocation28_spill] sm:$0xff] }
 0x329   : > { %v16261_v31 = vrot.slane %v5477_v7, %v14407_v10  ;;  %v5493_v1 = vcombine.high %v5460_v49, %v5475_v15  ;;  %v5526_v50 = vrot.slane %v5512_v3, %v14400_v61  ;;  %v5542_v22 = vcombine.low %v5519_v37, %v5534_v58 }
 0x32a   : > { %19237 = vst [vmem:[#allocation43_spill] sm:$0xff] %v16258_v39  ;;  %v5543_v45 = vcombine.high %v5519_v37, %v5534_v58  ;;  %13127 = vmatprep.subr.msk.bf16.mxu1 %vm7430_vm0, %v16255_v51  ;;  %v16266_v5 = vpack.i.b16 %v5168_v4, %v5167_v34  ;;  %v16269_v33 = vrot.slane %v5492_v26, %v14407_v10  ;;  %v5370_v37 = vshrl.u32 %v19243_v63, 16 }
 0x32b   : > { %19238 = vst [vmem:[#allocation62_spill] sm:$0xff] %v16261_v31  ;;  %v16272_v21 = vrot.slane %v5493_v1, %v14407_v10  ;;  %v16279_v30 = vrot.slane %v5542_v22, %v14407_v10  ;;  %v5558_v34 = vcombine.low %v5526_v50, %v5541_v36  ;;  %v5559_v40 = vcombine.high %v5526_v50, %v5541_v36  ;;  %v5309_v50 = vpop.permute.xlu0 %5308 }
 0x32c   : > { %19239 = vst [vmem:[#allocation63_spill] sm:$0xff] %v16269_v33  ;;  %v16282_v58 = vrot.slane %v5543_v45, %v14407_v10  ;;  %13135 = vmatprep.subr.msk.bf16.mxu0 %vm7430_vm0, %v16266_v5  ;;  %v5368_v3 = vpack.i.b16 %v5277_v32, %v19243_v63  ;;  %v5371_v22 = vshrl.u32 %v5277_v32, 16  ;;  %v5376_v52 = vpack.i.b16 %v5309_v50, %v5293_v28  ;;  %v5275_v63 = vpop.permute.xlu1 %5274 }
 0x32d   : > { %19240 = vst [vmem:[#allocation46_spill] sm:$0xff] %v16272_v21  ;;  %19241 = vst [vmem:[#allocation45_spill] sm:$0xff] %v16279_v30  ;;  %v16293_v4 = vrot.slane %v5558_v34, %v14407_v10  ;;  %v16296_v26 = vrot.slane %v5559_v40, %v14407_v10  ;;  %v5379_v15 = vshrl.u32 %v5309_v50, 16  ;;  %v19246_v34 = vld [vmem:[#allocation29_spill] sm:$0xff] }
 0x32e   : > { %19242 = vst [vmem:[#allocation48_spill] sm:$0xff] %v16282_v58  ;;  %v5842_v45 = vcombine.high %v5368_v3, %v14398_v60  ;;  %v5849_v49 = vrot.slane %v5368_v3, %v14400_v61  ;;  %v5352_v7 = vpack.i.b16 %v5275_v63, %v19246_v34  ;;  %v5354_v40 = vshrl.u32 %v19246_v34, 16 }
 0x32f   : > { %19244 = vst [vmem:[#allocation47_spill] sm:$0xff] %v16293_v4  ;;  %19245 = vst [vmem:[#allocation75_spill] sm:$0xff] %v16296_v26  ;;  %v5355_v4 = vshrl.u32 %v5275_v63, 16  ;;  %v5372_v26 = vpack.i.b16 %v5371_v22, %v5370_v37  ;;  %v5857_v21 = vcombine.high %v5376_v52, %v14398_v60  ;;  %v5864_v1 = vrot.slane %v5376_v52, %v14400_v61 }
 0x330   : > { %v5856_v36 = vrot.slane %v5842_v45, %v14400_v61  ;;  %v5380_v32 = vpack.i.b16 %v5379_v15, %v5378_v0  ;;  %v5710_v30 = vcombine.high %v5352_v7, %v14398_v60  ;;  %v16311_v28 = vrot.slane %v5352_v7, %v14400_v61  ;;  %v5307_v33 = vpop.permute.xlu1 %5306 }
 0x331   : > { %v5356_v58 = vpack.i.b16 %v5355_v4, %v5354_v40  ;;  %v5908_v3 = vcombine.high %v5372_v26, %v14398_v60  ;;  %v5915_v50 = vrot.slane %v5372_v26, %v14400_v61  ;;  %v5871_v63 = vrot.slane %v5857_v21, %v14400_v61  ;;  %v5291_v40 = vpop.permute.xlu0 %5290 }
 0x332   : > { %v5872_v37 = vcombine.low %v5849_v49, %v5864_v1  ;;  %v5873_v22 = vcombine.high %v5849_v49, %v5864_v1  ;;  %v5923_v45 = vcombine.high %v5380_v32, %v14398_v60  ;;  %v5930_v34 = vrot.slane %v5380_v32, %v14400_v61 }
 0x333   : > { %v16319_v0 = vrot.slane %v5710_v30, %v14400_v61  ;;  %v5922_v15 = vrot.slane %v5908_v3, %v14400_v61  ;;  %v5888_v52 = vcombine.low %v5856_v36, %v5871_v63  ;;  %v5889_v4 = vcombine.high %v5856_v36, %v5871_v63 }
 0x334   : > { %v16323_v7 = vrot.slane %v5872_v37, %v14407_v10  ;;  %v16326_v26 = vrot.slane %v5873_v22, %v14407_v10  ;;  %v5937_v21 = vrot.slane %v5923_v45, %v14400_v61  ;;  %v5938_v49 = vcombine.low %v5915_v50, %v5930_v34 }
 0x335   : > { %v5939_v1 = vcombine.high %v5915_v50, %v5930_v34  ;;  %v16330_v32 = vrot.slane %v5888_v52, %v14407_v10  ;;  %v16333_v30 = vrot.slane %v5889_v4, %v14407_v10  ;;  %v5776_v3 = vcombine.high %v5356_v58, %v14398_v60 }
 0x336   : > { %v5783_v37 = vrot.slane %v5356_v58, %v14400_v61  ;;  %v16338_v36 = vrot.slane %v5938_v49, %v14407_v10  ;;  %v5954_v22 = vcombine.low %v5922_v15, %v5937_v21  ;;  %v5955_v50 = vcombine.high %v5922_v15, %v5937_v21  ;;  %v19247_v15 = vld [vmem:[#allocation20_spill] sm:$0xff]  ;;  %v16370_v21 = vpop.permute.xlu1 %5296 }
 0x337   : > { %v16341_v63 = vrot.slane %v5939_v1, %v14407_v10  ;;  %v5790_v1 = vrot.slane %v5776_v3, %v14400_v61  ;;  %v7746_v52 = vsel %vm7430_vm0, %v16255_v51, 0  ;;  %v7891_v58 = vsel %vm7430_vm0, %v16266_v5, 0  ;;  %v5281_v3 = vpop.permute.xlu0 %5280  ;;  %v19248_v51 = vld [vmem:[#allocation34_spill] sm:$0xff] }
 0x338   : > { %v16352_v4 = vrot.slane %v5954_v22, %v14407_v10  ;;  %v16355_v49 = vrot.slane %v5955_v50, %v14407_v10  ;;  %v5362_v34 = vshrl.u32 %v5291_v40, 16  ;;  %12895 = vmatpush3.bf16.xpose.msra.mxu1 %v7746_v52  ;;  %12927 = vmatpush3.bf16.xpose.msra.mxu0 %v7891_v58  ;;  %v5360_v22 = vpack.i.b16 %v5307_v33, %v5291_v40 }
 0x339   : > { %v5363_v50 = vshrl.u32 %v5307_v33, 16  ;;  %v2363_v45 = vcombine.high %v15266_v41, %v15277_v59  ;;  %v2413_v31 = vcombine.high %v19247_v15, %v15818_v17  ;;  %v5410_v39 = vshrl.u32 %v16370_v21, 16 }
 0x33a   : > { %v5400_v42 = vpack.i.b16 %v5281_v3, %v19248_v51  ;;  %v5402_v5 = vshrl.u32 %v19248_v51, 16  ;;  %v5403_v13 = vshrl.u32 %v5281_v3, 16  ;;  %v5725_v40 = vcombine.high %v5360_v22, %v14398_v60  ;;  %v5279_v27 = vpop.permute.xlu1 %5278 }
 0x33b   : > { %v5364_v52 = vpack.i.b16 %v5363_v50, %v5362_v34  ;;  %v5732_v33 = vrot.slane %v5360_v22, %v14400_v61  ;;  %v3034_v58 = vpack.i.b16 %v2413_v31, %v2363_v45  ;;  %v2463_v15 = vcombine.high %v15879_v54, %v15893_v19 }
 0x33c   : > { %v5404_v41 = vpack.i.b16 %v5403_v13, %v5402_v5  ;;  %v6106_v59 = vcombine.high %v5400_v42, %v14398_v60  ;;  %v16379_v17 = vrot.slane %v5400_v42, %v14400_v61  ;;  %v5739_v43 = vrot.slane %v5725_v40, %v14400_v61 }
 0x33d   : > { %v5740_v51 = vcombine.low %v16311_v28, %v5732_v33  ;;  %v5741_v34 = vcombine.high %v16311_v28, %v5732_v33  ;;  %v5791_v50 = vcombine.high %v5364_v52, %v14398_v60  ;;  %v5798_v22 = vrot.slane %v5364_v52, %v14400_v61 }
 0x33e   : > { %v16389_v13 = vrot.slane %v6106_v59, %v14400_v61  ;;  %v6172_v3 = vcombine.high %v5404_v41, %v14398_v60  ;;  %v16393_v42 = vrot.slane %v5404_v41, %v14400_v61  ;;  %v5756_v28 = vcombine.low %v16319_v0, %v5739_v43 }
 0x33f   : > { %v16396_v54 = vrot.slane %v5740_v51, %v14407_v10  ;;  %v16399_v19 = vrot.slane %v5741_v34, %v14407_v10  ;;  %v5757_v5 = vcombine.high %v16319_v0, %v5739_v43  ;;  %v5805_v52 = vrot.slane %v5791_v50, %v14400_v61  ;;  %12897 = vmatmul.mubr.msk.bf16.vlgmr.msra.gmra.mxu1 %vm7430_vm0, %v3034_v58 }
 0x340   : > { %v5806_v40 = vcombine.low %v5783_v37, %v5798_v22  ;;  %v5807_v33 = vcombine.high %v5783_v37, %v5798_v22  ;;  %v16406_v59 = vrot.slane %v6172_v3, %v14400_v61  ;;  %v16409_v41 = vrot.slane %v5756_v28, %v14407_v10  ;;  %v5313_v22 = vpop.permute.xlu0 %5312 }
 0x341   : > { %v16412_v51 = vrot.slane %v5757_v5, %v14407_v10  ;;  %v5822_v58 = vcombine.low %v5790_v1, %v5805_v52  ;;  %v5823_v50 = vcombine.high %v5790_v1, %v5805_v52  ;;  %v2513_v5 = vcombine.high %v15900_v56, %v15911_v35 }
 0x342   : > { %v16419_v0 = vrot.slane %v5806_v40, %v14407_v10  ;;  %v16422_v37 = vrot.slane %v5807_v33, %v14407_v10  ;;  %v3035_v34 = vshrl.u32 %v2363_v45, 16  ;;  %v3036_v3 = vshrl.u32 %v2413_v31, 16  ;;  %v19254_v45 = vld [vmem:[#allocation35_spill] sm:$0xff] }
 0x343   : > { %19249 = vst [vmem:[#allocation71_spill] sm:$0xff] %v16412_v51  ;;  %v16431_v43 = vrot.slane %v5822_v58, %v14407_v10  ;;  %v16434_v40 = vrot.slane %v5823_v50, %v14407_v10  ;;  %v3046_v33 = vpack.i.b16 %v2513_v5, %v2463_v15  ;;  %v3047_v12 = vshrl.u32 %v2463_v15, 16 }
 0x344   : > { %19250 = vst [vmem:[#allocation72_spill] sm:$0xff] %v16419_v0  ;;  %19251 = vst [vmem:[#allocation73_spill] sm:$0xff] %v16422_v37  ;;  %v3048_v28 = vshrl.u32 %v2513_v5, 16  ;;  %v5408_v56 = vpack.i.b16 %v5313_v22, %v16370_v21  ;;  %v5411_v35 = vshrl.u32 %v5313_v22, 16  ;;  %v5384_v58 = vpack.i.b16 %v5279_v27, %v19254_v45  ;;  %v5295_v22 = vpop.permute.xlu0 %5294 }
 0x345   : > { %19252 = vst [vmem:[#allocation74_spill] sm:$0xff] %v16431_v43  ;;  %19253 = vst [vmem:[#allocation50_spill] sm:$0xff] %v16434_v40  ;;  %v5386_v55 = vshrl.u32 %v19254_v45, 16  ;;  %12900 = vmatprep.mubr.msk.bf16.mxu1 %vm7430_vm0, %v3046_v33  ;;  %v3037_v50 = vpack.i.b16 %v3036_v3, %v3035_v34  ;;  %v5387_v1 = vshrl.u32 %v5279_v27, 16  ;;  %v2563_v52 = vcombine.high %v15936_v11, %v15952_v18  ;;  %v5311_v33 = vpop.permute.xlu1 %5310 }
 0x346   : > { %v3049_v29 = vpack.i.b16 %v3048_v28, %v3047_v12  ;;  %v5412_v43 = vpack.i.b16 %v5411_v35, %v5410_v39  ;;  %v6121_v31 = vcombine.high %v5408_v56, %v14398_v60  ;;  %v6128_v15 = vrot.slane %v5408_v56, %v14400_v61 }
 0x347   : > { %v5974_v21 = vcombine.high %v5384_v58, %v14398_v60  ;;  %12929 = vmatmul.mubr.msk.bf16.vlgmr.msra.gmra.mxu0 %vm7430_vm0, %v3037_v50  ;;  %v5388_v5 = vpack.i.b16 %v5387_v1, %v5386_v55  ;;  %v5981_v45 = vrot.slane %v5384_v58, %v14400_v61  ;;  %v2613_v12 = vcombine.high %v15957_v25, %v15974_v57 }
 0x348   : > { %v5394_v27 = vshrl.u32 %v5295_v22, 16  ;;  %12932 = vmatprep.mubr.msk.bf16.mxu0 %vm7430_vm0, %v3049_v29  ;;  %v6135_v11 = vrot.slane %v6121_v31, %v14400_v61  ;;  %v6136_v18 = vcombine.low %v16379_v17, %v6128_v15  ;;  %v6137_v39 = vcombine.high %v16379_v17, %v6128_v15 }
 0x349   : > { %v6187_v34 = vcombine.high %v5412_v43, %v14398_v60  ;;  %v6194_v3 = vrot.slane %v5412_v43, %v14400_v61  ;;  %v5988_v55 = vrot.slane %v5974_v21, %v14400_v61  ;;  %v6040_v28 = vcombine.high %v5388_v5, %v14398_v60 }
 0x34a   : > { %v16462_v1 = vrot.slane %v5388_v5, %v14400_v61  ;;  %v16465_v25 = vrot.slane %v6136_v18, %v14407_v10  ;;  %v16468_v57 = vrot.slane %v6137_v39, %v14407_v10  ;;  %v6152_v29 = vcombine.low %v16389_v13, %v6135_v11 }
 0x34b   : > { %v6153_v17 = vcombine.high %v16389_v13, %v6135_v11  ;;  %v6201_v43 = vrot.slane %v6187_v34, %v14400_v61  ;;  %v6202_v56 = vcombine.low %v16393_v42, %v6194_v3  ;;  %v6203_v35 = vcombine.high %v16393_v42, %v6194_v3 }
 0x34c   : > { %v16476_v58 = vrot.slane %v6040_v28, %v14400_v61  ;;  %v16479_v50 = vrot.slane %v6152_v29, %v14407_v10  ;;  %v3058_v34 = vpack.i.b16 %v2613_v12, %v2563_v52  ;;  %v5392_v3 = vpack.i.b16 %v5311_v33, %v5295_v22 }
 0x34d   : > { %v16482_v31 = vrot.slane %v6153_v17, %v14407_v10  ;;  %v16489_v21 = vrot.slane %v6202_v56, %v14407_v10  ;;  %v16492_v42 = vrot.slane %v6203_v35, %v14407_v10  ;;  %v6218_v5 = vcombine.low %v16406_v59, %v6201_v43 }
 0x34e   : > { %v6219_v11 = vcombine.high %v16406_v59, %v6201_v43  ;;  %12901 = vmatmul.mubr.msk.bf16.gmra.mxu1 %vm7430_vm0, %v3058_v34  ;;  %v5395_v43 = vshrl.u32 %v5311_v33, 16  ;;  %v5989_v56 = vcombine.high %v5392_v3, %v14398_v60  ;;  %v5996_v35 = vrot.slane %v5392_v3, %v14400_v61 }
 0x34f   : > { %v16501_v28 = vrot.slane %v6218_v5, %v14407_v10  ;;  %v2663_v22 = vcombine.high %v15967_v44, %v15977_v6  ;;  %v16515_v5 = vpop.permute.xlu1 %5300  ;;  %v3059_v39 = vshrl.u32 %v2563_v52, 16  ;;  %v3060_v17 = vshrl.u32 %v2613_v12, 16  ;;  %v5285_v52 = vpop.permute.xlu0 %5284 }
 0x350   : > { %v16504_v29 = vrot.slane %v6219_v11, %v14407_v10  ;;  %v2713_v11 = vcombine.high %v15998_v9, %v16006_v16  ;;  %v5442_v18 = vshrl.u32 %v16515_v5, 16  ;;  %v5396_v59 = vpack.i.b16 %v5395_v43, %v5394_v27 }
 0x351   : > { %v6003_v34 = vrot.slane %v5989_v56, %v14400_v61  ;;  %v6004_v33 = vcombine.low %v5981_v45, %v5996_v35  ;;  %v6005_v13 = vcombine.high %v5981_v45, %v5996_v35  ;;  %v3061_v40 = vpack.i.b16 %v3060_v17, %v3059_v39  ;;  %v19255_v39 = vld [vmem:[#allocation36_spill] sm:$0xff] }
 0x352   : > { %v3070_v15 = vpack.i.b16 %v2713_v11, %v2663_v22  ;;  %v3071_v3 = vshrl.u32 %v2663_v22, 16  ;;  %v3072_v37 = vshrl.u32 %v2713_v11, 16  ;;  %v6055_v12 = vcombine.high %v5396_v59, %v14398_v60 }
 0x353   : > { %v16522_v44 = vrot.slane %v6004_v33, %v14407_v10  ;;  %v16525_v6 = vrot.slane %v6005_v13, %v14407_v10  ;;  %v6020_v9 = vcombine.low %v5988_v55, %v6003_v34  ;;  %v6021_v16 = vcombine.high %v5988_v55, %v6003_v34  ;;  %12933 = vmatmul.mubr.msk.bf16.gmra.mxu0 %vm7430_vm0, %v3061_v40 }
 0x354   : > { %v6062_v27 = vrot.slane %v5396_v59, %v14400_v61  ;;  %12904 = vmatprep.mubr.msk.bf16.mxu1 %vm7430_vm0, %v3070_v15  ;;  %v3073_v45 = vpack.i.b16 %v3072_v37, %v3071_v3  ;;  %v5434_v17 = vshrl.u32 %v19255_v39, 16  ;;  %v6069_v59 = vrot.slane %v6055_v12, %v14400_v61 }
 0x355   : > { %v16533_v43 = vrot.slane %v6020_v9, %v14407_v10  ;;  %v16536_v13 = vrot.slane %v6021_v16, %v14407_v10  ;;  %v5432_v40 = vpack.i.b16 %v5285_v52, %v19255_v39  ;;  %v5435_v11 = vshrl.u32 %v5285_v52, 16 }
 0x356   : > { %v6070_v15 = vcombine.low %v16462_v1, %v6062_v27  ;;  %v6071_v37 = vcombine.high %v16462_v1, %v6062_v27  ;;  %12936 = vmatprep.mubr.msk.bf16.mxu0 %vm7430_vm0, %v3073_v45  ;;  %v16553_v34 = vcombine.high %v16024_v62, %v16041_v24  ;;  %v6086_v3 = vcombine.low %v16476_v58, %v6069_v59  ;;  %v5317_v62 = vpop.permute.xlu0 %5316 }
 0x357   : > { %v6087_v9 = vcombine.high %v16476_v58, %v6069_v59  ;;  %v5436_v16 = vpack.i.b16 %v5435_v11, %v5434_v17  ;;  %v6370_v12 = vcombine.high %v5432_v40, %v14398_v60  ;;  %v6377_v27 = vrot.slane %v5432_v40, %v14400_v61  ;;  %v19256_v11 = vld [vmem:[#allocation32_spill] sm:$0xff] }
 0x358   : > { %v16556_v33 = vrot.slane %v6070_v15, %v14407_v10  ;;  %v16559_v1 = vrot.slane %v6071_v37, %v14407_v10  ;;  %v16567_v52 = vcombine.high %v16056_v48, %v16064_v47  ;;  %v16570_v24 = vrot.slane %v6086_v3, %v14407_v10  ;;  %v5283_v15 = vpop.permute.xlu1 %5282 }
 0x359   : > { %v16573_v45 = vrot.slane %v6087_v9, %v14407_v10  ;;  %v6384_v17 = vrot.slane %v6370_v12, %v14400_v61  ;;  %v6436_v59 = vcombine.high %v5436_v16, %v14398_v60  ;;  %v6443_v48 = vrot.slane %v5436_v16, %v14400_v61 }
 0x35a   : > { %v3082_v47 = vpack.i.b16 %v16567_v52, %v16553_v34  ;;  %v5440_v37 = vpack.i.b16 %v5317_v62, %v16515_v5  ;;  %v5443_v40 = vshrl.u32 %v5317_v62, 16  ;;  %v5416_v3 = vpack.i.b16 %v5283_v15, %v19256_v11 }
 0x35b   : > { %v5418_v9 = vshrl.u32 %v19256_v11, 16  ;;  %v6450_v39 = vrot.slane %v6436_v59, %v14400_v61  ;;  %v5419_v12 = vshrl.u32 %v5283_v15, 16  ;;  %v2863_v58 = vcombine.high %v16084_v53, %v16091_v20 }
 0x35c   : > { %12905 = vmatmul.mubr.msk.bf16.gmra.mxu1 %vm7430_vm0, %v3082_v47  ;;  %v2913_v16 = vcombine.high %v16104_v46, %v16110_v14  ;;  %v5444_v22 = vpack.i.b16 %v5443_v40, %v5442_v18  ;;  %v6385_v35 = vcombine.high %v5440_v37, %v14398_v60  ;;  %v6392_v5 = vrot.slane %v5440_v37, %v14400_v61  ;;  %v5315_v51 = vpop.permute.xlu1 %5314 }
 0x35d   : > { %v6238_v62 = vcombine.high %v5416_v3, %v14398_v60  ;;  %v5420_v56 = vpack.i.b16 %v5419_v12, %v5418_v9  ;;  %v16597_v11 = vrot.slane %v5416_v3, %v14400_v61  ;;  %v3083_v47 = vshrl.u32 %v16553_v34, 16 }
 0x35e   : > { %v3094_v59 = vpack.i.b16 %v2913_v16, %v2863_v58  ;;  %v6399_v15 = vrot.slane %v6385_v35, %v14400_v61  ;;  %v6400_v53 = vcombine.low %v6377_v27, %v6392_v5  ;;  %v6401_v20 = vcombine.high %v6377_v27, %v6392_v5 }
 0x35f   : > { %v6451_v46 = vcombine.high %v5444_v22, %v14398_v60  ;;  %v6458_v14 = vrot.slane %v5444_v22, %v14400_v61  ;;  %v16604_v18 = vrot.slane %v6238_v62, %v14400_v61  ;;  %v6304_v37 = vcombine.high %v5420_v56, %v14398_v60 }
 0x360   : > { %v16608_v40 = vrot.slane %v5420_v56, %v14400_v61  ;;  %12908 = vmatprep.mubr.msk.bf16.mxu1 %vm7430_vm0, %v3094_v59  ;;  %v6408_v34 = vrot.slane %v6400_v53, %v14407_v10  ;;  %v6415_v35 = vrot.slane %v6401_v20, %v14407_v10  ;;  %v6416_v3 = vcombine.low %v6384_v17, %v6399_v15  ;;  %v5299_v20 = vpop.permute.xlu0 %5298 }
 0x361   : > { %v6417_v27 = vcombine.high %v6384_v17, %v6399_v15  ;;  %v6465_v9 = vrot.slane %v6451_v46, %v14400_v61  ;;  %v6466_v12 = vcombine.low %v6443_v48, %v6458_v14  ;;  %v6467_v22 = vcombine.high %v6443_v48, %v6458_v14 }
 0x362   : > { %v16615_v5 = vrot.slane %v6304_v37, %v14400_v61  ;;  %v6424_v62 = vrot.slane %v6416_v3, %v14407_v10  ;;  %v7202_v55 = vcombine.low %v6408_v34, %v6415_v35  ;;  %v12348_v0 = vcombine.high %v6408_v34, %v6415_v35 }
 0x363   : > { %v6431_v56 = vrot.slane %v6417_v27, %v14407_v10  ;;  %v16620_v59 = vrot.slane %v6466_v12, %v14407_v10  ;;  %v16623_v53 = vrot.slane %v6467_v22, %v14407_v10  ;;  %v6482_v17 = vcombine.low %v6450_v39, %v6465_v9 }
 0x364   : > { %v6483_v15 = vcombine.high %v6450_v39, %v6465_v9  ;;  %v3084_v14 = vshrl.u32 %v16567_v52, 16  ;;  %v3095_v37 = vshrl.u32 %v2863_v58, 16  ;;  %v3096_v9 = vshrl.u32 %v2913_v16, 16 }
 0x365   : > { %v7218_v46 = vcombine.low %v6424_v62, %v6431_v56  ;;  %v12349_v48 = vcombine.high %v6424_v62, %v6431_v56  ;;  %v16627_v3 = vrot.slane %v6482_v17, %v14407_v10  ;;  %v7252_v35 = vcombine.low %v16620_v59, %v16623_v53 }
 0x366   : > { %v16630_v34 = vrot.slane %v6483_v15, %v14407_v10  ;;  %v12350_v27 = vcombine.high %v16620_v59, %v16623_v53  ;;  %v3085_v39 = vpack.i.b16 %v3084_v14, %v3083_v47  ;;  %v5426_v12 = vshrl.u32 %v5299_v20, 16 }
 0x367   : > { %v5424_v22 = vpack.i.b16 %v5315_v51, %v5299_v20  ;;  %v5427_v62 = vshrl.u32 %v5315_v51, 16  ;;  %v2963_v52 = vcombine.high %v16119_v8, %v16122_v38  ;;  %v3013_v58 = vcombine.high %v16152_v23, %v16157_v2 }
 0x368   : > { %v7209_v56 = vrot.slane %v7202_v55, %v14400_v61  ;;  %12937 = vmatmul.mubr.msk.bf16.gmra.mxu0 %vm7430_vm0, %v3085_v39  ;;  %v3097_v17 = vpack.i.b16 %v3096_v9, %v3095_v37  ;;  %v7217_v16 = vrot.slane %v12348_v0, %v14400_v61  ;;  %v7225_v2 = vrot.slane %v7218_v46, %v14400_v61 }
 0x369   : > { %v6253_v15 = vcombine.high %v5424_v22, %v14398_v60  ;;  %v6260_v59 = vrot.slane %v5424_v22, %v14400_v61  ;;  %v5428_v47 = vpack.i.b16 %v5427_v62, %v5426_v12  ;;  %v3106_v53 = vpack.i.b16 %v3013_v58, %v2963_v52 }
 0x36a   : > { %v3107_v51 = vshrl.u32 %v2963_v52, 16  ;;  %v3108_v20 = vshrl.u32 %v3013_v58, 16  ;;  %12940 = vmatprep.mubr.msk.bf16.mxu0 %vm7430_vm0, %v3097_v17  ;;  %v7233_v37 = vrot.slane %v12349_v48, %v14400_v61  ;;  %v7234_v52 = vcombine.low %v7209_v56, %v7217_v16 }
 0x36b   : > { %v6267_v8 = vrot.slane %v6253_v15, %v14400_v61  ;;  %v6268_v38 = vcombine.low %v16597_v11, %v6260_v59  ;;  %v6269_v23 = vcombine.high %v16597_v11, %v6260_v59  ;;  %v6319_v55 = vcombine.high %v5428_v47, %v14398_v60  ;;  %12909 = vmatmul.mubr.msk.bf16.gmra.mxu1 %vm7430_vm0, %v3106_v53 }
 0x36c   : > { %v6326_v14 = vrot.slane %v5428_v47, %v14400_v61  ;;  %v3109_v0 = vpack.i.b16 %v3108_v20, %v3107_v51  ;;  %v7242_v56 = vcombine.low %v7225_v2, %v7233_v37 }
 0x36d   : > { %v6276_v39 = vrot.slane %v6268_v38, %v14407_v10  ;;  %v6283_v9 = vrot.slane %v6269_v23, %v14407_v10  ;;  %v6284_v12 = vcombine.low %v16604_v18, %v6267_v8  ;;  %v6285_v22 = vcombine.high %v16604_v18, %v6267_v8 }
 0x36e   : > { %v6333_v11 = vrot.slane %v6319_v55, %v14400_v61  ;;  %v6334_v46 = vcombine.low %v16608_v40, %v6326_v14  ;;  %v6335_v62 = vcombine.high %v16608_v40, %v6326_v14  ;;  %v16669_v40 = vrot.slane %v7234_v52, %v14407_v10 }
 0x36f   : > { %v6292_v58 = vrot.slane %v6284_v12, %v14407_v10  ;;  %v6299_v17 = vrot.slane %v6285_v22, %v14407_v10  ;;  %v7102_v48 = vcombine.low %v6276_v39, %v6283_v9  ;;  %v12344_v15 = vcombine.high %v6276_v39, %v6283_v9 }
 0x370   : > { %v6342_v59 = vrot.slane %v6334_v46, %v14407_v10  ;;  %v6349_v47 = vrot.slane %v6335_v62, %v14407_v10  ;;  %v6350_v53 = vcombine.low %v16615_v5, %v6333_v11  ;;  %v6351_v18 = vcombine.high %v16615_v5, %v6333_v11  ;;  %12941 = vmatmul.mubr.msk.bf16.gmra.mxu0 %vm7430_vm0, %v3109_v0 }
 0x371   : > { %v7118_v51 = vcombine.low %v6292_v58, %v6299_v17  ;;  %v12345_v20 = vcombine.high %v6292_v58, %v6299_v17  ;;  %v16674_v55 = vrot.slane %v7242_v56, %v14407_v10  ;;  %v7259_v14 = vrot.slane %v7252_v35, %v14400_v61 }
 0x372   : > { %v6358_v16 = vrot.slane %v6350_v53, %v14407_v10  ;;  %v6365_v8 = vrot.slane %v6351_v18, %v14407_v10  ;;  %v7152_v38 = vcombine.low %v6342_v59, %v6349_v47  ;;  %v12346_v23 = vcombine.high %v6342_v59, %v6349_v47 }
 0x373   : > { %v7267_v5 = vrot.slane %v12350_v27, %v14400_v61  ;;  %v7268_v0 = vcombine.low %v16627_v3, %v16630_v34  ;;  %v12351_v39 = vcombine.high %v16627_v3, %v16630_v34  ;;  %v7109_v2 = vrot.slane %v7102_v48, %v14400_v61 }
 0x374   : > { %v7117_v37 = vrot.slane %v12344_v15, %v14400_v61  ;;  %v7125_v9 = vrot.slane %v7118_v51, %v14400_v61  ;;  %v7250_v12 = vcombine.low %v16669_v40, %v16674_v55  ;;  %v7133_v27 = vrot.slane %v12345_v20, %v14400_v61 }
 0x375   : > { %v7275_v22 = vrot.slane %v7268_v0, %v14400_v61  ;;  %v7284_v35 = vcombine.low %v7259_v14, %v7267_v5  ;;  %v7283_v11 = vrot.slane %v12351_v39, %v14400_v61  ;;  %v7159_v62 = vrot.slane %v7152_v38, %v14400_v61 }
 0x376   : > { %v7134_v46 = vcombine.low %v7109_v2, %v7117_v37  ;;  %v7167_v3 = vrot.slane %v12346_v23, %v14400_v61  ;;  %v7418_v52 = vshrl.u32 %v7250_v12, 16  ;;  %v7142_v58 = vcombine.low %v7125_v9, %v7133_v27 }
 0x377   : > { %v16693_v34 = vrot.slane %v7284_v35, %v14407_v10  ;;  %v7168_v17 = vcombine.low %v6358_v16, %v6365_v8  ;;  %v7292_v48 = vcombine.low %v7275_v22, %v7283_v11  ;;  %v12347_v59 = vcombine.high %v6358_v16, %v6365_v8 }
 0x378   : > { %v16696_v15 = vrot.slane %v7134_v46, %v14407_v10  ;;  %v7184_v47 = vcombine.low %v7159_v62, %v7167_v3  ;;  %v16699_v53 = vrot.slane %v7142_v58, %v14407_v10  ;;  %v19257_v51 = vcombine.low %v16465_v25, %v16468_v57 }
 0x379   : > { %v7175_v18 = vrot.slane %v7168_v17, %v14400_v61  ;;  %v19258_v56 = vcombine.high %v16465_v25, %v16468_v57  ;;  %v16711_v23 = vrot.slane %v7292_v48, %v14407_v10  ;;  %v7183_v16 = vrot.slane %v12347_v59, %v14400_v61 }
 0x37a   : > { %v7009_v20 = vrot.slane %v19257_v51, %v14400_v61  ;;  %v16715_v8 = vrot.slane %v7184_v47, %v14407_v10  ;;  %v19259_v14 = vcombine.low %v16479_v50, %v16482_v31  ;;  %v7150_v0 = vcombine.low %v16696_v15, %v16699_v53 }
 0x37b   : > { %v7017_v38 = vrot.slane %v19258_v56, %v14400_v61  ;;  %v19260_v25 = vcombine.high %v16479_v50, %v16482_v31  ;;  %v19261_v2 = vcombine.low %v16489_v21, %v16492_v42  ;;  %v7300_v9 = vcombine.low %v16693_v34, %v16711_v23 }
 0x37c   : > { %v7025_v5 = vrot.slane %v19259_v14, %v14400_v61  ;;  %v7192_v22 = vcombine.low %v7175_v18, %v7183_v16  ;;  %v19262_v35 = vcombine.high %v16489_v21, %v16492_v42  ;;  %v7068_v11 = vcombine.low %v16501_v28, %v16504_v29 }
 0x37d   : > { %v7033_v57 = vrot.slane %v19260_v25, %v14400_v61  ;;  %v7034_v39 = vcombine.low %v7009_v20, %v7017_v38  ;;  %v7059_v37 = vrot.slane %v19261_v2, %v14400_v61  ;;  %v7402_v50 = vshrl.u32 %v7150_v0, 16 }
 0x37e   : > { %v7067_v27 = vrot.slane %v19262_v35, %v14400_v61  ;;  %v12343_v62 = vcombine.high %v16501_v28, %v16504_v29  ;;  %v7416_v3 = vpack.i.b16 %v7300_v9, %v7250_v12  ;;  %v7419_v58 = vshrl.u32 %v7300_v9, 16 }
 0x37f   : > { %v16740_v31 = vrot.slane %v7034_v39, %v14407_v10  ;;  %v7042_v46 = vcombine.low %v7025_v5, %v7033_v57  ;;  %v16745_v17 = vrot.slane %v7192_v22, %v14407_v10  ;;  %v7075_v48 = vrot.slane %v7068_v11, %v14400_v61 }
 0x380   : > { %v7083_v42 = vrot.slane %v12343_v62, %v14400_v61  ;;  %v7084_v59 = vcombine.low %v7059_v37, %v7067_v27  ;;  %v19263_v47 = vcombine.low %v16522_v44, %v16525_v6  ;;  %12944 = vmatprep.subr.bf16.mxu1 %v7416_v3  ;;  %v7420_v28 = vpack.i.b16 %v7419_v58, %v7418_v52 }
 0x381   : > { %v16749_v21 = vrot.slane %v7042_v46, %v14407_v10  ;;  %v7200_v29 = vcombine.low %v16715_v8, %v16745_v17  ;;  %v19264_v12 = vcombine.high %v16522_v44, %v16525_v6  ;;  %v19265_v20 = vcombine.low %v16533_v43, %v16536_v13  ;;  %12945 = vmatpush3.bf16.msra.mxu1 %v7416_v3 }
 0x382   : > { %v6909_v18 = vrot.slane %v19263_v47, %v14400_v61  ;;  %v16769_v16 = vrot.slane %v7084_v59, %v14407_v10  ;;  %v7092_v52 = vcombine.low %v7075_v48, %v7083_v42  ;;  %v19266_v14 = vcombine.high %v16533_v43, %v16536_v13  ;;  %12976 = vmatprep.subr.bf16.mxu0 %v7420_v28 }
 0x383   : > { %v6917_v51 = vrot.slane %v19264_v12, %v14400_v61  ;;  %v6925_v56 = vrot.slane %v19265_v20, %v14400_v61  ;;  %v7050_v38 = vcombine.low %v16740_v31, %v16749_v21  ;;  %v7400_v44 = vpack.i.b16 %v7200_v29, %v7150_v0  ;;  %12977 = vmatpush3.bf16.msra.mxu0 %v7420_v28 }
 0x384   : > { %v6933_v5 = vrot.slane %v19266_v14, %v14400_v61  ;;  %v7403_v6 = vshrl.u32 %v7200_v29, 16  ;;  %v19267_v57 = vcombine.low %v16556_v33, %v16559_v1  ;;  %v16780_v2 = vrot.slane %v7092_v52, %v14407_v10 }
 0x385   : > { %v6934_v25 = vcombine.low %v6909_v18, %v6917_v51  ;;  %v7386_v37 = vshrl.u32 %v7050_v38, 16  ;;  %v19268_v43 = vcombine.high %v16556_v33, %v16559_v1  ;;  %12946 = vmatprep.subr.bf16.mxu1 %v7400_v44  ;;  %v6968_v35 = vcombine.low %v16570_v24, %v16573_v45 }
 0x386   : > { %v6959_v39 = vrot.slane %v19267_v57, %v14400_v61  ;;  %v6942_v9 = vcombine.low %v6925_v56, %v6933_v5  ;;  %v7404_v0 = vpack.i.b16 %v7403_v6, %v7402_v50  ;;  %v12339_v27 = vcombine.high %v16570_v24, %v16573_v45  ;;  %12947 = vmatpush3.bf16.msra.mxu1 %v7400_v44 }
 0x387   : > { %v6967_v13 = vrot.slane %v19268_v43, %v14400_v61  ;;  %v16787_v22 = vrot.slane %v6934_v25, %v14407_v10  ;;  %v7100_v11 = vcombine.low %v16769_v16, %v16780_v2  ;;  %v19269_v1 = vcombine.low %v16323_v7, %v16326_v26 }
 0x388   : > { %v16796_v46 = vrot.slane %v6942_v9, %v14407_v10  ;;  %12978 = vmatprep.subr.bf16.mxu0 %v7404_v0  ;;  %v6975_v62 = vrot.slane %v6968_v35, %v14400_v61  ;;  %v6983_v3 = vrot.slane %v12339_v27, %v14400_v61  ;;  %v19270_v24 = vcombine.high %v16323_v7, %v16326_v26  ;;  %v19277_v9 = vld [vmem:[#allocation71_spill] sm:$0xff]  ;;  %v19280_v27 = vld [vmem:[#allocation72_spill] sm:$0xff] }
 0x389   : > { %v6984_v33 = vcombine.low %v6959_v39, %v6967_v13  ;;  %v6809_v50 = vrot.slane %v19269_v1, %v14400_v61  ;;  %v19271_v58 = vcombine.low %v16330_v32, %v16333_v30  ;;  %12979 = vmatpush3.bf16.msra.mxu0 %v7404_v0  ;;  %v7384_v42 = vpack.i.b16 %v7100_v11, %v7050_v38 }
 0x38a   : > { %v6817_v45 = vrot.slane %v19270_v24, %v14400_v61  ;;  %v7387_v59 = vshrl.u32 %v7100_v11, 16  ;;  %v6950_v47 = vcombine.low %v16787_v22, %v16796_v46  ;;  %v6992_v28 = vcombine.low %v6975_v62, %v6983_v3  ;;  %v19281_v11 = vld [vmem:[#allocation73_spill] sm:$0xff] }
 0x38b   : > { %v6825_v48 = vrot.slane %v19271_v58, %v14400_v61  ;;  %v16815_v18 = vrot.slane %v6984_v33, %v14407_v10  ;;  %v19272_v7 = vcombine.high %v16330_v32, %v16333_v30  ;;  %v19273_v12 = vcombine.low %v16338_v36, %v16341_v63  ;;  %12948 = vmatprep.subr.bf16.mxu1 %v7384_v42 }
 0x38c   : > { %v6834_v29 = vcombine.low %v6809_v50, %v6817_v45  ;;  %v7388_v20 = vpack.i.b16 %v7387_v59, %v7386_v37  ;;  %v7370_v56 = vshrl.u32 %v6950_v47, 16  ;;  %v19274_v38 = vcombine.high %v16338_v36, %v16341_v63  ;;  %12949 = vmatpush3.bf16.msra.mxu1 %v7384_v42  ;;  %v19284_v42 = vld [vmem:[#allocation50_spill] sm:$0xff] }
 0x38d   : > { %v6833_v26 = vrot.slane %v19272_v7, %v14400_v61  ;;  %v6859_v51 = vrot.slane %v19273_v12, %v14400_v61  ;;  %v6868_v14 = vcombine.low %v16352_v4, %v16355_v49  ;;  %v16832_v32 = vrot.slane %v6992_v28, %v14407_v10  ;;  %v19285_v59 = vld [vmem:[#allocation74_spill] sm:$0xff] }
 0x38e   : > { %v6867_v52 = vrot.slane %v19274_v38, %v14400_v61  ;;  %v16835_v30 = vrot.slane %v6834_v29, %v14407_v10  ;;  %v12335_v44 = vcombine.high %v16352_v4, %v16355_v49  ;;  %12980 = vmatprep.subr.bf16.mxu0 %v7388_v20  ;;  %v19275_v36 = vcombine.low %v16396_v54, %v16399_v19  ;;  %v19286_v38 = vld [vmem:[#allocation25_spill] sm:$0xff] }
 0x38f   : > { %v6842_v5 = vcombine.low %v6825_v48, %v6833_v26  ;;  %v6875_v6 = vrot.slane %v6868_v14, %v14400_v61  ;;  %v19276_v57 = vcombine.high %v16396_v54, %v16399_v19  ;;  %12981 = vmatpush3.bf16.msra.mxu0 %v7388_v20  ;;  %v7000_v37 = vcombine.low %v16815_v18, %v16832_v32 }
 0x390   : > { %v6884_v25 = vcombine.low %v6859_v51, %v6867_v52  ;;  %v6709_v63 = vrot.slane %v19275_v36, %v14400_v61  ;;  %v6883_v49 = vrot.slane %v12335_v44, %v14400_v61  ;;  %v19278_v43 = vcombine.low %v16409_v41, %v19277_v9  ;;  %v19287_v52 = vld [vmem:[#allocation38_spill] sm:$0xff]  ;;  %v19290_v36 = vld [vmem:[#allocation37_spill] sm:$0xff] }
 0x391   : > { %v6717_v39 = vrot.slane %v19276_v57, %v14400_v61  ;;  %v16851_v4 = vrot.slane %v6842_v5, %v14407_v10  ;;  %v19279_v54 = vcombine.high %v16409_v41, %v19277_v9  ;;  %v19282_v33 = vcombine.low %v19280_v27, %v19281_v11 }
 0x392   : > { %v6725_v13 = vrot.slane %v19278_v43, %v14400_v61  ;;  %v16859_v0 = vrot.slane %v6884_v25, %v14407_v10  ;;  %v7368_v50 = vpack.i.b16 %v7000_v37, %v6950_v47  ;;  %v7371_v62 = vshrl.u32 %v7000_v37, 16 }
 0x393   : > { %v6733_v19 = vrot.slane %v19279_v54, %v14400_v61  ;;  %v6734_v35 = vcombine.low %v6709_v63, %v6717_v39  ;;  %v6759_v1 = vrot.slane %v19282_v33, %v14400_v61  ;;  %v6850_v3 = vcombine.low %v16835_v30, %v16851_v4  ;;  %v19291_v63 = vld [vmem:[#allocation40_spill] sm:$0xff]  ;;  %v19295_v54 = vld [vmem:[#allocation42_spill] sm:$0xff] }
 0x394   : > { %v6892_v24 = vcombine.low %v6875_v6, %v6883_v49  ;;  %v19283_v41 = vcombine.high %v19280_v27, %v19281_v11  ;;  %v6768_v28 = vcombine.low %v19285_v59, %v19284_v42  ;;  %12950 = vmatprep.subr.bf16.mxu1 %v7368_v50  ;;  %v7372_v7 = vpack.i.b16 %v7371_v62, %v7370_v56 }
 0x395   : > { %v16872_v45 = vrot.slane %v6734_v35, %v14407_v10  ;;  %v6742_v58 = vcombine.low %v6725_v13, %v6733_v19  ;;  %v7354_v26 = vshrl.u32 %v6850_v3, 16  ;;  %v12331_v29 = vcombine.high %v19285_v59, %v19284_v42  ;;  %12951 = vmatpush3.bf16.msra.mxu1 %v7368_v50  ;;  %v19294_v13 = vld [vmem:[#allocation39_spill] sm:$0xff] }
 0x396   : > { %v6767_v48 = vrot.slane %v19283_v41, %v14400_v61  ;;  %v16881_v47 = vrot.slane %v6892_v24, %v14407_v10  ;;  %v6775_v51 = vrot.slane %v6768_v28, %v14400_v61  ;;  %v19288_v14 = vcombine.low %v19286_v38, %v19287_v52  ;;  %12982 = vmatprep.subr.bf16.mxu0 %v7372_v7  ;;  %v19298_v41 = vld [vmem:[#allocation44_spill] sm:$0xff] }
 0x397   : > { %v16886_v12 = vrot.slane %v6742_v58, %v14407_v10  ;;  %v6783_v44 = vrot.slane %v12331_v29, %v14400_v61  ;;  %v19289_v6 = vcombine.high %v19286_v38, %v19287_v52  ;;  %v19292_v57 = vcombine.low %v19290_v36, %v19291_v63  ;;  %12983 = vmatpush3.bf16.msra.mxu0 %v7372_v7  ;;  %v19300_v38 = vld [vmem:[#allocation43_spill] sm:$0xff]  ;;  %v19301_v52 = vld [vmem:[#allocation62_spill] sm:$0xff] }
 0x398   : > { %v6784_v20 = vcombine.low %v6759_v1, %v6767_v48  ;;  %v6609_v5 = vrot.slane %v19288_v14, %v14400_v61  ;;  %v6900_v56 = vcombine.low %v16859_v0, %v16881_v47  ;;  %v19293_v9 = vcombine.high %v19290_v36, %v19291_v63  ;;  %v19299_v48 = vld [vmem:[#allocation41_spill] sm:$0xff]  ;;  %v19305_v36 = vld [vmem:[#allocation46_spill] sm:$0xff] }
 0x399   : > { %v6617_v25 = vrot.slane %v19289_v6, %v14400_v61  ;;  %v6625_v39 = vrot.slane %v19292_v57, %v14400_v61  ;;  %v6750_v37 = vcombine.low %v16872_v45, %v16886_v12  ;;  %v19296_v19 = vcombine.low %v19294_v13, %v19295_v54 }
 0x39a   : > { %v16907_v49 = vrot.slane %v6784_v20, %v14407_v10  ;;  %v6633_v43 = vrot.slane %v19293_v9, %v14400_v61  ;;  %v7352_v27 = vpack.i.b16 %v6900_v56, %v6850_v3  ;;  %v7355_v11 = vshrl.u32 %v6900_v56, 16 }
 0x39b   : > { %v6659_v35 = vrot.slane %v19296_v19, %v14400_v61  ;;  %v6792_v33 = vcombine.low %v6775_v51, %v6783_v44  ;;  %v6634_v1 = vcombine.low %v6609_v5, %v6617_v25  ;;  %v7338_v50 = vshrl.u32 %v6750_v37, 16  ;;  %v19304_v25 = vld [vmem:[#allocation63_spill] sm:$0xff]  ;;  %v19309_v19 = vld [vmem:[#allocation48_spill] sm:$0xff] }
 0x39c   : > { %v6642_v62 = vcombine.low %v6625_v39, %v6633_v43  ;;  %v19297_v24 = vcombine.high %v19294_v13, %v19295_v54  ;;  %v6668_v42 = vcombine.low %v19299_v48, %v19298_v41  ;;  %12952 = vmatprep.subr.bf16.mxu1 %v7352_v27  ;;  %v7356_v59 = vpack.i.b16 %v7355_v11, %v7354_v26  ;;  %v19308_v54 = vld [vmem:[#allocation45_spill] sm:$0xff] }
 0x39d   : > { %v16924_v28 = vrot.slane %v6792_v33, %v14407_v10  ;;  %v16927_v3 = vrot.slane %v6634_v1, %v14407_v10  ;;  %v12327_v7 = vcombine.high %v19299_v48, %v19298_v41  ;;  %12953 = vmatpush3.bf16.msra.mxu1 %v7352_v27  ;;  %v19302_v26 = vcombine.low %v19300_v38, %v19301_v52 }
 0x39e   : > { %v6667_v58 = vrot.slane %v19297_v24, %v14400_v61  ;;  %v16932_v29 = vrot.slane %v6642_v62, %v14407_v10  ;;  %v6675_v51 = vrot.slane %v6668_v42, %v14400_v61  ;;  %12984 = vmatprep.subr.bf16.mxu0 %v7356_v59  ;;  %v19303_v44 = vcombine.high %v19300_v38, %v19301_v52  ;;  %v19312_v42 = vld [vmem:[#allocation75_spill] sm:$0xff] }
 0x39f   : > { %v6509_v14 = vrot.slane %v19302_v26, %v14400_v61  ;;  %v6800_v5 = vcombine.low %v16907_v49, %v16924_v28  ;;  %v6683_v56 = vrot.slane %v12327_v7, %v14400_v61  ;;  %v19306_v63 = vcombine.low %v19304_v25, %v19305_v36  ;;  %12985 = vmatpush3.bf16.msra.mxu0 %v7356_v59  ;;  %v19313_v59 = vld [vmem:[#allocation47_spill] sm:$0xff] }
 0x3a0   : > { %v6684_v20 = vcombine.low %v6659_v35, %v6667_v58  ;;  %v6517_v6 = vrot.slane %v19303_v44, %v14400_v61  ;;  %v6650_v39 = vcombine.low %v16927_v3, %v16932_v29  ;;  %v19307_v43 = vcombine.high %v19304_v25, %v19305_v36 }
 0x3a1   : > { %v6525_v57 = vrot.slane %v19306_v63, %v14400_v61  ;;  %v19310_v35 = vcombine.low %v19308_v54, %v19309_v19  ;;  %v7336_v11 = vpack.i.b16 %v6800_v5, %v6750_v37  ;;  %v7339_v33 = vshrl.u32 %v6800_v5, 16 }
 0x3a2   : > { %v16953_v9 = vrot.slane %v6684_v20, %v14407_v10  ;;  %v6533_v13 = vrot.slane %v19307_v43, %v14400_v61  ;;  %v6692_v1 = vcombine.low %v6675_v51, %v6683_v56  ;;  %v6534_v62 = vcombine.low %v6509_v14, %v6517_v6 }
 0x3a3   : > { %v6559_v27 = vrot.slane %v19310_v35, %v14400_v61  ;;  %v7322_v24 = vshrl.u32 %v6650_v39, 16  ;;  %v19311_v41 = vcombine.high %v19308_v54, %v19309_v19  ;;  %v6568_v7 = vcombine.low %v19313_v59, %v19312_v42  ;;  %12954 = vmatprep.subr.bf16.mxu1 %v7336_v11 }
 0x3a4   : > { %v6542_v58 = vcombine.low %v6525_v57, %v6533_v13  ;;  %v7340_v20 = vpack.i.b16 %v7339_v33, %v7338_v50  ;;  %v16970_v38 = vrot.slane %v6692_v1, %v14407_v10  ;;  %v16973_v37 = vrot.slane %v6534_v62, %v14407_v10  ;;  %12955 = vmatpush3.bf16.msra.mxu1 %v7336_v11 }
 0x3a5   : > { %v6567_v48 = vrot.slane %v19311_v41, %v14400_v61  ;;  %v12323_v51 = vcombine.high %v19313_v59, %v19312_v42  ;;  %v6575_v26 = vrot.slane %v6568_v7, %v14400_v61  ;;  %v7251_v5 = vcombine.high %v16669_v40, %v16674_v55 }
 0x3a6   : > { %v16978_v52 = vrot.slane %v6542_v58, %v14407_v10  ;;  %12986 = vmatprep.subr.bf16.mxu0 %v7340_v20  ;;  %v6700_v50 = vcombine.low %v16953_v9, %v16970_v38  ;;  %v7301_v44 = vcombine.high %v16693_v34, %v16711_v23  ;;  %v7151_v6 = vcombine.high %v16696_v15, %v16699_v53 }
 0x3a7   : > { %v6584_v14 = vcombine.low %v6559_v27, %v6567_v48  ;;  %v6583_v56 = vrot.slane %v12323_v51, %v14400_v61  ;;  %12987 = vmatpush3.bf16.msra.mxu0 %v7340_v20  ;;  %v7426_v63 = vshrl.u32 %v7251_v5, 16  ;;  %v7201_v40 = vcombine.high %v16715_v8, %v16745_v17 }
 0x3a8   : > { %v6550_v25 = vcombine.low %v16973_v37, %v16978_v52  ;;  %v7320_v55 = vpack.i.b16 %v6700_v50, %v6650_v39  ;;  %v7323_v57 = vshrl.u32 %v6700_v50, 16  ;;  %v16995_v13 = vpack.i.b16 %v7301_v44, %v7251_v5 }
 0x3a9   : > { %v6591_v36 = vrot.slane %v6584_v14, %v14407_v10  ;;  %v6592_v43 = vcombine.low %v6575_v26, %v6583_v56  ;;  %v7427_v34 = vshrl.u32 %v7301_v44, 16  ;;  %v16997_v23 = vpack.i.b16 %v7201_v40, %v7151_v6 }
 0x3aa   : > { %v7306_v54 = vshrl.u32 %v6550_v25, 16  ;;  %v7410_v15 = vshrl.u32 %v7151_v6, 16  ;;  %12956 = vmatprep.subr.bf16.mxu1 %v7320_v55  ;;  %v7324_v53 = vpack.i.b16 %v7323_v57, %v7322_v24  ;;  %v7411_v35 = vshrl.u32 %v7201_v40, 16  ;;  %v17046_v14 = vpop.f32.mrf.mxu0 }
 0x3ab   : > { %v6599_v19 = vrot.slane %v6592_v43, %v14407_v10  ;;  %v7051_v27 = vcombine.high %v16740_v31, %v16749_v21  ;;  %12957 = vmatpush3.bf16.msra.mxu1 %v7320_v55  ;;  %v17002_v8 = vpack.i.b16 %v7427_v34, %v7426_v63  ;;  %v7101_v17 = vcombine.high %v16769_v16, %v16780_v2 }
 0x3ac   : > { %v6951_v39 = vcombine.high %v16787_v22, %v16796_v46  ;;  %v7001_v11 = vcombine.high %v16815_v18, %v16832_v32  ;;  %12988 = vmatprep.subr.bf16.mxu0 %v7324_v53  ;;  %v17010_v1 = vpack.i.b16 %v7411_v35, %v7410_v15  ;;  %v6851_v31 = vcombine.high %v16835_v30, %v16851_v4  ;;  %v17020_v32 = vpop.f32.mrf.mxu1 }
 0x3ad   : > { %v6600_v33 = vcombine.low %v6591_v36, %v6599_v19  ;;  %v7394_v62 = vshrl.u32 %v7051_v27, 16  ;;  %12989 = vmatpush3.bf16.msra.mxu0 %v7324_v53  ;;  %v17014_v21 = vpack.i.b16 %v7101_v17, %v7051_v27  ;;  %v7395_v24 = vshrl.u32 %v7101_v17, 16  ;;  %8015 = vmax.xlane.f32.xlu0 %v17020_v32 }
 0x3ae   : > { %v17016_v58 = vpack.i.b16 %v7001_v11, %v6951_v39  ;;  %v7378_v16 = vshrl.u32 %v6951_v39, 16  ;;  %v7379_v46 = vshrl.u32 %v7001_v11, 16  ;;  %v6901_v18 = vcombine.high %v16859_v0, %v16881_v47  ;;  %v17033_v47 = vpop.f32.mrf.mxu1 }
 0x3af   : > { %v7304_v2 = vpack.i.b16 %v6600_v33, %v6550_v25  ;;  %v7307_v22 = vshrl.u32 %v6600_v33, 16  ;;  %v17022_v41 = vpack.i.b16 %v7395_v24, %v7394_v62  ;;  %v7362_v48 = vshrl.u32 %v6851_v31, 16  ;;  %8011 = vmax.xlane.f32.xlu1 %v17033_v47 }
 0x3b0   : > { %v6751_v30 = vcombine.high %v16872_v45, %v16886_v12  ;;  %v6801_v4 = vcombine.high %v16907_v49, %v16924_v28  ;;  %v17029_v59 = vpack.i.b16 %v7379_v46, %v7378_v16  ;;  %v17031_v7 = vpack.i.b16 %v6901_v18, %v6851_v31  ;;  %v17059_v44 = vpop.f32.mrf.mxu1 }
 0x3b1   : > { %12958 = vmatprep.subr.bf16.mxu1 %v7304_v2  ;;  %v7308_v42 = vpack.i.b16 %v7307_v22, %v7306_v54  ;;  %v7363_v0 = vshrl.u32 %v6901_v18, 16  ;;  %v6651_v45 = vcombine.high %v16927_v3, %v16932_v29  ;;  %v6701_v49 = vcombine.high %v16953_v9, %v16970_v38  ;;  %8047 = vmax.xlane.f32.xlu0 %v17046_v14  ;;  %v17055_v38 = vpop.f32.mrf.mxu0 }
 0x3b2   : > { %12959 = vmatpush3.bf16.msra.mxu1 %v7304_v2  ;;  %v17035_v20 = vpack.i.b16 %v6801_v4, %v6751_v30  ;;  %v7346_v51 = vshrl.u32 %v6751_v30, 16  ;;  %v7347_v26 = vshrl.u32 %v6801_v4, 16  ;;  %v6551_v28 = vcombine.high %v16973_v37, %v16978_v52  ;;  %v17069_v63 = vpop.f32.mrf.mxu1 }
 0x3b3   : > { %12990 = vmatprep.subr.bf16.mxu0 %v7308_v42  ;;  %13008 = vmatprep.subr.bf16.mxu1 %v16995_v13  ;;  %v17040_v12 = vpack.i.b16 %v7363_v0, %v7362_v48  ;;  %v7330_v50 = vshrl.u32 %v6651_v45, 16  ;;  %v6601_v3 = vcombine.high %v6591_v36, %v6599_v19  ;;  %v17053_v29 = vpack.i.b16 %v6701_v49, %v6651_v45  ;;  %v17067_v36 = vpop.f32.mrf.mxu0 }
 0x3b4   : > { %12991 = vmatpush3.bf16.msra.mxu0 %v7308_v42  ;;  %v17049_v5 = vpack.i.b16 %v7347_v26, %v7346_v51  ;;  %v7331_v56 = vshrl.u32 %v6701_v49, 16  ;;  %v7314_v9 = vshrl.u32 %v6551_v28, 16  ;;  %8017 = vmax.xlane.f32.xlu1 %v17059_v44 }
 0x3b5   : > { %13040 = vmatprep.subr.bf16.mxu0 %v17002_v8  ;;  %v17057_v37 = vpack.i.b16 %v6601_v3, %v6551_v28  ;;  %v7315_v52 = vshrl.u32 %v6601_v3, 16  ;;  %8043 = vmax.xlane.f32.xlu0 %v17055_v38  ;;  %v17073_v40 = vpop.f32.mrf.mxu0 }
 0x3b6   : > { %v17061_v6 = vpack.i.b16 %v7331_v56, %v7330_v50 }
 0x3b7   : > { %v17064_v25 = vpack.i.b16 %v7315_v52, %v7314_v9 }
 0x3b8   : > { %8049 = vmax.xlane.f32.xlu1 %v17067_v36 }
 0x3b9   : > { %8013 = vmax.xlane.f32.xlu0 %v17069_v63 }
 0x3ba   : > { %v17075_v55 = vpop.f32.mrf.mxu1 }
 0x3bc   : > { %8045 = vmax.xlane.f32.xlu1 %v17073_v40  ;;  %v17078_v57 = vpop.f32.mrf.mxu1  ;;  %v17080_v43 = vpop.f32.mrf.mxu0 }
 0x3bd   : > { %8019 = vmax.xlane.f32.xlu0 %v17078_v57 }
 0x3be   : > { %v17084_v54 = vpop.f32.mrf.mxu1  ;;  %v17086_v34 = vpop.f32.mrf.mxu0 }
 0x3c0   : > { %8023 = vmax.xlane.f32.xlu1 %v17075_v55  ;;  %v17090_v15 = vpop.f32.mrf.mxu1  ;;  %v17094_v53 = vpop.f32.mrf.mxu0 }
 0x3c1   : > { %8051 = vmax.xlane.f32.xlu0 %v17086_v34 }
 0x3c2   : > { %v17100_v35 = vpop.f32.mrf.mxu0 }
 0x3c4   : > { %8055 = vmax.xlane.f32.xlu1 %v17080_v43 }
 0x3c5   : > { %8025 = vmax.xlane.f32.xlu0 %v17084_v54 }
 0x3c8   : > { %8021 = vmax.xlane.f32.xlu1 %v17090_v15  ;;  %v17096_v19 = vpop.f32.mrf.mxu1 }
 0x3c9   : > { %8057 = vmax.xlane.f32.xlu0 %v17094_v53 }
 0x3ca   : > { %v17102_v27 = vpop.f32.mrf.mxu1 }
 0x3cb   : > { %v17106_v17 = vpop.f32.mrf.mxu0 }
 0x3cc   : > { %8031 = vmax.xlane.f32.xlu1 %v17096_v19  ;;  %v17108_v39 = vpop.f32.mrf.mxu1 }
 0x3cd   : > { %8053 = vmax.xlane.f32.xlu0 %v17100_v35  ;;  %v17112_v11 = vpop.f32.mrf.mxu0 }
 0x3ce   : > { %v17114_v33 = vpop.f32.mrf.mxu1 }
 0x3cf   : > { %v17118_v62 = vpop.f32.mrf.mxu0 }
 0x3d0   : > { %8027 = vmax.xlane.f32.xlu1 %v17102_v27 }
 0x3d1   : > { %8033 = vmax.xlane.f32.xlu0 %v17108_v39  ;;  %v17124_v24 = vpop.f32.mrf.mxu0 }
 0x3d4   : > { %8063 = vmax.xlane.f32.xlu1 %v17106_v17 }
 0x3d5   : > { %8029 = vmax.xlane.f32.xlu0 %v17114_v33 }
 0x3d7   : > { %v17120_v31 = vpop.f32.mrf.mxu1 }
 0x3d8   : > { %8059 = vmax.xlane.f32.xlu1 %v17112_v11 }
 0x3d9   : > { %8065 = vmax.xlane.f32.xlu0 %v17118_v62  ;;  %v17126_v16 = vpop.f32.mrf.mxu1  ;;  %v17130_v2 = vpop.f32.mrf.mxu0 }
 0x3db   : > { %v17132_v22 = vpop.f32.mrf.mxu1  ;;  %v17136_v46 = vpop.f32.mrf.mxu0 }
 0x3dc   : > { %8039 = vmax.xlane.f32.xlu1 %v17120_v31 }
 0x3dd   : > { %8061 = vmax.xlane.f32.xlu0 %v17124_v24  ;;  %v17138_v18 = vpop.f32.mrf.mxu1  ;;  %v17142_v48 = vpop.f32.mrf.mxu0 }
 0x3df   : > { %v17145_v30 = vpop.f32.mrf.mxu0 }
 0x3e0   : > { %8035 = vmax.xlane.f32.xlu1 %v17126_v16 }
 0x3e1   : > { %8041 = vmax.xlane.f32.xlu0 %v17132_v22 }
 0x3e4   : > { %8071 = vmax.xlane.f32.xlu1 %v17130_v2 }
 0x3e5   : > { %8037 = vmax.xlane.f32.xlu0 %v17138_v18 }
 0x3e8   : > { %8067 = vmax.xlane.f32.xlu1 %v17136_v46 }
 0x3e9   : > { %8073 = vmax.xlane.f32.xlu0 %v17142_v48 }
 0x3ed   : > { %8069 = vmax.xlane.f32.xlu0 %v17145_v30 }
 0x3ff   : > { %v17148_v4 = vpop.f32.mrf.mxu1 }
 0x400   : > { %8079 = vmax.xlane.f32.xlu1 %v17148_v4 }
 0x401   : > { %v17151_v42 = vpop.f32.mrf.mxu1 }
 0x403   : > { %v17153_v0 = vpop.f32.mrf.mxu1 }
 0x404   : > { %8081 = vmax.xlane.f32.xlu0 %v17153_v0  ;;  %8075 = vmax.xlane.f32.xlu1 %v17151_v42 }
 0x405   : > { %v17157_v51 = vpop.f32.mrf.mxu1 }
 0x406   : > { %19314 = vst [vmem:[#allocation49_spill] sm:$0xff] %v17157_v51 }
 0x407   : > { %v17159_v26 = vpop.f32.mrf.mxu0 }
 0x408   : > { %19315 = vst [vmem:[#allocation52_spill] sm:$0xff] %v17159_v26  ;;  %8077 = vmax.xlane.f32.xlu0 %v17157_v51 }
 0x409   : > { %v17162_v45 = vpop.f32.mrf.mxu0 }
 0x40a   : > { %19316 = vst [vmem:[#allocation51_spill] sm:$0xff] %v17162_v45  ;;  %8107 = vmax.xlane.f32.xlu1 %v17162_v45 }
 0x40b   : > { %v17165_v49 = vpop.f32.mrf.mxu0 }
 0x40c   : > { %19317 = vst [vmem:[#allocation23_spill] sm:$0xff] %v17165_v49 }
 0x40d   : > { %v17167_v28 = vpop.f32.mrf.mxu0 }
 0x40e   : > { %19318 = vst [vmem:[#allocation22_spill] sm:$0xff] %v17167_v28  ;;  %8109 = vmax.xlane.f32.xlu0 %v17167_v28  ;;  %8111 = vmax.xlane.f32.xlu1 %v17159_v26  ;;  %v17171_v50 = vpop.f32.mrf.mxu1 }
 0x40f   : > { %19319 = vst [vmem:[#allocation67_spill] sm:$0xff] %v17171_v50 }
 0x410   : > { %v17173_v3 = vpop.f32.mrf.mxu1 }
 0x411   : > { %19320 = vst [vmem:[#allocation66_spill] sm:$0xff] %v17173_v3 }
 0x412   : > { %8113 = vmax.xlane.f32.xlu0 %v17165_v49  ;;  %8087 = vmax.xlane.f32.xlu1 %v17171_v50  ;;  %v17179_v9 = vpop.f32.mrf.mxu1 }
 0x413   : > { %v17177_v56 = vpop.f32.mrf.mxu0  ;;  %19322 = vst [vmem:[#allocation53_spill] sm:$0xff] %v17179_v9 }
 0x414   : > { %19321 = vst [vmem:[#allocation54_spill] sm:$0xff] %v17177_v56  ;;  %v17185_v10 = vpop.f32.mrf.mxu1 }
 0x415   : > { %v17183_v52 = vpop.f32.mrf.mxu0  ;;  %19324 = vst [vmem:[#allocation55_spill] sm:$0xff] %v17185_v10 }
 0x416   : > { %8089 = vmax.xlane.f32.xlu0 %v17179_v9  ;;  %8083 = vmax.xlane.f32.xlu1 %v17173_v3  ;;  %19323 = vst [vmem:[#allocation56_spill] sm:$0xff] %v17183_v52 }
 0x417   : > { %v17187_v61 = vpop.f32.mrf.mxu0 }
 0x418   : > { %19325 = vst [vmem:[#allocation21_spill] sm:$0xff] %v17187_v61 }
 0x419   : > { %v17191_v60 = vpop.f32.mrf.mxu0 }
 0x41a   : > { %8085 = vmax.xlane.f32.xlu0 %v17185_v10  ;;  %8115 = vmax.xlane.f32.xlu1 %v17183_v52  ;;  %19326 = vst [vmem:[#allocation57_spill] sm:$0xff] %v17191_v60 }
 0x41c   : > { %v17193_v50 = vpop.f32.mrf.mxu1 }
 0x41d   : > { %19327 = vst [vmem:[#allocation59_spill] sm:$0xff] %v17193_v50 }
 0x41e   : > { %8117 = vmax.xlane.f32.xlu0 %v17191_v60  ;;  %8119 = vmax.xlane.f32.xlu1 %v17177_v56  ;;  %v17197_v9 = vpop.f32.mrf.mxu1 }
 0x41f   : > { %19328 = vst [vmem:[#allocation58_spill] sm:$0xff] %v17197_v9 }
 0x420   : > { %v17201_v3 = vpop.f32.mrf.mxu1 }
 0x421   : > { %19329 = vst [vmem:[#allocation26_spill] sm:$0xff] %v17201_v3 }
 0x422   : > { %8121 = vmax.xlane.f32.xlu0 %v17187_v61  ;;  %8095 = vmax.xlane.f32.xlu1 %v17193_v50  ;;  %v17205_v52 = vpop.f32.mrf.mxu1 }
 0x423   : > { %19330 = vst [vmem:[#allocation61_spill] sm:$0xff] %v17205_v52 }
 0x426   : > { %8097 = vmax.xlane.f32.xlu0 %v17201_v3  ;;  %8091 = vmax.xlane.f32.xlu1 %v17197_v9 }
 0x428   : > { %v17208_v10 = vpop.f32.mrf.mxu0 }
 0x429   : > { %19331 = vst [vmem:[#allocation60_spill] sm:$0xff] %v17208_v10 }
 0x42a   : > { %8093 = vmax.xlane.f32.xlu0 %v17205_v52  ;;  %v17210_v60 = vpop.f32.mrf.mxu0 }
 0x42b   : > { %19332 = vst [vmem:[#allocation65_spill] sm:$0xff] %v17210_v60  ;;  %8123 = vmax.xlane.f32.xlu1 %v17210_v60  ;;  %v17215_v61 = vpop.f32.mrf.mxu1 }
 0x42c   : > { %v17213_v56 = vpop.f32.mrf.mxu0  ;;  %19334 = vst [vmem:[#allocation27_spill] sm:$0xff] %v17215_v61 }
 0x42d   : > { %19333 = vst [vmem:[#allocation64_spill] sm:$0xff] %v17213_v56  ;;  %v17222_v52 = vpop.f32.mrf.mxu1 }
 0x42e   : > { %v17217_v50 = vpop.f32.mrf.mxu0  ;;  %19336 = vst [vmem:[#allocation68_spill] sm:$0xff] %v17222_v52 }
 0x42f   : > { %19335 = vst [vmem:[#allocation69_spill] sm:$0xff] %v17217_v50  ;;  %8125 = vmax.xlane.f32.xlu0 %v17217_v50  ;;  %8127 = vmax.xlane.f32.xlu1 %v17208_v10  ;;  %v17230_v10 = vpop.f32.mrf.mxu1 }
 0x430   : > { %v17224_v49 = vpop.f32.mrf.mxu0 }
 0x431   : > { %19337 = vst [vmem:[#allocation24_spill] sm:$0xff] %v17224_v49 }
 0x432   : > { %v17232_v51 = vpop.f32.mrf.mxu0 }
 0x433   : > { %8129 = vmax.xlane.f32.xlu0 %v17213_v56  ;;  %8103 = vmax.xlane.f32.xlu1 %v17215_v61 }
 0x436   : > { %v8016_v9 = vpop.xlane.xlu0 %8015 }
 0x437   : > { %v8141_v3 = vsub.f32 %v17020_v32, %v8016_v9  ;;  %8105 = vmax.xlane.f32.xlu0 %v17230_v10  ;;  %8099 = vmax.xlane.f32.xlu1 %v17222_v52 }
 0x438   : > { %v8012_v26 = vpop.xlane.xlu1 %8011 }
 0x439   : > { %v8207_v60 = vmul.f32 1.442695, %v8141_v3  ;;  %v8139_v28 = vsub.f32 %v17033_v47, %v8012_v26 }
 0x43a   : > { %v8048_v45 = vpop.xlane.xlu0 %8047 }
 0x43b   : > { %13343 = vpow2.f32 %v8207_v60  ;;  %v8157_v50 = vsub.f32 %v17046_v14, %v8048_v45  ;;  %v8203_v32 = vmul.f32 1.442695, %v8139_v28  ;;  %v17238_v60 = vpop.f32.mrf.mxu1  ;;  %v17240_v14 = vpop.f32.mrf.mxu0  ;;  %8131 = vmax.xlane.f32.xlu1 %v17232_v51 }
 0x43c   : > { %19338 = vst [vmem:[#allocation70_spill] sm:$0xff] %v17240_v14  ;;  %8101 = vmax.xlane.f32.xlu0 %v17238_v60 }
 0x43d   : > { %v8018_v9 = vpop.xlane.xlu1 %8017  ;;  %13345 = vpow2.f32 %v8203_v32  ;;  %v8239_v56 = vmul.f32 1.442695, %v8157_v50  ;;  %v17246_v32 = vpop.f32.mrf.mxu0 }
 0x43e   : > { %v8142_v61 = vsub.f32 %v17059_v44, %v8018_v9  ;;  %v8044_v3 = vpop.xlane.xlu0 %8043 }
 0x43f   : > { %v8155_v47 = vsub.f32 %v17055_v38, %v8044_v3  ;;  %8135 = vmax.xlane.f32.xlu1 %v17224_v49 }
 0x440   : > { %v8209_v26 = vmul.f32 1.442695, %v8142_v61  ;;  %8133 = vmax.xlane.f32.xlu0 %v17246_v32 }
 0x441   : > { %v8050_v45 = vpop.xlane.xlu1 %8049  ;;  %v8235_v28 = vmul.f32 1.442695, %v8155_v47 }
 0x442   : > { %13347 = vpow2.f32 %v8209_v26  ;;  %v8158_v52 = vsub.f32 %v17067_v36, %v8050_v45  ;;  %v8014_v44 = vpop.xlane.xlu0 %8013 }
 0x443   : > { %13349 = vpow2.f32 %v8239_v56  ;;  %v8140_v50 = vsub.f32 %v17069_v63, %v8014_v44 }
 0x444   : > { %v8241_v61 = vmul.f32 1.442695, %v8158_v52  ;;  %13351 = vpow2.f32 %v8235_v28  ;;  %8137 = vmax.xlane.f32.xlu0 %v17240_v14 }
 0x445   : > { %v8205_v38 = vmul.f32 1.442695, %v8140_v50  ;;  %v8046_v9 = vpop.xlane.xlu1 %8045 }
 0x446   : > { %v8156_v3 = vsub.f32 %v17073_v40, %v8046_v9  ;;  %v8020_v36 = vpop.xlane.xlu0 %8019 }
 0x447   : > { %13353 = vpow2.f32 %v8205_v38  ;;  %v8143_v56 = vsub.f32 %v17078_v57, %v8020_v36 }
 0x448   : > { %v13344_v47 = vpop.eup %13343  ;;  %v8237_v26 = vmul.f32 1.442695, %v8156_v3  ;;  %13355 = vpow2.f32 %v8241_v61 }
 0x449   : > { %v8024_v63 = vpop.xlane.xlu1 %8023  ;;  %8335 = vadd.xlane.f32.xlu1 %v13344_v47  ;;  %v8211_v40 = vmul.f32 1.442695, %v8143_v56 }
 0x44a   : > { %13357 = vpow2.f32 %v8237_v26  ;;  %v8145_v45 = vsub.f32 %v17075_v55, %v8024_v63  ;;  %v13346_v52 = vpop.eup %13345  ;;  %v8052_v50 = vpop.xlane.xlu0 %8051 }
 0x44b   : > { %v8159_v55 = vsub.f32 %v17086_v34, %v8052_v50 }
 0x44c   : > { %v8215_v44 = vmul.f32 1.442695, %v8145_v45 }
 0x44d   : > { %v8056_v28 = vpop.xlane.xlu1 %8055  ;;  %8331 = vadd.xlane.f32.xlu1 %v13346_v52 }
 0x44e   : > { %13359 = vpow2.f32 %v8215_v44  ;;  %v8161_v38 = vsub.f32 %v17080_v43, %v8056_v28  ;;  %v8026_v61 = vpop.xlane.xlu0 %8025 }
 0x44f   : > { %v13348_v9 = vpop.eup %13347  ;;  %v8146_v26 = vsub.f32 %v17084_v54, %v8026_v61  ;;  %13361 = vpow2.f32 %v8211_v40  ;;  %v8243_v61 = vmul.f32 1.442695, %v8159_v55 }
 0x450   : > { %v13350_v3 = vpop.eup %13349  ;;  %v8247_v14 = vmul.f32 1.442695, %v8161_v38  ;;  %8337 = vadd.xlane.f32.xlu0 %v13348_v9  ;;  %v8524_v50 = vpack.c.bf16 %v13348_v9, %v13344_v47 }
 0x451   : > { %v8022_v49 = vpop.xlane.xlu1 %8021  ;;  %8367 = vadd.xlane.f32.xlu1 %v13350_v3  ;;  %v13352_v36 = vpop.eup %13351  ;;  %v8217_v63 = vmul.f32 1.442695, %v8146_v26 }
 0x452   : > { %v8144_v57 = vsub.f32 %v17090_v15, %v8022_v49  ;;  %13363 = vpow2.f32 %v8247_v14  ;;  %v8058_v43 = vpop.xlane.xlu0 %8057 }
 0x453   : > { %13365 = vpow2.f32 %v8217_v63  ;;  %v8162_v44 = vsub.f32 %v17094_v53, %v8058_v43 }
 0x454   : > { %v13354_v56 = vpop.eup %13353  ;;  %v8213_v45 = vmul.f32 1.442695, %v8144_v57 }
 0x455   : > { %v8032_v28 = vpop.xlane.xlu1 %8031  ;;  %8363 = vadd.xlane.f32.xlu1 %v13352_v36  ;;  %8333 = vadd.xlane.f32.xlu0 %v13354_v56  ;;  %v8523_v54 = vpack.c.bf16 %v13354_v56, %v13346_v52  ;;  %v13356_v38 = vpop.eup %13355  ;;  %v8249_v49 = vmul.f32 1.442695, %v8162_v44 }
 0x456   : > { %13367 = vpow2.f32 %v8213_v45  ;;  %v8149_v34 = vsub.f32 %v17096_v19, %v8032_v28  ;;  %v8054_v40 = vpop.xlane.xlu0 %8053  ;;  %v8532_v53 = vpack.c.bf16 %v13356_v38, %v13350_v3 }
 0x457   : > { %v13358_v15 = vpop.eup %13357  ;;  %12960 = vmatprep.mubr.bf16.mxu1 %v8523_v54  ;;  %v8160_v26 = vsub.f32 %v17100_v35, %v8054_v40  ;;  %13369 = vpow2.f32 %v8243_v61 }
 0x458   : > { %12961 = vmatmul.mubr.bf16.vlgmr.msra.gmra.mxu1 %v8524_v50  ;;  %v8531_v14 = vpack.c.bf16 %v13358_v15, %v13352_v36  ;;  %v8223_v52 = vmul.f32 1.442695, %v8149_v34  ;;  %13371 = vpow2.f32 %v8249_v49 }
 0x459   : > { %v8028_v57 = vpop.xlane.xlu1 %8027  ;;  %13009 = vmatpush3.bf16.msra.mxu1 %v16995_v13  ;;  %8369 = vadd.xlane.f32.xlu0 %v13356_v38  ;;  %v8245_v47 = vmul.f32 1.442695, %v8160_v26 }
 0x45a   : > { %v8147_v55 = vsub.f32 %v17102_v27, %v8028_v57  ;;  %12992 = vmatprep.mubr.bf16.mxu0 %v8531_v14  ;;  %13010 = vmatprep.subr.bf16.mxu1 %v16997_v23  ;;  %v8034_v9 = vpop.xlane.xlu0 %8033 }
 0x45b   : > { %v13360_v19 = vpop.eup %13359  ;;  %12993 = vmatmul.mubr.bf16.vlgmr.msra.gmra.mxu0 %v8532_v53  ;;  %13373 = vpow2.f32 %v8245_v47  ;;  %v8150_v13 = vsub.f32 %v17108_v39, %v8034_v9 }
 0x45c   : > { %13041 = vmatpush3.bf16.msra.mxu0 %v17002_v8  ;;  %8343 = vadd.xlane.f32.xlu1 %v13360_v19  ;;  %13375 = vpow2.f32 %v8223_v52  ;;  %v8219_v27 = vmul.f32 1.442695, %v8147_v55  ;;  %v13362_v36 = vpop.eup %13361 }
 0x45d   : > { %13042 = vmatprep.subr.bf16.mxu0 %v17010_v1  ;;  %v8064_v35 = vpop.xlane.xlu1 %8063  ;;  %13011 = vmatpush3.bf16.msra.mxu1 %v16997_v23  ;;  %v8225_v63 = vmul.f32 1.442695, %v8150_v13 }
 0x45e   : > { %v8165_v3 = vsub.f32 %v17106_v17, %v8064_v35  ;;  %8365 = vadd.xlane.f32.xlu0 %v13358_v15  ;;  %13012 = vmatprep.subr.bf16.mxu1 %v17014_v21  ;;  %v8030_v56 = vpop.xlane.xlu0 %8029  ;;  %13377 = vpow2.f32 %v8219_v27 }
 0x45f   : > { %v13364_v8 = vpop.eup %13363  ;;  %v8148_v39 = vsub.f32 %v17114_v33, %v8030_v56  ;;  %13379 = vpow2.f32 %v8225_v63 }
 0x460   : > { %13043 = vmatpush3.bf16.msra.mxu0 %v17010_v1  ;;  %8339 = vadd.xlane.f32.xlu1 %v13362_v36  ;;  %v13366_v23 = vpop.eup %13365  ;;  %v8255_v17 = vmul.f32 1.442695, %v8165_v3 }
 0x461   : > { %13044 = vmatprep.subr.bf16.mxu0 %v17022_v41  ;;  %v8060_v45 = vpop.xlane.xlu1 %8059  ;;  %13013 = vmatpush3.bf16.msra.mxu1 %v17014_v21  ;;  %v8221_v28 = vmul.f32 1.442695, %v8148_v39 }
 0x462   : > { %v8163_v43 = vsub.f32 %v17112_v11, %v8060_v45  ;;  %13014 = vmatprep.subr.bf16.mxu1 %v17016_v58  ;;  %8345 = vadd.xlane.f32.xlu0 %v13366_v23  ;;  %v8066_v1 = vpop.xlane.xlu0 %8065  ;;  %v8526_v11 = vpack.c.bf16 %v13366_v23, %v13360_v19 }
 0x463   : > { %v13368_v44 = vpop.eup %13367  ;;  %13381 = vpow2.f32 %v8221_v28  ;;  %v8166_v54 = vsub.f32 %v17118_v62, %v8066_v1 }
 0x464   : > { %13045 = vmatpush3.bf16.msra.mxu0 %v17022_v41  ;;  %8375 = vadd.xlane.f32.xlu1 %v13364_v8  ;;  %v8525_v33 = vpack.c.bf16 %v13368_v44, %v13362_v36  ;;  %13383 = vpow2.f32 %v8255_v17  ;;  %v8251_v38 = vmul.f32 1.442695, %v8163_v43  ;;  %v13370_v34 = vpop.eup %13369 }
 0x465   : > { %13046 = vmatprep.subr.bf16.mxu0 %v17029_v59  ;;  %v8040_v21 = vpop.xlane.xlu1 %8039  ;;  %13015 = vmatpush3.bf16.msra.mxu1 %v17016_v58  ;;  %v8257_v41 = vmul.f32 1.442695, %v8166_v54  ;;  %v13372_v62 = vpop.eup %13371 }
 0x466   : > { %v8153_v61 = vsub.f32 %v17120_v31, %v8040_v21  ;;  %12964 = vmatprep.mubr.bf16.mxu1 %v8525_v33  ;;  %13016 = vmatprep.subr.bf16.mxu1 %v17031_v7  ;;  %v8062_v50 = vpop.xlane.xlu0 %8061  ;;  %13385 = vpow2.f32 %v8251_v38 }
 0x467   : > { %8341 = vadd.xlane.f32.xlu0 %v13368_v44  ;;  %12965 = vmatmul.mubr.bf16.gmra.mxu1 %v8526_v11  ;;  %v8164_v15 = vsub.f32 %v17124_v24, %v8062_v50  ;;  %13387 = vpow2.f32 %v8257_v41  ;;  %v8534_v24 = vpack.c.bf16 %v13372_v62, %v13364_v8 }
 0x468   : > { %13047 = vmatpush3.bf16.msra.mxu0 %v17029_v59  ;;  %8371 = vadd.xlane.f32.xlu1 %v13370_v34  ;;  %v13374_v31 = vpop.eup %13373  ;;  %v8231_v49 = vmul.f32 1.442695, %v8153_v61 }
 0x469   : > { %13048 = vmatprep.subr.bf16.mxu0 %v17040_v12  ;;  %v8036_v58 = vpop.xlane.xlu1 %8035  ;;  %13017 = vmatpush3.bf16.msra.mxu1 %v17031_v7  ;;  %v13376_v14 = vpop.eup %13375  ;;  %v8253_v26 = vmul.f32 1.442695, %v8164_v15  ;;  %v8533_v59 = vpack.c.bf16 %v13374_v31, %v13370_v34 }
 0x46a   : > { %v8151_v40 = vsub.f32 %v17126_v16, %v8036_v58  ;;  %13018 = vmatprep.subr.bf16.mxu1 %v17035_v20  ;;  %v8042_v57 = vpop.xlane.xlu0 %8041 }
 0x46b   : > { %8377 = vadd.xlane.f32.xlu0 %v13372_v62  ;;  %13389 = vpow2.f32 %v8253_v26  ;;  %v8154_v7 = vsub.f32 %v17132_v22, %v8042_v57  ;;  %12996 = vmatprep.mubr.bf16.mxu0 %v8533_v59  ;;  %v13378_v52 = vpop.eup %13377  ;;  %v19340_v59 = vld [vmem:[#allocation51_spill] sm:$0xff] }
 0x46c   : > { %13049 = vmatpush3.bf16.msra.mxu0 %v17040_v12  ;;  %8351 = vadd.xlane.f32.xlu1 %v13376_v14  ;;  %13391 = vpow2.f32 %v8231_v49  ;;  %v8227_v16 = vmul.f32 1.442695, %v8151_v40  ;;  %v13380_v19 = vpop.eup %13379  ;;  %v19339_v40 = vld [vmem:[#allocation49_spill] sm:$0xff] }
 0x46d   : > { %13050 = vmatprep.subr.bf16.mxu0 %v17049_v5  ;;  %v8072_v53 = vpop.xlane.xlu1 %8071  ;;  %12997 = vmatmul.mubr.bf16.gmra.mxu0 %v8534_v24  ;;  %v8233_v55 = vmul.f32 1.442695, %v8154_v7 }
 0x46e   : > { %13019 = vmatpush3.bf16.msra.mxu1 %v17035_v20  ;;  %v8038_v12 = vpop.xlane.xlu0 %8037  ;;  %13393 = vpow2.f32 %v8227_v16  ;;  %v19341_v16 = vld [vmem:[#allocation22_spill] sm:$0xff] }
 0x46f   : > { %8373 = vadd.xlane.f32.xlu0 %v13374_v31  ;;  %13020 = vmatprep.subr.bf16.mxu1 %v17053_v29  ;;  %v8152_v22 = vsub.f32 %v17138_v18, %v8038_v12  ;;  %13395 = vpow2.f32 %v8233_v55  ;;  %v8528_v18 = vpack.c.bf16 %v13380_v19, %v13376_v14 }
 0x470   : > { %13051 = vmatpush3.bf16.msra.mxu0 %v17049_v5  ;;  %8347 = vadd.xlane.f32.xlu1 %v13378_v52  ;;  %v13382_v9 = vpop.eup %13381 }
 0x471   : > { %13052 = vmatprep.subr.bf16.mxu0 %v17061_v6  ;;  %v8068_v47 = vpop.xlane.xlu1 %8067  ;;  %v13384_v20 = vpop.eup %13383  ;;  %v8229_v35 = vmul.f32 1.442695, %v8152_v22  ;;  %v8527_v27 = vpack.c.bf16 %v13382_v9, %v13378_v52 }
 0x472   : > { %v8167_v13 = vsub.f32 %v17136_v46, %v8068_v47  ;;  %13021 = vmatpush3.bf16.msra.mxu1 %v17053_v29  ;;  %v8074_v3 = vpop.xlane.xlu0 %8073  ;;  %v8169_v29 = vsub.f32 %v17130_v2, %v8072_v53 }
 0x473   : > { %8353 = vadd.xlane.f32.xlu0 %v13380_v19  ;;  %13022 = vmatprep.subr.bf16.mxu1 %v17057_v37  ;;  %13397 = vpow2.f32 %v8229_v35  ;;  %v8170_v36 = vsub.f32 %v17142_v48, %v8074_v3  ;;  %v13386_v46 = vpop.eup %13385 }
 0x474   : > { %v8259_v5 = vmul.f32 1.442695, %v8167_v13  ;;  %13053 = vmatpush3.bf16.msra.mxu0 %v17061_v6  ;;  %8383 = vadd.xlane.f32.xlu1 %v13384_v20  ;;  %v13388_v6 = vpop.eup %13387  ;;  %v8263_v39 = vmul.f32 1.442695, %v8169_v29  ;;  %v19345_v29 = vld [vmem:[#allocation53_spill] sm:$0xff] }
 0x475   : > { %12968 = vmatprep.mubr.bf16.mxu1 %v8527_v27  ;;  %13054 = vmatprep.subr.bf16.mxu0 %v17064_v25  ;;  %v8265_v63 = vmul.f32 1.442695, %v8170_v36  ;;  %v8536_v17 = vpack.c.bf16 %v13388_v6, %v13384_v20  ;;  %v19344_v20 = vld [vmem:[#allocation67_spill] sm:$0xff] }
 0x476   : > { %13399 = vpow2.f32 %v8259_v5  ;;  %12969 = vmatmul.mubr.bf16.gmra.mxu1 %v8528_v18  ;;  %v8070_v56 = vpop.xlane.xlu0 %8069 }
 0x477   : > { %13023 = vmatpush3.bf16.msra.mxu1 %v17057_v37  ;;  %8349 = vadd.xlane.f32.xlu0 %v13382_v9  ;;  %v8168_v8 = vsub.f32 %v17145_v30, %v8070_v56  ;;  %13401 = vpow2.f32 %v8265_v63  ;;  %v19343_v9 = vld [vmem:[#allocation23_spill] sm:$0xff]  ;;  %v19346_v63 = vld [vmem:[#allocation66_spill] sm:$0xff] }
 0x478   : > { %13055 = vmatpush3.bf16.msra.mxu0 %v17064_v25  ;;  %8379 = vadd.xlane.f32.xlu1 %v13386_v46  ;;  %v13390_v48 = vpop.eup %13389 }
 0x479   : > { %v13392_v45 = vpop.eup %13391  ;;  %v8261_v23 = vmul.f32 1.442695, %v8168_v8  ;;  %v8535_v2 = vpack.c.bf16 %v13390_v48, %v13386_v46 }
 0x47b   : > { %8385 = vadd.xlane.f32.xlu0 %v13388_v6  ;;  %13403 = vpow2.f32 %v8261_v23  ;;  %13000 = vmatprep.mubr.bf16.mxu0 %v8535_v2  ;;  %v13394_v37 = vpop.eup %13393 }
 0x47c   : > { %8359 = vadd.xlane.f32.xlu1 %v13392_v45  ;;  %13405 = vpow2.f32 %v8263_v39  ;;  %13001 = vmatmul.mubr.bf16.gmra.mxu0 %v8536_v17  ;;  %v13396_v25 = vpop.eup %13395  ;;  %v19347_v17 = vld [vmem:[#allocation55_spill] sm:$0xff] }
 0x47d   : > { %v8530_v28 = vpack.c.bf16 %v13396_v25, %v13392_v45 }
 0x47f   : > { %8381 = vadd.xlane.f32.xlu0 %v13390_v48 }
 0x480   : > { %8355 = vadd.xlane.f32.xlu1 %v13394_v37  ;;  %v13398_v43 = vpop.eup %13397 }
 0x481   : > { %v8529_v30 = vpack.c.bf16 %v13398_v43, %v13394_v37 }
 0x483   : > { %v13400_v44 = vpop.eup %13399  ;;  %8361 = vadd.xlane.f32.xlu0 %v13396_v25  ;;  %12972 = vmatprep.mubr.bf16.mxu1 %v8529_v30  ;;  %v19348_v25 = vld [vmem:[#allocation56_spill] sm:$0xff] }
 0x484   : > { %8387 = vadd.xlane.f32.xlu1 %v13400_v44  ;;  %12973 = vmatmul.mubr.bf16.gmra.mxu1 %v8530_v28  ;;  %v17306_v1 = vpop.eup %13401 }
 0x487   : > { %8357 = vadd.xlane.f32.xlu0 %v13398_v43 }
 0x488   : > { %v13404_v33 = vpop.eup %13403 }
 0x489   : > { %v17308_v54 = vpop.eup %13405  ;;  %v8080_v21 = vpop.xlane.xlu1 %8079  ;;  %v8537_v11 = vpack.c.bf16 %v13404_v33, %v13400_v44 }
 0x48a   : > { %v8173_v38 = vsub.f32 %v17148_v4, %v8080_v21  ;;  %v8538_v61 = vpack.c.bf16 %v17306_v1, %v17308_v54 }
 0x48b   : > { %8389 = vadd.xlane.f32.xlu0 %v13404_v33  ;;  %13004 = vmatprep.mubr.bf16.mxu0 %v8537_v11 }
 0x48c   : > { %v8271_v34 = vmul.f32 1.442695, %v8173_v38  ;;  %13005 = vmatmul.mubr.bf16.gmra.mxu0 %v8538_v61  ;;  %v19349_v38 = vld [vmem:[#allocation57_spill] sm:$0xff] }
 0x48d   : > { %v8082_v41 = vpop.xlane.xlu0 %8081  ;;  %v8076_v50 = vpop.xlane.xlu1 %8075 }
 0x48e   : > { %13407 = vpow2.f32 %v8271_v34  ;;  %v8174_v62 = vsub.f32 %v17153_v0, %v8082_v41  ;;  %v8171_v15 = vsub.f32 %v17151_v42, %v8076_v50  ;;  %v19342_v0 = vld [vmem:[#allocation52_spill] sm:$0xff]  ;;  %v19350_v34 = vld [vmem:[#allocation54_spill] sm:$0xff] }
 0x490   : > { %v8273_v58 = vmul.f32 1.442695, %v8174_v62  ;;  %v8267_v31 = vmul.f32 1.442695, %v8171_v15 }
 0x491   : > { %v8078_v49 = vpop.xlane.xlu0 %8077 }
 0x492   : > { %13409 = vpow2.f32 %v8273_v58  ;;  %v8172_v14 = vsub.f32 %v19339_v40, %v8078_v49 }
 0x493   : > { %13411 = vpow2.f32 %v8267_v31  ;;  %v8108_v26 = vpop.xlane.xlu1 %8107 }
 0x494   : > { %v8269_v4 = vmul.f32 1.442695, %v8172_v14  ;;  %v8187_v57 = vsub.f32 %v19340_v59, %v8108_v26  ;;  %v19351_v14 = vld [vmem:[#allocation21_spill] sm:$0xff]  ;;  %v19352_v59 = vld [vmem:[#allocation59_spill] sm:$0xff] }
 0x496   : > { %13413 = vpow2.f32 %v8269_v4  ;;  %v8299_v24 = vmul.f32 1.442695, %v8187_v57 }
 0x497   : > { %v8110_v7 = vpop.xlane.xlu0 %8109  ;;  %v8112_v53 = vpop.xlane.xlu1 %8111 }
 0x498   : > { %v8188_v52 = vsub.f32 %v19341_v16, %v8110_v7  ;;  %v8189_v55 = vsub.f32 %v19342_v0, %v8112_v53  ;;  %13415 = vpow2.f32 %v8299_v24 }
 0x49a   : > { %v8301_v12 = vmul.f32 1.442695, %v8188_v52  ;;  %v8303_v19 = vmul.f32 1.442695, %v8189_v55  ;;  %v19353_v52 = vld [vmem:[#allocation26_spill] sm:$0xff] }
 0x49b   : > { %v13408_v42 = vpop.eup %13407  ;;  %v8114_v22 = vpop.xlane.xlu0 %8113  ;;  %v19354_v55 = vld [vmem:[#allocation58_spill] sm:$0xff] }
 0x49c   : > { %v8088_v47 = vpop.xlane.xlu1 %8087  ;;  %8399 = vadd.xlane.f32.xlu1 %v13408_v42  ;;  %13417 = vpow2.f32 %v8301_v12  ;;  %v8190_v13 = vsub.f32 %v19343_v9, %v8114_v22 }
 0x49d   : > { %13419 = vpow2.f32 %v8303_v19  ;;  %v8177_v35 = vsub.f32 %v19344_v20, %v8088_v47 }
 0x49e   : > { %v8305_v5 = vmul.f32 1.442695, %v8190_v13 }
 0x49f   : > { %v13410_v27 = vpop.eup %13409  ;;  %v8090_v18 = vpop.xlane.xlu0 %8089  ;;  %v8279_v6 = vmul.f32 1.442695, %v8177_v35  ;;  %v19355_v35 = vld [vmem:[#allocation61_spill] sm:$0xff] }
 0x4a0   : > { %v13412_v3 = vpop.eup %13411  ;;  %v8084_v36 = vpop.xlane.xlu1 %8083  ;;  %8401 = vadd.xlane.f32.xlu0 %v13410_v27  ;;  %13421 = vpow2.f32 %v8305_v5  ;;  %v8178_v46 = vsub.f32 %v19345_v29, %v8090_v18  ;;  %v8540_v44 = vpack.c.bf16 %v13410_v27, %v13408_v42 }
 0x4a1   : > { %v8175_v56 = vsub.f32 %v19346_v63, %v8084_v36  ;;  %8395 = vadd.xlane.f32.xlu1 %v13412_v3  ;;  %13423 = vpow2.f32 %v8279_v6  ;;  %v19356_v63 = vld [vmem:[#allocation65_spill] sm:$0xff] }
 0x4a2   : > { %v8281_v48 = vmul.f32 1.442695, %v8178_v46 }
 0x4a3   : > { %v13414_v8 = vpop.eup %13413  ;;  %v8275_v39 = vmul.f32 1.442695, %v8175_v56  ;;  %v8086_v45 = vpop.xlane.xlu0 %8085 }
 0x4a4   : > { %v8116_v23 = vpop.xlane.xlu1 %8115  ;;  %8397 = vadd.xlane.f32.xlu0 %v13414_v8  ;;  %v8539_v2 = vpack.c.bf16 %v13414_v8, %v13412_v3  ;;  %v8176_v37 = vsub.f32 %v19347_v17, %v8086_v45  ;;  %13425 = vpow2.f32 %v8281_v48 }
 0x4a5   : > { %v8191_v43 = vsub.f32 %v19348_v25, %v8116_v23  ;;  %13427 = vpow2.f32 %v8275_v39  ;;  %v13416_v11 = vpop.eup %13415 }
 0x4a6   : > { %13024 = vmatprep.mubr.bf16.mxu1 %v8539_v2  ;;  %v8277_v30 = vmul.f32 1.442695, %v8176_v37  ;;  %v19357_v2 = vld [vmem:[#allocation69_spill] sm:$0xff]  ;;  %v19358_v37 = vld [vmem:[#allocation60_spill] sm:$0xff] }
 0x4a7   : > { %13025 = vmatmul.mubr.bf16.vlgmr.msra.gmra.mxu1 %v8540_v44  ;;  %v8307_v28 = vmul.f32 1.442695, %v8191_v43  ;;  %v8118_v33 = vpop.xlane.xlu0 %8117 }
 0x4a8   : > { %v8120_v21 = vpop.xlane.xlu1 %8119  ;;  %13429 = vpow2.f32 %v8277_v30  ;;  %v8192_v61 = vsub.f32 %v19349_v38, %v8118_v33 }
 0x4a9   : > { %v8193_v41 = vsub.f32 %v19350_v34, %v8120_v21  ;;  %v13418_v50 = vpop.eup %13417  ;;  %13431 = vpow2.f32 %v8307_v28 }
 0x4aa   : > { %v13420_v62 = vpop.eup %13419  ;;  %v8309_v15 = vmul.f32 1.442695, %v8192_v61  ;;  %v8547_v31 = vpack.c.bf16 %v13418_v50, %v13416_v11 }
 0x4ab   : > { %v8311_v58 = vmul.f32 1.442695, %v8193_v41  ;;  %8431 = vadd.xlane.f32.xlu1 %v13420_v62  ;;  %v8122_v49 = vpop.xlane.xlu0 %8121 }
 0x4ac   : > { %v8096_v40 = vpop.xlane.xlu1 %8095  ;;  %13433 = vpow2.f32 %v8309_v15  ;;  %v8194_v4 = vsub.f32 %v19351_v14, %v8122_v49  ;;  %13056 = vmatprep.mubr.bf16.mxu0 %v8547_v31  ;;  %v19360_v31 = vld [vmem:[#allocation68_spill] sm:$0xff]  ;;  %v19361_v14 = vld [vmem:[#allocation27_spill] sm:$0xff] }
 0x4ad   : > { %v13422_v26 = vpop.eup %13421  ;;  %13435 = vpow2.f32 %v8311_v58  ;;  %v8181_v57 = vsub.f32 %v19352_v59, %v8096_v40 }
 0x4ae   : > { %v8313_v24 = vmul.f32 1.442695, %v8194_v4  ;;  %8433 = vadd.xlane.f32.xlu0 %v13422_v26  ;;  %v8548_v7 = vpack.c.bf16 %v13422_v26, %v13420_v62  ;;  %v13424_v19 = vpop.eup %13423 }
 0x4af   : > { %8427 = vadd.xlane.f32.xlu1 %v13416_v11  ;;  %v8098_v53 = vpop.xlane.xlu0 %8097  ;;  %v8287_v12 = vmul.f32 1.442695, %v8181_v57  ;;  %v19359_v11 = vld [vmem:[#allocation64_spill] sm:$0xff] }
 0x4b0   : > { %v8092_v16 = vpop.xlane.xlu1 %8091  ;;  %13437 = vpow2.f32 %v8313_v24  ;;  %v8182_v0 = vsub.f32 %v19353_v52, %v8098_v53  ;;  %13057 = vmatmul.mubr.bf16.vlgmr.msra.gmra.mxu0 %v8548_v7 }
 0x4b1   : > { %v8179_v42 = vsub.f32 %v19354_v55, %v8092_v16  ;;  %v13426_v47 = vpop.eup %13425  ;;  %13439 = vpow2.f32 %v8287_v12 }
 0x4b2   : > { %v8289_v22 = vmul.f32 1.442695, %v8182_v0  ;;  %8429 = vadd.xlane.f32.xlu0 %v13418_v50  ;;  %v13428_v20 = vpop.eup %13427  ;;  %v8542_v29 = vpack.c.bf16 %v13426_v47, %v13424_v19 }
 0x4b3   : > { %v8283_v9 = vmul.f32 1.442695, %v8179_v42  ;;  %8407 = vadd.xlane.f32.xlu1 %v13424_v19  ;;  %v8094_v13 = vpop.xlane.xlu0 %8093 }
 0x4b4   : > { %v8180_v27 = vsub.f32 %v19355_v35, %v8094_v13  ;;  %13441 = vpow2.f32 %v8289_v22  ;;  %v8124_v36 = vpop.xlane.xlu1 %8123 }
 0x4b5   : > { %v13430_v5 = vpop.eup %13429  ;;  %13443 = vpow2.f32 %v8283_v9  ;;  %v8195_v56 = vsub.f32 %v19356_v63, %v8124_v36 }
 0x4b6   : > { %v8285_v3 = vmul.f32 1.442695, %v8180_v27  ;;  %8409 = vadd.xlane.f32.xlu0 %v13426_v47  ;;  %v8541_v18 = vpack.c.bf16 %v13430_v5, %v13428_v20  ;;  %v13432_v46 = vpop.eup %13431  ;;  %v19362_v47 = vld [vmem:[#allocation24_spill] sm:$0xff] }
 0x4b7   : > { %8403 = vadd.xlane.f32.xlu1 %v13428_v20  ;;  %v8315_v39 = vmul.f32 1.442695, %v8195_v56 }
 0x4b8   : > { %13445 = vpow2.f32 %v8285_v3  ;;  %13028 = vmatprep.mubr.bf16.mxu1 %v8541_v18  ;;  %v8126_v45 = vpop.xlane.xlu0 %8125  ;;  %v8128_v23 = vpop.xlane.xlu1 %8127 }
 0x4b9   : > { %v13434_v6 = vpop.eup %13433  ;;  %13029 = vmatmul.mubr.bf16.gmra.mxu1 %v8542_v29  ;;  %v8196_v17 = vsub.f32 %v19357_v2, %v8126_v45  ;;  %v8197_v25 = vsub.f32 %v19358_v37, %v8128_v23  ;;  %13447 = vpow2.f32 %v8315_v39 }
 0x4ba   : > { %v13436_v8 = vpop.eup %13435  ;;  %8405 = vadd.xlane.f32.xlu0 %v13430_v5  ;;  %v8549_v48 = vpack.c.bf16 %v13434_v6, %v13432_v46  ;;  %v19363_v5 = vld [vmem:[#allocation70_spill] sm:$0xff] }
 0x4bb   : > { %8439 = vadd.xlane.f32.xlu1 %v13436_v8  ;;  %v8317_v44 = vmul.f32 1.442695, %v8196_v17  ;;  %v8319_v30 = vmul.f32 1.442695, %v8197_v25 }
 0x4bc   : > { %13060 = vmatprep.mubr.bf16.mxu0 %v8549_v48  ;;  %v8130_v33 = vpop.xlane.xlu0 %8129  ;;  %v8104_v21 = vpop.xlane.xlu1 %8103 }
 0x4bd   : > { %v13438_v43 = vpop.eup %13437  ;;  %13449 = vpow2.f32 %v8317_v44  ;;  %v8198_v38 = vsub.f32 %v19359_v11, %v8130_v33  ;;  %v8185_v4 = vsub.f32 %v19361_v14, %v8104_v21 }
 0x4be   : > { %8441 = vadd.xlane.f32.xlu0 %v13438_v43  ;;  %v8550_v28 = vpack.c.bf16 %v13438_v43, %v13436_v8  ;;  %13451 = vpow2.f32 %v8319_v30  ;;  %v13440_v61 = vpop.eup %13439 }
 0x4bf   : > { %8435 = vadd.xlane.f32.xlu1 %v13432_v46  ;;  %v8321_v34 = vmul.f32 1.442695, %v8198_v38  ;;  %v8295_v0 = vmul.f32 1.442695, %v8185_v4 }
 0x4c0   : > { %13061 = vmatmul.mubr.bf16.gmra.mxu0 %v8550_v28  ;;  %v8106_v50 = vpop.xlane.xlu0 %8105  ;;  %v8100_v62 = vpop.xlane.xlu1 %8099 }
 0x4c1   : > { %v13442_v41 = vpop.eup %13441  ;;  %13453 = vpow2.f32 %v8321_v34  ;;  %v8186_v58 = vsub.f32 %v17230_v10, %v8106_v50  ;;  %v8183_v49 = vsub.f32 %v19360_v31, %v8100_v62 }
 0x4c2   : > { %8437 = vadd.xlane.f32.xlu0 %v13434_v6  ;;  %v13444_v15 = vpop.eup %13443  ;;  %v8544_v53 = vpack.c.bf16 %v13442_v41, %v13440_v61 }
 0x4c3   : > { %8415 = vadd.xlane.f32.xlu1 %v13440_v61  ;;  %v8297_v26 = vmul.f32 1.442695, %v8186_v58  ;;  %v8291_v57 = vmul.f32 1.442695, %v8183_v49 }
 0x4c4   : > { %v8132_v7 = vpop.xlane.xlu1 %8131 }
 0x4c5   : > { %v13446_v40 = vpop.eup %13445  ;;  %v8102_v24 = vpop.xlane.xlu0 %8101  ;;  %v8199_v52 = vsub.f32 %v17232_v51, %v8132_v7  ;;  %13455 = vpow2.f32 %v8297_v26 }
 0x4c6   : > { %8417 = vadd.xlane.f32.xlu0 %v13442_v41  ;;  %v8543_v59 = vpack.c.bf16 %v13446_v40, %v13444_v15  ;;  %v8184_v16 = vsub.f32 %v17238_v60, %v8102_v24  ;;  %13457 = vpow2.f32 %v8291_v57  ;;  %v13448_v19 = vpop.eup %13447 }
 0x4c7   : > { %8411 = vadd.xlane.f32.xlu1 %v13444_v15  ;;  %v8323_v55 = vmul.f32 1.442695, %v8199_v52 }
 0x4c8   : > { %13032 = vmatprep.mubr.bf16.mxu1 %v8543_v59  ;;  %v8293_v10 = vmul.f32 1.442695, %v8184_v16  ;;  %v8136_v12 = vpop.xlane.xlu1 %8135 }
 0x4c9   : > { %13033 = vmatmul.mubr.bf16.gmra.mxu1 %v8544_v53  ;;  %v8134_v42 = vpop.xlane.xlu0 %8133  ;;  %v8201_v9 = vsub.f32 %v19362_v47, %v8136_v12 }
 0x4ca   : > { %8413 = vadd.xlane.f32.xlu0 %v13446_v40  ;;  %13459 = vpow2.f32 %v8293_v10  ;;  %v8200_v22 = vsub.f32 %v17246_v32, %v8134_v42  ;;  %v13450_v13 = vpop.eup %13449 }
 0x4cb   : > { %13461 = vpow2.f32 %v8295_v0  ;;  %v13452_v60 = vpop.eup %13451  ;;  %v8551_v20 = vpack.c.bf16 %v13450_v13, %v13448_v19  ;;  %v8327_v35 = vmul.f32 1.442695, %v8201_v9 }
 0x4cc   : > { %v8325_v51 = vmul.f32 1.442695, %v8200_v22  ;;  %13463 = vpow2.f32 %v8323_v55  ;;  %8447 = vadd.xlane.f32.xlu1 %v13452_v60 }
 0x4cd   : > { %v8138_v27 = vpop.xlane.xlu0 %8137  ;;  %13064 = vmatprep.mubr.bf16.mxu0 %v8551_v20 }
 0x4ce   : > { %13465 = vpow2.f32 %v8325_v51  ;;  %v8202_v3 = vsub.f32 %v19363_v5, %v8138_v27  ;;  %v13454_v18 = vpop.eup %13453 }
 0x4cf   : > { %8449 = vadd.xlane.f32.xlu0 %v13454_v18  ;;  %v8552_v29 = vpack.c.bf16 %v13454_v18, %v13452_v60  ;;  %13467 = vpow2.f32 %v8327_v35 }
 0x4d0   : > { %v8329_v36 = vmul.f32 1.442695, %v8202_v3  ;;  %8443 = vadd.xlane.f32.xlu1 %v13448_v19 }
 0x4d1   : > { %13065 = vmatmul.mubr.bf16.gmra.mxu0 %v8552_v29 }
 0x4d2   : > { %13469 = vpow2.f32 %v8329_v36  ;;  %v8336_v32 = vpop.xlane.xlu1 %8335  ;;  %v13456_v46 = vpop.eup %13455 }
 0x4d3   : > { %8445 = vadd.xlane.f32.xlu0 %v13450_v13  ;;  %v13458_v56 = vpop.eup %13457  ;;  %13471 = vrcp.f32 %v8336_v32 }
 0x4d4   : > { %8391 = vadd.xlane.f32.xlu1 %v17308_v54 }
 0x4d6   : > { %v8332_v39 = vpop.xlane.xlu1 %8331 }
 0x4d7   : > { %v13460_v6 = vpop.eup %13459  ;;  %8393 = vadd.xlane.f32.xlu0 %v17306_v1 }
 0x4d8   : > { %v13462_v8 = vpop.eup %13461  ;;  %v8545_v48 = vpack.c.bf16 %v13460_v6, %v13458_v56 }
 0x4d9   : > { %v8338_v63 = vpop.xlane.xlu0 %8337  ;;  %8423 = vadd.xlane.f32.xlu1 %v13462_v8  ;;  %v8546_v45 = vpack.c.bf16 %v13456_v46, %v13462_v8  ;;  %v13464_v2 = vpop.eup %13463 }
 0x4da   : > { %13036 = vmatprep.mubr.bf16.mxu1 %v8545_v48  ;;  %v17348_v43 = vpop.xlane.xlu1 %8367  ;;  %13473 = vrcp.f32 %v8338_v63 }
 0x4db   : > { %v13466_v17 = vpop.eup %13465  ;;  %13037 = vmatmul.mubr.bf16.gmra.mxu1 %v8546_v45  ;;  %8425 = vadd.xlane.f32.xlu0 %v13456_v46  ;;  %13475 = vrcp.f32 %v8332_v39 }
 0x4dc   : > { %v8553_v37 = vpack.c.bf16 %v13466_v17, %v13464_v2  ;;  %v13468_v54 = vpop.eup %13467 }
 0x4dd   : > { %8419 = vadd.xlane.f32.xlu1 %v13458_v56 }
 0x4de   : > { %v8334_v23 = vpop.xlane.xlu0 %8333  ;;  %13068 = vmatprep.mubr.bf16.mxu0 %v8553_v37  ;;  %v17352_v28 = vpop.xlane.xlu1 %8363 }
 0x4df   : > { %v13470_v44 = vpop.eup %13469  ;;  %8421 = vadd.xlane.f32.xlu0 %v13460_v6  ;;  %13477 = vrcp.f32 %v8334_v23 }
 0x4e0   : > { %v8554_v1 = vpack.c.bf16 %v13470_v44, %v13468_v54  ;;  %v13472_v57 = vpop.eup %13471 }
 0x4e1   : > { %8451 = vadd.xlane.f32.xlu1 %v13464_v2 }
 0x4e2   : > { %v17346_v25 = vpop.xlane.xlu0 %8369  ;;  %13069 = vmatmul.mubr.bf16.gmra.mxu0 %v8554_v1 }
 0x4e3   : > { %8453 = vadd.xlane.f32.xlu0 %v13466_v17 }
 0x4e5   : > { %8455 = vadd.xlane.f32.xlu1 %v13468_v54  ;;  %v8344_v33 = vpop.xlane.xlu1 %8343 }
 0x4e7   : > { %v17350_v30 = vpop.xlane.xlu0 %8365  ;;  %8457 = vadd.xlane.f32.xlu0 %v13470_v44  ;;  %v13474_v24 = vpop.eup %13473 }
 0x4e8   : > { %v13476_v53 = vpop.eup %13475 }
 0x4e9   : > { %v8340_v11 = vpop.xlane.xlu1 %8339 }
 0x4ea   : > { %13479 = vrcp.f32 %v8340_v11 }
 0x4eb   : > { %v8346_v21 = vpop.xlane.xlu0 %8345  ;;  %13481 = vrcp.f32 %v8344_v33 }
 0x4ec   : > { %v13478_v10 = vpop.eup %13477  ;;  %13483 = vrcp.f32 %v8346_v21 }
 0x4ed   : > { %v8376_v61 = vpop.xlane.xlu1 %8375 }
 0x4f0   : > { %v8342_v38 = vpop.xlane.xlu0 %8341 }
 0x4f1   : > { %v8372_v41 = vpop.xlane.xlu1 %8371  ;;  %13485 = vrcp.f32 %v8342_v38 }
 0x4f2   : > { %13487 = vrcp.f32 %v8372_v41 }
 0x4f3   : > { %13489 = vrcp.f32 %v8376_v61 }
 0x4f4   : > { %v8378_v34 = vpop.xlane.xlu0 %8377 }
 0x4f5   : > { %v8352_v62 = vpop.xlane.xlu1 %8351  ;;  %13491 = vrcp.f32 %v8378_v34 }
 0x4f7   : > { %v13480_v27 = vpop.eup %13479 }
 0x4f8   : > { %v8374_v50 = vpop.xlane.xlu0 %8373  ;;  %v13482_v18 = vpop.eup %13481 }
 0x4f9   : > { %v8348_v58 = vpop.xlane.xlu1 %8347  ;;  %13493 = vrcp.f32 %v8374_v50  ;;  %v13484_v32 = vpop.eup %13483 }
 0x4fa   : > { %13495 = vrcp.f32 %v8352_v62 }
 0x4fb   : > { %13497 = vrcp.f32 %v8348_v58 }
 0x4fc   : > { %v8354_v15 = vpop.xlane.xlu0 %8353 }
 0x4fd   : > { %v8384_v49 = vpop.xlane.xlu1 %8383  ;;  %13499 = vrcp.f32 %v8354_v15 }
 0x4fe   : > { %v13486_v8 = vpop.eup %13485 }
 0x4ff   : > { %v13488_v17 = vpop.eup %13487 }
 0x500   : > { %v8350_v31 = vpop.xlane.xlu0 %8349  ;;  %v13490_v1 = vpop.eup %13489 }
 0x501   : > { %v8380_v14 = vpop.xlane.xlu1 %8379  ;;  %13501 = vrcp.f32 %v8350_v31 }
 0x502   : > { %13503 = vrcp.f32 %v8384_v49  ;;  %v13492_v21 = vpop.eup %13491 }
 0x503   : > { %13505 = vrcp.f32 %v8380_v14 }
 0x504   : > { %v17354_v40 = vpop.xlane.xlu0 %8385 }
 0x505   : > { %v17358_v16 = vpop.xlane.xlu1 %8359  ;;  %13507 = vrcp.f32 %v17354_v40 }
 0x506   : > { %v13494_v41 = vpop.eup %13493 }
 0x507   : > { %v13496_v58 = vpop.eup %13495 }
 0x508   : > { %v17356_v4 = vpop.xlane.xlu0 %8381 }
 0x509   : > { %v17368_v13 = vpop.xlane.xlu1 %8355  ;;  %13509 = vrcp.f32 %v17356_v4 }
 0x50a   : > { %13511 = vrcp.f32 %v17358_v16 }
 0x50b   : > { %13513 = vrcp.f32 %v17368_v13 }
 0x50c   : > { %v17360_v55 = vpop.xlane.xlu0 %8361 }
 0x50d   : > { %v17376_v5 = vpop.xlane.xlu1 %8387  ;;  %13515 = vrcp.f32 %v17360_v55 }
 0x510   : > { %v17370_v60 = vpop.xlane.xlu0 %8357 }
 0x511   : > { %13517 = vrcp.f32 %v17370_v60 }
 0x512   : > { %13519 = vrcp.f32 %v17376_v5 }
 0x514   : > { %v17378_v36 = vpop.xlane.xlu0 %8389 }
 0x515   : > { %13521 = vrcp.f32 %v17378_v36 }
 0x516   : > { %13523 = vrcp.f32 %v17346_v25 }
 0x517   : > { %13525 = vrcp.f32 %v17348_v43 }
 0x518   : > { %v12962_v26 = vpop.f32.mrf.mxu1  ;;  %13527 = vrcp.f32 %v17350_v30 }
 0x519   : > { %v8945_v52 = vmul.f32 %v13472_v57, %v12962_v26 }
 0x51a   : > { %v8589_v59 = vpop.f32.mrf.mxu1 }
 0x51b   : > { %v8943_v12 = vmul.f32 %v13476_v53, %v8589_v59  ;;  %v17364_v47 = vpop.f32.mrf.mxu0 }
 0x51c   : > { %v12963_v7 = vpop.f32.mrf.mxu1 }
 0x51d   : > { %v8946_v0 = vmul.f32 %v13474_v24, %v12963_v7  ;;  %v17372_v51 = vpop.f32.mrf.mxu0 }
 0x51e   : > { %v8592_v42 = vpop.f32.mrf.mxu1 }
 0x51f   : > { %v17362_v19 = vpack.c.bf16 %v8946_v0, %v8945_v52  ;;  %v8944_v22 = vmul.f32 %v13478_v10, %v8592_v42  ;;  %v17374_v35 = vpop.f32.mrf.mxu0  ;;  %v13498_v52 = vpop.eup %13497  ;;  %13529 = vrcp.f32 %v17352_v28 }
 0x521   : > { %v17366_v9 = vpack.c.bf16 %v8944_v22, %v8943_v12  ;;  %v17380_v63 = vpop.f32.mrf.mxu0 }
 0x525   : > { %v17382_v48 = vpop.xlane.xlu1 %8399 }
 0x527   : > { %v12966_v20 = vpop.f32.mrf.mxu1 }
 0x528   : > { %v8949_v56 = vmul.f32 %v13482_v18, %v12966_v20  ;;  %v13500_v20 = vpop.eup %13499  ;;  %13531 = vrcp.f32 %v17382_v48  ;;  %v9059_v48 = vshrl.u32 %v17362_v19, 16 }
 0x529   : > { %v8605_v3 = vpop.f32.mrf.mxu1  ;;  %v17384_v37 = vpop.xlane.xlu0 %8401 }
 0x52a   : > { %v8947_v29 = vmul.f32 %v13480_v27, %v8605_v3  ;;  %v17386_v38 = vpop.xlane.xlu1 %8395  ;;  %v13502_v3 = vpop.eup %13501  ;;  %13533 = vrcp.f32 %v17384_v37 }
 0x52b   : > { %v12967_v46 = vpop.f32.mrf.mxu1 }
 0x52c   : > { %v8950_v6 = vmul.f32 %v13484_v32, %v12967_v46 }
 0x52d   : > { %v8608_v39 = vpop.f32.mrf.mxu1  ;;  %v12998_v2 = vpop.f32.mrf.mxu0 }
 0x52e   : > { %v9010_v45 = vpack.c.bf16 %v8950_v6, %v8949_v56  ;;  %v8948_v23 = vmul.f32 %v13486_v8, %v8608_v39  ;;  %v8965_v61 = vmul.f32 %v13490_v1, %v12998_v2  ;;  %v17390_v31 = vpop.xlane.xlu0 %8397  ;;  %v13504_v56 = vpop.eup %13503  ;;  %13535 = vrcp.f32 %v17386_v38 }
 0x52f   : > { %v8702_v44 = vpop.f32.mrf.mxu0  ;;  %v13506_v2 = vpop.eup %13505  ;;  %13537 = vrcp.f32 %v17390_v31  ;;  %v9043_v38 = vshrl.u32 %v17366_v9, 16 }
 0x530   : > { %v9009_v54 = vpack.c.bf16 %v8948_v23, %v8947_v29  ;;  %v8963_v33 = vmul.f32 %v13488_v17, %v8702_v44  ;;  %v9091_v49 = vshrl.u32 %v9010_v45, 16 }
 0x531   : > { %v12999_v11 = vpop.f32.mrf.mxu0 }
 0x532   : > { %v8966_v34 = vmul.f32 %v13492_v21, %v12999_v11  ;;  %v9075_v10 = vshrl.u32 %v9009_v54, 16 }
 0x533   : > { %v8705_v50 = vpop.f32.mrf.mxu0 }
 0x534   : > { %v9018_v62 = vpack.c.bf16 %v8966_v34, %v8965_v61  ;;  %v8964_v15 = vmul.f32 %v13494_v41, %v8705_v50  ;;  %v17392_v59 = vpop.xlane.xlu1 %8431 }
 0x536   : > { %v12970_v26 = vpop.f32.mrf.mxu1  ;;  %v17394_v14 = vpack.i.b16 %v9018_v62, %v9010_v45  ;;  %v9092_v57 = vshrl.u32 %v9018_v62, 16  ;;  %v9017_v24 = vpack.c.bf16 %v8964_v15, %v8963_v33 }
 0x537   : > { %v8953_v7 = vmul.f32 %v13496_v58, %v12970_v26  ;;  %v17401_v4 = vpop.xlane.xlu0 %8433 }
 0x538   : > { %v8621_v53 = vpop.f32.mrf.mxu1  ;;  %v17396_v0 = vpack.i.b16 %v9092_v57, %v9091_v49  ;;  %v17398_v40 = vpack.i.b16 %v9017_v24, %v9009_v54  ;;  %v9076_v42 = vshrl.u32 %v9017_v24, 16  ;;  %v17403_v27 = vpop.xlane.xlu1 %8427 }
 0x539   : > { %v8951_v12 = vmul.f32 %v13498_v52, %v8621_v53  ;;  %v13508_v54 = vpop.eup %13507  ;;  %13539 = vrcp.f32 %v17392_v59 }
 0x53a   : > { %v12971_v22 = vpop.f32.mrf.mxu1  ;;  %v17406_v18 = vpack.i.b16 %v9076_v42, %v9075_v10  ;;  %v13510_v33 = vpop.eup %13509  ;;  %13541 = vrcp.f32 %v17401_v4 }
 0x53b   : > { %v8954_v32 = vmul.f32 %v13500_v20, %v12971_v22  ;;  %v17409_v16 = vpop.xlane.xlu0 %8429  ;;  %v13512_v50 = vpop.eup %13511  ;;  %13543 = vrcp.f32 %v17403_v27  ;;  %v19364_v27 = vld [vmem:[#allocation30_spill] sm:$0xff] }
 0x53c   : > { %v8624_v29 = vpop.f32.mrf.mxu1  ;;  %v13002_v6 = vpop.f32.mrf.mxu0 }
 0x53d   : > { %v8952_v46 = vmul.f32 %v13502_v3, %v8624_v29  ;;  %v17412_v8 = vpop.xlane.xlu1 %8407  ;;  %v9012_v39 = vpack.c.bf16 %v8954_v32, %v8953_v7  ;;  %v8969_v23 = vmul.f32 %v13504_v56, %v13002_v6  ;;  %v13514_v24 = vpop.eup %13513  ;;  %13545 = vrcp.f32 %v17409_v16 }
 0x53e   : > { %v8718_v13 = vpop.f32.mrf.mxu0  ;;  %v13516_v22 = vpop.eup %13515  ;;  %13547 = vrcp.f32 %v17412_v8 }
 0x53f   : > { %v9011_v45 = vpack.c.bf16 %v8952_v46, %v8951_v12  ;;  %v8967_v17 = vmul.f32 %v13506_v2, %v8718_v13  ;;  %v17414_v44 = vpop.xlane.xlu0 %8409  ;;  %v9123_v15 = vshrl.u32 %v9012_v39, 16  ;;  %v13518_v25 = vpop.eup %13517 }
 0x540   : > { %v13003_v1 = vpop.f32.mrf.mxu0  ;;  %13549 = vrcp.f32 %v17414_v44 }
 0x541   : > { %v17417_v55 = vpop.xlane.xlu1 %8403  ;;  %v8970_v21 = vmul.f32 %v13508_v54, %v13003_v1  ;;  %v9107_v52 = vshrl.u32 %v9011_v45, 16 }
 0x542   : > { %v8721_v11 = vpop.f32.mrf.mxu0 }
 0x543   : > { %v9020_v60 = vpack.c.bf16 %v8970_v21, %v8969_v23  ;;  %v8968_v61 = vmul.f32 %v13510_v33, %v8721_v11  ;;  %v17420_v34 = vpop.xlane.xlu0 %8405 }
 0x544   : > { %v12974_v41 = vpop.f32.mrf.mxu1 }
 0x545   : > { %v17422_v62 = vpop.xlane.xlu1 %8439  ;;  %v17424_v58 = vpack.i.b16 %v9020_v60, %v9012_v39  ;;  %v9124_v49 = vshrl.u32 %v9020_v60, 16  ;;  %v9019_v26 = vpack.c.bf16 %v8968_v61, %v8967_v17  ;;  %v8957_v5 = vmul.f32 %v13512_v50, %v12974_v41 }
 0x546   : > { %v8637_v57 = vpop.f32.mrf.mxu1 }
 0x547   : > { %v17428_v7 = vpack.i.b16 %v9124_v49, %v9123_v15  ;;  %v17430_v36 = vpack.i.b16 %v9019_v26, %v9011_v45  ;;  %v17433_v53 = vpop.xlane.xlu0 %8441  ;;  %v9108_v10 = vshrl.u32 %v9019_v26, 16  ;;  %v8955_v42 = vmul.f32 %v13514_v24, %v8637_v57  ;;  %v13520_v45 = vpop.eup %13519 }
 0x548   : > { %v12975_v12 = vpop.f32.mrf.mxu1  ;;  %v13522_v17 = vpop.eup %13521  ;;  %13551 = vrcp.f32 %v17417_v55 }
 0x549   : > { %v17435_v20 = vpop.xlane.xlu1 %8435  ;;  %v17438_v3 = vpack.i.b16 %v9108_v10, %v9107_v52  ;;  %v8958_v29 = vmul.f32 %v13516_v22, %v12975_v12  ;;  %v13524_v1 = vpop.eup %13523 }
 0x54a   : > { %v8640_v43 = vpop.f32.mrf.mxu1  ;;  %v13526_v11 = vpop.eup %13525  ;;  %v8962_v60 = vmul.f32 %v13524_v1, %v17374_v35 }
 0x54b   : > { %v8956_v32 = vmul.f32 %v13518_v25, %v8640_v43  ;;  %v17440_v46 = vpop.xlane.xlu0 %8437  ;;  %v17446_v6 = vpack.c.bf16 %v8958_v29, %v8957_v5  ;;  %v13528_v61 = vpop.eup %13527  ;;  %v8961_v50 = vmul.f32 %v13526_v11, %v17364_v47  ;;  %v9629_v11 = vcombine.high %v17396_v0, %v19364_v27 }
 0x54c   : > { %v17442_v30 = vpop.f32.mrf.mxu0  ;;  %v8960_v15 = vmul.f32 %v13528_v61, %v17380_v63  ;;  %v13530_v26 = vpop.eup %13529 }
 0x54d   : > { %v17444_v56 = vpop.xlane.xlu1 %8415  ;;  %v9013_v39 = vpack.c.bf16 %v8956_v32, %v8955_v42  ;;  %v8959_v52 = vmul.f32 %v13530_v26, %v17372_v51  ;;  %v9016_v10 = vpack.c.bf16 %v8962_v60, %v8961_v50  ;;  %v17490_v32 = vpop.eup %13531  ;;  %v9431_v50 = vcombine.high %v17398_v40, %v19364_v27 }
 0x54e   : > { %v8734_v23 = vpop.f32.mrf.mxu0  ;;  %v13534_v44 = vpop.eup %13533 }
 0x54f   : > { %v8971_v2 = vmul.f32 %v13520_v45, %v8734_v23  ;;  %v17448_v13 = vpop.xlane.xlu0 %8417  ;;  %v9139_v5 = vshrl.u32 %v9013_v39, 16  ;;  %v9015_v47 = vpack.c.bf16 %v8960_v15, %v8959_v52  ;;  %v9060_v63 = vshrl.u32 %v9016_v10, 16  ;;  %v17500_v23 = vpop.eup %13535 }
 0x550   : > { %v17450_v28 = vpop.f32.mrf.mxu0  ;;  %v9057_v22 = vpack.i.b16 %v9016_v10, %v17362_v19  ;;  %v13538_v1 = vpop.eup %13537 }
 0x551   : > { %v17452_v33 = vpop.xlane.xlu1 %8411  ;;  %v9044_v37 = vshrl.u32 %v9015_v47, 16  ;;  %v9061_v31 = vpack.i.b16 %v9060_v63, %v9059_v48  ;;  %v9041_v4 = vpack.i.b16 %v9015_v47, %v17366_v9  ;;  %v17522_v61 = vpop.eup %13539 }
 0x552   : > { %v8737_v54 = vpop.f32.mrf.mxu0  ;;  %v9299_v29 = vcombine.high %v9057_v22, %v19364_v27  ;;  %v17533_v26 = vpop.eup %13541 }
 0x553   : > { %v8972_v21 = vmul.f32 %v13522_v17, %v8737_v54  ;;  %v17457_v49 = vpop.xlane.xlu0 %8413  ;;  %v9045_v43 = vpack.i.b16 %v9044_v37, %v9043_v38  ;;  %v9365_v19 = vcombine.high %v9061_v31, %v19364_v27  ;;  %v9167_v8 = vcombine.high %v9041_v4, %v19364_v27  ;;  %v17545_v10 = vpop.eup %13543 }
 0x554   : > { %v9563_v17 = vcombine.high %v17394_v14, %v19364_v27  ;;  %v17557_v48 = vpop.eup %13545 }
 0x555   : > { %v9021_v41 = vpack.c.bf16 %v8972_v21, %v8971_v2  ;;  %v17464_v35 = vpop.xlane.xlu1 %8447  ;;  %v9233_v55 = vcombine.high %v9045_v43, %v19364_v27 }
 0x557   : > { %v17459_v57 = vpack.i.b16 %v9021_v41, %v9013_v39  ;;  %v9140_v24 = vshrl.u32 %v9021_v41, 16  ;;  %v19365_v39 = vld [vmem:[#allocation31_spill] sm:$0xff] }
 0x558   : > { %v17471_v12 = vpop.xlane.xlu0 %8449  ;;  %v17496_v45 = vrot.slane %v9057_v22, %v19365_v39  ;;  %v17506_v2 = vrot.slane %v9061_v31, %v19365_v39  ;;  %v17512_v21 = vrot.slane %v9365_v19, %v19365_v39  ;;  %v17525_v41 = vrot.slane %v9167_v8, %v19365_v39 }
 0x559   : > { %v17466_v42 = vpack.i.b16 %v9140_v24, %v9139_v5  ;;  %v17474_v51 = vpop.xlane.xlu1 %8443  ;;  %v17540_v5 = vrot.slane %v17394_v14, %v19365_v39  ;;  %v9497_v24 = vcombine.high %v17406_v18, %v19364_v27  ;;  %v17552_v47 = vrot.slane %v17396_v0, %v19365_v39 }
 0x55a   : > { %v9827_v14 = vcombine.high %v17424_v58, %v19364_v27  ;;  %v17564_v37 = vrot.slane %v17398_v40, %v19365_v39  ;;  %v9893_v0 = vcombine.high %v17428_v7, %v19364_v27  ;;  %v17572_v38 = vrot.slane %v9431_v50, %v19365_v39 }
 0x55b   : > { %v17576_v31 = vrot.slane %v17406_v18, %v19365_v39  ;;  %v9695_v40 = vcombine.high %v17430_v36, %v19364_v27  ;;  %v9761_v18 = vcombine.high %v17438_v3, %v19364_v27  ;;  %v17600_v19 = vrot.slane %v17428_v7, %v19365_v39 }
 0x55c   : > { %v17482_v59 = vpop.xlane.xlu0 %8445  ;;  %v17609_v8 = vrot.slane %v17430_v36, %v19365_v39  ;;  %v17622_v36 = vrot.slane %v17438_v3, %v19365_v39 }
 0x55d   : > { %v8392_v25 = vpop.xlane.xlu1 %8391  ;;  %v17616_v7 = vrot.slane %v9695_v40, %v19365_v39 }
 0x55e   : > { %13553 = vrcp.f32 %v8392_v25  ;;  %v17589_v25 = vrot.slane %v17424_v58, %v19365_v39  ;;  %v17604_v58 = vrot.slane %v9893_v0, %v19365_v39  ;;  %19367 = vst [vmem:[#allocation29_spill] sm:$0xff] %v17609_v8  ;;  %19369 = vst [vmem:[#allocation34_spill] sm:$0xff] %v17622_v36 }
 0x55f   : > { %13555 = vrcp.f32 %v17420_v34  ;;  %v17503_v34 = vrot.slane %v9299_v29, %v19365_v39  ;;  %19368 = vst [vmem:[#allocation20_spill] sm:$0xff] %v17616_v7 }
 0x560   : > { %v8394_v16 = vpop.xlane.xlu0 %8393  ;;  %19366 = vst [vmem:[#allocation28_spill] sm:$0xff] %v17604_v58 }
 0x561   : > { %13557 = vrcp.f32 %v8394_v16 }
 0x562   : > { %v17493_v9 = vpop.xlane.xlu1 %8423  ;;  %13559 = vrcp.f32 %v17422_v62  ;;  %v17515_v62 = vrot.slane %v9041_v4, %v19365_v39 }
 0x563   : > { %13561 = vrcp.f32 %v17433_v53  ;;  %v17528_v53 = vrot.slane %v9045_v43, %v19365_v39 }
 0x564   : > { %13563 = vrcp.f32 %v17435_v20  ;;  %v17520_v60 = vpop.xlane.xlu0 %8425  ;;  %v17536_v20 = vrot.slane %v9233_v55, %v19365_v39 }
 0x565   : > { %13565 = vrcp.f32 %v17440_v46  ;;  %v17548_v46 = vrot.slane %v9563_v17, %v19365_v39  ;;  %v9959_v17 = vcombine.high %v17459_v57, %v19364_v27 }
 0x566   : > { %13567 = vrcp.f32 %v17444_v56  ;;  %v8420_v52 = vpop.xlane.xlu1 %8419  ;;  %v17560_v56 = vrot.slane %v9629_v11, %v19365_v39 }
 0x567   : > { %v13026_v54 = vpop.f32.mrf.mxu1  ;;  %13569 = vrcp.f32 %v17448_v13  ;;  %v17569_v13 = vpop.eup %13547 }
 0x568   : > { %13571 = vrcp.f32 %v17452_v33  ;;  %v8422_v22 = vpop.xlane.xlu0 %8421  ;;  %v17581_v4 = vpop.eup %13549  ;;  %v17584_v33 = vrot.slane %v9497_v24, %v19365_v39 }
 0x569   : > { %v8783_v15 = vpop.f32.mrf.mxu1  ;;  %13573 = vrcp.f32 %v17457_v49  ;;  %v17593_v29 = vpop.eup %13551  ;;  %v17596_v49 = vrot.slane %v9827_v14, %v19365_v39  ;;  %v17625_v14 = vrot.slane %v9761_v18, %v19365_v39  ;;  %v9155_v18 = vshrl.u32 %v17446_v6, 16 }
 0x56a   : > { %13575 = vrcp.f32 %v17464_v35  ;;  %v8452_v55 = vpop.xlane.xlu1 %8451 }
 0x56b   : > { %v13027_v63 = vpop.f32.mrf.mxu1  ;;  %13577 = vrcp.f32 %v17471_v12  ;;  %v13554_v16 = vpop.eup %13553  ;;  %v8977_v12 = vmul.f32 %v17490_v32, %v13026_v54  ;;  %19370 = vst [vmem:[#allocation35_spill] sm:$0xff] %v17625_v14  ;;  %v8975_v54 = vmul.f32 %v17500_v23, %v8783_v15  ;;  %v17650_v23 = vrot.slane %v17466_v42, %v19365_v39  ;;  %v13295_v14 = vld [vmem:[#allocation10 + $0x38] sm:$0xff]  }
 0x56c   : > { %v8978_v35 = vmul.f32 %v13534_v44, %v13027_v63  ;;  %13579 = vrcp.f32 %v17474_v51  ;;  %v17613_v11 = vpop.eup %13555  ;;  %v8454_v44 = vpop.xlane.xlu0 %8453  ;;  %v10025_v63 = vcombine.high %v17466_v42, %v19364_v27  ;;  %13072 = vmatprep.subr.bf16.mxu1 %v13295_v14 }
 0x56d   : > { %v8786_v43 = vpop.f32.mrf.mxu1  ;;  %13581 = vrcp.f32 %v17482_v59  ;;  %v8973_v59 = vmul.f32 %v13554_v16, %v17442_v30  ;;  %19373 = vst [vmem:[#allocation71_spill] sm:$0xff] %v17650_v23  ;;  %13073 = vmatpush3.bf16.msra.mxu1 %v13295_v14 }
 0x56e   : > { %v8976_v50 = vmul.f32 %v13538_v1, %v8786_v43  ;;  %v13558_v24 = vpop.eup %13557  ;;  %13583 = vrcp.f32 %v17493_v9  ;;  %v9024_v1 = vpack.c.bf16 %v8978_v35, %v8977_v12  ;;  %v17641_v9 = vrot.slane %v17459_v57, %v19365_v39  ;;  %v8456_v57 = vpop.xlane.xlu1 %8455 }
 0x56f   : > { %v17630_v0 = vpop.eup %13559  ;;  %v8974_v32 = vmul.f32 %v13558_v24, %v17450_v28  ;;  %13585 = vrcp.f32 %v17520_v60  ;;  %v17644_v43 = vrot.slane %v9959_v17, %v19365_v39  ;;  %v17655_v60 = vrot.slane %v10025_v63, %v19365_v39 }
 0x570   : > { %v13058_v51 = vpop.f32.mrf.mxu0  ;;  %v17635_v3 = vpop.eup %13561  ;;  %19371 = vst [vmem:[#allocation36_spill] sm:$0xff] %v17641_v9  ;;  %13587 = vrcp.f32 %v8420_v52  ;;  %v9023_v15 = vpack.c.bf16 %v8976_v50, %v8975_v54  ;;  %v9067_v42 = vshrl.u32 %v9024_v1, 16 }
 0x571   : > { %19372 = vst [vmem:[#allocation32_spill] sm:$0xff] %v17644_v43  ;;  %v17646_v30 = vpop.eup %13563  ;;  %v9022_v28 = vpack.c.bf16 %v8974_v32, %v8973_v59  ;;  %13589 = vrcp.f32 %v8422_v22  ;;  %19374 = vst [vmem:[#allocation72_spill] sm:$0xff] %v17655_v60  ;;  %v8993_v17 = vmul.f32 %v17522_v61, %v13058_v51  ;;  %v8458_v50 = vpop.xlane.xlu0 %8457 }
 0x572   : > { %v8880_v40 = vpop.f32.mrf.mxu0  ;;  %v17652_v16 = vpop.eup %13565  ;;  %13591 = vrcp.f32 %v8452_v55 }
 0x573   : > { %v17659_v24 = vpop.eup %13567  ;;  %v9153_v52 = vpack.i.b16 %v9022_v28, %v17446_v6  ;;  %v9156_v59 = vshrl.u32 %v9022_v28, 16  ;;  %13593 = vrcp.f32 %v8454_v44  ;;  %v8991_v22 = vmul.f32 %v17545_v10, %v8880_v40 }
 0x574   : > { %v13059_v35 = vpop.f32.mrf.mxu0  ;;  %v17662_v54 = vpop.eup %13569  ;;  %13595 = vrcp.f32 %v8456_v57  ;;  %v9051_v6 = vshrl.u32 %v9023_v15, 16 }
 0x575   : > { %v8994_v12 = vmul.f32 %v17533_v26, %v13059_v35  ;;  %v17666_v61 = vpop.eup %13571  ;;  %v9157_v26 = vpack.i.b16 %v9156_v59, %v9155_v18  ;;  %v10091_v51 = vcombine.high %v9153_v52, %v19364_v27  ;;  %13597 = vrcp.f32 %v8458_v50 }
 0x576   : > { %v8883_v32 = vpop.f32.mrf.mxu0  ;;  %v17669_v28 = vpop.eup %13573  ;;  %v17674_v10 = vrot.slane %v9153_v52, %v19365_v39 }
 0x577   : > { %v9032_v63 = vpack.c.bf16 %v8994_v12, %v8993_v17  ;;  %v8992_v60 = vmul.f32 %v17557_v48, %v8883_v32  ;;  %v17671_v44 = vpop.eup %13575  ;;  %v17677_v48 = vrot.slane %v10091_v51, %v19365_v39  ;;  %v10157_v40 = vcombine.high %v9157_v26, %v19364_v27 }
 0x578   : > { %19375 = vst [vmem:[#allocation73_spill] sm:$0xff] %v17674_v10  ;;  %v17681_v18 = vrot.slane %v9157_v26, %v19365_v39  ;;  %v17683_v57 = vpop.eup %13577 }
 0x579   : > { %v9065_v55 = vpack.i.b16 %v9032_v63, %v9024_v1  ;;  %v9068_v35 = vshrl.u32 %v9032_v63, 16  ;;  %v9031_v23 = vpack.c.bf16 %v8992_v60, %v8991_v22  ;;  %v13030_v43 = vpop.f32.mrf.mxu1  ;;  %19376 = vst [vmem:[#allocation50_spill] sm:$0xff] %v17677_v48  ;;  %v17687_v50 = vpop.eup %13579  ;;  %v17690_v52 = vrot.slane %v10157_v40, %v19365_v39 }
 0x57a   : > { %19377 = vst [vmem:[#allocation74_spill] sm:$0xff] %v17681_v18  ;;  %v17693_v22 = vmul.f32 %v17569_v13, %v13030_v43  ;;  %v17698_v26 = vpop.eup %13581  ;;  %v19380_v43 = vld [vmem:[#allocation33_spill] sm:$0xff] }
 0x57b   : > { %v9069_v17 = vpack.i.b16 %v9068_v35, %v9067_v42  ;;  %v9314_v1 = vcombine.high %v9065_v55, %v19364_v27  ;;  %v9321_v60 = vrot.slane %v9065_v55, %v19365_v39  ;;  %v9049_v12 = vpack.i.b16 %v9031_v23, %v9023_v15  ;;  %v8799_v59 = vpop.f32.mrf.mxu1  ;;  %19378 = vst [vmem:[#allocation25_spill] sm:$0xff] %v17690_v52  ;;  %v17704_v35 = vpop.eup %13583 }
 0x57c   : > { %v9052_v32 = vshrl.u32 %v9031_v23, 16  ;;  %v17696_v63 = vmul.f32 %v17593_v29, %v8799_v59  ;;  %19379 = vst [vmem:[#allocation38_spill] sm:$0xff] %v17704_v35 }
 0x57d   : > { %v9328_v42 = vrot.slane %v9314_v1, %v19365_v39  ;;  %v9329_v51 = vcombine.low %v17496_v45, %v9321_v60  ;;  %v9330_v15 = vcombine.high %v17496_v45, %v9321_v60  ;;  %v9380_v55 = vcombine.high %v9069_v17, %v19364_v27  ;;  %v17713_v45 = vpop.eup %13585 }
 0x57e   : > { %v9387_v23 = vrot.slane %v9069_v17, %v19365_v39  ;;  %v9053_v40 = vpack.i.b16 %v9052_v32, %v9051_v6  ;;  %v9182_v13 = vcombine.high %v9049_v12, %v19364_v27  ;;  %v9189_v29 = vrot.slane %v9049_v12, %v19365_v39  ;;  %19381 = vst [vmem:[#allocation37_spill] sm:$0xff] %v17713_v45  ;;  %v17721_v12 = vpop.eup %13587 }
 0x57f   : > { %v9337_v59 = vrot.slane %v9329_v51, %v19380_v43  ;;  %v9344_v52 = vrot.slane %v9330_v15, %v19380_v43  ;;  %v9345_v1 = vcombine.low %v17503_v34, %v9328_v42  ;;  %v9346_v18 = vcombine.high %v17503_v34, %v9328_v42  ;;  %19382 = vst [vmem:[#allocation40_spill] sm:$0xff] %v17721_v12  ;;  %v17729_v9 = vpop.eup %13589 }
 0x580   : > { %v9394_v60 = vrot.slane %v9380_v55, %v19365_v39  ;;  %v9395_v48 = vcombine.low %v17506_v2, %v9387_v23  ;;  %v9396_v6 = vcombine.high %v17506_v2, %v9387_v23  ;;  %v9196_v17 = vrot.slane %v9182_v13, %v19365_v39  ;;  %v17719_v32 = vpop.f32.mrf.mxu0  ;;  %19383 = vst [vmem:[#allocation39_spill] sm:$0xff] %v17729_v9  ;;  %v17739_v10 = vpop.eup %13591 }
 0x581   : > { %v17724_v51 = vrot.slane %v9345_v1, %v19380_v43  ;;  %v17727_v15 = vrot.slane %v9346_v18, %v19380_v43  ;;  %v10323_v34 = vcombine.low %v9337_v59, %v9344_v52  ;;  %v12388_v42 = vcombine.high %v9337_v59, %v9344_v52  ;;  %19384 = vst [vmem:[#allocation42_spill] sm:$0xff] %v17739_v10  ;;  %v13031_v59 = vpop.f32.mrf.mxu1  ;;  %v17751_v9 = vpop.eup %13593 }
 0x582   : > { %v17732_v55 = vrot.slane %v9395_v48, %v19380_v43  ;;  %v17735_v2 = vrot.slane %v9396_v6, %v19380_v43  ;;  %v9411_v23 = vcombine.low %v17512_v21, %v9394_v60  ;;  %v9412_v13 = vcombine.high %v17512_v21, %v9394_v60  ;;  %v8896_v6 = vpop.f32.mrf.mxu0  ;;  %19385 = vst [vmem:[#allocation44_spill] sm:$0xff] %v17751_v9  ;;  %v17763_v52 = vpop.eup %13595 }
 0x583   : > { %v17742_v1 = vrot.slane %v10323_v34, %v19365_v39  ;;  %v17745_v18 = vrot.slane %v12388_v42, %v19365_v39  ;;  %19386 = vst [vmem:[#allocation41_spill] sm:$0xff] %v17763_v52  ;;  %v9197_v48 = vcombine.low %v17515_v62, %v9189_v29  ;;  %v9198_v10 = vcombine.high %v17515_v62, %v9189_v29  ;;  %v17769_v45 = vpop.eup %13597 }
 0x584   : > { %v17754_v21 = vrot.slane %v9411_v23, %v19380_v43  ;;  %v17757_v60 = vrot.slane %v9412_v13, %v19380_v43  ;;  %v9213_v9 = vcombine.low %v17525_v41, %v9196_v17  ;;  %v9214_v23 = vcombine.high %v17525_v41, %v9196_v17  ;;  %19387 = vst [vmem:[#allocation43_spill] sm:$0xff] %v17769_v45  ;;  %v8802_v17 = vpop.f32.mrf.mxu1  ;;  %v13063_v45 = vpop.f32.mrf.mxu0 }
 0x585   : > { %v9248_v42 = vcombine.high %v9053_v40, %v19364_v27  ;;  %v9255_v52 = vrot.slane %v9053_v40, %v19365_v39  ;;  %v9205_v12 = vrot.slane %v9197_v48, %v19380_v43  ;;  %v9212_v62 = vrot.slane %v9198_v10, %v19380_v43  ;;  %v13296_v48 = vld [vmem:[#allocation10 + $0x30] sm:$0xff]  }
 0x586   : > { %v17780_v29 = vrot.slane %v9213_v9, %v19380_v43  ;;  %v17783_v41 = vrot.slane %v9214_v23, %v19380_v43  ;;  %v8982_v40 = vmul.f32 %v17581_v4, %v13031_v59  ;;  %13074 = vmatprep.subr.bf16.mxu1 %v13296_v48  ;;  %v8997_v14 = vmul.f32 %v17630_v0, %v17719_v32 }
 0x587   : > { %v9262_v13 = vrot.slane %v9248_v42, %v19365_v39  ;;  %v9263_v34 = vcombine.low %v17528_v53, %v9255_v52  ;;  %v9264_v35 = vcombine.high %v17528_v53, %v9255_v52  ;;  %v10223_v36 = vcombine.low %v9205_v12, %v9212_v62  ;;  %13075 = vmatpush3.bf16.msra.mxu1 %v13296_v48 }
 0x588   : > { %v12384_v10 = vcombine.high %v9205_v12, %v9212_v62  ;;  %v9026_v59 = vpack.c.bf16 %v8982_v40, %v17693_v22  ;;  %v8980_v62 = vmul.f32 %v17613_v11, %v8802_v17  ;;  %v8995_v17 = vmul.f32 %v17646_v30, %v8896_v6 }
 0x589   : > { %v13034_v7 = vpop.f32.mrf.mxu1  ;;  %v17794_v8 = vrot.slane %v9263_v34, %v19380_v43  ;;  %v17797_v42 = vrot.slane %v9264_v35, %v19380_v43  ;;  %v9279_v53 = vcombine.low %v17536_v20, %v9262_v13  ;;  %v9280_v4 = vcombine.high %v17536_v20, %v9262_v13  ;;  %v8899_v34 = vpop.f32.mrf.mxu0  ;;  %v13297_v13 = vld [vmem:[#allocation10 + $0x28] sm:$0xff]  }
 0x58a   : > { %v17802_v12 = vrot.slane %v10223_v36, %v19365_v39  ;;  %v17805_v52 = vrot.slane %v12384_v10, %v19365_v39  ;;  %v9099_v22 = vshrl.u32 %v9026_v59, 16  ;;  %v9025_v11 = vpack.c.bf16 %v8980_v62, %v17696_v63  ;;  %13076 = vmatprep.subr.bf16.mxu1 %v13297_v13 }
 0x58b   : > { %v8815_v23 = vpop.f32.mrf.mxu1  ;;  %v17810_v35 = vrot.slane %v9279_v53, %v19380_v43  ;;  %v17813_v9 = vrot.slane %v9280_v4, %v19380_v43  ;;  %v8998_v4 = vmul.f32 %v17635_v3, %v13063_v45  ;;  %v8996_v36 = vmul.f32 %v17652_v16, %v8899_v34  ;;  %v13298_v16 = vld [vmem:[#allocation10 + $0x20] sm:$0xff]   ;;  %13077 = vmatpush3.bf16.msra.mxu1 %v13297_v13 }
 0x58c   : > { %v9083_v20 = vshrl.u32 %v9025_v11, 16  ;;  %v8985_v58 = vmul.f32 %v17659_v24, %v13034_v7  ;;  %v8983_v63 = vmul.f32 %v17666_v61, %v8815_v23  ;;  %v19388_v53 = vcombine.low %v17724_v51, %v17727_v15  ;;  %13078 = vmatprep.subr.bf16.mxu1 %v13298_v16 }
 0x58d   : > { %v13035_v40 = vpop.f32.mrf.mxu1  ;;  %v10289_v10 = vcombine.low %v17810_v35, %v17813_v9  ;;  %v9034_v30 = vpack.c.bf16 %v8998_v4, %v8997_v14  ;;  %v9033_v6 = vpack.c.bf16 %v8996_v36, %v8995_v17  ;;  %v19389_v7 = vcombine.high %v17724_v51, %v17727_v15 }
 0x58e   : > { %v8986_v0 = vmul.f32 %v17662_v54, %v13035_v40  ;;  %v17837_v3 = vrot.slane %v19388_v53, %v19365_v39  ;;  %v10355_v54 = vcombine.low %v17742_v1, %v17745_v18  ;;  %v19390_v61 = vcombine.low %v17732_v55, %v17735_v2 }
 0x58f   : > { %v8818_v32 = vpop.f32.mrf.mxu1  ;;  %v17845_v24 = vrot.slane %v19389_v7, %v19365_v39  ;;  %v9097_v48 = vpack.i.b16 %v9034_v30, %v9026_v59  ;;  %v9100_v23 = vshrl.u32 %v9034_v30, 16  ;;  %v9081_v34 = vpack.i.b16 %v9033_v6, %v9025_v11  ;;  %v13299_v11 = vld [vmem:[#allocation10 + $0x18] sm:$0xff]   ;;  %13079 = vmatpush3.bf16.msra.mxu1 %v13298_v16 }
 0x590   : > { %v8984_v62 = vmul.f32 %v17669_v28, %v8818_v32  ;;  %v17839_v45 = vpack.c.bf16 %v8986_v0, %v8985_v58  ;;  %v17853_v28 = vrot.slane %v19390_v61, %v19365_v39  ;;  %v9084_v58 = vshrl.u32 %v9033_v6, 16  ;;  %13080 = vmatprep.subr.bf16.mxu1 %v13299_v11 }
 0x591   : > { %v17859_v51 = vrot.slane %v10355_v54, %v19380_v43  ;;  %v10363_v15 = vcombine.low %v17837_v3, %v17845_v24  ;;  %v9101_v1 = vpack.i.b16 %v9100_v23, %v9099_v22  ;;  %v9578_v18 = vcombine.high %v9097_v48, %v19364_v27  ;;  %v13066_v40 = vpop.f32.mrf.mxu0 }
 0x592   : > { %v9131_v36 = vshrl.u32 %v17839_v45, 16  ;;  %v17856_v14 = vpack.c.bf16 %v8984_v62, %v8983_v63  ;;  %v9585_v17 = vrot.slane %v9097_v48, %v19365_v39  ;;  %v9085_v59 = vpack.i.b16 %v9084_v58, %v9083_v20 }
 0x593   : > { %v9446_v53 = vcombine.high %v9081_v34, %v19364_v27  ;;  %v9453_v4 = vrot.slane %v9081_v34, %v19365_v39  ;;  %v17869_v0 = vmul.f32 %v17671_v44, %v13066_v40  ;;  %v9592_v13 = vrot.slane %v9578_v18, %v19365_v39  ;;  %13081 = vmatpush3.bf16.msra.mxu1 %v13299_v11  ;;  %v19407_v11 = vld [vmem:[#allocation39_spill] sm:$0xff] }
 0x594   : > { %v9115_v63 = vshrl.u32 %v17856_v14, 16  ;;  %v9593_v22 = vcombine.low %v17540_v5, %v9585_v17  ;;  %v9594_v32 = vcombine.high %v17540_v5, %v9585_v17  ;;  %v9644_v20 = vcombine.high %v9101_v1, %v19364_v27 }
 0x595   : > { %v9651_v30 = vrot.slane %v9101_v1, %v19365_v39  ;;  %v9460_v6 = vrot.slane %v9446_v53, %v19365_v39  ;;  %v9461_v62 = vcombine.low %v17564_v37, %v9453_v4  ;;  %v9462_v3 = vcombine.high %v17564_v37, %v9453_v4  ;;  %v19408_v4 = vld [vmem:[#allocation41_spill] sm:$0xff] }
 0x596   : > { %v9601_v44 = vrot.slane %v9593_v22, %v19380_v43  ;;  %v9608_v7 = vrot.slane %v9594_v32, %v19380_v43  ;;  %v9609_v24 = vcombine.low %v17548_v46, %v9592_v13  ;;  %v9610_v54 = vcombine.high %v17548_v46, %v9592_v13 }
 0x597   : > { %v9658_v5 = vrot.slane %v9644_v20, %v19365_v39  ;;  %v9659_v61 = vcombine.low %v17552_v47, %v9651_v30  ;;  %v9660_v48 = vcombine.high %v17552_v47, %v9651_v30  ;;  %v9469_v23 = vrot.slane %v9461_v62, %v19380_v43 }
 0x598   : > { %v17888_v37 = vrot.slane %v9609_v24, %v19380_v43  ;;  %v17891_v16 = vrot.slane %v9610_v54, %v19380_v43  ;;  %v10523_v34 = vcombine.low %v9601_v44, %v9608_v7  ;;  %v12396_v58 = vcombine.high %v9601_v44, %v9608_v7 }
 0x599   : > { %v17894_v1 = vrot.slane %v9659_v61, %v19380_v43  ;;  %v17897_v46 = vrot.slane %v9660_v48, %v19380_v43  ;;  %v9675_v18 = vcombine.low %v17560_v56, %v9658_v5  ;;  %v9676_v47 = vcombine.high %v17560_v56, %v9658_v5  ;;  %v8912_v5 = vpop.f32.mrf.mxu0 }
 0x59a   : > { %v17902_v17 = vrot.slane %v10523_v34, %v19365_v39  ;;  %v17905_v40 = vrot.slane %v12396_v58, %v19365_v39  ;;  %v10539_v53 = vcombine.low %v17888_v37, %v17891_v16  ;;  %v9476_v32 = vrot.slane %v9462_v3, %v19380_v43 }
 0x59b   : > { %v17912_v13 = vrot.slane %v9675_v18, %v19380_v43  ;;  %v17915_v22 = vrot.slane %v9676_v47, %v19380_v43  ;;  %v9477_v20 = vcombine.low %v17572_v38, %v9460_v6  ;;  %v9478_v30 = vcombine.high %v17572_v38, %v9460_v6 }
 0x59c   : > { %v9512_v62 = vcombine.high %v9085_v59, %v19364_v27  ;;  %v9519_v24 = vrot.slane %v9085_v59, %v19365_v39  ;;  %v10370_v54 = vrot.slane %v10363_v15, %v19380_v43  ;;  %v10423_v6 = vcombine.low %v9469_v23, %v9476_v32  ;;  %v13300_v59 = vld [vmem:[#allocation10 + $0x10] sm:$0xff]  }
 0x59d   : > { %v17932_v61 = vrot.slane %v9477_v20, %v19380_v43  ;;  %v17935_v3 = vrot.slane %v9478_v30, %v19380_v43  ;;  %v12392_v58 = vcombine.high %v9469_v23, %v9476_v32  ;;  %13082 = vmatprep.subr.bf16.mxu1 %v13300_v59  ;;  %v13301_v32 = vld [vmem:[#allocation10 + $0x8] sm:$0xff]  }
 0x59e   : > { %v9526_v38 = vrot.slane %v9512_v62, %v19365_v39  ;;  %v9527_v48 = vcombine.low %v17576_v31, %v9519_v24  ;;  %v9528_v34 = vcombine.high %v17576_v31, %v9519_v24  ;;  %v17941_v18 = vcombine.high %v17859_v51, %v10370_v54  ;;  %v13067_v24 = vpop.f32.mrf.mxu0  ;;  %13083 = vmatpush3.bf16.msra.mxu1 %v13300_v59 }
 0x59f   : > { %v17946_v20 = vrot.slane %v10423_v6, %v19365_v39  ;;  %v17957_v23 = vrot.slane %v12392_v58, %v19365_v39  ;;  %v19391_v6 = vcombine.high %v17732_v55, %v17735_v2  ;;  %v8999_v55 = vmul.f32 %v17687_v50, %v8912_v5  ;;  %13084 = vmatprep.subr.bf16.mxu1 %v13301_v32  ;;  %v19406_v2 = vld [vmem:[#allocation37_spill] sm:$0xff] }
 0x5a0   : > { %v9543_v15 = vcombine.low %v17584_v33, %v9526_v38  ;;  %v9544_v47 = vcombine.high %v17584_v33, %v9526_v38  ;;  %v17951_v62 = vrot.slane %v9527_v48, %v19380_v43  ;;  %v17954_v31 = vrot.slane %v9528_v34, %v19380_v43 }
 0x5a1   : > { %v10388_v48 = vrot.slane %v19391_v6, %v19365_v39  ;;  %v19392_v34 = vcombine.low %v17754_v21, %v17757_v60  ;;  %v9002_v7 = vmul.f32 %v17683_v57, %v13067_v24  ;;  %v19396_v57 = vcombine.low %v17794_v8, %v17797_v42 }
 0x5a2   : > { %v17962_v33 = vrot.slane %v9543_v15, %v19380_v43  ;;  %v17965_v38 = vrot.slane %v9544_v47, %v19380_v43  ;;  %v19393_v47 = vcombine.high %v17754_v21, %v17757_v60  ;;  %v19394_v21 = vcombine.low %v17780_v29, %v17783_v41  ;;  %13085 = vmatpush3.bf16.msra.mxu1 %v13301_v32 }
 0x5a3   : > { %v10396_v58 = vrot.slane %v19392_v34, %v19365_v39  ;;  %v10405_v59 = vcombine.low %v17853_v28, %v10388_v48  ;;  %v17990_v34 = vcombine.low %v17859_v51, %v10370_v54  ;;  %v19395_v60 = vcombine.high %v17780_v29, %v17783_v41 }
 0x5a4   : > { %v10404_v30 = vrot.slane %v19393_v47, %v19365_v39  ;;  %v10246_v50 = vrot.slane %v19394_v21, %v19365_v39  ;;  %v8915_v47 = vpop.f32.mrf.mxu0  ;;  %v10255_v54 = vcombine.low %v17802_v12, %v17805_v52  ;;  %v9036_v48 = vpack.c.bf16 %v9002_v7, %v17869_v0 }
 0x5a5   : > { %v10254_v5 = vrot.slane %v19395_v60, %v19365_v39  ;;  %v10412_v28 = vrot.slane %v10405_v59, %v19380_v43  ;;  %v11038_v51 = vshrl.u32 %v17990_v34, 16  ;;  %v19397_v41 = vcombine.high %v17794_v8, %v17797_v42 }
 0x5a6   : > { %v10413_v15 = vcombine.low %v10396_v58, %v10404_v30  ;;  %v10280_v30 = vrot.slane %v19396_v57, %v19365_v39  ;;  %v18016_v59 = vrot.slane %v10255_v54, %v19380_v43  ;;  %v10296_v12 = vrot.slane %v10289_v10, %v19365_v39 }
 0x5a7   : > { %v10263_v29 = vcombine.low %v10246_v50, %v10254_v5  ;;  %v10288_v58 = vrot.slane %v19397_v41, %v19365_v39  ;;  %v19398_v52 = vcombine.high %v17810_v35, %v17813_v9  ;;  %v9000_v7 = vmul.f32 %v17698_v26, %v8915_v47 }
 0x5a8   : > { %v10420_v24 = vrot.slane %v10413_v15, %v19380_v43  ;;  %v9129_v42 = vpack.i.b16 %v9036_v48, %v17839_v45  ;;  %v9132_v32 = vshrl.u32 %v9036_v48, 16 }
 0x5a9   : > { %v10304_v0 = vrot.slane %v19398_v52, %v19365_v39  ;;  %v18033_v21 = vrot.slane %v10263_v29, %v19380_v43  ;;  %v10305_v50 = vcombine.low %v10280_v30, %v10288_v58  ;;  %v9035_v10 = vpack.c.bf16 %v9000_v7, %v8999_v55 }
 0x5aa   : > { %v18027_v15 = vcombine.high %v10412_v28, %v10420_v24  ;;  %v18029_v8 = vcombine.low %v10412_v28, %v10420_v24  ;;  %v9133_v26 = vpack.i.b16 %v9132_v32, %v9131_v36  ;;  %v9842_v35 = vcombine.high %v9129_v42, %v19364_v27 }
 0x5ab   : > { %v10313_v60 = vcombine.low %v10296_v12, %v10304_v0  ;;  %v9849_v47 = vrot.slane %v9129_v42, %v19365_v39  ;;  %v10272_v28 = vcombine.high %v18016_v59, %v18033_v21  ;;  %v10312_v54 = vrot.slane %v10305_v50, %v19380_v43 }
 0x5ac   : > { %v11043_v5 = vpack.i.b16 %v18027_v15, %v17941_v18  ;;  %v11039_v9 = vshrl.u32 %v18029_v8, 16  ;;  %v9856_v30 = vrot.slane %v9842_v35, %v19365_v39  ;;  %v9908_v24 = vcombine.high %v9133_v26, %v19364_v27 }
 0x5ad   : > { %v10320_v57 = vrot.slane %v10313_v60, %v19380_v43  ;;  %v9915_v45 = vrot.slane %v9133_v26, %v19365_v39  ;;  %v9857_v36 = vcombine.low %v17589_v25, %v9849_v47  ;;  %v9858_v48 = vcombine.high %v17589_v25, %v9849_v47 }
 0x5ae   : > { %11137 = vrot.lane.b32.xlu1 %v11043_v5, %s13962_s12  ;;  %v11040_v55 = vpack.i.b16 %v11039_v9, %v11038_v51  ;;  %v9113_v41 = vpack.i.b16 %v9035_v10, %v17856_v14  ;;  %v9873_v58 = vcombine.low %v17596_v49, %v9856_v30  ;;  %v9874_v12 = vcombine.high %v17596_v49, %v9856_v30  ;;  %v19399_v49 = vld [vmem:[#allocation28_spill] sm:$0xff] }
 0x5af   : > { %v10322_v29 = vcombine.high %v10312_v54, %v10320_v57  ;;  %v9922_v51 = vrot.slane %v9908_v24, %v19365_v39  ;;  %v9923_v52 = vcombine.low %v17600_v19, %v9915_v45  ;;  %v9865_v0 = vrot.slane %v9857_v36, %v19380_v43  ;;  %v19405_v24 = vld [vmem:[#allocation40_spill] sm:$0xff] }
 0x5b0   : > { %11121 = vrot.lane.b32.xlu0 %v11040_v55, %s13960_s2  ;;  %v9872_v7 = vrot.slane %v9858_v48, %v19380_v43  ;;  %v9924_v42 = vcombine.high %v17600_v19, %v9915_v45  ;;  %v18062_v32 = vrot.slane %v9873_v58, %v19380_v43  ;;  %v18065_v50 = vrot.slane %v9874_v12, %v19380_v43  ;;  %v13038_v19 = vpop.f32.mrf.mxu1 }
 0x5b1   : > { %v11031_v25 = vpack.i.b16 %v10322_v29, %v10272_v28  ;;  %v18068_v60 = vrot.slane %v9923_v52, %v19380_v43  ;;  %v9939_v5 = vcombine.low %v19399_v49, %v9922_v51  ;;  %v9940_v26 = vcombine.high %v19399_v49, %v9922_v51 }
 0x5b2   : > { %v18072_v9 = vrot.slane %v9924_v42, %v19380_v43  ;;  %v10723_v35 = vcombine.low %v9865_v0, %v9872_v7  ;;  %v12404_v47 = vcombine.high %v9865_v0, %v9872_v7  ;;  %v9116_v45 = vshrl.u32 %v9035_v10, 16 }
 0x5b3   : > { %11135 = vrot.lane.b32.xlu1 %v11031_v25, %s13962_s12  ;;  %v18077_v55 = vrot.slane %v9939_v5, %v19380_v43  ;;  %v18084_v36 = vrot.slane %v9940_v26, %v19380_v43  ;;  %v9710_v10 = vcombine.high %v9113_v41, %v19364_v27  ;;  %v9717_v0 = vrot.slane %v9113_v41, %v19365_v39  ;;  %v8831_v5 = vpop.f32.mrf.mxu1  ;;  %v13302_v26 = vld [vmem:[#allocation10] sm:$0xff]  }
 0x5b4   : > { %v18087_v48 = vrot.slane %v10723_v35, %v19365_v39  ;;  %v18090_v58 = vrot.slane %v12404_v47, %v19365_v39  ;;  %v9117_v52 = vpack.i.b16 %v9116_v45, %v9115_v63  ;;  %v11032_v25 = vshrl.u32 %v10272_v28, 16  ;;  %v19400_v47 = vld [vmem:[#allocation29_spill] sm:$0xff]  ;;  %13086 = vmatprep.subr.bf16.mxu1 %v13302_v26 }
 0x5b5   : > { %v11033_v49 = vshrl.u32 %v10322_v29, 16  ;;  %v9724_v35 = vrot.slane %v9710_v10, %v19365_v39  ;;  %v9725_v51 = vcombine.low %v19400_v47, %v9717_v0  ;;  %v9726_v14 = vcombine.high %v19400_v47, %v9717_v0  ;;  %v19401_v10 = vld [vmem:[#allocation20_spill] sm:$0xff]  ;;  %13087 = vmatpush3.bf16.msra.mxu1 %v13302_v26  ;;  %v13070_v26 = vpop.f32.mrf.mxu0 }
 0x5b6   : > { %v9776_v63 = vcombine.high %v9117_v52, %v19364_v27  ;;  %v9783_v41 = vrot.slane %v9117_v52, %v19365_v39  ;;  %v18111_v7 = vcombine.low %v18016_v59, %v18033_v21  ;;  %v18113_v42 = vcombine.low %v10312_v54, %v10320_v57  ;;  %v19402_v52 = vld [vmem:[#allocation34_spill] sm:$0xff]  ;;  %v13039_v21 = vpop.f32.mrf.mxu1 }
 0x5b7   : > { %v11034_v45 = vpack.i.b16 %v11033_v49, %v11032_v25  ;;  %v9733_v28 = vrot.slane %v9725_v51, %v19380_v43  ;;  %v9740_v29 = vrot.slane %v9726_v14, %v19380_v43  ;;  %v9741_v12 = vcombine.low %v19401_v10, %v9724_v35 }
 0x5b8   : > { %v9742_v0 = vcombine.high %v19401_v10, %v9724_v35  ;;  %v9790_v47 = vrot.slane %v9776_v63, %v19365_v39  ;;  %v9791_v25 = vcombine.low %v19402_v52, %v9783_v41  ;;  %v9792_v49 = vcombine.high %v19402_v52, %v9783_v41  ;;  %v19403_v41 = vld [vmem:[#allocation35_spill] sm:$0xff] }
 0x5b9   : > { %11151 = vrot.lane.b32.xlu0 %v11034_v45, %s13961_s3  ;;  %v11026_v59 = vshrl.u32 %v18111_v7, 16  ;;  %v18125_v54 = vrot.slane %v9741_v12, %v19380_v43  ;;  %v10623_v51 = vcombine.low %v9733_v28, %v9740_v29  ;;  %v12400_v35 = vcombine.high %v9733_v28, %v9740_v29 }
 0x5ba   : > { %v18128_v57 = vrot.slane %v9742_v0, %v19380_v43  ;;  %v18131_v14 = vrot.slane %v9791_v25, %v19380_v43  ;;  %v18134_v63 = vrot.slane %v9792_v49, %v19380_v43  ;;  %v9807_v45 = vcombine.low %v19403_v41, %v9790_v47 }
 0x5bb   : > { %v9808_v10 = vcombine.high %v19403_v41, %v9790_v47  ;;  %v18139_v52 = vrot.slane %v10623_v51, %v19365_v39  ;;  %v18142_v12 = vrot.slane %v12400_v35, %v19365_v39  ;;  %v8834_v51 = vpop.f32.mrf.mxu1  ;;  %v11027_v35 = vshrl.u32 %v18113_v42, 16  ;;  %v19404_v41 = vld [vmem:[#allocation38_spill] sm:$0xff] }
 0x5bc   : > { %v18149_v0 = vrot.slane %v9807_v45, %v19380_v43  ;;  %v8989_v28 = vmul.f32 %v19404_v41, %v13038_v19  ;;  %v8987_v30 = vmul.f32 %v19405_v24, %v8831_v5  ;;  %v11044_v29 = vshrl.u32 %v17941_v18, 16  ;;  %v8928_v45 = vpop.f32.mrf.mxu0 }
 0x5bd   : > { %v18152_v25 = vrot.slane %v9808_v10, %v19380_v43  ;;  %v11045_v47 = vshrl.u32 %v18027_v15, 16  ;;  %v8990_v49 = vmul.f32 %v19406_v2, %v13039_v21  ;;  %v11028_v44 = vpack.i.b16 %v11027_v35, %v11026_v59 }
 0x5be   : > { %v8988_v56 = vmul.f32 %v19407_v11, %v8834_v51  ;;  %v9005_v19 = vmul.f32 %v19408_v4, %v13070_v26  ;;  %v10546_v18 = vrot.slane %v10539_v53, %v19365_v39  ;;  %v19409_v41 = vcombine.high %v17888_v37, %v17891_v16  ;;  %v13071_v21 = vpop.f32.mrf.mxu0 }
 0x5bf   : > { %v10689_v10 = vcombine.low %v18149_v0, %v18152_v25  ;;  %v11046_v24 = vpack.i.b16 %v11045_v47, %v11044_v29  ;;  %v9030_v5 = vpack.c.bf16 %v8990_v49, %v8989_v28  ;;  %v10555_v2 = vcombine.low %v17902_v17, %v17905_v40  ;;  %11119 = vrot.lane.b32.xlu1 %v11028_v44, %s13960_s2  ;;  %v19414_v29 = vld [vmem:[#allocation42_spill] sm:$0xff] }
 0x5c0   : > { %v10554_v6 = vrot.slane %v19409_v41, %v19365_v39  ;;  %v9029_v11 = vpack.c.bf16 %v8988_v56, %v8987_v30  ;;  %v19410_v4 = vcombine.low %v17894_v1, %v17897_v46  ;;  %v19411_v53 = vcombine.high %v17894_v1, %v17897_v46 }
 0x5c1   : > { %v19412_v37 = vcombine.low %v17912_v13, %v17915_v22  ;;  %v9163_v17 = vshrl.u32 %v9030_v5, 16  ;;  %v10562_v40 = vrot.slane %v10555_v2, %v19380_v43  ;;  %v19413_v44 = vcombine.high %v17912_v13, %v17915_v22 }
 0x5c2   : > { %v10580_v15 = vrot.slane %v19410_v4, %v19365_v39  ;;  %v10588_v59 = vrot.slane %v19411_v53, %v19365_v39  ;;  %v10563_v56 = vcombine.low %v10546_v18, %v10554_v6  ;;  %v9147_v26 = vshrl.u32 %v9029_v11, 16 }
 0x5c3   : > { %v10596_v16 = vrot.slane %v19412_v37, %v19365_v39  ;;  %v10604_v30 = vrot.slane %v19413_v44, %v19365_v39  ;;  %v9003_v1 = vmul.f32 %v19414_v29, %v8928_v45  ;;  %v19415_v46 = vcombine.low %v17932_v61, %v17935_v3  ;;  %11153 = vrot.lane.b32.xlu1 %v11046_v24, %s13961_s3 }
 0x5c4   : > { %v10605_v28 = vcombine.low %v10580_v15, %v10588_v59  ;;  %v10570_v49 = vrot.slane %v10563_v56, %v19380_v43  ;;  %v19416_v6 = vcombine.high %v17932_v61, %v17935_v3  ;;  %v10455_v13 = vcombine.low %v17946_v20, %v17957_v23  ;;  %v8931_v20 = vpop.f32.mrf.mxu0 }
 0x5c5   : > { %v10446_v47 = vrot.slane %v19415_v46, %v19365_v39  ;;  %v10613_v51 = vcombine.low %v10596_v16, %v10604_v30  ;;  %v19417_v45 = vcombine.low %v17951_v62, %v17954_v31  ;;  %v19418_v41 = vcombine.high %v17951_v62, %v17954_v31  ;;  %v19421_v31 = vld [vmem:[#allocation43_spill] sm:$0xff] }
 0x5c6   : > { %v10454_v35 = vrot.slane %v19416_v6, %v19365_v39  ;;  %v10612_v22 = vrot.slane %v10605_v28, %v19380_v43  ;;  %v19419_v61 = vcombine.low %v17962_v33, %v17965_v38  ;;  %v18224_v23 = vcombine.high %v10562_v40, %v10570_v49  ;;  %v19422_v28 = vld [vmem:[#allocation44_spill] sm:$0xff] }
 0x5c7   : > { %v10480_v18 = vrot.slane %v19417_v45, %v19365_v39  ;;  %v10488_v2 = vrot.slane %v19418_v41, %v19365_v39  ;;  %v10620_v24 = vrot.slane %v10613_v51, %v19380_v43  ;;  %v10462_v4 = vrot.slane %v10455_v13, %v19380_v43 }
 0x5c8   : > { %v10496_v3 = vrot.slane %v19419_v61, %v19365_v39  ;;  %v10463_v15 = vcombine.low %v10446_v47, %v10454_v35  ;;  %v19420_v53 = vcombine.high %v17962_v33, %v17965_v38  ;;  %v9006_v37 = vmul.f32 %v19421_v31, %v13071_v21 }
 0x5c9   : > { %v10505_v62 = vcombine.low %v10480_v18, %v10488_v2  ;;  %v18233_v16 = vcombine.low %v10562_v40, %v10570_v49  ;;  %v18235_v56 = vcombine.high %v10612_v22, %v10620_v24  ;;  %v18238_v30 = vcombine.low %v10612_v22, %v10620_v24 }
 0x5ca   : > { %v10504_v59 = vrot.slane %v19420_v53, %v19365_v39  ;;  %v10470_v44 = vrot.slane %v10463_v15, %v19380_v43  ;;  %v9004_v29 = vmul.f32 %v19422_v28, %v8931_v20  ;;  %v9038_v51 = vpack.c.bf16 %v9006_v37, %v9005_v19  ;;  %v19423_v53 = vld [vmem:[#allocation73_spill] sm:$0xff]  ;;  %v19424_v37 = vld [vmem:[#allocation36_spill] sm:$0xff] }
 0x5cb   : > { %v10512_v46 = vrot.slane %v10505_v62, %v19380_v43  ;;  %v11062_v33 = vshrl.u32 %v18233_v16, 16  ;;  %v11067_v38 = vpack.i.b16 %v18235_v56, %v18224_v23  ;;  %v11063_v40 = vshrl.u32 %v18238_v30, 16 }
 0x5cc   : > { %v10513_v47 = vcombine.low %v10496_v3, %v10504_v59  ;;  %v18245_v21 = vcombine.high %v10462_v4, %v10470_v44  ;;  %v9037_v49 = vpack.c.bf16 %v9004_v29, %v9003_v1  ;;  %v9161_v35 = vpack.i.b16 %v9038_v51, %v9030_v5 }
 0x5cd   : > { %v9164_v13 = vshrl.u32 %v9038_v51, 16  ;;  %v18249_v22 = vcombine.low %v10462_v4, %v10470_v44  ;;  %11141 = vrot.lane.b32.xlu1 %v11067_v38, %s13962_s12  ;;  %v11064_v45 = vpack.i.b16 %v11063_v40, %v11062_v33  ;;  %v11068_v41 = vshrl.u32 %v18224_v23, 16  ;;  %v19426_v38 = vld [vmem:[#allocation74_spill] sm:$0xff] }
 0x5ce   : > { %v10520_v6 = vrot.slane %v10513_v47, %v19380_v43  ;;  %v9145_v19 = vpack.i.b16 %v9037_v49, %v9029_v11  ;;  %v9148_v18 = vshrl.u32 %v9037_v49, 16  ;;  %v10106_v3 = vcombine.high %v9161_v35, %v19364_v27 }
 0x5cf   : > { %v9165_v61 = vpack.i.b16 %v9164_v13, %v9163_v17  ;;  %v10113_v1 = vrot.slane %v9161_v35, %v19365_v39  ;;  %v10755_v23 = vcombine.low %v18087_v48, %v18090_v58 }
 0x5d0   : > { %v18253_v2 = vcombine.high %v10512_v46, %v10520_v6  ;;  %v9149_v20 = vpack.i.b16 %v9148_v18, %v9147_v26  ;;  %v9974_v5 = vcombine.high %v9145_v19, %v19364_v27  ;;  %v9981_v24 = vrot.slane %v9145_v19, %v19365_v39 }
 0x5d1   : > { %v18259_v4 = vcombine.low %v10512_v46, %v10520_v6  ;;  %v10120_v15 = vrot.slane %v10106_v3, %v19365_v39  ;;  %v10121_v59 = vcombine.low %v19423_v53, %v10113_v1  ;;  %v10122_v17 = vcombine.high %v19423_v53, %v10113_v1  ;;  %11125 = vrot.lane.b32.xlu1 %v11064_v45, %s13960_s2  ;;  %v19425_v46 = vld [vmem:[#allocation50_spill] sm:$0xff]  ;;  %v19427_v3 = vld [vmem:[#allocation25_spill] sm:$0xff] }
 0x5d2   : > { %v11055_v11 = vpack.i.b16 %v18253_v2, %v18245_v21  ;;  %v10172_v62 = vcombine.high %v9165_v61, %v19364_v27  ;;  %v10179_v31 = vrot.slane %v9165_v61, %v19365_v39  ;;  %v9988_v26 = vrot.slane %v9974_v5, %v19365_v39 }
 0x5d3   : > { %v9989_v44 = vcombine.low %v19424_v37, %v9981_v24  ;;  %v10129_v28 = vrot.slane %v10121_v59, %v19380_v43  ;;  %v10136_v29 = vrot.slane %v10122_v17, %v19380_v43  ;;  %v10137_v47 = vcombine.low %v19425_v46, %v10120_v15 }
 0x5d4   : > { %11139 = vrot.lane.b32.xlu0 %v11055_v11, %s13962_s12  ;;  %v10138_v51 = vcombine.high %v19425_v46, %v10120_v15  ;;  %v10186_v33 = vrot.slane %v10172_v62, %v19365_v39  ;;  %v10187_v40 = vcombine.low %v19426_v38, %v10179_v31  ;;  %v10188_v49 = vcombine.high %v19426_v38, %v10179_v31 }
 0x5d5   : > { %v9990_v6 = vcombine.high %v19424_v37, %v9981_v24  ;;  %v18281_v35 = vrot.slane %v10137_v47, %v19380_v43  ;;  %v10923_v45 = vcombine.low %v10129_v28, %v10136_v29  ;;  %v12412_v19 = vcombine.high %v10129_v28, %v10136_v29  ;;  %v19428_v29 = vld [vmem:[#allocation32_spill] sm:$0xff] }
 0x5d6   : > { %v18284_v13 = vrot.slane %v10138_v51, %v19380_v43  ;;  %v18287_v18 = vrot.slane %v10187_v40, %v19380_v43  ;;  %v18290_v61 = vrot.slane %v10188_v49, %v19380_v43  ;;  %v10203_v1 = vcombine.low %v19427_v3, %v10186_v33 }
 0x5d7   : > { %v10204_v5 = vcombine.high %v19427_v3, %v10186_v33  ;;  %v18295_v24 = vrot.slane %v10923_v45, %v19365_v39  ;;  %v18298_v11 = vrot.slane %v12412_v19, %v19365_v39  ;;  %v9997_v37 = vrot.slane %v9989_v44, %v19380_v43  ;;  %v19429_v19 = vld [vmem:[#allocation71_spill] sm:$0xff] }
 0x5d8   : > { %v10939_v15 = vcombine.low %v18281_v35, %v18284_v13  ;;  %v12413_v53 = vcombine.high %v18281_v35, %v18284_v13  ;;  %v18305_v59 = vrot.slane %v10203_v1, %v19380_v43  ;;  %v10973_v62 = vcombine.low %v18287_v18, %v18290_v61 }
 0x5d9   : > { %v18308_v17 = vrot.slane %v10204_v5, %v19380_v43  ;;  %v12414_v31 = vcombine.high %v18287_v18, %v18290_v61  ;;  %v10004_v28 = vrot.slane %v9990_v6, %v19380_v43  ;;  %v10005_v46 = vcombine.low %v19428_v29, %v9988_v26 }
 0x5da   : > { %v10006_v47 = vcombine.high %v19428_v29, %v9988_v26  ;;  %v10040_v38 = vcombine.high %v9149_v20, %v19364_v27  ;;  %v10047_v40 = vrot.slane %v9149_v20, %v19365_v39  ;;  %v11050_v5 = vshrl.u32 %v18249_v22, 16 }
 0x5db   : > { %v10989_v51 = vcombine.low %v18305_v59, %v18308_v17  ;;  %v18325_v49 = vrot.slane %v10005_v46, %v19380_v43  ;;  %v10823_v6 = vcombine.low %v9997_v37, %v10004_v28  ;;  %v12408_v45 = vcombine.high %v9997_v37, %v10004_v28 }
 0x5dc   : > { %v18328_v44 = vrot.slane %v10006_v47, %v19380_v43  ;;  %v10054_v26 = vrot.slane %v10040_v38, %v19365_v39  ;;  %v10055_v3 = vcombine.low %v19429_v19, %v10047_v40  ;;  %v10056_v1 = vcombine.high %v19429_v19, %v10047_v40  ;;  %v19430_v47 = vld [vmem:[#allocation72_spill] sm:$0xff] }
 0x5dd   : > { %v18335_v27 = vrot.slane %v10823_v6, %v19365_v39  ;;  %v18338_v20 = vrot.slane %v12408_v45, %v19365_v39  ;;  %v11051_v6 = vshrl.u32 %v18259_v4, 16  ;;  %v11069_v45 = vshrl.u32 %v18235_v56, 16 }
 0x5de   : > { %v18345_v28 = vrot.slane %v10055_v3, %v19380_v43  ;;  %v18348_v46 = vrot.slane %v10056_v1, %v19380_v43  ;;  %v10071_v38 = vcombine.low %v19430_v47, %v10054_v26  ;;  %v10072_v40 = vcombine.high %v19430_v47, %v10054_v26 }
 0x5df   : > { %v11056_v19 = vshrl.u32 %v18245_v21, 16  ;;  %v11057_v29 = vshrl.u32 %v18253_v2, 16  ;;  %v11052_v47 = vpack.i.b16 %v11051_v6, %v11050_v5  ;;  %v11070_v56 = vpack.i.b16 %v11069_v45, %v11068_v41 }
 0x5e0   : > { %v18357_v37 = vrot.slane %v10071_v38, %v19380_v43  ;;  %v18360_v3 = vrot.slane %v10072_v40, %v19380_v43  ;;  %v10873_v1 = vcombine.low %v18345_v28, %v18348_v46  ;;  %v19431_v21 = vcombine.low %v18062_v32, %v18065_v50 }
 0x5e1   : > { %v11058_v33 = vpack.i.b16 %v11057_v29, %v11056_v19  ;;  %v19432_v26 = vcombine.high %v18062_v32, %v18065_v50  ;;  %11123 = vrot.lane.b32.xlu0 %v11052_v47, %s13960_s2  ;;  %11157 = vrot.lane.b32.xlu1 %v11070_v56, %s13961_s3  ;;  %v19433_v41 = vcombine.low %v18068_v60, %v18072_v9 }
 0x5e2   : > { %v10746_v2 = vrot.slane %v19431_v21, %v19365_v39  ;;  %v10889_v38 = vcombine.low %v18357_v37, %v18360_v3  ;;  %v12411_v40 = vcombine.high %v18357_v37, %v18360_v3  ;;  %v19434_v6 = vcombine.high %v18068_v60, %v18072_v9 }
 0x5e3   : > { %v10754_v5 = vrot.slane %v19432_v26, %v19365_v39  ;;  %v10780_v29 = vrot.slane %v19433_v41, %v19365_v39  ;;  %v19435_v32 = vcombine.low %v18077_v55, %v18084_v36  ;;  %v10762_v48 = vrot.slane %v10755_v23, %v19380_v43 }
 0x5e4   : > { %v10788_v45 = vrot.slane %v19434_v6, %v19365_v39  ;;  %v19436_v19 = vcombine.high %v18077_v55, %v18084_v36  ;;  %v19437_v47 = vcombine.low %v18125_v54, %v18128_v57  ;;  %v19438_v9 = vcombine.high %v18125_v54, %v18128_v57 }
 0x5e5   : > { %v10796_v50 = vrot.slane %v19435_v32, %v19365_v39  ;;  %v10763_v58 = vcombine.low %v10746_v2, %v10754_v5  ;;  %v10655_v23 = vcombine.low %v18139_v52, %v18142_v12  ;;  %v19439_v2 = vcombine.low %v18131_v14, %v18134_v63  ;;  %11155 = vrot.lane.b32.xlu0 %v11058_v33, %s13961_s3 }
 0x5e6   : > { %v10804_v26 = vrot.slane %v19436_v19, %v19365_v39  ;;  %v10646_v56 = vrot.slane %v19437_v47, %v19365_v39  ;;  %v10805_v60 = vcombine.low %v10780_v29, %v10788_v45  ;;  %v10654_v21 = vrot.slane %v19438_v9, %v19365_v39 }
 0x5e7   : > { %v10680_v55 = vrot.slane %v19439_v2, %v19365_v39  ;;  %v10770_v36 = vrot.slane %v10763_v58, %v19380_v43  ;;  %v19440_v41 = vcombine.high %v18131_v14, %v18134_v63  ;;  %v10696_v54 = vrot.slane %v10689_v10, %v19365_v39 }
 0x5e8   : > { %v10813_v5 = vcombine.low %v10796_v50, %v10804_v26  ;;  %v10812_v57 = vrot.slane %v10805_v60, %v19380_v43  ;;  %v10662_v52 = vrot.slane %v10655_v23, %v19380_v43  ;;  %v10663_v12 = vcombine.low %v10646_v56, %v10654_v21 }
 0x5e9   : > { %v10688_v29 = vrot.slane %v19440_v41, %v19365_v39  ;;  %v19441_v6 = vcombine.high %v18149_v0, %v18152_v25  ;;  %v10772_v32 = vcombine.high %v10762_v48, %v10770_v36  ;;  %v18432_v50 = vcombine.low %v10762_v48, %v10770_v36 }
 0x5ea   : > { %v10820_v14 = vrot.slane %v10813_v5, %v19380_v43  ;;  %v10670_v10 = vrot.slane %v10663_v12, %v19380_v43  ;;  %v10946_v33 = vrot.slane %v10939_v15, %v19365_v39  ;;  %v10954_v0 = vrot.slane %v12413_v53, %v19365_v39 }
 0x5eb   : > { %v10704_v45 = vrot.slane %v19441_v6, %v19365_v39  ;;  %v10705_v63 = vcombine.low %v10680_v55, %v10688_v29  ;;  %v11086_v48 = vshrl.u32 %v18432_v50, 16  ;;  %v11092_v9 = vshrl.u32 %v10772_v32, 16 }
 0x5ec   : > { %v10822_v25 = vcombine.high %v10812_v57, %v10820_v14  ;;  %v18444_v26 = vcombine.low %v10812_v57, %v10820_v14  ;;  %v10672_v47 = vcombine.high %v10662_v52, %v10670_v10  ;;  %v18448_v60 = vcombine.low %v10662_v52, %v10670_v10 }
 0x5ed   : > { %v10713_v58 = vcombine.low %v10696_v54, %v10704_v45  ;;  %v10712_v19 = vrot.slane %v10705_v63, %v19380_v43  ;;  %v10955_v35 = vcombine.low %v18295_v24, %v18298_v11  ;;  %v10963_v29 = vcombine.low %v10946_v33, %v10954_v0 }
 0x5ee   : > { %v11091_v21 = vpack.i.b16 %v10822_v25, %v10772_v32  ;;  %v11087_v15 = vshrl.u32 %v18444_v26, 16  ;;  %v11093_v23 = vshrl.u32 %v10822_v25, 16  ;;  %v11074_v2 = vshrl.u32 %v18448_v60, 16 }
 0x5ef   : > { %v10720_v56 = vrot.slane %v10713_v58, %v19380_v43  ;;  %v11080_v55 = vshrl.u32 %v10672_v47, 16  ;;  %v10962_v41 = vrot.slane %v10955_v35, %v19380_v43  ;;  %v10980_v24 = vrot.slane %v10973_v62, %v19365_v39 }
 0x5f0   : > { %11145 = vrot.lane.b32.xlu1 %v11091_v21, %s13962_s12  ;;  %v11088_v36 = vpack.i.b16 %v11087_v15, %v11086_v48  ;;  %v11094_v5 = vpack.i.b16 %v11093_v23, %v11092_v9  ;;  %v10970_v11 = vrot.slane %v10963_v29, %v19380_v43  ;;  %v10988_v12 = vrot.slane %v12414_v31, %v19365_v39 }
 0x5f1   : > { %v10722_v13 = vcombine.high %v10712_v19, %v10720_v56  ;;  %v18453_v53 = vcombine.low %v10712_v19, %v10720_v56  ;;  %v10996_v6 = vrot.slane %v10989_v51, %v19365_v39  ;;  %v19442_v45 = vcombine.high %v18305_v59, %v18308_v17 }
 0x5f2   : > { %v19443_v63 = vcombine.low %v18325_v49, %v18328_v44  ;;  %v19444_v61 = vcombine.high %v18325_v49, %v18328_v44  ;;  %v10972_v51 = vcombine.high %v10962_v41, %v10970_v11  ;;  %v11005_v10 = vcombine.low %v10980_v24, %v10988_v12 }
 0x5f3   : > { %v11079_v54 = vpack.i.b16 %v10722_v13, %v10672_v47  ;;  %v11075_v57 = vshrl.u32 %v18453_v53, 16  ;;  %v11081_v52 = vshrl.u32 %v10722_v13, 16  ;;  %v11004_v32 = vrot.slane %v19442_v45, %v19365_v39 }
 0x5f4   : > { %v10846_v18 = vrot.slane %v19443_v63, %v19365_v39  ;;  %v10854_v31 = vrot.slane %v19444_v61, %v19365_v39  ;;  %11129 = vrot.lane.b32.xlu1 %v11088_v36, %s13960_s2  ;;  %v10855_v17 = vcombine.low %v18335_v27, %v18338_v20  ;;  %v10880_v33 = vrot.slane %v10873_v1, %v19365_v39  ;;  %v13314_v63 = vld [vmem:[#allocation11 + $0x44] ss:$8 sps:$4 sm:$0xff]   ;;  %v13317_v61 = vld [vmem:[#allocation11 + $0x34] ss:$8 sps:$4 sm:$0xff]  }
 0x5f5   : > { %11143 = vrot.lane.b32.xlu0 %v11079_v54, %s13962_s12  ;;  %v11076_v62 = vpack.i.b16 %v11075_v57, %v11074_v2  ;;  %v11082_v14 = vpack.i.b16 %v11081_v52, %v11080_v55  ;;  %v11013_v59 = vcombine.low %v10996_v6, %v11004_v32  ;;  %v19445_v0 = vcombine.high %v18345_v28, %v18348_v46  ;;  %v13308_v6 = vld [vmem:[#allocation11 + $0x64] ss:$8 sps:$4 sm:$0xff]   ;;  %v13306_v32 = vld [vmem:[#allocation11 + $0x60] ss:$8 sps:$4 sm:$0xff]  }
 0x5f6   : > { %v10863_v58 = vcombine.low %v10846_v18, %v10854_v31  ;;  %v10896_v44 = vrot.slane %v10889_v38, %v19365_v39  ;;  %v11012_v25 = vrot.slane %v11005_v10, %v19380_v43  ;;  %v10904_v20 = vrot.slane %v12411_v40, %v19365_v39  ;;  %v13312_v18 = vld [vmem:[#allocation11 + $0x40] ss:$8 sps:$4 sm:$0xff]   ;;  %v13315_v31 = vld [vmem:[#allocation11 + $0x30] ss:$8 sps:$4 sm:$0xff]  }
 0x5f7   : > { %v10888_v49 = vrot.slane %v19445_v0, %v19365_v39  ;;  %v11020_v27 = vrot.slane %v11013_v59, %v19380_v43  ;;  %v10862_v1 = vrot.slane %v10855_v17, %v19380_v43  ;;  %v18509_v19 = vcombine.low %v10962_v41, %v10970_v11  ;;  %v13318_v10 = vld [vmem:[#allocation11 + $0x20] ss:$8 sps:$4 sm:$0xff]  }
 0x5f8   : > { %v10870_v28 = vrot.slane %v10863_v58, %v19380_v43  ;;  %11161 = vrot.lane.b32.xlu1 %v11094_v5, %s13961_s3  ;;  %v10913_v48 = vcombine.low %v10896_v44, %v10904_v20  ;;  %v11116_v56 = vshrl.u32 %v10972_v51, 16  ;;  %v11025_v2 = vpack.i.b16 %v18113_v42, %v18111_v7  ;;  %v13303_v7 = vld [vmem:[#allocation11 + $0x70] ss:$8 sps:$4 sm:$0xff]   ;;  %v13305_v42 = vld [vmem:[#allocation11 + $0x74] ss:$8 sps:$4 sm:$0xff]  }
 0x5f9   : > { %11127 = vrot.lane.b32.xlu0 %v11076_v62, %s13960_s2  ;;  %v10905_v46 = vcombine.low %v10880_v33, %v10888_v49  ;;  %v11022_v38 = vcombine.high %v11012_v25, %v11020_v27  ;;  %v18512_v47 = vcombine.low %v11012_v25, %v11020_v27  ;;  %v11110_v39 = vshrl.u32 %v18509_v19, 16  ;;  %11498 = vmatprep.subr.bf16.mxu0 %v13305_v42  ;;  %v13311_v62 = vld [vmem:[#allocation11 + $0x54] ss:$8 sps:$4 sm:$0xff]  }
 0x5fa   : > { %v10872_v9 = vcombine.high %v10862_v1, %v10870_v28  ;;  %v18516_v3 = vcombine.low %v10862_v1, %v10870_v28  ;;  %v10920_v21 = vrot.slane %v10913_v48, %v19380_v43  ;;  %v11049_v29 = vpack.i.b16 %v18259_v4, %v18249_v22  ;;  %11499 = vmatpush1.bf16.msra.mxu0 %v13303_v7 }
 0x5fb   : > { %v10912_v37 = vrot.slane %v10905_v46, %v19380_v43  ;;  %v11115_v40 = vpack.i.b16 %v11022_v38, %v10972_v51  ;;  %v11111_v15 = vshrl.u32 %v18512_v47, 16  ;;  %v11117_v23 = vshrl.u32 %v11022_v38, 16  ;;  %11500 = vmatprep.subr.bf16.mxu0 %v13308_v6  ;;  %v13320_v51 = vld [vmem:[#allocation11 + $0x24] ss:$8 sps:$4 sm:$0xff]  }
 0x5fc   : > { %v11098_v35 = vshrl.u32 %v18516_v3, 16  ;;  %v11104_v13 = vshrl.u32 %v10872_v9, 16  ;;  %v11061_v43 = vpack.i.b16 %v18238_v30, %v18233_v16  ;;  %v11085_v54 = vpack.i.b16 %v18444_v26, %v18432_v50 }
 0x5fd   : > { %11159 = vrot.lane.b32.xlu0 %v11082_v14, %s13961_s3  ;;  %11149 = vrot.lane.b32.xlu1 %v11115_v40, %s13962_s12  ;;  %v10922_v55 = vcombine.high %v10912_v37, %v10920_v21  ;;  %v11112_v36 = vpack.i.b16 %v11111_v15, %v11110_v39  ;;  %v18525_v5 = vcombine.low %v10912_v37, %v10920_v21  ;;  %v13309_v14 = vld [vmem:[#allocation11 + $0x50] ss:$8 sps:$4 sm:$0xff]  }
 0x5fe   : > { %v11118_v41 = vpack.i.b16 %v11117_v23, %v11116_v56  ;;  %v11073_v57 = vpack.i.b16 %v18453_v53, %v18448_v60  ;;  %v11109_v12 = vpack.i.b16 %v18512_v47, %v18509_v19  ;;  %11501 = vmatpush1.bf16.msra.mxu0 %v13306_v32  ;;  %v11037_v33 = vpack.i.b16 %v18029_v8, %v17990_v34  ;;  %v430_v19 = vld [vmem:[%s14195_s15 + $0x8] sm:$0xff] }
 0x5ff   : > { %v11103_v52 = vpack.i.b16 %v10922_v55, %v10872_v9  ;;  %v11099_v24 = vshrl.u32 %v18525_v5, 16  ;;  %v11105_v11 = vshrl.u32 %v10922_v55, 16  ;;  %v11097_v45 = vpack.i.b16 %v18525_v5, %v18516_v3  ;;  %11502 = vmatprep.subr.bf16.mxu0 %v13311_v62  ;;  %v429_v5 = vld [vmem:[%s14195_s15] sm:$0xff] }
 0x600   : > { %v469_v47 = vpack.c.bf16 %v430_v19, %v429_v5  ;;  %v13326_v32 = vld [vmem:[#allocation11 + $0x4] ss:$8 sps:$4 sm:$0xff]  }
 0x601   : > { %11147 = vrot.lane.b32.xlu0 %v11103_v52, %s13962_s12  ;;  %11133 = vrot.lane.b32.xlu1 %v11112_v36, %s13960_s2  ;;  %v11100_v22 = vpack.i.b16 %v11099_v24, %v11098_v35  ;;  %v11106_v4 = vpack.i.b16 %v11105_v11, %v11104_v13  ;;  %v433_v62 = vld [vmem:[%s14195_s15 + $0x20] sm:$0xff] }
 0x602   : > { %11503 = vmatpush1.bf16.msra.mxu0 %v13309_v14  ;;  %12736 = vmatprep.mubr.bf16.mxu0 %v469_v47  ;;  %v434_v14 = vld [vmem:[%s14195_s15 + $0x28] sm:$0xff] }
 0x603   : > { %11504 = vmatprep.subr.bf16.mxu0 %v13314_v63  ;;  %v437_v63 = vld [vmem:[%s14195_s15 + $0x40] sm:$0xff] }
 0x605   : > { %11131 = vrot.lane.b32.xlu0 %v11100_v22, %s13960_s2  ;;  %11165 = vrot.lane.b32.xlu1 %v11118_v41, %s13961_s3 }
 0x606   : > { %11505 = vmatpush1.bf16.msra.mxu0 %v13312_v18  ;;  %v438_v18 = vld [vmem:[%s14195_s15 + $0x48] sm:$0xff] }
 0x607   : > { %11506 = vmatprep.subr.bf16.mxu0 %v13317_v61  ;;  %v471_v61 = vpack.c.bf16 %v434_v14, %v433_v62 }
 0x609   : > { %11163 = vrot.lane.b32.xlu0 %v11106_v4, %s13961_s3  ;;  %v13324_v4 = vld [vmem:[#allocation11] ss:$8 sps:$4 sm:$0xff]   ;;  %12740 = vmatprep.mubr.bf16.mxu0 %v471_v61  ;;  %v13337_v61 = vld [vmem:[#allocation13 + $0x50] sm:$0xff]  }
 0x60a   : > { %11507 = vmatpush1.bf16.msra.mxu0 %v13315_v31  ;;  %v473_v31 = vpack.c.bf16 %v438_v18, %v437_v63 }
 0x60b   : > { %11508 = vmatprep.subr.bf16.mxu0 %v13320_v51  ;;  %v18593_v51 = vld [vmem:[%s14195_s15 + $0x60] sm:$0xff] }
 0x60c   : > { %12744 = vmatprep.mubr.bf16.mxu0 %v473_v31  ;;  %v13338_v31 = vld [vmem:[#allocation13 + $0x10] sm:$0xff]  }
 0x60e   : > { %11509 = vmatpush1.bf16.msra.mxu0 %v13318_v10  ;;  %v442_v10 = vld [vmem:[%s14195_s15 + $0x68] sm:$0xff] }
 0x620   : > { %v11138_v59 = vpop.permute.xlu1 %11137 }
 0x622   : > { %v11122_v58 = vpop.permute.xlu0 %11121 }
 0x623   : > { %v11172_v49 = vsel %vm7430_vm0, %v11037_v33, %v11122_v58  ;;  %v13327_v58 = vld [vmem:[#allocation13 + $0x78] sm:$0xff]  }
 0x624   : > { %v11195_v1 = vsel %vm11191_vm2, %v11172_v49, %v11138_v59  ;;  %v475_v59 = vpack.c.bf16 %v442_v10, %v18593_v51  ;;  %v13328_v33 = vld [vmem:[#allocation13 + $0x38] sm:$0xff]   ;;  %12656 = vmatprep.subr.bf16.mxu1 %v13327_v58 }
 0x625   : > { %v11136_v17 = vpop.permute.xlu1 %11135 }
 0x626   : > { %12748 = vmatprep.mubr.bf16.mxu0 %v475_v59  ;;  %v13341_v59 = vld [vmem:[#allocation13 + $0x40] sm:$0xff]  }
 0x62b   : > { %v11152_v25 = vpop.permute.xlu0 %11151 }
 0x631   : > { %v11120_v0 = vpop.permute.xlu1 %11119 }
 0x632   : > { %v11169_v44 = vsel %vm7430_vm0, %v11025_v2, %v11120_v0 }
 0x633   : > { %v11193_v27 = vsel %vm11191_vm2, %v11169_v44, %v11136_v17  ;;  %v19446_v17 = vmov 0  }
 0x634   : > { %v11210_v20 = vsel %vm11208_vm1, %v11193_v27, %v11152_v25  ;;  %11530 = vmatprep.mubr.bf16.mxu0 %v19446_v17 }
 0x635   : > { %v11154_v28 = vpop.permute.xlu1 %11153  ;;  %13088 = vmatprep.mubr.bf16.mxu1 %v11210_v20 }
 0x636   : > { %v11213_v46 = vsel %vm11208_vm1, %v11195_v1, %v11154_v28  ;;  %v13663_v28 = vld [vmem:[%s14195_s15 + $0x18] sm:$0xff] }
 0x637   : > { %13089 = vmatmul.mubr.bf16.vlgmr.msra.gmra.mxu1 %v11213_v46 }
 0x638   : > { %12657 = vmatpush3.bf16.msra.mxu1 %v13328_v33 }
 0x63f   : > { %v11142_v34 = vpop.permute.xlu1 %11141 }
 0x643   : > { %v11126_v38 = vpop.permute.xlu1 %11125 }
 0x644   : > { %v11178_v9 = vsel %vm7430_vm0, %v11061_v43, %v11126_v38 }
 0x645   : > { %v11199_v15 = vsel %vm11191_vm2, %v11178_v9, %v11142_v34  ;;  %v13664_v34 = vld [vmem:[%s14195_s15 + $0x10] sm:$0xff] }
 0x646   : > { %v11140_v8 = vpop.permute.xlu0 %11139 }
 0x653   : > { %v11124_v48 = vpop.permute.xlu0 %11123  ;;  %v11158_v37 = vpop.permute.xlu1 %11157 }
 0x654   : > { %v11175_v56 = vsel %vm7430_vm0, %v11049_v29, %v11124_v48  ;;  %v11219_v23 = vsel %vm11208_vm1, %v11199_v15, %v11158_v37  ;;  %v13665_v15 = vld [vmem:[%s14195_s15 + $0x38] sm:$0xff] }
 0x655   : > { %v11197_v40 = vsel %vm11191_vm2, %v11175_v56, %v11140_v8 }
 0x657   : > { %v11156_v39 = vpop.permute.xlu0 %11155 }
 0x658   : > { %v11216_v21 = vsel %vm11208_vm1, %v11197_v40, %v11156_v39 }
 0x659   : > { %13092 = vmatprep.mubr.bf16.mxu1 %v11216_v21 }
 0x65a   : > { %13093 = vmatmul.mubr.bf16.gmra.mxu1 %v11219_v23 }
 0x662   : > { %v11146_v35 = vpop.permute.xlu1 %11145 }
 0x666   : > { %v11130_v2 = vpop.permute.xlu1 %11129 }
 0x667   : > { %v11144_v13 = vpop.permute.xlu0 %11143  ;;  %v11184_v36 = vsel %vm7430_vm0, %v11085_v54, %v11130_v2 }
 0x668   : > { %v11203_v7 = vsel %vm11191_vm2, %v11184_v36, %v11146_v35  ;;  %v13666_v35 = vld [vmem:[%s14195_s15 + $0x30] sm:$0xff] }
 0x66a   : > { %v11162_v30 = vpop.permute.xlu1 %11161 }
 0x66b   : > { %v11128_v55 = vpop.permute.xlu0 %11127  ;;  %v11225_v60 = vsel %vm11208_vm1, %v11203_v7, %v11162_v30  ;;  %v13667_v7 = vld [vmem:[%s14195_s15 + $0x58] sm:$0xff] }
 0x66c   : > { %v11181_v16 = vsel %vm7430_vm0, %v11073_v57, %v11128_v55 }
 0x66d   : > { %v11201_v43 = vsel %vm11191_vm2, %v11181_v16, %v11144_v13 }
 0x66f   : > { %v11160_v41 = vpop.permute.xlu0 %11159  ;;  %v11150_v42 = vpop.permute.xlu1 %11149 }
 0x670   : > { %v11222_v29 = vsel %vm11208_vm1, %v11201_v43, %v11160_v41 }
 0x671   : > { %13096 = vmatprep.mubr.bf16.mxu1 %v11222_v29 }
 0x672   : > { %13097 = vmatmul.mubr.bf16.gmra.mxu1 %v11225_v60 }
 0x673   : > { %v11148_v53 = vpop.permute.xlu0 %11147  ;;  %v11134_v57 = vpop.permute.xlu1 %11133 }
 0x674   : > { %v11190_v26 = vsel %vm7430_vm0, %v11109_v12, %v11134_v57  ;;  %v13321_v12 = vld [vmem:[#allocation11 + $0x10] ss:$8 sps:$4 sm:$0xff]  }
 0x675   : > { %v11207_v22 = vsel %vm11191_vm2, %v11190_v26, %v11150_v42 }
 0x677   : > { %v11132_v52 = vpop.permute.xlu0 %11131  ;;  %v11166_v54 = vpop.permute.xlu1 %11165 }
 0x678   : > { %v11187_v50 = vsel %vm7430_vm0, %v11097_v45, %v11132_v52  ;;  %v11231_v3 = vsel %vm11208_vm1, %v11207_v22, %v11166_v54  ;;  %v13323_v45 = vld [vmem:[#allocation11 + $0x14] ss:$8 sps:$4 sm:$0xff]  }
 0x679   : > { %v11205_v11 = vsel %vm11191_vm2, %v11187_v50, %v11148_v53  ;;  %11510 = vmatprep.subr.bf16.mxu0 %v13323_v45  ;;  %v13668_v53 = vld [vmem:[%s14195_s15 + $0x50] sm:$0xff]  ;;  %v13669_v22 = vld [vmem:[%s14195_s15 + $0x78] sm:$0xff] }
 0x67a   : > { %11511 = vmatpush1.bf16.msra.mxu0 %v13321_v12  ;;  %v13329_v12 = vld [vmem:[#allocation13 + $0x70] sm:$0xff]  }
 0x67b   : > { %v11164_v24 = vpop.permute.xlu0 %11163  ;;  %11512 = vmatprep.subr.bf16.mxu0 %v13326_v32  ;;  %12658 = vmatprep.subr.bf16.mxu1 %v13329_v12  ;;  %v13330_v45 = vld [vmem:[#allocation13 + $0x30] sm:$0xff]   ;;  %v13332_v32 = vld [vmem:[#allocation13 + $0x28] sm:$0xff]  }
 0x67c   : > { %v11228_v6 = vsel %vm11208_vm1, %v11205_v11, %v11164_v24  ;;  %12659 = vmatpush3.bf16.msra.mxu1 %v13330_v45 }
 0x67d   : > { %13100 = vmatprep.mubr.bf16.mxu1 %v11228_v6 }
 0x67e   : > { %13101 = vmatmul.mubr.bf16.gmra.mxu1 %v11231_v3  ;;  %11513 = vmatpush1.bf16.msra.mxu0 %v13324_v4  ;;  %v13331_v4 = vld [vmem:[#allocation13 + $0x68] sm:$0xff]  }
 0x67f   : > { %12660 = vmatprep.subr.bf16.mxu1 %v13331_v4 }
 0x680   : > { %12661 = vmatpush3.bf16.msra.mxu1 %v13332_v32 }
 0x6f7   : > { %v13090_v0 = vpop.f32.mrf.mxu1 }
 0x6f8   : > { %v18609_v8 = vadd.f32 %v13664_v34, %v13090_v0 }
 0x6f9   : > { %v11331_v49 = vpop.f32.mrf.mxu1 }
 0x6fa   : > { %v18598_v27 = vadd.f32 %v11331_v49, %v429_v5  ;;  %v13670_v5 = vld [vmem:[%s14195_s15 + $0x70] sm:$0xff] }
 0x6fb   : > { %v13091_v44 = vpop.f32.mrf.mxu1 }
 0x6fc   : > { %v18606_v46 = vadd.f32 %v13663_v28, %v13091_v44 }
 0x6fd   : > { %v11334_v25 = vpop.f32.mrf.mxu1 }
 0x6fe   : > { %v18600_v20 = vadd.f32 %v11334_v25, %v430_v19  ;;  %v11395_v38 = vpack.c.bf16 %v18606_v46, %v18609_v8 }
 0x700   : > { %v11394_v1 = vpack.c.bf16 %v18600_v20, %v18598_v27 }
 0x702   : > { %11531 = vmatmul.mubr.bf16.vlgmr.msra.gmra.mxu0 %v11394_v1 }
 0x703   : > { %11540 = vmatprep.mubr.bf16.mxu0 %v19446_v17 }
 0x70a   : > { %11541 = vmatmul.mubr.bf16.gmra.mxu0 %v11395_v38 }
 0x70b   : > { %11550 = vmatprep.mubr.bf16.mxu0 %v19446_v17 }
 0x71a   : > { %v13094_v48 = vpop.f32.mrf.mxu1 }
 0x71b   : > { %v18625_v13 = vadd.f32 %v13666_v35, %v13094_v48 }
 0x71c   : > { %v11347_v56 = vpop.f32.mrf.mxu1 }
 0x71d   : > { %v18614_v39 = vadd.f32 %v11347_v56, %v433_v62  ;;  %v13333_v62 = vld [vmem:[#allocation13 + $0x60] sm:$0xff]  }
 0x71e   : > { %v13095_v9 = vpop.f32.mrf.mxu1  ;;  %12662 = vmatprep.subr.bf16.mxu1 %v13333_v62 }
 0x71f   : > { %v18622_v23 = vadd.f32 %v13665_v15, %v13095_v9 }
 0x720   : > { %v11350_v37 = vpop.f32.mrf.mxu1 }
 0x721   : > { %v18616_v40 = vadd.f32 %v11350_v37, %v434_v14  ;;  %v11397_v2 = vpack.c.bf16 %v18622_v23, %v18625_v13  ;;  %v13334_v14 = vld [vmem:[#allocation13 + $0x20] sm:$0xff]  }
 0x722   : > { %12663 = vmatpush3.bf16.msra.mxu1 %v13334_v14 }
 0x723   : > { %v11396_v21 = vpack.c.bf16 %v18616_v40, %v18614_v39 }
 0x725   : > { %11551 = vmatmul.mubr.bf16.gmra.mxu0 %v11396_v21 }
 0x726   : > { %11560 = vmatprep.mubr.bf16.mxu0 %v19446_v17 }
 0x72d   : > { %11561 = vmatmul.mubr.bf16.gmra.mxu0 %v11397_v2 }
 0x72e   : > { %11570 = vmatprep.mubr.bf16.mxu0 %v19446_v17 }
 0x732   : > { %v13098_v55 = vpop.f32.mrf.mxu1 }
 0x733   : > { %v18641_v57 = vadd.f32 %v13668_v53, %v13098_v55 }
 0x734   : > { %v11363_v16 = vpop.f32.mrf.mxu1 }
 0x735   : > { %v18630_v41 = vadd.f32 %v11363_v16, %v437_v63  ;;  %v13335_v63 = vld [vmem:[#allocation13 + $0x58] sm:$0xff]  }
 0x736   : > { %v13099_v30 = vpop.f32.mrf.mxu1  ;;  %12664 = vmatprep.subr.bf16.mxu1 %v13335_v63 }
 0x737   : > { %v18638_v42 = vadd.f32 %v13667_v7, %v13099_v30 }
 0x738   : > { %v11366_v36 = vpop.f32.mrf.mxu1 }
 0x739   : > { %v18632_v43 = vadd.f32 %v11366_v36, %v438_v18  ;;  %v11399_v50 = vpack.c.bf16 %v18638_v42, %v18641_v57  ;;  %v13336_v18 = vld [vmem:[#allocation13 + $0x18] sm:$0xff]  }
 0x73a   : > { %12665 = vmatpush3.bf16.msra.mxu1 %v13336_v18 }
 0x73b   : > { %v11398_v29 = vpack.c.bf16 %v18632_v43, %v18630_v41  ;;  %12666 = vmatprep.subr.bf16.mxu1 %v13337_v61 }
 0x73d   : > { %11571 = vmatmul.mubr.bf16.gmra.mxu0 %v11398_v29 }
 0x73e   : > { %11580 = vmatprep.mubr.bf16.mxu0 %v19446_v17  ;;  %v13102_v60 = vpop.f32.mrf.mxu1  ;;  %12667 = vmatpush3.bf16.msra.mxu1 %v13338_v31 }
 0x73f   : > { %v18658_v19 = vadd.f32 %v13670_v5, %v13102_v60 }
 0x740   : > { %v11379_v52 = vpop.f32.mrf.mxu1 }
 0x741   : > { %v18649_v11 = vadd.f32 %v11379_v52, %v18593_v51  ;;  %v13339_v51 = vld [vmem:[#allocation13 + $0x48] sm:$0xff]  }
 0x742   : > { %v13103_v26 = vpop.f32.mrf.mxu1  ;;  %12668 = vmatprep.subr.bf16.mxu1 %v13339_v51 }
 0x743   : > { %v18655_v3 = vadd.f32 %v13669_v22, %v13103_v26 }
 0x744   : > { %v11382_v54 = vpop.f32.mrf.mxu1 }
 0x745   : > { %11581 = vmatmul.mubr.bf16.gmra.mxu0 %v11399_v50  ;;  %v18645_v24 = vadd.f32 %v11382_v54, %v442_v10  ;;  %v11401_v47 = vpack.c.bf16 %v18655_v3, %v18658_v19  ;;  %v13340_v10 = vld [vmem:[#allocation13 + $0x8] sm:$0xff]  }
 0x746   : > { %11590 = vmatprep.mubr.bf16.mxu0 %v19446_v17  ;;  %12669 = vmatpush3.bf16.msra.mxu1 %v13340_v10 }
 0x747   : > { %v11400_v6 = vpack.c.bf16 %v18645_v24, %v18649_v11  ;;  %12670 = vmatprep.subr.bf16.mxu1 %v13341_v59 }
 0x74d   : > { %11591 = vmatmul.mubr.bf16.gmra.mxu0 %v11400_v6 }
 0x74e   : > { %11600 = vmatprep.mubr.bf16.mxu0 %v19446_v17  ;;  %v13342_v17 = vld [vmem:[#allocation13] sm:$0xff]  }
 0x74f   : > { %12671 = vmatpush3.bf16.msra.mxu1 %v13342_v17 }
 0x755   : > { %11601 = vmatmul.mubr.bf16.gmra.mxu0 %v11401_v47 }
 0x7c2   : > { %v11532_v58 = vpop.f32.mrf.mxu0 }
 0x7c3   : > { %v11643_v33 = vmul.f32 0.70710677, %v11532_v58  ;;  %v11611_v50 = vmul.f32 0.5, %v11532_v58 }
 0x7c4   : > { %v11534_v0 = vpop.f32.mrf.mxu0 }
 0x7c5   : > { %v11644_v49 = vmul.f32 0.70710677, %v11534_v0  ;;  %v11612_v60 = vmul.f32 0.5, %v11534_v0 }
 0x7c6   : > { %v11536_v44 = vpop.f32.mrf.mxu0 }
 0x7c7   : > { %13599 = verf.f32 %v11644_v49  ;;  %v11645_v25 = vmul.f32 0.70710677, %v11536_v44  ;;  %v11613_v7 = vmul.f32 0.5, %v11536_v44 }
 0x7c8   : > { %13601 = verf.f32 %v11643_v33  ;;  %v11538_v1 = vpop.f32.mrf.mxu0 }
 0x7c9   : > { %13603 = verf.f32 %v11645_v25  ;;  %v11646_v28 = vmul.f32 0.70710677, %v11538_v1  ;;  %v11614_v53 = vmul.f32 0.5, %v11538_v1 }
 0x7ca   : > { %v11542_v34 = vpop.f32.mrf.mxu0 }
 0x7cb   : > { %13605 = verf.f32 %v11646_v28  ;;  %v11647_v38 = vmul.f32 0.70710677, %v11542_v34  ;;  %v11615_v10 = vmul.f32 0.5, %v11542_v34 }
 0x7cc   : > { %v11544_v48 = vpop.f32.mrf.mxu0 }
 0x7cd   : > { %v11648_v56 = vmul.f32 0.70710677, %v11544_v48  ;;  %v11616_v61 = vmul.f32 0.5, %v11544_v48 }
 0x7ce   : > { %v11546_v9 = vpop.f32.mrf.mxu0 }
 0x7cf   : > { %13607 = verf.f32 %v11648_v56  ;;  %v11649_v37 = vmul.f32 0.70710677, %v11546_v9  ;;  %v11617_v18 = vmul.f32 0.5, %v11546_v9 }
 0x7d0   : > { %13609 = verf.f32 %v11647_v38  ;;  %v11548_v21 = vpop.f32.mrf.mxu0 }
 0x7d1   : > { %13611 = verf.f32 %v11649_v37  ;;  %v11650_v15 = vmul.f32 0.70710677, %v11548_v21  ;;  %v11618_v31 = vmul.f32 0.5, %v11548_v21 }
 0x7d3   : > { %13613 = verf.f32 %v11650_v15 }
 0x7d4   : > { %v13600_v35 = vpop.eup %13599 }
 0x7d5   : > { %v13602_v2 = vpop.eup %13601  ;;  %v11708_v16 = vadd.f32 1.0, %v13600_v35 }
 0x7d6   : > { %v13604_v55 = vpop.eup %13603  ;;  %v11707_v29 = vadd.f32 1.0, %v13602_v2 }
 0x7d7   : > { %v11709_v30 = vadd.f32 1.0, %v13604_v55  ;;  %v11740_v54 = vmul.f32 %v11708_v16, %v11612_v60 }
 0x7d8   : > { %v13606_v36 = vpop.eup %13605  ;;  %v11739_v5 = vmul.f32 %v11707_v29, %v11611_v50 }
 0x7d9   : > { %v11710_v52 = vadd.f32 1.0, %v13606_v36  ;;  %v11741_v26 = vmul.f32 %v11709_v30, %v11613_v7 }
 0x7db   : > { %v11742_v6 = vmul.f32 %v11710_v52, %v11614_v53  ;;  %v11771_v4 = vpack.c.bf16 %v11741_v26, %v11739_v5 }
 0x7dc   : > { %v13608_v22 = vpop.eup %13607 }
 0x7dd   : > { %v13610_v47 = vpop.eup %13609  ;;  %v11772_v12 = vpack.c.bf16 %v11742_v6, %v11740_v54  ;;  %v11712_v32 = vadd.f32 1.0, %v13608_v22 }
 0x7de   : > { %v13612_v45 = vpop.eup %13611  ;;  %v11711_v63 = vadd.f32 1.0, %v13610_v47 }
 0x7df   : > { %v11713_v62 = vadd.f32 1.0, %v13612_v45  ;;  %11954 = vmatprep.mubr.bf16.mxu1 %v11772_v12  ;;  %v11744_v17 = vmul.f32 %v11712_v32, %v11616_v61 }
 0x7e0   : > { %v13614_v14 = vpop.eup %13613  ;;  %11955 = vmatmul.mubr.bf16.vlgmr.msra.gmra.mxu1 %v11771_v4  ;;  %v11743_v0 = vmul.f32 %v11711_v63, %v11615_v10 }
 0x7e1   : > { %v11714_v51 = vadd.f32 1.0, %v13614_v14  ;;  %v11745_v59 = vmul.f32 %v11713_v62, %v11617_v18 }
 0x7e3   : > { %v11746_v58 = vmul.f32 %v11714_v51, %v11618_v31  ;;  %v11773_v28 = vpack.c.bf16 %v11745_v59, %v11743_v0 }
 0x7e5   : > { %v11552_v33 = vpop.f32.mrf.mxu0  ;;  %v11774_v25 = vpack.c.bf16 %v11746_v58, %v11744_v17 }
 0x7e6   : > { %v11651_v49 = vmul.f32 0.70710677, %v11552_v33  ;;  %v11619_v62 = vmul.f32 0.5, %v11552_v33 }
 0x7e7   : > { %v11554_v44 = vpop.f32.mrf.mxu0  ;;  %11962 = vmatprep.mubr.bf16.mxu1 %v11774_v25 }
 0x7e8   : > { %v11652_v1 = vmul.f32 0.70710677, %v11554_v44  ;;  %13615 = verf.f32 %v11651_v49  ;;  %11963 = vmatmul.mubr.bf16.gmra.mxu1 %v11773_v28  ;;  %v11620_v4 = vmul.f32 0.5, %v11554_v44 }
 0x7e9   : > { %v11556_v38 = vpop.f32.mrf.mxu0 }
 0x7ea   : > { %v11653_v56 = vmul.f32 0.70710677, %v11556_v38  ;;  %13617 = verf.f32 %v11652_v1  ;;  %v11621_v54 = vmul.f32 0.5, %v11556_v38 }
 0x7eb   : > { %v11558_v48 = vpop.f32.mrf.mxu0 }
 0x7ec   : > { %13619 = verf.f32 %v11653_v56  ;;  %v11654_v9 = vmul.f32 0.70710677, %v11558_v48  ;;  %v11622_v6 = vmul.f32 0.5, %v11558_v48 }
 0x7ed   : > { %v11562_v34 = vpop.f32.mrf.mxu0 }
 0x7ee   : > { %13621 = verf.f32 %v11654_v9  ;;  %v11655_v37 = vmul.f32 0.70710677, %v11562_v34 }
 0x7ef   : > { %v11564_v21 = vpop.f32.mrf.mxu0 }
 0x7f0   : > { %v11656_v15 = vmul.f32 0.70710677, %v11564_v21  ;;  %13623 = verf.f32 %v11655_v37 }
 0x7f1   : > { %v11566_v35 = vpop.f32.mrf.mxu0 }
 0x7f2   : > { %v11657_v2 = vmul.f32 0.70710677, %v11566_v35  ;;  %13625 = verf.f32 %v11656_v15  ;;  %v11625_v28 = vmul.f32 0.5, %v11566_v35 }
 0x7f3   : > { %v11568_v55 = vpop.f32.mrf.mxu0 }
 0x7f4   : > { %13627 = verf.f32 %v11657_v2  ;;  %v11658_v16 = vmul.f32 0.70710677, %v11568_v55  ;;  %v11626_v38 = vmul.f32 0.5, %v11568_v55  ;;  %v11623_v2 = vmul.f32 0.5, %v11562_v34 }
 0x7f5   : > { %v13616_v30 = vpop.eup %13615 }
 0x7f6   : > { %13629 = verf.f32 %v11658_v16  ;;  %v11715_v47 = vadd.f32 1.0, %v13616_v30  ;;  %v11624_v16 = vmul.f32 0.5, %v11564_v21 }
 0x7f7   : > { %v13618_v29 = vpop.eup %13617 }
 0x7f8   : > { %v11716_v26 = vadd.f32 1.0, %v13618_v29  ;;  %v11747_v59 = vmul.f32 %v11715_v47, %v11619_v62 }
 0x7f9   : > { %v13620_v60 = vpop.eup %13619 }
 0x7fa   : > { %v11717_v52 = vadd.f32 1.0, %v13620_v60  ;;  %v11748_v61 = vmul.f32 %v11716_v26, %v11620_v4 }
 0x7fb   : > { %v13622_v50 = vpop.eup %13621 }
 0x7fc   : > { %v11718_v12 = vadd.f32 1.0, %v13622_v50  ;;  %v11749_v14 = vmul.f32 %v11717_v52, %v11621_v54 }
 0x7fd   : > { %v18662_v36 = vpop.f32.mrf.mxu0  ;;  %v13624_v18 = vpop.eup %13623 }
 0x7fe   : > { %v11659_v7 = vmul.f32 0.70710677, %v18662_v36  ;;  %v11750_v63 = vmul.f32 %v11718_v12, %v11622_v6  ;;  %v11775_v33 = vpack.c.bf16 %v11749_v14, %v11747_v59  ;;  %v11719_v9 = vadd.f32 1.0, %v13624_v18 }
 0x7ff   : > { %v18665_v53 = vpop.f32.mrf.mxu0  ;;  %v13626_v10 = vpop.eup %13625 }
 0x800   : > { %v11660_v22 = vmul.f32 0.70710677, %v18665_v53  ;;  %13631 = verf.f32 %v11659_v7  ;;  %v11776_v49 = vpack.c.bf16 %v11750_v63, %v11748_v61  ;;  %v11720_v1 = vadd.f32 1.0, %v13626_v10 }
 0x801   : > { %v18668_v5 = vpop.f32.mrf.mxu0  ;;  %v13628_v58 = vpop.eup %13627  ;;  %v11751_v52 = vmul.f32 %v11719_v9, %v11623_v2  ;;  %v11628_v59 = vmul.f32 0.5, %v18665_v53 }
 0x802   : > { %v11661_v45 = vmul.f32 0.70710677, %v18668_v5  ;;  %13633 = verf.f32 %v11660_v22  ;;  %v11721_v44 = vadd.f32 1.0, %v13628_v58  ;;  %11970 = vmatprep.mubr.bf16.mxu1 %v11776_v49  ;;  %v11752_v55 = vmul.f32 %v11720_v1, %v11624_v16 }
 0x803   : > { %v18671_v32 = vpop.f32.mrf.mxu0  ;;  %v13630_v25 = vpop.eup %13629  ;;  %11971 = vmatmul.mubr.bf16.gmra.mxu1 %v11775_v33  ;;  %v11629_v63 = vmul.f32 0.5, %v18668_v5 }
 0x804   : > { %13635 = verf.f32 %v11661_v45  ;;  %v11662_v31 = vmul.f32 0.70710677, %v18671_v32  ;;  %v11722_v37 = vadd.f32 1.0, %v13630_v25  ;;  %v11753_v29 = vmul.f32 %v11721_v44, %v11625_v28 }
 0x805   : > { %v18674_v51 = vpop.f32.mrf.mxu0  ;;  %v11630_v58 = vmul.f32 0.5, %v18671_v32 }
 0x806   : > { %v11663_v17 = vmul.f32 0.70710677, %v18674_v51  ;;  %13637 = verf.f32 %v11662_v31  ;;  %v11754_v7 = vmul.f32 %v11722_v37, %v11626_v38  ;;  %v11777_v21 = vpack.c.bf16 %v11753_v29, %v11751_v52 }
 0x807   : > { %v18677_v0 = vpop.f32.mrf.mxu0  ;;  %v11627_v31 = vmul.f32 0.5, %v18662_v36 }
 0x808   : > { %v11664_v56 = vmul.f32 0.70710677, %v18677_v0  ;;  %13639 = verf.f32 %v11663_v17  ;;  %v11778_v6 = vpack.c.bf16 %v11754_v7, %v11752_v55  ;;  %v11632_v7 = vmul.f32 0.5, %v18677_v0 }
 0x809   : > { %v18680_v48 = vpop.f32.mrf.mxu0 }
 0x80a   : > { %v11665_v15 = vmul.f32 0.70710677, %v18680_v48  ;;  %13641 = verf.f32 %v11664_v56  ;;  %11978 = vmatprep.mubr.bf16.mxu1 %v11778_v6 }
 0x80b   : > { %v11588_v30 = vpop.f32.mrf.mxu0  ;;  %11979 = vmatmul.mubr.bf16.gmra.mxu1 %v11777_v21 }
 0x80c   : > { %13643 = verf.f32 %v11665_v15  ;;  %v11666_v35 = vmul.f32 0.70710677, %v11588_v30 }
 0x80d   : > { %v18683_v60 = vpop.f32.mrf.mxu0  ;;  %v13632_v50 = vpop.eup %13631 }
 0x80e   : > { %13645 = verf.f32 %v11666_v35  ;;  %v11667_v26 = vmul.f32 0.70710677, %v18683_v60  ;;  %v11723_v62 = vadd.f32 1.0, %v13632_v50  ;;  %v11633_v35 = vmul.f32 0.5, %v18680_v48 }
 0x80f   : > { %v18686_v54 = vpop.f32.mrf.mxu0  ;;  %v13634_v22 = vpop.eup %13633  ;;  %v11634_v50 = vmul.f32 0.5, %v11588_v30 }
 0x810   : > { %v11668_v34 = vmul.f32 0.70710677, %v18686_v54  ;;  %v11724_v14 = vadd.f32 1.0, %v13634_v22  ;;  %v11755_v25 = vmul.f32 %v11723_v62, %v11627_v31  ;;  %v11631_v22 = vmul.f32 0.5, %v18674_v51 }
 0x811   : > { %v13636_v47 = vpop.eup %13635  ;;  %v18689_v12 = vpop.f32.mrf.mxu0  ;;  %v11636_v31 = vmul.f32 0.5, %v18686_v54 }
 0x812   : > { %v11725_v45 = vadd.f32 1.0, %v13636_v47  ;;  %13647 = verf.f32 %v11668_v34  ;;  %v11669_v4 = vmul.f32 0.70710677, %v18689_v12  ;;  %v11756_v1 = vmul.f32 %v11724_v14, %v11628_v59 }
 0x813   : > { %13649 = verf.f32 %v11667_v26  ;;  %v11598_v18 = vpop.f32.mrf.mxu0  ;;  %v13638_v61 = vpop.eup %13637  ;;  %v11637_v59 = vmul.f32 0.5, %v18689_v12 }
 0x814   : > { %13651 = verf.f32 %v11669_v4  ;;  %v11670_v10 = vmul.f32 0.70710677, %v11598_v18  ;;  %v11757_v17 = vmul.f32 %v11725_v45, %v11629_v63  ;;  %v11726_v49 = vadd.f32 1.0, %v13638_v61 }
 0x815   : > { %v18696_v44 = vpop.f32.mrf.mxu0  ;;  %v13640_v33 = vpop.eup %13639  ;;  %v11638_v51 = vmul.f32 0.5, %v11598_v18 }
 0x816   : > { %13653 = verf.f32 %v11670_v10  ;;  %v11758_v5 = vmul.f32 %v11726_v49, %v11630_v58  ;;  %v11671_v28 = vmul.f32 0.70710677, %v18696_v44  ;;  %v11779_v37 = vpack.c.bf16 %v11757_v17, %v11755_v25 }
 0x817   : > { %v11604_v38 = vpop.f32.mrf.mxu0  ;;  %v13642_v56 = vpop.eup %13641  ;;  %v11727_v52 = vadd.f32 1.0, %v13640_v33  ;;  %v11635_v58 = vmul.f32 0.5, %v18683_v60  ;;  %v11639_v60 = vmul.f32 0.5, %v18696_v44 }
 0x818   : > { %v11672_v36 = vmul.f32 0.70710677, %v11604_v38  ;;  %v11780_v53 = vpack.c.bf16 %v11758_v5, %v11756_v1  ;;  %v11728_v2 = vadd.f32 1.0, %v13642_v56  ;;  %13655 = verf.f32 %v11671_v28 }
 0x819   : > { %v13644_v9 = vpop.eup %13643  ;;  %v11606_v15 = vpop.f32.mrf.mxu0  ;;  %v11759_v0 = vmul.f32 %v11727_v52, %v11631_v22  ;;  %v11640_v18 = vmul.f32 0.5, %v11604_v38 }
 0x81a   : > { %v11729_v16 = vadd.f32 1.0, %v13644_v9  ;;  %v11673_v32 = vmul.f32 0.70710677, %v11606_v15  ;;  %13657 = verf.f32 %v11672_v36  ;;  %11986 = vmatprep.mubr.bf16.mxu1 %v11780_v53  ;;  %v11760_v34 = vmul.f32 %v11728_v2, %v11632_v7 }
 0x81b   : > { %v13646_v29 = vpop.eup %13645  ;;  %v11608_v55 = vpop.f32.mrf.mxu0  ;;  %11987 = vmatmul.mubr.bf16.gmra.mxu1 %v11779_v37  ;;  %v11641_v12 = vmul.f32 0.5, %v11606_v15  ;;  %v18709_v15 = vld [vmem:[%s18825_s7] ss:$0 sm:$0xff] }
 0x81c   : > { %v11730_v26 = vadd.f32 1.0, %v13646_v29  ;;  %13659 = verf.f32 %v11673_v32  ;;  %v11674_v6 = vmul.f32 0.70710677, %v11608_v55  ;;  %v11761_v21 = vmul.f32 %v11729_v16, %v11633_v35 }
 0x81d   : > { %v11642_v16 = vmul.f32 0.5, %v11608_v55 }
 0x81e   : > { %v11762_v47 = vmul.f32 %v11730_v26, %v11634_v50  ;;  %13661 = verf.f32 %v11674_v6  ;;  %v11781_v14 = vpack.c.bf16 %v11761_v21, %v11759_v0 }
 0x81f   : > { %v13648_v45 = vpop.eup %13647 }
 0x820   : > { %v13650_v4 = vpop.eup %13649  ;;  %v11782_v62 = vpack.c.bf16 %v11762_v47, %v11760_v34  ;;  %v11732_v63 = vadd.f32 1.0, %v13648_v45 }
 0x821   : > { %v13652_v48 = vpop.eup %13651  ;;  %v11731_v10 = vadd.f32 1.0, %v13650_v4 }
 0x822   : > { %v11733_v61 = vadd.f32 1.0, %v13652_v48  ;;  %11994 = vmatprep.mubr.bf16.mxu1 %v11782_v62  ;;  %v11764_v49 = vmul.f32 %v11732_v63, %v11636_v31 }
 0x823   : > { %v13654_v30 = vpop.eup %13653  ;;  %11995 = vmatmul.mubr.bf16.gmra.mxu1 %v11781_v14  ;;  %v11763_v28 = vmul.f32 %v11731_v10, %v11635_v58 }
 0x824   : > { %v11734_v17 = vadd.f32 1.0, %v13654_v30  ;;  %v11765_v33 = vmul.f32 %v11733_v61, %v11637_v59 }
 0x825   : > { %v13656_v1 = vpop.eup %13655 }
 0x826   : > { %v11766_v25 = vmul.f32 %v11734_v17, %v11638_v51  ;;  %v11783_v9 = vpack.c.bf16 %v11765_v33, %v11763_v28  ;;  %v11735_v2 = vadd.f32 1.0, %v13656_v1 }
 0x827   : > { %v13658_v5 = vpop.eup %13657 }
 0x828   : > { %v11784_v56 = vpack.c.bf16 %v11766_v25, %v11764_v49  ;;  %v11736_v54 = vadd.f32 1.0, %v13658_v5  ;;  %v11767_v52 = vmul.f32 %v11735_v2, %v11639_v60 }
 0x829   : > { %v13660_v36 = vpop.eup %13659 }
 0x82a   : > { %v11737_v37 = vadd.f32 1.0, %v13660_v36  ;;  %12002 = vmatprep.mubr.bf16.mxu1 %v11784_v56  ;;  %v11768_v7 = vmul.f32 %v11736_v54, %v11640_v18 }
 0x82b   : > { %v13662_v53 = vpop.eup %13661  ;;  %12003 = vmatmul.mubr.bf16.gmra.mxu1 %v11783_v9 }
 0x82c   : > { %v11738_v32 = vadd.f32 1.0, %v13662_v53  ;;  %v11769_v29 = vmul.f32 %v11737_v37, %v11641_v12 }
 0x82e   : > { %v11770_v35 = vmul.f32 %v11738_v32, %v11642_v16  ;;  %v11785_v26 = vpack.c.bf16 %v11769_v29, %v11767_v52 }
 0x830   : > { %v11786_v50 = vpack.c.bf16 %v11770_v35, %v11768_v7 }
 0x832   : > { %12010 = vmatprep.mubr.bf16.mxu1 %v11786_v50 }
 0x833   : > { %12011 = vmatmul.mubr.bf16.gmra.mxu1 %v11785_v26 }
 0x8a0   : > { %v12672_v6 = vpop.f32.mrf.mxu1 }
 0x8a2   : > { %v12673_v38 = vpop.f32.mrf.mxu1 }
 0x8a3   : > { %v12674_v55 = vadd.f32 %v12673_v38, %v12672_v6 }
 0x8a4   : > { %v12675_v22 = vpop.f32.mrf.mxu1 }
 0x8a5   : > { %v11957_v44 = vadd.f32 %v12674_v55, %v18709_v15 }
 0x8a6   : > { %v12676_v34 = vpop.f32.mrf.mxu1 }
 0x8a7   : > { %v12019_v21 = vadd.f32 %v11957_v44, %v18598_v27  ;;  %v12677_v47 = vadd.f32 %v12676_v34, %v12675_v22 }
 0x8a8   : > { %v12678_v45 = vpop.f32.mrf.mxu1 }
 0x8a9   : > { %12035 = vst [vmem:[%s18715_s14] sm:$0xff] %v12019_v21  ;;  %v11960_v4 = vadd.f32 %v12677_v47, %v18709_v15 }
 0x8aa   : > { %v12679_v0 = vpop.f32.mrf.mxu1 }
 0x8ab   : > { %v12020_v62 = vadd.f32 %v11960_v4, %v18600_v20  ;;  %v12680_v48 = vadd.f32 %v12679_v0, %v12678_v45 }
 0x8ac   : > { %v12681_v14 = vpop.f32.mrf.mxu1 }
 0x8ad   : > { %12036 = vst [vmem:[%s18715_s14 + $0x8] sm:$0xff] %v12020_v62  ;;  %v11965_v27 = vadd.f32 %v12680_v48, %v18709_v15 }
 0x8ae   : > { %v12682_v63 = vpop.f32.mrf.mxu1 }
 0x8af   : > { %v12021_v61 = vadd.f32 %v11965_v27, %v18609_v8  ;;  %v12683_v30 = vadd.f32 %v12682_v63, %v12681_v14 }
 0x8b1   : > { %12037 = vst [vmem:[%s18715_s14 + $0x10] sm:$0xff] %v12021_v61  ;;  %v11968_v31 = vadd.f32 %v12683_v30, %v18709_v15 }
 0x8b3   : > { %v12022_v10 = vadd.f32 %v11968_v31, %v18606_v46 }
 0x8b5   : > { %12038 = vst [vmem:[%s18715_s14 + $0x18] sm:$0xff] %v12022_v10 }
 0x8c3   : > { %v12684_v59 = vpop.f32.mrf.mxu1 }
 0x8c5   : > { %v12685_v51 = vpop.f32.mrf.mxu1 }
 0x8c6   : > { %v12686_v20 = vadd.f32 %v12685_v51, %v12684_v59 }
 0x8c7   : > { %v12687_v17 = vpop.f32.mrf.mxu1 }
 0x8c8   : > { %v11973_v58 = vadd.f32 %v12686_v20, %v18709_v15 }
 0x8c9   : > { %v12688_v49 = vpop.f32.mrf.mxu1 }
 0x8ca   : > { %v12023_v33 = vadd.f32 %v11973_v58, %v18614_v39  ;;  %v12689_v25 = vadd.f32 %v12688_v49, %v12687_v17 }
 0x8cb   : > { %v12690_v8 = vpop.f32.mrf.mxu1 }
 0x8cc   : > { %12039 = vst [vmem:[%s18715_s14 + $0x20] sm:$0xff] %v12023_v33  ;;  %v11976_v1 = vadd.f32 %v12689_v25, %v18709_v15 }
 0x8cd   : > { %v12691_v5 = vpop.f32.mrf.mxu1 }
 0x8ce   : > { %v12024_v46 = vadd.f32 %v11976_v1, %v18616_v40  ;;  %v12692_v28 = vadd.f32 %v12691_v5, %v12690_v8 }
 0x8cf   : > { %v12693_v56 = vpop.f32.mrf.mxu1 }
 0x8d0   : > { %12040 = vst [vmem:[%s18715_s14 + $0x28] sm:$0xff] %v12024_v46  ;;  %v11981_v36 = vadd.f32 %v12692_v28, %v18709_v15 }
 0x8d1   : > { %v12694_v9 = vpop.f32.mrf.mxu1 }
 0x8d2   : > { %v12025_v37 = vadd.f32 %v11981_v36, %v18625_v13  ;;  %v12695_v54 = vadd.f32 %v12694_v9, %v12693_v56 }
 0x8d4   : > { %12041 = vst [vmem:[%s18715_s14 + $0x30] sm:$0xff] %v12025_v37  ;;  %v11984_v39 = vadd.f32 %v12695_v54, %v18709_v15 }
 0x8d6   : > { %v12026_v2 = vadd.f32 %v11984_v39, %v18622_v23 }
 0x8d8   : > { %12042 = vst [vmem:[%s18715_s14 + $0x38] sm:$0xff] %v12026_v2 }
 0x8db   : > { %v12696_v53 = vpop.f32.mrf.mxu1 }
 0x8dd   : > { %v12697_v12 = vpop.f32.mrf.mxu1 }
 0x8de   : > { %v12698_v40 = vadd.f32 %v12697_v12, %v12696_v53 }
 0x8df   : > { %v12699_v18 = vpop.f32.mrf.mxu1 }
 0x8e0   : > { %v11989_v16 = vadd.f32 %v12698_v40, %v18709_v15 }
 0x8e1   : > { %v12700_v32 = vpop.f32.mrf.mxu1 }
 0x8e2   : > { %v12027_v60 = vadd.f32 %v11989_v16, %v18630_v41  ;;  %v12701_v29 = vadd.f32 %v12700_v32, %v12699_v18 }
 0x8e3   : > { %v12702_v13 = vpop.f32.mrf.mxu1 }
 0x8e4   : > { %12043 = vst [vmem:[%s18715_s14 + $0x40] sm:$0xff] %v12027_v60  ;;  %v11992_v7 = vadd.f32 %v12701_v29, %v18709_v15 }
 0x8e5   : > { %v12703_v35 = vpop.f32.mrf.mxu1 }
 0x8e6   : > { %v12028_v23 = vadd.f32 %v11992_v7, %v18632_v43  ;;  %v12704_v52 = vadd.f32 %v12703_v35, %v12702_v13 }
 0x8e7   : > { %v12705_v50 = vpop.f32.mrf.mxu1 }
 0x8e8   : > { %12044 = vst [vmem:[%s18715_s14 + $0x48] sm:$0xff] %v12028_v23  ;;  %v11997_v26 = vadd.f32 %v12704_v52, %v18709_v15 }
 0x8e9   : > { %v12706_v6 = vpop.f32.mrf.mxu1 }
 0x8ea   : > { %v12029_v38 = vadd.f32 %v11997_v26, %v18641_v57  ;;  %v12707_v55 = vadd.f32 %v12706_v6, %v12705_v50 }
 0x8eb   : > { %v12708_v41 = vpop.f32.mrf.mxu1 }
 0x8ec   : > { %12045 = vst [vmem:[%s18715_s14 + $0x50] sm:$0xff] %v12029_v38  ;;  %v12000_v22 = vadd.f32 %v12707_v55, %v18709_v15 }
 0x8ed   : > { %v12709_v44 = vpop.f32.mrf.mxu1 }
 0x8ee   : > { %v12030_v34 = vadd.f32 %v12000_v22, %v18638_v42  ;;  %v12710_v21 = vadd.f32 %v12709_v44, %v12708_v41 }
 0x8ef   : > { %v12711_v43 = vpop.f32.mrf.mxu1 }
 0x8f0   : > { %12046 = vst [vmem:[%s18715_s14 + $0x58] sm:$0xff] %v12030_v34  ;;  %v12005_v47 = vadd.f32 %v12710_v21, %v18709_v15 }
 0x8f1   : > { %v12712_v45 = vpop.f32.mrf.mxu1 }
 0x8f2   : > { %v12031_v4 = vadd.f32 %v12005_v47, %v18649_v11  ;;  %v12713_v57 = vadd.f32 %v12712_v45, %v12711_v43 }
 0x8f3   : > { %v12714_v0 = vpop.f32.mrf.mxu1 }
 0x8f4   : > { %12047 = vst [vmem:[%s18715_s14 + $0x60] sm:$0xff] %v12031_v4  ;;  %v12008_v62 = vadd.f32 %v12713_v57, %v18709_v15 }
 0x8f5   : > { %v12715_v48 = vpop.f32.mrf.mxu1 }
 0x8f6   : > { %v12032_v42 = vadd.f32 %v12008_v62, %v18645_v24  ;;  %v12716_v14 = vadd.f32 %v12715_v48, %v12714_v0 }
 0x8f7   : > { %v12717_v27 = vpop.f32.mrf.mxu1 }
 0x8f8   : > { %12048 = vst [vmem:[%s18715_s14 + $0x68] sm:$0xff] %v12032_v42  ;;  %v12013_v63 = vadd.f32 %v12716_v14, %v18709_v15 }
 0x8f9   : > { %v12718_v61 = vpop.f32.mrf.mxu1 }
 0x8fa   : > { %v12033_v11 = vadd.f32 %v12013_v63, %v18658_v19  ;;  %v12719_v30 = vadd.f32 %v12718_v61, %v12717_v27 }
 0x8fc   : > { %12049 = vst [vmem:[%s18715_s14 + $0x70] sm:$0xff] %v12033_v11  ;;  %v12016_v31 = vadd.f32 %v12719_v30, %v18709_v15 }
 0x8fe   : > { %v12034_v24 = vadd.f32 %v12016_v31, %v18655_v3 }
 0x900   : > { %12050 = vst [vmem:[%s18715_s14 + $0x78] sm:$0xff] %v12034_v24 }
 0x901   : > { %13868 = shalt.err (!%p13865_p13)
}
 0x902   : > { %s13869_s15 = scalar_lea.hbm %s18766_s22, 2048  ;;  %s13873_s12 = scalar_lea.hbm %s18826_s8, 4096 }
 0x903   : > { %p13870_p2 = scmp.ne.s32.totalorder %s18766_s22, %s13869_s15  ;;  %p13874_p8 = scmp.lt.s32.totalorder %s18766_s22, %s18826_s8 }
 0x904   : > { %p13875_p12 = scmp.lt.s32.totalorder %s13873_s12, %s13869_s15 }
 0x905   : > { %p13871_p9 = pnand %p13870_p2, %p14156_p11 }
 0x906   : > { %p13876_p4 = por %p13875_p12, %p13874_p8 }
 0x907   : > { %p13872_p6 = pneg %p13871_p9 }
 0x909   : > { %p13877_p1 = pnand %p13876_p4, %p13872_p6 }
 0x90b   : > { %13880 = shalt.err (!%p13877_p1)
}
 0x90c   : > { %s13967_s14 = smov 128   ;;  %s13968_s23 = smov 8  }
 0x90d   : > { %13162 = dma.vmem_to_hbm [thread:$0]  (%p14156_p11), %s18768_s24, 2048, %s18766_s22, %s12052_s1, %s13967_s14, %s13967_s14, %s13968_s23  }
 0x90e PF: > { %s12082_s16 = sand.u32 1, %s13927_s27   ;;  %p19447_p3 = scmp.ne.s32.totalorder %s19007_s20, 0 }
 0x90f   : > { %p19448_p5 = scmp.ge.s32.totalorder %s13947_s10, 2  ;;  %s12083_s26 = scalar_lea.sflag [#allocation4], %s12082_s16 }
 0x911   : > { %p13188_p10 = pnand %p19448_p5, %p19447_p3 }
 0x913   : > { %p13189_p0 = pneg %p13188_p10 }
 0x915   : > { %13922 = dma.done.wait (%p13189_p0), %s12083_s26, 2048  }
 0x916   : > { %13924 = vsyncadd (%p13189_p0), %s12083_s26, 4294965248  ;;  %s27_s10 = sadd.s32 1, %s13947_s10   ;;  %s19449_s27 = smov %s13931_s28 }
 0x917   : > { %p24_p7 = scmp.ge.s32.totalorder %s27_s10, 4   ;;  %s19450_s28 = smov %s13935_s29 }
 0x918   : > { %s19451_s29 = smov %s14161_s19  ;;  %s19452_s30 = smov %s13943_s9 }
 0x919   : > { %s19453_s9 = smov %s19455_s21  ;;  %26 = sbr.rel (!%p24_p7) target bundleno = 15 (0xf), region = 122 }
 0x91e   :  { %12088 = vsyncpa [#allocation3], 1 }
 0x91f   :  { %12090 = vsyncpa [#allocation3 + $0x1], 1 }
 0x920   :  { %12091 = vsyncpa [#allocation6], 1 }
 0x921   :  { %12092 = vsyncpa [#allocation9], 1 }
 0x922   :  { %12093 = vsyncpa [#allocation12], 1 }
 0x923   :  { %12094 = vsyncpa [#allocation4], 1 }
 0x924   :  { %12096 = vsyncpa [#allocation4 + $0x1], 1 }

</bundles_post_ra>
